<compile_context>
chip_gen: v6e
topology: v6e:2x2x1
jax: 0.10.0
libtpu: 0.0.40
codegen_flags: <defaults>
</compile_context>

<pallas_src>
import functools

import jax
import jax.numpy as jnp
from jax.experimental import pallas as pl
from jax.experimental.pallas import tpu as pltpu


def pointnet_densecls_kernel(x_ref,                     # (Bt*N, 3)   f32
                             w1_ref, b1_ref,            # (3,64) f32, (1,64) f32
                             w2_ref, b2_ref,            # (64,128) bf16, (1,128) f32
                             w3_ref, b3_ref,            # (128,1024) bf16, (1,1024) f32
                             wg_ref, wp_ref, bh1_ref,   # (1024,512) bf16, (64,512) bf16, (1,512) f32
                             wh2_ref, bh2_ref,          # (512,256) bf16, (1,256) f32
                             wh3_ref, bh3_ref,          # (256,128) bf16, (1,128) f32
                             wh4_ref, bh4_ref,          # (128,k) bf16, (1,k) f32
                             out_ref,                   # (Bt*N, k)  f32
                             *, bt, n):
    rows = bt * n
    x = x_ref[...]                                        # (rows, 3) f32

    # ---------------- PointNetfeat ----------------
    # Layer 1 (K=3): three broadcast FMAs on the VPU instead of a 3/128-useful
    # MXU contraction (kept in f32; exact).
    w1 = w1_ref[...]
    h1 = (x[:, 0:1] * w1[0:1, :]
          + x[:, 1:2] * w1[1:2, :]
          + x[:, 2:3] * w1[2:3, :]
          + b1_ref[...])
    h1 = jnp.maximum(h1, 0.0)                             # (rows, 64) f32
    h1b = h1.astype(jnp.bfloat16)                         # per-point feature, reused by head

    # Layer 2: bf16 matmul, f32 accum; ReLU after the bf16 cast (identical,
    # halves the vregs touched by the max).
    h2 = (jnp.dot(h1b, w2_ref[...], preferred_element_type=jnp.float32)
          + b2_ref[...]).astype(jnp.bfloat16)
    h2 = jnp.maximum(h2, 0.0)                             # (rows, 128) bf16

    # Layer 3: raw matmul only. Bias-add + ReLU are hoisted across the global
    # max-pool (per-channel bias and ReLU commute with max over points), so the
    # (rows,1024) f32 slab sees no elementwise work at all.
    h3 = jnp.dot(h2, w3_ref[...],
                 preferred_element_type=jnp.float32)      # (rows, 1024) f32
    g = jnp.max(h3.reshape(bt, n, 1024), axis=1) + b3_ref[...]
    g = jnp.maximum(g, 0.0)                               # (bt, 1024) f32

    # ---------------- Dense head ----------------
    # Linear(1088,512) over concat([global(1024), pointwise(64)]) split in two:
    #   global part:    once per batch element, then broadcast over points
    #   pointwise part: 64-wide contraction per point
    gpart = (jnp.dot(g.astype(jnp.bfloat16), wg_ref[...],
                     preferred_element_type=jnp.float32) + bh1_ref[...])      # (bt, 512)
    ppart = jnp.dot(h1b, wp_ref[...],
                    preferred_element_type=jnp.float32)                       # (rows, 512)
    f1 = (ppart.reshape(bt, n, 512) + gpart.reshape(bt, 1, 512)).astype(jnp.bfloat16)
    f1 = jnp.maximum(f1, 0.0).reshape(rows, 512)          # (rows, 512) bf16

    f2 = (jnp.dot(f1, wh2_ref[...], preferred_element_type=jnp.float32)
          + bh2_ref[...]).astype(jnp.bfloat16)
    f2 = jnp.maximum(f2, 0.0)                             # (rows, 256) bf16

    f3 = (jnp.dot(f2, wh3_ref[...], preferred_element_type=jnp.float32)
          + bh3_ref[...]).astype(jnp.bfloat16)
    f3 = jnp.maximum(f3, 0.0)                             # (rows, 128) bf16

    out_ref[...] = (jnp.dot(f3, wh4_ref[...],
                            preferred_element_type=jnp.float32)
                    + bh4_ref[...])                       # (rows, k) f32 logits


def _choose_bt(B, Np):
    """Pick the batch tile from a VMEM footprint model.

    Targets ~1024-row slabs per grid step (amortizes per-step overhead and the
    fixed MXU weight pushes of the (1024,512) global matmul on v5e/v6e) while
    keeping an even grid of >= 2 steps when the batch allows it, so v7x's two
    TensorCores both get work on the "parallel" batch axis, and staying well
    under the explicit 32 MiB scoped-VMEM limit.
    """
    bytes_per_row = 10 * 1024          # f32 (rows,1024) h3 slab + 512-wide head intermediates
    weight_bytes = 3 * (1 << 20)       # single-buffered bf16 weights + biases + slack
    work_budget = 24 * (1 << 20)       # headroom inside the 32 MiB vmem_limit_bytes
    max_rows = max(Np, (work_budget - weight_bytes) // bytes_per_row)
    target_rows = min(1024, max_rows)
    if B == 1:
        return 1
    steps = max(2, -(-(B * Np) // target_rows))   # at least 2 steps for 2-TC chips
    steps = min(B, steps + (steps & 1))           # even step count when possible
    return -(-B // steps)


def pointnet_densecls(x, params, *, bt=None):
    """x: (B, N, 3) float32 -> (B, N, k) logits."""
    B, N, D = x.shape
    assert D == 3
    k = params["wf4"].shape[1]

    # Pad the point axis to a multiple of 8 by repeating the last point so the
    # in-kernel (rows,C)->(bt,n,C) reshapes never split (8,128) sublane tiles.
    # Duplicated points do not change the max-pool; their outputs are dropped.
    Np = -(-N // 8) * 8
    if Np != N:
        x = jnp.concatenate(
            [x, jnp.broadcast_to(x[:, -1:, :], (B, Np - N, D))], axis=1)

    if bt is None:
        bt = _choose_bt(B, Np)
    bt = max(1, min(bt, B))

    # Pad the batch so it divides by bt (padded rows are finite and discarded).
    Bp = -(-B // bt) * bt
    if Bp != B:
        x = jnp.concatenate([x, jnp.zeros((Bp - B, Np, D), x.dtype)], axis=0)
    rows = bt * Np
    assert rows % 8 == 0 or Bp // bt == 1

    x2d = x.reshape(Bp * Np, D)

    # bf16 weight casts done once here (not per grid step). Biases stay f32.
    bf16 = lambda w: w.astype(jnp.bfloat16)
    wg = bf16(params["wf1"][:1024])    # global-feature part of Linear(1088,512)
    wp = bf16(params["wf1"][1024:])    # pointwise-feature part
    args = (x2d,
            params["w1"], params["b1"],
            bf16(params["w2"]), params["b2"],
            bf16(params["w3"]), params["b3"],
            wg, wp, params["bf1"],
            bf16(params["wf2"]), params["bf2"],
            bf16(params["wf3"]), params["bf3"],
            bf16(params["wf4"]), params["bf4"])

    def const_spec(a):
        nd = a.ndim
        # Constant index_map => fetched once; Buffered(1) avoids allocating a
        # second (never used) VMEM buffer per weight/bias (~1.7 MiB total).
        return pl.BlockSpec(a.shape, lambda b, _nd=nd: (0,) * _nd,
                            pipeline_mode=pl.Buffered(1))

    in_specs = [pl.BlockSpec((rows, D), lambda b: (b, 0))]
    in_specs += [const_spec(a) for a in args[1:]]

    grid_spec = pltpu.PrefetchScalarGridSpec(
        num_scalar_prefetch=0,
        grid=(Bp // bt,),
        in_specs=in_specs,
        out_specs=pl.BlockSpec((rows, k), lambda b: (b, 0)),
    )

    flops_per_pt = 2 * (3 * 64 + 64 * 128 + 128 * 1024
                        + 64 * 512 + 512 * 256 + 256 * 128 + 128 * k)
    flops = int(Bp * Np * flops_per_pt + Bp * 2 * 1024 * 512)
    bytes_accessed = int(x2d.size * 4 + Bp * Np * k * 4
                         + sum(int(a.size) * a.dtype.itemsize for a in args[1:]))

    out2d = pl.pallas_call(
        functools.partial(pointnet_densecls_kernel, bt=bt, n=Np),
        out_shape=jax.ShapeDtypeStruct((Bp * Np, k), jnp.float32),
        grid_spec=grid_spec,
        compiler_params=pltpu.CompilerParams(
            dimension_semantics=("parallel",),
            vmem_limit_bytes=32 * 1024 * 1024),
        cost_estimate=pl.CostEstimate(flops=flops, transcendentals=0,
                                      bytes_accessed=bytes_accessed),
    )(*args)

    return out2d.reshape(Bp, Np, k)[:B, :N]


def init_params(key, k=2):
    """Deterministic synthetic parameters; BN folded into the Linear it follows."""
    keys = jax.random.split(key, 40)
    it = iter(range(40))

    def linear(din, dout):
        lim = 1.0 / jnp.sqrt(jnp.float32(din))
        w = jax.random.uniform(keys[next(it)], (din, dout), jnp.float32, -lim, lim)
        b = jax.random.uniform(keys[next(it)], (dout,), jnp.float32, -lim, lim)
        return w, b

    def bn_fold(w, b, eps=1e-5):
        dout = w.shape[1]
        gamma = 1.0 + 0.1 * jax.random.normal(keys[next(it)], (dout,), jnp.float32)
        beta = 0.1 * jax.random.normal(keys[next(it)], (dout,), jnp.float32)
        mean = 0.05 * jax.random.normal(keys[next(it)], (dout,), jnp.float32)
        var = 1.0 + 0.1 * jax.random.uniform(keys[next(it)], (dout,), jnp.float32)
        scale = gamma / jnp.sqrt(var + eps)
        shift = beta - mean * scale
        return w * scale[None, :], b * scale + shift

    w1, b1 = bn_fold(*linear(3, 64))          # feat mlp1
    w2, b2 = bn_fold(*linear(64, 128))        # feat mlp2
    w3, b3 = bn_fold(*linear(128, 1024))      # feat mlp3
    wf1, bf1 = bn_fold(*linear(1088, 512))    # head Linear(1088,512)+BN
    wf2, bf2 = bn_fold(*linear(512, 256))     # head Linear(512,256)+BN
    wf3, bf3 = bn_fold(*linear(256, 128))     # head Linear(256,128)+BN
    wf4, bf4 = linear(128, k)                 # head Linear(128,k) (no BN)

    row = lambda v: v.reshape(1, -1)
    return dict(w1=w1, b1=row(b1), w2=w2, b2=row(b2), w3=w3, b3=row(b3),
                wf1=wf1, bf1=row(bf1), wf2=wf2, bf2=row(bf2),
                wf3=wf3, bf3=row(bf3), wf4=wf4, bf4=row(bf4))


def pointnet_densecls_ref(x, params):
    """Pure-JAX reference mirroring the PyTorch forward (bf16 matmuls, f32 accum)."""
    B, N, D = x.shape
    bf16 = lambda a: a.astype(jnp.bfloat16)
    f32 = jnp.float32

    xf = x.reshape(B * N, D)
    h1 = jnp.maximum(jnp.dot(xf, params["w1"],
                             precision=jax.lax.Precision.HIGHEST) + params["b1"], 0.0)
    h2 = jnp.maximum(jnp.dot(bf16(h1), bf16(params["w2"]),
                             preferred_element_type=f32) + params["b2"], 0.0)
    h3 = jnp.maximum(jnp.dot(bf16(h2), bf16(params["w3"]),
                             preferred_element_type=f32) + params["b3"], 0.0)
    g = jnp.max(h3.reshape(B, N, -1), axis=1)                         # (B, 1024)
    gexp = jnp.repeat(g[:, None, :], N, axis=1).reshape(B * N, 1024)
    cat = jnp.concatenate([gexp, h1], axis=1)                         # (B*N, 1088)
    f1 = jnp.maximum(jnp.dot(bf16(cat), bf16(params["wf1"]),
                             preferred_element_type=f32) + params["bf1"], 0.0)
    f2 = jnp.maximum(jnp.dot(bf16(f1), bf16(params["wf2"]),
                             preferred_element_type=f32) + params["bf2"], 0.0)
    f3 = jnp.maximum(jnp.dot(bf16(f2), bf16(params["wf3"]),
                             preferred_element_type=f32) + params["bf3"], 0.0)
    logits = jnp.dot(bf16(f3), bf16(params["wf4"]),
                     preferred_element_type=f32) + params["bf4"]
    return logits.reshape(B, N, -1)


if __name__ == "__main__":
    key = jax.random.PRNGKey(0)
    kx, kp = jax.random.split(key)

    B, N, k = 8, 64, 2            # (batch, points, classes); bt=4 -> 256-row slabs, 2 grid steps
    x = jax.random.normal(kx, (B, N, 3), dtype=jnp.float32)
    params = init_params(kp, k=k)

    out = pointnet_densecls(x, params)
    out = jax.block_until_ready(out)
    assert out.shape == (B, N, k)

    ref = pointnet_densecls_ref(x, params)
    assert jnp.allclose(out, ref, atol=3e-3, rtol=3e-3), (
        float(jnp.max(jnp.abs(out - ref))))

    print("KERNEL_OK")
</pallas_src>

<mosaic_0001>
module attributes {stable_mosaic.version = 11 : i64} {
  func.func @pointnet_densecls_kernel(%arg0: i32, %arg1: memref<256x3xf32, #tpu.memory_space<vmem>>, %arg2: memref<3x64xf32, #tpu.memory_space<vmem>>, %arg3: memref<1x64xf32, #tpu.memory_space<vmem>>, %arg4: memref<64x128xbf16, #tpu.memory_space<vmem>>, %arg5: memref<1x128xf32, #tpu.memory_space<vmem>>, %arg6: memref<128x1024xbf16, #tpu.memory_space<vmem>>, %arg7: memref<1x1024xf32, #tpu.memory_space<vmem>>, %arg8: memref<1024x512xbf16, #tpu.memory_space<vmem>>, %arg9: memref<64x512xbf16, #tpu.memory_space<vmem>>, %arg10: memref<1x512xf32, #tpu.memory_space<vmem>>, %arg11: memref<512x256xbf16, #tpu.memory_space<vmem>>, %arg12: memref<1x256xf32, #tpu.memory_space<vmem>>, %arg13: memref<256x128xbf16, #tpu.memory_space<vmem>>, %arg14: memref<1x128xf32, #tpu.memory_space<vmem>>, %arg15: memref<128x2xbf16, #tpu.memory_space<vmem>>, %arg16: memref<1x2xf32, #tpu.memory_space<vmem>>, %arg17: memref<256x2xf32, #tpu.memory_space<vmem>>) attributes {dimension_semantics = [#tpu.dimension_semantics<parallel>], iteration_bounds = array<i64: 2>, scalar_prefetch = 0 : i64, scratch_operands = 0 : i64, tpu.core_type = #tpu.core_type<tc>, window_params = [{transform_indices = @transform_0, window_bounds = array<i64: 256, 3>}, {pipeline_mode = #tpu.pipeline_mode<synchronous>, transform_indices = @transform_1, window_bounds = array<i64: 3, 64>}, {pipeline_mode = #tpu.pipeline_mode<synchronous>, transform_indices = @transform_2, window_bounds = array<i64: 1, 64>}, {pipeline_mode = #tpu.pipeline_mode<synchronous>, transform_indices = @transform_3, window_bounds = array<i64: 64, 128>}, {pipeline_mode = #tpu.pipeline_mode<synchronous>, transform_indices = @transform_4, window_bounds = array<i64: 1, 128>}, {pipeline_mode = #tpu.pipeline_mode<synchronous>, transform_indices = @transform_5, window_bounds = array<i64: 128, 1024>}, {pipeline_mode = #tpu.pipeline_mode<synchronous>, transform_indices = @transform_6, window_bounds = array<i64: 1, 1024>}, {pipeline_mode = #tpu.pipeline_mode<synchronous>, transform_indices = @transform_7, window_bounds = array<i64: 1024, 512>}, {pipeline_mode = #tpu.pipeline_mode<synchronous>, transform_indices = @transform_8, window_bounds = array<i64: 64, 512>}, {pipeline_mode = #tpu.pipeline_mode<synchronous>, transform_indices = @transform_9, window_bounds = array<i64: 1, 512>}, {pipeline_mode = #tpu.pipeline_mode<synchronous>, transform_indices = @transform_10, window_bounds = array<i64: 512, 256>}, {pipeline_mode = #tpu.pipeline_mode<synchronous>, transform_indices = @transform_11, window_bounds = array<i64: 1, 256>}, {pipeline_mode = #tpu.pipeline_mode<synchronous>, transform_indices = @transform_12, window_bounds = array<i64: 256, 128>}, {pipeline_mode = #tpu.pipeline_mode<synchronous>, transform_indices = @transform_13, window_bounds = array<i64: 1, 128>}, {pipeline_mode = #tpu.pipeline_mode<synchronous>, transform_indices = @transform_14, window_bounds = array<i64: 128, 2>}, {pipeline_mode = #tpu.pipeline_mode<synchronous>, transform_indices = @transform_15, window_bounds = array<i64: 1, 2>}, {transform_indices = @transform_16, window_bounds = array<i64: 256, 2>}]} {
    %c0 = arith.constant 0 : index
    %c0_0 = arith.constant 0 : index
    %0 = vector.load %arg1[%c0, %c0_0] : memref<256x3xf32, #tpu.memory_space<vmem>>, vector<256x3xf32>
    %c0_1 = arith.constant 0 : index
    %c0_2 = arith.constant 0 : index
    %1 = vector.load %arg2[%c0_1, %c0_2] : memref<3x64xf32, #tpu.memory_space<vmem>>, vector<3x64xf32>
    %2 = vector.extract_strided_slice %0 {offsets = [0, 0], sizes = [256, 1], strides = [1, 1]} : vector<256x3xf32> to vector<256x1xf32>
    %3 = vector.extract_strided_slice %1 {offsets = [0, 0], sizes = [1, 64], strides = [1, 1]} : vector<3x64xf32> to vector<1x64xf32>
    %4 = vector.broadcast %2 : vector<256x1xf32> to vector<256x64xf32>
    %5 = vector.broadcast %3 : vector<1x64xf32> to vector<256x64xf32>
    %6 = arith.mulf %4, %5 : vector<256x64xf32>
    %7 = vector.extract_strided_slice %0 {offsets = [0, 1], sizes = [256, 1], strides = [1, 1]} : vector<256x3xf32> to vector<256x1xf32>
    %8 = vector.extract_strided_slice %1 {offsets = [1, 0], sizes = [1, 64], strides = [1, 1]} : vector<3x64xf32> to vector<1x64xf32>
    %9 = vector.broadcast %7 : vector<256x1xf32> to vector<256x64xf32>
    %10 = vector.broadcast %8 : vector<1x64xf32> to vector<256x64xf32>
    %11 = arith.mulf %9, %10 : vector<256x64xf32>
    %12 = arith.addf %6, %11 : vector<256x64xf32>
    %13 = vector.extract_strided_slice %0 {offsets = [0, 2], sizes = [256, 1], strides = [1, 1]} : vector<256x3xf32> to vector<256x1xf32>
    %14 = vector.extract_strided_slice %1 {offsets = [2, 0], sizes = [1, 64], strides = [1, 1]} : vector<3x64xf32> to vector<1x64xf32>
    %15 = vector.broadcast %13 : vector<256x1xf32> to vector<256x64xf32>
    %16 = vector.broadcast %14 : vector<1x64xf32> to vector<256x64xf32>
    %17 = arith.mulf %15, %16 : vector<256x64xf32>
    %18 = arith.addf %12, %17 : vector<256x64xf32>
    %c0_3 = arith.constant 0 : index
    %c0_4 = arith.constant 0 : index
    %19 = vector.load %arg3[%c0_3, %c0_4] : memref<1x64xf32, #tpu.memory_space<vmem>>, vector<1x64xf32>
    %20 = vector.broadcast %19 : vector<1x64xf32> to vector<256x64xf32>
    %21 = arith.addf %18, %20 : vector<256x64xf32>
    %cst = arith.constant 0.000000e+00 : f32
    %22 = vector.broadcast %cst : f32 to vector<256x64xf32>
    %23 = arith.maximumf %21, %22 : vector<256x64xf32>
    %24 = arith.truncf %23 : vector<256x64xf32> to vector<256x64xbf16>
    %c0_5 = arith.constant 0 : index
    %c0_6 = arith.constant 0 : index
    %25 = vector.load %arg4[%c0_5, %c0_6] : memref<64x128xbf16, #tpu.memory_space<vmem>>, vector<64x128xbf16>
    %cst_7 = arith.constant dense<0.000000e+00> : vector<256x128xf32>
    %26 = tpu.matmul %24, %25, %cst_7 {dimension_numbers = #tpu.dot_dimension_numbers<[1], [0], [0], [1], [0, 0, 1, 1], [], []>} : vector<256x64xbf16>, vector<64x128xbf16>, vector<256x128xf32> -> vector<256x128xf32>
    %c0_8 = arith.constant 0 : index
    %c0_9 = arith.constant 0 : index
    %27 = vector.load %arg5[%c0_8, %c0_9] : memref<1x128xf32, #tpu.memory_space<vmem>>, vector<1x128xf32>
    %28 = vector.broadcast %27 : vector<1x128xf32> to vector<256x128xf32>
    %29 = arith.addf %26, %28 : vector<256x128xf32>
    %30 = arith.truncf %29 : vector<256x128xf32> to vector<256x128xbf16>
    %cst_10 = arith.constant 0.000000e+00 : bf16
    %31 = vector.broadcast %cst_10 : bf16 to vector<256x128xbf16>
    %32 = arith.maximumf %30, %31 : vector<256x128xbf16>
    %c0_11 = arith.constant 0 : index
    %c0_12 = arith.constant 0 : index
    %33 = vector.load %arg6[%c0_11, %c0_12] : memref<128x1024xbf16, #tpu.memory_space<vmem>>, vector<128x1024xbf16>
    %cst_13 = arith.constant dense<0.000000e+00> : vector<256x1024xf32>
    %34 = tpu.matmul %32, %33, %cst_13 {dimension_numbers = #tpu.dot_dimension_numbers<[1], [0], [0], [1], [0, 0, 1, 1], [], []>} : vector<256x128xbf16>, vector<128x1024xbf16>, vector<256x1024xf32> -> vector<256x1024xf32>
    %35 = vector.shape_cast %34 : vector<256x1024xf32> to vector<4x64x1024xf32>
    %cst_14 = arith.constant dense<0xFF800000> : vector<4x1024xf32>
    %36 = vector.multi_reduction <maximumf>, %35, %cst_14 [1] : vector<4x64x1024xf32> to vector<4x1024xf32>
    %c0_15 = arith.constant 0 : index
    %c0_16 = arith.constant 0 : index
    %37 = vector.load %arg7[%c0_15, %c0_16] : memref<1x1024xf32, #tpu.memory_space<vmem>>, vector<1x1024xf32>
    %38 = vector.broadcast %37 : vector<1x1024xf32> to vector<4x1024xf32>
    %39 = arith.addf %36, %38 : vector<4x1024xf32>
    %cst_17 = arith.constant 0.000000e+00 : f32
    %40 = vector.broadcast %cst_17 : f32 to vector<4x1024xf32>
    %41 = arith.maximumf %39, %40 : vector<4x1024xf32>
    %42 = arith.truncf %41 : vector<4x1024xf32> to vector<4x1024xbf16>
    %c0_18 = arith.constant 0 : index
    %c0_19 = arith.constant 0 : index
    %43 = vector.load %arg8[%c0_18, %c0_19] : memref<1024x512xbf16, #tpu.memory_space<vmem>>, vector<1024x512xbf16>
    %cst_20 = arith.constant dense<0.000000e+00> : vector<4x512xf32>
    %44 = tpu.matmul %42, %43, %cst_20 {dimension_numbers = #tpu.dot_dimension_numbers<[1], [0], [0], [1], [0, 0, 1, 1], [], []>} : vector<4x1024xbf16>, vector<1024x512xbf16>, vector<4x512xf32> -> vector<4x512xf32>
    %c0_21 = arith.constant 0 : index
    %c0_22 = arith.constant 0 : index
    %45 = vector.load %arg10[%c0_21, %c0_22] : memref<1x512xf32, #tpu.memory_space<vmem>>, vector<1x512xf32>
    %46 = vector.broadcast %45 : vector<1x512xf32> to vector<4x512xf32>
    %47 = arith.addf %44, %46 : vector<4x512xf32>
    %c0_23 = arith.constant 0 : index
    %c0_24 = arith.constant 0 : index
    %48 = vector.load %arg9[%c0_23, %c0_24] : memref<64x512xbf16, #tpu.memory_space<vmem>>, vector<64x512xbf16>
    %cst_25 = arith.constant dense<0.000000e+00> : vector<256x512xf32>
    %49 = tpu.matmul %24, %48, %cst_25 {dimension_numbers = #tpu.dot_dimension_numbers<[1], [0], [0], [1], [0, 0, 1, 1], [], []>} : vector<256x64xbf16>, vector<64x512xbf16>, vector<256x512xf32> -> vector<256x512xf32>
    %50 = vector.shape_cast %49 : vector<256x512xf32> to vector<4x64x512xf32>
    %51 = vector.shape_cast %47 : vector<4x512xf32> to vector<4x1x512xf32>
    %52 = vector.broadcast %51 : vector<4x1x512xf32> to vector<4x64x512xf32>
    %53 = arith.addf %50, %52 : vector<4x64x512xf32>
    %54 = arith.truncf %53 : vector<4x64x512xf32> to vector<4x64x512xbf16>
    %cst_26 = arith.constant 0.000000e+00 : bf16
    %55 = vector.broadcast %cst_26 : bf16 to vector<4x64x512xbf16>
    %56 = arith.maximumf %54, %55 : vector<4x64x512xbf16>
    %57 = vector.shape_cast %56 : vector<4x64x512xbf16> to vector<256x512xbf16>
    %c0_27 = arith.constant 0 : index
    %c0_28 = arith.constant 0 : index
    %58 = vector.load %arg11[%c0_27, %c0_28] : memref<512x256xbf16, #tpu.memory_space<vmem>>, vector<512x256xbf16>
    %cst_29 = arith.constant dense<0.000000e+00> : vector<256x256xf32>
    %59 = tpu.matmul %57, %58, %cst_29 {dimension_numbers = #tpu.dot_dimension_numbers<[1], [0], [0], [1], [0, 0, 1, 1], [], []>} : vector<256x512xbf16>, vector<512x256xbf16>, vector<256x256xf32> -> vector<256x256xf32>
    %c0_30 = arith.constant 0 : index
    %c0_31 = arith.constant 0 : index
    %60 = vector.load %arg12[%c0_30, %c0_31] : memref<1x256xf32, #tpu.memory_space<vmem>>, vector<1x256xf32>
    %61 = vector.broadcast %60 : vector<1x256xf32> to vector<256x256xf32>
    %62 = arith.addf %59, %61 : vector<256x256xf32>
    %63 = arith.truncf %62 : vector<256x256xf32> to vector<256x256xbf16>
    %cst_32 = arith.constant 0.000000e+00 : bf16
    %64 = vector.broadcast %cst_32 : bf16 to vector<256x256xbf16>
    %65 = arith.maximumf %63, %64 : vector<256x256xbf16>
    %c0_33 = arith.constant 0 : index
    %c0_34 = arith.constant 0 : index
    %66 = vector.load %arg13[%c0_33, %c0_34] : memref<256x128xbf16, #tpu.memory_space<vmem>>, vector<256x128xbf16>
    %cst_35 = arith.constant dense<0.000000e+00> : vector<256x128xf32>
    %67 = tpu.matmul %65, %66, %cst_35 {dimension_numbers = #tpu.dot_dimension_numbers<[1], [0], [0], [1], [0, 0, 1, 1], [], []>} : vector<256x256xbf16>, vector<256x128xbf16>, vector<256x128xf32> -> vector<256x128xf32>
    %c0_36 = arith.constant 0 : index
    %c0_37 = arith.constant 0 : index
    %68 = vector.load %arg14[%c0_36, %c0_37] : memref<1x128xf32, #tpu.memory_space<vmem>>, vector<1x128xf32>
    %69 = vector.broadcast %68 : vector<1x128xf32> to vector<256x128xf32>
    %70 = arith.addf %67, %69 : vector<256x128xf32>
    %71 = arith.truncf %70 : vector<256x128xf32> to vector<256x128xbf16>
    %cst_38 = arith.constant 0.000000e+00 : bf16
    %72 = vector.broadcast %cst_38 : bf16 to vector<256x128xbf16>
    %73 = arith.maximumf %71, %72 : vector<256x128xbf16>
    %c0_39 = arith.constant 0 : index
    %c0_40 = arith.constant 0 : index
    %74 = vector.load %arg15[%c0_39, %c0_40] : memref<128x2xbf16, #tpu.memory_space<vmem>>, vector<128x2xbf16>
    %cst_41 = arith.constant dense<0.000000e+00> : vector<256x2xf32>
    %75 = tpu.matmul %73, %74, %cst_41 {dimension_numbers = #tpu.dot_dimension_numbers<[1], [0], [0], [1], [0, 0, 1, 1], [], []>} : vector<256x128xbf16>, vector<128x2xbf16>, vector<256x2xf32> -> vector<256x2xf32>
    %c0_42 = arith.constant 0 : index
    %c0_43 = arith.constant 0 : index
    %76 = vector.load %arg16[%c0_42, %c0_43] : memref<1x2xf32, #tpu.memory_space<vmem>>, vector<1x2xf32>
    %77 = vector.broadcast %76 : vector<1x2xf32> to vector<256x2xf32>
    %78 = arith.addf %75, %77 : vector<256x2xf32>
    %c0_44 = arith.constant 0 : index
    %c0_45 = arith.constant 0 : index
    %79 = vector.load %arg17[%c0_44, %c0_45] : memref<256x2xf32, #tpu.memory_space<vmem>>, vector<256x2xf32>
    tpu.vector_store %arg17[%c0_44, %c0_45], %78 {strides = array<i32>} : memref<256x2xf32, #tpu.memory_space<vmem>>, vector<256x2xf32>,
    return
  }
  func.func @transform_0(%arg0: i32) -> (i32, i32) {
    %c0_i32 = arith.constant 0 : i32
    %c0_i32_0 = arith.constant 0 : i32
    return %arg0, %c0_i32 : i32, i32
  }
  func.func @transform_1(%arg0: i32) -> (i32, i32) {
    %c0_i32 = arith.constant 0 : i32
    %c0_i32_0 = arith.constant 0 : i32
    %c0_i32_1 = arith.constant 0 : i32
    return %c0_i32, %c0_i32_0 : i32, i32
  }
  func.func @transform_2(%arg0: i32) -> (i32, i32) {
    %c0_i32 = arith.constant 0 : i32
    %c0_i32_0 = arith.constant 0 : i32
    %c0_i32_1 = arith.constant 0 : i32
    return %c0_i32, %c0_i32_0 : i32, i32
  }
  func.func @transform_3(%arg0: i32) -> (i32, i32) {
    %c0_i32 = arith.constant 0 : i32
    %c0_i32_0 = arith.constant 0 : i32
    %c0_i32_1 = arith.constant 0 : i32
    return %c0_i32, %c0_i32_0 : i32, i32
  }
  func.func @transform_4(%arg0: i32) -> (i32, i32) {
    %c0_i32 = arith.constant 0 : i32
    %c0_i32_0 = arith.constant 0 : i32
    %c0_i32_1 = arith.constant 0 : i32
    return %c0_i32, %c0_i32_0 : i32, i32
  }
  func.func @transform_5(%arg0: i32) -> (i32, i32) {
    %c0_i32 = arith.constant 0 : i32
    %c0_i32_0 = arith.constant 0 : i32
    %c0_i32_1 = arith.constant 0 : i32
    return %c0_i32, %c0_i32_0 : i32, i32
  }
  func.func @transform_6(%arg0: i32) -> (i32, i32) {
    %c0_i32 = arith.constant 0 : i32
    %c0_i32_0 = arith.constant 0 : i32
    %c0_i32_1 = arith.constant 0 : i32
    return %c0_i32, %c0_i32_0 : i32, i32
  }
  func.func @transform_7(%arg0: i32) -> (i32, i32) {
    %c0_i32 = arith.constant 0 : i32
    %c0_i32_0 = arith.constant 0 : i32
    %c0_i32_1 = arith.constant 0 : i32
    return %c0_i32, %c0_i32_0 : i32, i32
  }
  func.func @transform_8(%arg0: i32) -> (i32, i32) {
    %c0_i32 = arith.constant 0 : i32
    %c0_i32_0 = arith.constant 0 : i32
    %c0_i32_1 = arith.constant 0 : i32
    return %c0_i32, %c0_i32_0 : i32, i32
  }
  func.func @transform_9(%arg0: i32) -> (i32, i32) {
    %c0_i32 = arith.constant 0 : i32
    %c0_i32_0 = arith.constant 0 : i32
    %c0_i32_1 = arith.constant 0 : i32
    return %c0_i32, %c0_i32_0 : i32, i32
  }
  func.func @transform_10(%arg0: i32) -> (i32, i32) {
    %c0_i32 = arith.constant 0 : i32
    %c0_i32_0 = arith.constant 0 : i32
    %c0_i32_1 = arith.constant 0 : i32
    return %c0_i32, %c0_i32_0 : i32, i32
  }
  func.func @transform_11(%arg0: i32) -> (i32, i32) {
    %c0_i32 = arith.constant 0 : i32
    %c0_i32_0 = arith.constant 0 : i32
    %c0_i32_1 = arith.constant 0 : i32
    return %c0_i32, %c0_i32_0 : i32, i32
  }
  func.func @transform_12(%arg0: i32) -> (i32, i32) {
    %c0_i32 = arith.constant 0 : i32
    %c0_i32_0 = arith.constant 0 : i32
    %c0_i32_1 = arith.constant 0 : i32
    return %c0_i32, %c0_i32_0 : i32, i32
  }
  func.func @transform_13(%arg0: i32) -> (i32, i32) {
    %c0_i32 = arith.constant 0 : i32
    %c0_i32_0 = arith.constant 0 : i32
    %c0_i32_1 = arith.constant 0 : i32
    return %c0_i32, %c0_i32_0 : i32, i32
  }
  func.func @transform_14(%arg0: i32) -> (i32, i32) {
    %c0_i32 = arith.constant 0 : i32
    %c0_i32_0 = arith.constant 0 : i32
    %c0_i32_1 = arith.constant 0 : i32
    return %c0_i32, %c0_i32_0 : i32, i32
  }
  func.func @transform_15(%arg0: i32) -> (i32, i32) {
    %c0_i32 = arith.constant 0 : i32
    %c0_i32_0 = arith.constant 0 : i32
    %c0_i32_1 = arith.constant 0 : i32
    return %c0_i32, %c0_i32_0 : i32, i32
  }
  func.func @transform_16(%arg0: i32) -> (i32, i32) {
    %c0_i32 = arith.constant 0 : i32
    %c0_i32_0 = arith.constant 0 : i32
    return %arg0, %c0_i32 : i32, i32
  }
}

</mosaic_0001>

<bundles_post_ra>
// kernel: tpu_custom_call.1
= control target key start
LH: loop header
LB: loop body
LE: loop exit
PB: predicated region body
PF: predicated region fallthrough
CT: control target
= control target key end

     0   :  { %s11181_s0 = inlined_call_operand.vmem [shape: f32[512,3], index: 0, kind: input, shape index: {}]   ;;  %s11182_s1 = inlined_call_operand.vmem [shape: f32[3,64], index: 1, kind: input, shape index: {}]   ;;  %s11183_s2 = inlined_call_operand.vmem [shape: f32[1,64], index: 2, kind: input, shape index: {}]   ;;  %s11184_s3 = inlined_call_operand.vmem [shape: bf16[64,128], index: 3, kind: input, shape index: {}]   ;;  %s11185_s4 = inlined_call_operand.vmem [shape: f32[1,128], index: 4, kind: input, shape index: {}]   ;;  %s11186_s5 = inlined_call_operand.vmem [shape: bf16[128,1024], index: 5, kind: input, shape index: {}]   ;;  %s11187_s6 = inlined_call_operand.vmem [shape: f32[1,1024], index: 6, kind: input, shape index: {}]   ;;  %s11188_s7 = inlined_call_operand.hbm [shape: bf16[1024,512], index: 7, kind: input, shape index: {}]   ;;  %s11189_s8 = inlined_call_operand.hbm [shape: bf16[64,512], index: 8, kind: input, shape index: {}]   ;;  %s11190_s9 = inlined_call_operand.vmem [shape: f32[1,512], index: 9, kind: input, shape index: {}]   ;;  %s11191_s10 = inlined_call_operand.hbm [shape: bf16[512,256], index: 10, kind: input, shape index: {}]   ;;  %s11192_s11 = inlined_call_operand.vmem [shape: f32[1,256], index: 11, kind: input, shape index: {}]   ;;  %s11193_s12 = inlined_call_operand.hbm [shape: bf16[256,128], index: 12, kind: input, shape index: {}]   ;;  %s11194_s13 = inlined_call_operand.vmem [shape: f32[1,128], index: 13, kind: input, shape index: {}]   ;;  %s11195_s14 = inlined_call_operand.vmem [shape: bf16[128,2], index: 14, kind: input, shape index: {}]   ;;  %s11196_s15 = inlined_call_operand.vmem [shape: f32[1,2], index: 15, kind: input, shape index: {}]   ;;  %s11197_s16 = inlined_call_operand.vmem [shape: f32[512,2], index: 16, kind: output, shape index: {}]  }
   0x1   :  { %11231 = sst [smem:[#allocation28_spill]] %s11181_s0 }
   0x2   :  { %21 = vsyncpa [#allocation3], 0 }
   0x3   :  { %22 = vsyncpa [#allocation5], 0 }
   0x4   :  { %23 = vsyncpa [#allocation8], 0  ;;  %s9298_s21 = smov 0  }
   0x5 LB: > { %s7693_s22 = sadd.s32 4294967295, %s9197_s21   ;;  %p7695_p0 = scmp.ge.s32.totalorder %s9197_s21, 1  ;;  %s9197_s21 = sphi %s9298_s21, %s29_s21  }
   0x6   : > { %p401_p1 = scmp.lt.s32.totalorder %s9197_s21, 3  ;;  %p9308_p2 = scmp.eq.s32.totalorder %s7693_s22, 0 }
   0x7   : > { %s9199_s25 = smov [#allocation4]   ;;  %s9200_s27 = smov [#allocation2]  }
   0x8   : > { %p9312_p3 = pnand %p7695_p0, %p401_p1  ;;  %s444_s26 = sshll.u32 %s9199_s25, 4  ;;  %s445_s26 = int_to_ptr.vmem [resolvable:$true] %s444_s26 }
   0x9   : > { %s431_s28 = sshll.u32 %s9200_s27, 4  ;;  %s9201_s30 = smov [#allocation6]   ;;  %s9318_s28 = int_to_ptr.vmem [resolvable:$true] %s431_s28 }
   0xa   : > { %p8452_p4 = pneg %p9312_p3  ;;  %s460_s0 = sshll.u32 %s9201_s30, 4  ;;  %s9326_s0 = int_to_ptr.vmem [resolvable:$true] %s460_s0 }
   0xb   : > { %s9086_s17 = scalar_lea.vmem %s445_s26, 2048  ;;  %p9094_p10 = scmp.lt.s32.totalorder %s445_s26, %s445_s26 }
   0xc   : > { %p9322_p5 = pnand %p9308_p2, %p8452_p4  ;;  %p9087_p7 = scmp.ne.s32.totalorder %s445_s26, %s9086_s17 }
   0xd   : > { %p9095_p11 = scmp.lt.s32.totalorder %s9086_s17, %s9086_s17 }
   0xe   : > { %p9077_p6 = pneg %p9322_p5 }
   0xf   : > { %p9096_p12 = por %p9095_p11, %p9094_p10 }
  0x10   : > { %p9089_p8 = pnand %p9087_p7, %p9077_p6 }
  0x12   : > { %p9090_p9 = pneg %p9089_p8 }
  0x14   : > { %p9097_p13 = pnand %p9096_p12, %p9090_p9 }
  0x16   : > { %9100 = shalt.err (!%p9097_p13)
}
  0x17   : > { %s9202_s18 = smov 256   ;;  %s9203_s19 = smov 16  }
  0x18   : > { %8458 = dma.hbm_to_vmem [thread:$0]  (!%p9322_p5), %s11189_s8, 2048, %s445_s26, [#allocation5], %s9202_s18, %s9202_s18, %s9203_s19  }
  0x19   : > { %s9112_s27 = scalar_lea.vmem %s9318_s28, 32768  ;;  %p9120_p7 = scmp.lt.s32.totalorder %s9318_s28, %s9318_s28 }
  0x1a   : > { %p9113_p0 = scmp.ne.s32.totalorder %s9318_s28, %s9112_s27  ;;  %p9121_p8 = scmp.lt.s32.totalorder %s9112_s27, %s9112_s27 }
  0x1c   : > { %p9115_p1 = pnand %p9113_p0, %p9077_p6  ;;  %p9122_p9 = por %p9121_p8, %p9120_p7 }
  0x1e   : > { %p9116_p4 = pneg %p9115_p1 }
  0x20   : > { %p9123_p10 = pnand %p9122_p9, %p9116_p4 }
  0x22   : > { %9126 = shalt.err (!%p9123_p10)
}
  0x23   : > { %8455 = dma.hbm_to_vmem [thread:$0]  (!%p9322_p5), %s11188_s7, 32768, %s9318_s28, [#allocation3], %s9202_s18, %s9202_s18, %s9203_s19  }
  0x24   : > { %s9138_s26 = scalar_lea.vmem %s9326_s0, 8192  ;;  %p9146_p0 = scmp.lt.s32.totalorder %s9326_s0, %s9326_s0 }
  0x25   : > { %p9139_p11 = scmp.ne.s32.totalorder %s9326_s0, %s9138_s26  ;;  %p9147_p1 = scmp.lt.s32.totalorder %s9138_s26, %s9138_s26 }
  0x27   : > { %p9141_p12 = pnand %p9139_p11, %p9077_p6  ;;  %p9148_p4 = por %p9147_p1, %p9146_p0 }
  0x29   : > { %p9142_p13 = pneg %p9141_p12 }
  0x2b   : > { %p9149_p7 = pnand %p9148_p4, %p9142_p13 }
  0x2d   : > { %9152 = shalt.err (!%p9149_p7)
}
  0x2e   : > { %s9204_s20 = smov 128   ;;  %s9205_s25 = smov 8  }
  0x2f   : > { %8461 = dma.hbm_to_vmem [thread:$0]  (!%p9322_p5), %s11191_s10, 8192, %s9326_s0, [#allocation5], %s9204_s20, %s9204_s20, %s9205_s25  }
  0x30   : > { %s9206_s18 = smov [#allocation7]  }
  0x31   : > { %s476_s19 = sshll.u32 %s9206_s18, 4  ;;  %s477_s19 = int_to_ptr.vmem [resolvable:$true] %s476_s19 }
  0x32   : > { %s9164_s30 = scalar_lea.vmem %s477_s19, 2048  ;;  %p9172_p11 = scmp.lt.s32.totalorder %s477_s19, %s477_s19 }
  0x33   : > { %p9165_p8 = scmp.ne.s32.totalorder %s477_s19, %s9164_s30  ;;  %p9173_p12 = scmp.lt.s32.totalorder %s9164_s30, %s9164_s30 }
  0x35   : > { %p9167_p9 = pnand %p9165_p8, %p9077_p6  ;;  %p9174_p13 = por %p9173_p12, %p9172_p11 }
  0x37   : > { %p9168_p10 = pneg %p9167_p9 }
  0x39   : > { %p9175_p0 = pnand %p9174_p13, %p9168_p10 }
  0x3b   : > { %9178 = shalt.err (!%p9175_p0)
}
  0x3c   : > { %s9207_s17 = smov 64   ;;  %s9208_s26 = smov 4  }
  0x3d   : > { %8464 = dma.hbm_to_vmem [thread:$0]  (!%p9322_p5), %s11193_s12, 2048, %s477_s19, [#allocation8], %s9207_s17, %s9207_s17, %s9208_s26  }
  0x3e   : > { %510 = sbr.rel (%p9312_p3) target bundleno = 2139 (0x85b), region = 84 }
  0x43   : > { %9184 = dma.done.wait (%p9308_p2), [#allocation3], 32768  }
  0x44   : > { %9186 = vsyncadd (%p9308_p2), [#allocation3], 4294934528 }
  0x45   : > { %9188 = dma.done.wait (%p9308_p2), [#allocation5], 10240  }
  0x46   : > { %9190 = vsyncadd (%p9308_p2), [#allocation5], 4294957056 }
  0x47   : > { %9192 = dma.done.wait (%p9308_p2), [#allocation8], 2048  }
  0x48   : > { %9194 = vsyncadd (%p9308_p2), [#allocation8], 4294965248  ;;  %s7706_s24 = sshll.u32 %s7693_s22, 5  ;;  %v9209_v0 = vmov 1   ;;  %v11198_v1 = vmov 0   ;;  %s11235_s25 = sld [smem:[#allocation28_spill]]  ;;  %v778_v30 = vlaneseq }
  0x49   : > { %8497 = vset.pattern.permute.xlu0 %v9209_v0  ;;  %8495 = vset.pattern.permute.xlu1 %v9209_v0  ;;  %p573_p3 = scmp.lt.s32.totalorder %s7706_s24, 63  ;;  %v9211_v5 = vmov 2   ;;  %v8542_v10 = vld [vmem:[%s11184_s3 + $0x18] sm:$0xff]   ;;  %v8543_v11 = vld [vmem:[%s11184_s3 + $0x10] sm:$0xff]   ;;  %v8544_v13 = vld [vmem:[%s11184_s3 + $0x8] sm:$0xff]   ;;  %vm1332_vm0 = vcmask 523264  }
  0x4a   : > { %1990 = vmatprep.mubr.bf16.mxu1 %v11198_v1  ;;  %8348 = vmatprep.subr.bf16.mxu0 %v8542_v10  ;;  %v8545_v14 = vld [vmem:[%s11184_s3] sm:$0xff]   ;;  %v9485_v32 = vshrl.u32 %v778_v30, 7  ;;  %vm3627_vm1 = vcmask 1041409   ;;  %vm3630_vm2 = vcmask 1042434   ;;  %vm3633_vm3 = vcmask 1043459  }
  0x4b   : > { %s11270_s24 = smov (!%p573_p3, %s7706_s24), 63  ;;  %8349 = vmatpush3.bf16.msra.mxu0 %v8542_v10  ;;  %v617_v46 = vld [vmem:[%s11182_s1] sm:$0x7]  ;;  %vm7563_vm4 = vcmask 15360  }
  0x4c   : > { %s7707_s29 = sshll.u32 %s11270_s24, 3  ;;  %8350 = vmatprep.subr.bf16.mxu0 %v8543_v11  ;;  %11236 = vst [vmem:[#allocation12_spill] sm:$0xff] %v9485_v32  ;;  %v9492_v36 = vsub.s32 1, %v9485_v32  ;;  %v9497_v38 = vsub.s32 2, %v9485_v32  ;;  %v9500_v39 = vsub.s32 0, %v9485_v32 }
  0x4d   : > { %s11080_s26 = scalar_lea.vmem %s11197_s16, %s7707_s29 }
  0x4e   : > { %s9399_s28 = scalar_lea.vmem %s11235_s25, %s7707_s29  ;;  %11237 = vst [vmem:[#allocation13_spill] sm:$0xff] %v9497_v38  ;;  %v9529_v50 = vrot.slane %v617_v46, %v9492_v36  ;;  %v9533_v52 = vrot.slane %v617_v46, %v9497_v38  ;;  %v9536_v53 = vrot.slane %v617_v46, %v9500_v39 }
  0x4f   : > { %v587_v2 = vld [vmem:[%s9399_s28 + $0x10] sm:$0xff]  ;;  %v585_v3 = vld [vmem:[%s9399_s28] sm:$0xff]  ;;  %v586_v4 = vld [vmem:[%s9399_s28 + $0x8] sm:$0xff]  ;;  %8351 = vmatpush3.bf16.msra.mxu0 %v8543_v11 }
  0x50   : > { %823 = vperm.xlu0 %8497, %v587_v2   ;;  %815 = vperm.xlu1 %8495, %v585_v3   ;;  %v589_v6 = vld [vmem:[%s9399_s28 + $0x20] sm:$0xff]  ;;  %v588_v7 = vld [vmem:[%s9399_s28 + $0x18] sm:$0xff]  ;;  %v594_v9 = vld [vmem:[%s9399_s28 + $0x48] sm:$0xff] }
  0x51   : > { %v592_v8 = vld [vmem:[%s9399_s28 + $0x38] sm:$0xff]  ;;  %v590_v12 = vld [vmem:[%s9399_s28 + $0x28] sm:$0xff]  ;;  %8352 = vmatprep.subr.bf16.mxu0 %v8544_v13  ;;  %v595_v15 = vld [vmem:[%s9399_s28 + $0x50] sm:$0xff] }
  0x52   : > { %v591_v16 = vld [vmem:[%s9399_s28 + $0x30] sm:$0xff]  ;;  %v597_v17 = vld [vmem:[%s9399_s28 + $0x60] sm:$0xff]  ;;  %v9433_v18 = vld [vmem:[%s9399_s28 + $0x88] sm:$0xff] }
  0x53   : > { %8353 = vmatpush3.bf16.msra.mxu0 %v8544_v13  ;;  %v9436_v19 = vld [vmem:[%s9399_s28 + $0x90] sm:$0xff]  ;;  %v593_v20 = vld [vmem:[%s9399_s28 + $0x40] sm:$0xff]  ;;  %v598_v21 = vld [vmem:[%s9399_s28 + $0x68] sm:$0xff] }
  0x54   : > { %8500 = vset.pattern.permute.xlu0 %v9211_v5  ;;  %819 = vperm.xlu1 %8495, %v586_v4   ;;  %v599_v22 = vld [vmem:[%s9399_s28 + $0x70] sm:$0xff]  ;;  %v596_v23 = vld [vmem:[%s9399_s28 + $0x58] sm:$0xff]  ;;  %v9451_v24 = vld [vmem:[%s9399_s28 + $0xa8] sm:$0xff] }
  0x55   : > { %1015 = vperm.xlu0 %8500, %v586_v4   ;;  %8354 = vmatprep.subr.bf16.mxu0 %v8545_v14  ;;  %v9455_v25 = vld [vmem:[%s9399_s28 + $0xb0] sm:$0xff]  ;;  %v600_v26 = vld [vmem:[%s9399_s28 + $0x78] sm:$0xff]  ;;  %v9464_v27 = vld [vmem:[%s9399_s28 + $0xa0] sm:$0xff] }
  0x56   : > { %v9469_v28 = vld [vmem:[%s9399_s28 + $0xb8] sm:$0xff]  ;;  %v9474_v29 = vld [vmem:[%s9399_s28 + $0xc8] sm:$0xff]  ;;  %v9483_v31 = vld [vmem:[%s9399_s28 + $0xd0] sm:$0xff] }
  0x57   : > { %8355 = vmatpush3.bf16.msra.mxu0 %v8545_v14  ;;  %v9489_v35 = vld [vmem:[%s9399_s28 + $0xe0] sm:$0xff]  ;;  %v9510_v44 = vld [vmem:[%s9399_s28 + $0xe8] sm:$0xff]  ;;  %v9521_v48 = vld [vmem:[%s9399_s28 + $0xf0] sm:$0xff] }
  0x58   : > { %8496 = vset.pattern.permute.xlu1 %v11198_v1  ;;  %v9504_v41 = vld [vmem:[%s9399_s28 + $0x80] sm:$0xff]  ;;  %v604_v58 = vld [vmem:[%s9399_s28 + $0x98] sm:$0xff] }
  0x59   : > { %1027 = vperm.xlu0 %8500, %v589_v6   ;;  %635 = vperm.xlu1 %8496, %v588_v7  }
  0x5d   : > { %1039 = vperm.xlu0 %8500, %v592_v8   ;;  %8498 = vset.pattern.permute.xlu1 %v9209_v0 }
  0x5e   : > { %827 = vperm.xlu1 %8498, %v588_v7  }
  0x61   : > { %1047 = vperm.xlu0 %8500, %v594_v9  }
  0x62   : > { %8499 = vset.pattern.permute.xlu1 %v9211_v5 }
  0x63   : > { %1011 = vperm.xlu1 %8499, %v585_v3  }
  0x65   : > { %8511 = vset.pattern.permute.xlu0 %v11198_v1 }
  0x66   : > { %620 = vperm.xlu0 %8511, %v585_v3  }
  0x67   : > { %1019 = vperm.xlu1 %8499, %v587_v2  }
  0x6a   : > { %625 = vperm.xlu0 %8511, %v586_v4  }
  0x6b   : > { %1023 = vperm.xlu1 %8499, %v588_v7  }
  0x6e   : > { %630 = vperm.xlu0 %8511, %v587_v2  }
  0x6f   : > { %8501 = vset.pattern.permute.xlu1 %v11198_v1 }
  0x70   : > { %645 = vperm.xlu1 %8501, %v590_v12  }
  0x72   : > { %640 = vperm.xlu0 %8511, %v589_v6  }
  0x74   : > { %8502 = vset.pattern.permute.xlu1 %v9209_v0 }
  0x75   : > { %831 = vperm.xlu1 %8502, %v589_v6  }
  0x76   : > { %665 = vperm.xlu0 %8511, %v594_v9  }
  0x79   : > { %8503 = vset.pattern.permute.xlu1 %v11198_v1 }
  0x7a   : > { %670 = vperm.xlu0 %8511, %v595_v15   ;;  %650 = vperm.xlu1 %8503, %v591_v16  }
  0x7e   : > { %680 = vperm.xlu0 %8511, %v597_v17   ;;  %655 = vperm.xlu1 %8503, %v592_v8  }
  0x82   : > { %705 = vperm.xlu0 %8511, %v9433_v18   ;;  %8504 = vset.pattern.permute.xlu1 %v9209_v0 }
  0x83   : > { %843 = vperm.xlu1 %8504, %v592_v8   ;;  %v9552_v8 = vld [vmem:[%s9399_s28 + $0xf8] sm:$0xff] }
  0x86   : > { %710 = vperm.xlu0 %8511, %v9436_v19  }
  0x87   : > { %8505 = vset.pattern.permute.xlu1 %v9211_v5 }
  0x88   : > { %1031 = vperm.xlu1 %8505, %v590_v12  }
  0x8a   : > { %8519 = vset.pattern.permute.xlu0 %v9209_v0 }
  0x8b   : > { %835 = vperm.xlu0 %8519, %v590_v12  }
  0x8c   : > { %1035 = vperm.xlu1 %8505, %v591_v16  }
  0x8f   : > { %839 = vperm.xlu0 %8519, %v591_v16  }
  0x90   : > { %8506 = vset.pattern.permute.xlu1 %v11198_v1 }
  0x91   : > { %660 = vperm.xlu1 %8506, %v593_v20  }
  0x93   : > { %855 = vperm.xlu0 %8519, %v595_v15  }
  0x95   : > { %8507 = vset.pattern.permute.xlu1 %v9209_v0 }
  0x96   : > { %847 = vperm.xlu1 %8507, %v593_v20  }
  0x97   : > { %867 = vperm.xlu0 %8519, %v598_v21  }
  0x9a   : > { %851 = vperm.xlu1 %8507, %v594_v9   ;;  %v9557_v9 = vld [vmem:[%s11183_s2] ss:$0 sm:$0xff] }
  0x9b   : > { %871 = vperm.xlu0 %8519, %v599_v22  }
  0x9e   : > { %8508 = vset.pattern.permute.xlu1 %v11198_v1 }
  0x9f   : > { %675 = vperm.xlu1 %8508, %v596_v23   ;;  %887 = vperm.xlu0 %8519, %v9436_v19  }
  0xa3   : > { %8509 = vset.pattern.permute.xlu1 %v9209_v0  ;;  %899 = vperm.xlu0 %8519, %v9451_v24  }
  0xa4   : > { %859 = vperm.xlu1 %8509, %v596_v23  }
  0xa7   : > { %903 = vperm.xlu0 %8519, %v9455_v25  }
  0xa8   : > { %8510 = vset.pattern.permute.xlu1 %v9211_v5 }
  0xa9   : > { %1043 = vperm.xlu1 %8510, %v593_v20  }
  0xab   : > { %8526 = vset.pattern.permute.xlu0 %v9211_v5 }
  0xac   : > { %1059 = vperm.xlu0 %8526, %v597_v17  }
  0xad   : > { %1051 = vperm.xlu1 %8510, %v595_v15  }
  0xb0   : > { %1071 = vperm.xlu0 %8526, %v600_v26  }
  0xb1   : > { %1055 = vperm.xlu1 %8510, %v596_v23  }
  0xb4   : > { %1079 = vperm.xlu0 %8526, %v9433_v18  }
  0xb5   : > { %8512 = vset.pattern.permute.xlu1 %v11198_v1 }
  0xb6   : > { %685 = vperm.xlu1 %8512, %v598_v21  }
  0xb8   : > { %1091 = vperm.xlu0 %8526, %v9464_v27  }
  0xba   : > { %8513 = vset.pattern.permute.xlu1 %v9209_v0 }
  0xbb   : > { %863 = vperm.xlu1 %8513, %v597_v17  }
  0xbc   : > { %1103 = vperm.xlu0 %8526, %v9469_v28  }
  0xbf   : > { %8514 = vset.pattern.permute.xlu1 %v11198_v1 }
  0xc0   : > { %690 = vperm.xlu1 %8514, %v599_v22   ;;  %1111 = vperm.xlu0 %8526, %v9474_v29  }
  0xc4   : > { %695 = vperm.xlu1 %8514, %v600_v26   ;;  %8534 = vset.pattern.permute.xlu0 %v11198_v1 }
  0xc5   : > { %720 = vperm.xlu0 %8534, %v9464_v27  }
  0xc8   : > { %8515 = vset.pattern.permute.xlu1 %v9209_v0 }
  0xc9   : > { %875 = vperm.xlu1 %8515, %v600_v26   ;;  %745 = vperm.xlu0 %8534, %v9474_v29  }
  0xcb   : > { %v816_v33 = vpop.permute.xlu1 %815  ;;  %v824_v34 = vpop.permute.xlu0 %823 }
  0xcc   : > { %v946_v55 = vmul.f32 %v9529_v50, %v816_v33  ;;  %v948_v11 = vmul.f32 %v9529_v50, %v824_v34 }
  0xcd   : > { %8516 = vset.pattern.permute.xlu1 %v9211_v5  ;;  %750 = vperm.xlu0 %8534, %v9483_v31  }
  0xce   : > { %1063 = vperm.xlu1 %8516, %v598_v21  }
  0xcf   : > { %v820_v37 = vpop.permute.xlu1 %819 }
  0xd0   : > { %v1016_v40 = vpop.permute.xlu0 %1015  ;;  %v947_v62 = vmul.f32 %v9529_v50, %v820_v37 }
  0xd1   : > { %760 = vperm.xlu0 %8534, %v9489_v35   ;;  %v1143_v2 = vmul.f32 %v9533_v52, %v1016_v40 }
  0xd2   : > { %1067 = vperm.xlu1 %8516, %v599_v22  }
  0xd4   : > { %v636_v42 = vpop.permute.xlu1 %635  ;;  %v9506_v43 = vpop.permute.xlu0 %1027 }
  0xd5   : > { %8535 = vset.pattern.permute.xlu0 %v9209_v0  ;;  %v785_v3 = vmul.f32 %v9536_v53, %v636_v42 }
  0xd6   : > { %8517 = vset.pattern.permute.xlu1 %v11198_v1  ;;  %919 = vperm.xlu0 %8535, %v9483_v31  }
  0xd7   : > { %700 = vperm.xlu1 %8517, %v9504_v41  }
  0xd8   : > { %v9515_v45 = vpop.permute.xlu0 %1039 }
  0xd9   : > { %v828_v47 = vpop.permute.xlu1 %827 }
  0xda   : > { %931 = vperm.xlu0 %8535, %v9510_v44   ;;  %v949_v59 = vmul.f32 %v9529_v50, %v828_v47 }
  0xdb   : > { %8518 = vset.pattern.permute.xlu1 %v9209_v0 }
  0xdc   : > { %879 = vperm.xlu1 %8518, %v9504_v41   ;;  %v9526_v49 = vpop.permute.xlu0 %1047  ;;  %v981_v12 = vadd.f32 %v949_v59, %v785_v3 }
  0xde   : > { %v1012_v51 = vpop.permute.xlu1 %1011  ;;  %935 = vperm.xlu0 %8535, %v9521_v48  }
  0xdf   : > { %v1142_v60 = vmul.f32 %v9533_v52, %v1012_v51 }
  0xe0   : > { %883 = vperm.xlu1 %8518, %v9433_v18  }
  0xe1   : > { %v621_v54 = vpop.permute.xlu0 %620 }
  0xe2   : > { %v782_v56 = vmul.f32 %v9536_v53, %v621_v54  ;;  %v1020_v57 = vpop.permute.xlu1 %1019  ;;  %8540 = vset.pattern.permute.xlu0 %v9211_v5 }
  0xe3   : > { %1123 = vperm.xlu0 %8540, %v9489_v35   ;;  %v1144_v21 = vmul.f32 %v9533_v52, %v1020_v57 }
  0xe4   : > { %v978_v61 = vadd.f32 %v946_v55, %v782_v56  ;;  %8520 = vset.pattern.permute.xlu1 %v11198_v1 }
  0xe5   : > { %v626_v63 = vpop.permute.xlu0 %625  ;;  %715 = vperm.xlu1 %8520, %v604_v58  }
  0xe6   : > { %v1174_v4 = vadd.f32 %v1142_v60, %v978_v61  ;;  %v783_v6 = vmul.f32 %v9536_v53, %v626_v63  ;;  %v1024_v7 = vpop.permute.xlu1 %1023 }
  0xe7   : > { %v1145_v10 = vmul.f32 %v9533_v52, %v1024_v7  ;;  %1135 = vperm.xlu0 %8540, %v9552_v8   ;;  %v1149_v7 = vmul.f32 %v9533_v52, %v9515_v45 }
  0xe8   : > { %v979_v13 = vadd.f32 %v947_v62, %v783_v6  ;;  %v1213_v18 = vadd.f32 %v9557_v9, %v1174_v4 }
  0xe9   : > { %v631_v14 = vpop.permute.xlu0 %630  ;;  %8521 = vset.pattern.permute.xlu1 %v9209_v0  ;;  %v1177_v16 = vadd.f32 %v1145_v10, %v981_v12 }
  0xea   : > { %v1175_v15 = vadd.f32 %v1143_v2, %v979_v13  ;;  %v784_v17 = vmul.f32 %v9536_v53, %v631_v14  ;;  %891 = vperm.xlu1 %8521, %v604_v58   ;;  %v1245_v34 = vmax.f32 %v1213_v18, 0.0 }
  0xeb   : > { %v646_v20 = vpop.permute.xlu1 %645  ;;  %v1216_v30 = vadd.f32 %v9557_v9, %v1177_v16 }
  0xec   : > { %v980_v22 = vadd.f32 %v948_v11, %v784_v17  ;;  %v1214_v23 = vadd.f32 %v9557_v9, %v1175_v15 }
  0xed   : > { %v641_v26 = vpop.permute.xlu0 %640  ;;  %v1248_v51 = vmax.f32 %v1216_v30, 0.0 }
  0xee   : > { %v1176_v33 = vadd.f32 %v1144_v21, %v980_v22  ;;  %8522 = vset.pattern.permute.xlu1 %v9211_v5  ;;  %v1246_v37 = vmax.f32 %v1214_v23, 0.0 }
  0xef   : > { %1075 = vperm.xlu1 %8522, %v9504_v41  }
  0xf0   : > { %v1215_v40 = vadd.f32 %v9557_v9, %v1176_v33  ;;  %v832_v42 = vpop.permute.xlu1 %831  ;;  %v9571_v46 = vpack.c.bf16 %v1246_v37, %v1245_v34 }
  0xf1   : > { %v9573_v47 = vpop.permute.xlu0 %665  ;;  %v950_v62 = vmul.f32 %v9529_v50, %v832_v42 }
  0xf2   : > { %v1247_v54 = vmax.f32 %v1215_v40, 0.0  ;;  %8356 = vmatprep.mubr.msk.bf16.mxu0 %vm1332_vm0, %v9571_v46 }
  0xf3   : > { %1083 = vperm.xlu1 %8522, %v9436_v19   ;;  %v786_v19 = vmul.f32 %v9536_v53, %v641_v26 }
  0xf4   : > { %v9578_v55 = vpack.c.bf16 %v1248_v51, %v1247_v54 }
  0xf5   : > { %v651_v56 = vpop.permute.xlu1 %650  ;;  %v9580_v57 = vpop.permute.xlu0 %670  ;;  %v982_v2 = vadd.f32 %v950_v62, %v786_v19  ;;  %v9629_v62 = vld [vmem:[%s9399_s28 + $0xc0] sm:$0xff] }
  0xf6   : > { %8357 = vmatmul.mubr.msk.bf16.vlgmr.msra.gmra.mxu0 %vm1332_vm0, %v9578_v55  ;;  %v788_v16 = vmul.f32 %v9536_v53, %v651_v56 }
  0xf7   : > { %1087 = vperm.xlu1 %8522, %v604_v58   ;;  %v1146_v58 = vmul.f32 %v9533_v52, %v9506_v43 }
  0xf9   : > { %v656_v41 = vpop.permute.xlu1 %655  ;;  %v9584_v59 = vpop.permute.xlu0 %680  ;;  %v1178_v11 = vadd.f32 %v1146_v58, %v982_v2  ;;  %v791_v58 = vmul.f32 %v9536_v53, %v9573_v47  ;;  %v1634_v47 = vld [vmem:[%s11186_s5 + $0x1e0] sm:$0xff] }
  0xfa   : > { %v789_v6 = vmul.f32 %v9536_v53, %v656_v41 }
  0xfb   : > { %8523 = vset.pattern.permute.xlu1 %v11198_v1  ;;  %v1217_v45 = vadd.f32 %v9557_v9, %v1178_v11 }
  0xfc   : > { %725 = vperm.xlu1 %8523, %v9451_v24  }
  0xfd   : > { %v9588_v60 = vpop.permute.xlu0 %705  ;;  %v1249_v33 = vmax.f32 %v1217_v45, 0.0 }
  0xfe   : > { %v844_v61 = vpop.permute.xlu1 %843 }
  0xff   : > { %v953_v3 = vmul.f32 %v9529_v50, %v844_v61 }
 0x100   : > { %8524 = vset.pattern.permute.xlu1 %v9209_v0 }
 0x101   : > { %895 = vperm.xlu1 %8524, %v9464_v27   ;;  %v9594_v63 = vpop.permute.xlu0 %710  ;;  %v787_v27 = vmul.f32 %v9536_v53, %v646_v20  ;;  %v985_v12 = vadd.f32 %v953_v3, %v789_v6  ;;  %v1151_v3 = vmul.f32 %v9533_v52, %v9526_v49  ;;  %v792_v49 = vmul.f32 %v9536_v53, %v9580_v57 }
 0x103   : > { %v1032_v4 = vpop.permute.xlu1 %1031  ;;  %v1181_v18 = vadd.f32 %v1149_v7, %v985_v12 }
 0x104   : > { %v1147_v14 = vmul.f32 %v9533_v52, %v1032_v4 }
 0x105   : > { %8525 = vset.pattern.permute.xlu1 %v11198_v1  ;;  %v1220_v34 = vadd.f32 %v9557_v9, %v1181_v18 }
 0x106   : > { %v836_v10 = vpop.permute.xlu0 %835  ;;  %730 = vperm.xlu1 %8525, %v9455_v25  }
 0x107   : > { %v951_v43 = vmul.f32 %v9529_v50, %v836_v10  ;;  %v1036_v13 = vpop.permute.xlu1 %1035  ;;  %v1252_v56 = vmax.f32 %v1220_v34, 0.0 }
 0x108   : > { %v1148_v26 = vmul.f32 %v9533_v52, %v1036_v13 }
 0x109   : > { %v983_v15 = vadd.f32 %v951_v43, %v787_v27 }
 0x10a   : > { %v840_v17 = vpop.permute.xlu0 %839  ;;  %735 = vperm.xlu1 %8525, %v9469_v28  }
 0x10b   : > { %v1179_v21 = vadd.f32 %v1147_v14, %v983_v15  ;;  %v952_v22 = vmul.f32 %v9529_v50, %v840_v17  ;;  %v1622_v15 = vld [vmem:[%s11186_s5 + $0x180] sm:$0xff] }
 0x10c   : > { %v661_v20 = vpop.permute.xlu1 %660 }
 0x10d   : > { %v1218_v23 = vadd.f32 %v9557_v9, %v1179_v21  ;;  %v984_v30 = vadd.f32 %v952_v22, %v788_v16  ;;  %v790_v11 = vmul.f32 %v9536_v53, %v661_v20  ;;  %v1626_v16 = vld [vmem:[%s11186_s5 + $0x1a0] sm:$0xff] }
 0x10e   : > { %8527 = vset.pattern.permute.xlu1 %v9209_v0  ;;  %v7781_v45 = vcombine.high %v1622_v15, %v1626_v16  ;;  %v7780_v18 = vcombine.low %v1622_v15, %v1626_v16 }
 0x10f   : > { %v1250_v37 = vmax.f32 %v1218_v23, 0.0  ;;  %v1180_v40 = vadd.f32 %v1148_v26, %v984_v30  ;;  %907 = vperm.xlu1 %8527, %v9469_v28   ;;  %v9663_v26 = vld [vmem:[%s9399_s28 + $0xd8] sm:$0xff]  ;;  %v1614_v30 = vld [vmem:[%s11186_s5 + $0x140] sm:$0xff] }
 0x111   : > { %v1219_v42 = vadd.f32 %v9557_v9, %v1180_v40  ;;  %v848_v51 = vpop.permute.xlu1 %847  ;;  %v9617_v54 = vpack.c.bf16 %v1250_v37, %v1249_v33  ;;  %v1618_v33 = vld [vmem:[%s11186_s5 + $0x160] sm:$0xff] }
 0x112   : > { %v954_v7 = vmul.f32 %v9529_v50, %v848_v51  ;;  %v7772_v51 = vcombine.low %v1614_v30, %v1618_v33 }
 0x113   : > { %v1251_v41 = vmax.f32 %v1219_v42, 0.0  ;;  %8528 = vset.pattern.permute.xlu1 %v9211_v5  ;;  %8360 = vmatprep.mubr.msk.bf16.mxu0 %vm1332_vm0, %v9617_v54  ;;  %v7773_v42 = vcombine.high %v1614_v30, %v1618_v33  ;;  %v1582_v30 = vld [vmem:[%s11186_s5 + $0x40] sm:$0xff] }
 0x114   : > { %1095 = vperm.xlu1 %8528, %v9451_v24   ;;  %v856_v24 = vpop.permute.xlu0 %855  ;;  %v986_v57 = vadd.f32 %v954_v7, %v790_v11  ;;  %v1602_v11 = vld [vmem:[%s11186_s5 + $0xe0] sm:$0xff] }
 0x115   : > { %v852_v61 = vpop.permute.xlu1 %851  ;;  %v9623_v19 = vpack.c.bf16 %v1252_v56, %v1251_v41  ;;  %v956_v43 = vmul.f32 %v9529_v50, %v856_v24  ;;  %v1606_v24 = vld [vmem:[%s11186_s5 + $0x100] sm:$0xff] }
 0x116   : > { %v955_v2 = vmul.f32 %v9529_v50, %v852_v61  ;;  %v1586_v33 = vld [vmem:[%s11186_s5 + $0x60] sm:$0xff] }
 0x117   : > { %11238 = vst [vmem:[#allocation14_spill] sm:$0xff] %v9623_v19  ;;  %8361 = vmatmul.mubr.msk.bf16.gmra.mxu0 %vm1332_vm0, %v9623_v19  ;;  %v988_v22 = vadd.f32 %v956_v43, %v792_v49  ;;  %v1598_v49 = vld [vmem:[%s11186_s5 + $0xc0] sm:$0xff] }
 0x118   : > { %1099 = vperm.xlu1 %8528, %v9455_v25   ;;  %v987_v4 = vadd.f32 %v955_v2, %v791_v58  ;;  %v1630_v25 = vld [vmem:[%s11186_s5 + $0x1c0] sm:$0xff]  ;;  %v9651_v13 = vpop.permute.xlu0 %867  ;;  %v7756_v15 = vcombine.low %v1598_v49, %v1602_v11 }
 0x119   : > { %v7789_v10 = vcombine.high %v1630_v25, %v1634_v47  ;;  %v7788_v27 = vcombine.low %v1630_v25, %v1634_v47 }
 0x11a   : > { %v676_v28 = vpop.permute.xlu1 %675  ;;  %v1183_v12 = vadd.f32 %v1151_v3, %v987_v4  ;;  %v1610_v3 = vld [vmem:[%s11186_s5 + $0x120] sm:$0xff] }
 0x11b   : > { %1958 = vmatprep.subr.bf16.mxu1 %v7789_v10  ;;  %v793_v41 = vmul.f32 %v9536_v53, %v676_v28  ;;  %v7765_v25 = vcombine.high %v1606_v24, %v1610_v3  ;;  %v7764_v47 = vcombine.low %v1606_v24, %v1610_v3 }
 0x11c   : > { %8529 = vset.pattern.permute.xlu1 %v11198_v1  ;;  %1959 = vmatpush1.bf16.msra.mxu1 %v7788_v27  ;;  %v1222_v21 = vadd.f32 %v9557_v9, %v1183_v12  ;;  %v9673_v37 = vpop.permute.xlu0 %871 }
 0x11d   : > { %740 = vperm.xlu1 %8529, %v9629_v62   ;;  %1960 = vmatprep.subr.bf16.mxu1 %v7781_v45  ;;  %v1594_v45 = vld [vmem:[%s11186_s5 + $0xa0] sm:$0xff] }
 0x11e   : > { %v1254_v56 = vmax.f32 %v1222_v21, 0.0 }
 0x11f   : > { %v860_v6 = vpop.permute.xlu1 %859 }
 0x120   : > { %1961 = vmatpush1.bf16.msra.mxu1 %v7780_v18  ;;  %v9689_v10 = vpop.permute.xlu0 %887 }
 0x121   : > { %8530 = vset.pattern.permute.xlu1 %v9209_v0  ;;  %1962 = vmatprep.subr.bf16.mxu1 %v7773_v42  ;;  %v1574_v42 = vld [vmem:[%s11186_s5] sm:$0xff] }
 0x122   : > { %911 = vperm.xlu1 %8530, %v9629_v62  }
 0x124   : > { %v1044_v14 = vpop.permute.xlu1 %1043  ;;  %1963 = vmatpush1.bf16.msra.mxu1 %v7772_v51  ;;  %v9711_v21 = vpop.permute.xlu0 %899  ;;  %v1578_v51 = vld [vmem:[%s11186_s5 + $0x20] sm:$0xff] }
 0x125   : > { %v1150_v17 = vmul.f32 %v9533_v52, %v1044_v14  ;;  %1964 = vmatprep.subr.bf16.mxu1 %v7765_v25  ;;  %v7757_v14 = vcombine.high %v1598_v49, %v1602_v11  ;;  %v959_v25 = vmul.f32 %v9529_v50, %v9651_v13  ;;  %v960_v11 = vmul.f32 %v9529_v50, %v9673_v37  ;;  %v1631_v13 = vld [vmem:[%s11186_s5 + $0x1c8] sm:$0xff] }
 0x126   : > { %915 = vperm.xlu1 %8530, %v9474_v29   ;;  %v957_v29 = vmul.f32 %v9529_v50, %v860_v6 }
 0x127   : > { %v1182_v20 = vadd.f32 %v1150_v17, %v986_v57  ;;  %v1590_v17 = vld [vmem:[%s11186_s5 + $0x80] sm:$0xff] }
 0x128   : > { %v1052_v23 = vpop.permute.xlu1 %1051  ;;  %v989_v4 = vadd.f32 %v957_v29, %v793_v41  ;;  %1965 = vmatpush1.bf16.msra.mxu1 %v7764_v47  ;;  %v7740_v29 = vcombine.low %v1582_v30, %v1586_v33 }
 0x129   : > { %v1221_v34 = vadd.f32 %v9557_v9, %v1182_v20  ;;  %v1152_v40 = vmul.f32 %v9533_v52, %v1052_v23  ;;  %1966 = vmatprep.subr.bf16.mxu1 %v7757_v14  ;;  %v7748_v23 = vcombine.low %v1590_v17, %v1594_v45 }
 0x12a   : > { %8531 = vset.pattern.permute.xlu1 %v11198_v1 }
 0x12b   : > { %v1253_v61 = vmax.f32 %v1221_v34, 0.0  ;;  %v1184_v58 = vadd.f32 %v1152_v40, %v988_v22  ;;  %755 = vperm.xlu1 %8531, %v9663_v26   ;;  %v7749_v22 = vcombine.high %v1590_v17, %v1594_v45  ;;  %v9723_v34 = vpop.permute.xlu0 %903 }
 0x12c   : > { %v1056_v2 = vpop.permute.xlu1 %1055  ;;  %1967 = vmatpush1.bf16.msra.mxu1 %v7756_v15 }
 0x12d   : > { %v9685_v6 = vpack.c.bf16 %v1254_v56, %v1253_v61  ;;  %v1153_v28 = vmul.f32 %v9533_v52, %v1056_v2  ;;  %v1223_v7 = vadd.f32 %v9557_v9, %v1184_v58  ;;  %1968 = vmatprep.subr.bf16.mxu1 %v7749_v22  ;;  %v7733_v56 = vcombine.high %v1574_v42, %v1578_v51  ;;  %v1623_v22 = vld [vmem:[%s11186_s5 + $0x188] sm:$0xff] }
 0x12e   : > { %v794_v61 = vmul.f32 %v9536_v53, %v9584_v59 }
 0x12f   : > { %11239 = vst [vmem:[#allocation15_spill] sm:$0xff] %v9685_v6  ;;  %v1185_v27 = vadd.f32 %v1153_v28, %v989_v4  ;;  %8532 = vset.pattern.permute.xlu1 %v9209_v0  ;;  %8364 = vmatprep.mubr.msk.bf16.mxu0 %vm1332_vm0, %v9685_v6  ;;  %v1255_v16 = vmax.f32 %v1223_v7, 0.0  ;;  %v1060_v2 = vpop.permute.xlu0 %1059 }
 0x130   : > { %923 = vperm.xlu1 %8532, %v9663_v26   ;;  %1969 = vmatpush1.bf16.msra.mxu1 %v7748_v23  ;;  %v1154_v3 = vmul.f32 %v9533_v52, %v1060_v2 }
 0x131   : > { %v1224_v12 = vadd.f32 %v9557_v9, %v1185_v27  ;;  %v686_v43 = vpop.permute.xlu1 %685 }
 0x132   : > { %v795_v59 = vmul.f32 %v9536_v53, %v686_v43  ;;  %v1635_v43 = vld [vmem:[%s11186_s5 + $0x1e8] sm:$0xff] }
 0x133   : > { %v1256_v57 = vmax.f32 %v1224_v12, 0.0  ;;  %v1072_v28 = vpop.permute.xlu0 %1071 }
 0x134   : > { %8533 = vset.pattern.permute.xlu1 %v9211_v5  ;;  %v1157_v49 = vmul.f32 %v9533_v52, %v1072_v28  ;;  %v991_v14 = vadd.f32 %v959_v25, %v795_v59  ;;  %v1607_v25 = vld [vmem:[%s11186_s5 + $0x108] sm:$0xff] }
 0x135   : > { %v9709_v18 = vpack.c.bf16 %v1256_v57, %v1255_v16  ;;  %1107 = vperm.xlu1 %8533, %v9629_v62   ;;  %v7741_v62 = vcombine.high %v1582_v30, %v1586_v33  ;;  %v7791_v16 = vcombine.high %v1631_v13, %v1635_v43  ;;  %v7790_v57 = vcombine.low %v1631_v13, %v1635_v43  ;;  %v1611_v59 = vld [vmem:[%s11186_s5 + $0x128] sm:$0xff] }
 0x136   : > { %v864_v20 = vpop.permute.xlu1 %863  ;;  %v1591_v43 = vld [vmem:[%s11186_s5 + $0x88] sm:$0xff] }
 0x137   : > { %11240 = vst [vmem:[#allocation16_spill] sm:$0xff] %v9709_v18  ;;  %8365 = vmatmul.mubr.msk.bf16.gmra.mxu0 %vm1332_vm0, %v9709_v18  ;;  %1970 = vmatprep.subr.bf16.mxu1 %v7741_v62  ;;  %v958_v58 = vmul.f32 %v9529_v50, %v864_v20  ;;  %v1627_v20 = vld [vmem:[%s11186_s5 + $0x1a8] sm:$0xff] }
 0x138   : > { %1971 = vmatpush1.bf16.msra.mxu1 %v7740_v29  ;;  %2151 = vmatprep.subr.bf16.mxu0 %v7791_v16  ;;  %v7782_v30 = vcombine.low %v1623_v22, %v1627_v20  ;;  %v7783_v33 = vcombine.high %v1623_v22, %v1627_v20  ;;  %v1583_v16 = vld [vmem:[%s11186_s5 + $0x48] sm:$0xff] }
 0x139   : > { %1115 = vperm.xlu1 %8533, %v9483_v31   ;;  %v7732_v31 = vcombine.low %v1574_v42, %v1578_v51  ;;  %1972 = vmatprep.subr.bf16.mxu1 %v7733_v56  ;;  %v990_v24 = vadd.f32 %v958_v58, %v794_v61  ;;  %v1619_v61 = vld [vmem:[%s11186_s5 + $0x168] sm:$0xff] }
 0x13a   : > { %2152 = vmatpush1.bf16.msra.mxu0 %v7790_v57  ;;  %v1587_v57 = vld [vmem:[%s11186_s5 + $0x68] sm:$0xff] }
 0x13b   : > { %v691_v40 = vpop.permute.xlu1 %690  ;;  %v1186_v7 = vadd.f32 %v1154_v3, %v990_v24  ;;  %2153 = vmatprep.subr.bf16.mxu0 %v7783_v33  ;;  %v1575_v22 = vld [vmem:[%s11186_s5 + $0x8] sm:$0xff] }
 0x13c   : > { %1973 = vmatpush1.bf16.msra.mxu1 %v7732_v31  ;;  %v796_v15 = vmul.f32 %v9536_v53, %v691_v40  ;;  %v1579_v20 = vld [vmem:[%s11186_s5 + $0x28] sm:$0xff] }
 0x13d   : > { %1119 = vperm.xlu1 %8533, %v9663_v26   ;;  %v1225_v37 = vadd.f32 %v9557_v9, %v1186_v7  ;;  %v7767_v7 = vcombine.high %v1607_v25, %v1611_v59 }
 0x13e   : > { %v992_v62 = vadd.f32 %v960_v11, %v796_v15  ;;  %2154 = vmatpush1.bf16.msra.mxu0 %v7782_v30 }
 0x13f   : > { %v696_v41 = vpop.permute.xlu1 %695  ;;  %v1257_v42 = vmax.f32 %v1225_v37, 0.0  ;;  %v1080_v37 = vpop.permute.xlu0 %1079 }
 0x140   : > { %v797_v47 = vmul.f32 %v9536_v53, %v696_v41  ;;  %v1615_v41 = vld [vmem:[%s11186_s5 + $0x148] sm:$0xff]  ;;  %v1159_v30 = vmul.f32 %v9533_v52, %v1080_v37 }
 0x141   : > { %8536 = vset.pattern.permute.xlu1 %v11198_v1  ;;  %v7775_v3 = vcombine.high %v1615_v41, %v1619_v61 }
 0x142   : > { %765 = vperm.xlu1 %8536, %v9510_v44  }
 0x143   : > { %2155 = vmatprep.subr.bf16.mxu0 %v7775_v3 }
 0x144   : > { %v876_v26 = vpop.permute.xlu1 %875 }
 0x145   : > { %v961_v4 = vmul.f32 %v9529_v50, %v876_v26  ;;  %v7774_v26 = vcombine.low %v1615_v41, %v1619_v61 }
 0x146   : > { %8537 = vset.pattern.permute.xlu1 %v9209_v0 }
 0x147   : > { %927 = vperm.xlu1 %8537, %v9489_v35   ;;  %v993_v27 = vadd.f32 %v961_v4, %v797_v47  ;;  %2156 = vmatpush1.bf16.msra.mxu0 %v7774_v26 }
 0x148   : > { %2157 = vmatprep.subr.bf16.mxu0 %v7767_v7 }
 0x149   : > { %v1064_v12 = vpop.permute.xlu1 %1063  ;;  %v1189_v17 = vadd.f32 %v1157_v49, %v993_v27  ;;  %v1603_v49 = vld [vmem:[%s11186_s5 + $0xe8] sm:$0xff] }
 0x14a   : > { %v1155_v35 = vmul.f32 %v9533_v52, %v1064_v12 }
 0x14b   : > { %8538 = vset.pattern.permute.xlu1 %v11198_v1  ;;  %v1228_v51 = vadd.f32 %v9557_v9, %v1189_v17  ;;  %v7743_v17 = vcombine.high %v1583_v16, %v1587_v57 }
 0x14c   : > { %v1187_v45 = vadd.f32 %v1155_v35, %v991_v14  ;;  %770 = vperm.xlu1 %8538, %v9521_v48  }
 0x14d   : > { %v1068_v23 = vpop.permute.xlu1 %1067  ;;  %v1260_v4 = vmax.f32 %v1228_v51, 0.0 }
 0x14e   : > { %v1226_v29 = vadd.f32 %v9557_v9, %v1187_v45  ;;  %v1156_v40 = vmul.f32 %v9533_v52, %v1068_v23  ;;  %v7742_v45 = vcombine.low %v1583_v16, %v1587_v57 }
 0x150   : > { %v1258_v56 = vmax.f32 %v1226_v29, 0.0  ;;  %v1188_v31 = vadd.f32 %v1156_v40, %v992_v62  ;;  %775 = vperm.xlu1 %8538, %v9552_v8   ;;  %v7735_v62 = vcombine.high %v1575_v22, %v1579_v20  ;;  %v7734_v29 = vcombine.low %v1575_v22, %v1579_v20 }
 0x152   : > { %v9775_v58 = vpack.c.bf16 %v1258_v56, %v1257_v42  ;;  %v1227_v2 = vadd.f32 %v9557_v9, %v1188_v31  ;;  %v701_v24 = vpop.permute.xlu1 %700  ;;  %v800_v56 = vmul.f32 %v9536_v53, %v9594_v63  ;;  %v964_v31 = vmul.f32 %v9529_v50, %v9689_v10  ;;  %v1092_v10 = vpop.permute.xlu0 %1091 }
 0x153   : > { %v1162_v20 = vmul.f32 %v9533_v52, %v1092_v10 }
 0x154   : > { %11241 = vst [vmem:[#allocation17_spill] sm:$0xff] %v9775_v58  ;;  %v1259_v28 = vmax.f32 %v1227_v2, 0.0  ;;  %8539 = vset.pattern.permute.xlu1 %v9209_v0  ;;  %8368 = vmatprep.mubr.msk.bf16.mxu0 %vm1332_vm0, %v9775_v58  ;;  %v7766_v0 = vcombine.low %v1607_v25, %v1611_v59  ;;  %v8647_v58 = vld [vmem:[#allocation2 + $0x6e4] ss:$16 sps:$4 sm:$0xff]  }
 0x155   : > { %939 = vperm.xlu1 %8539, %v9552_v8   ;;  %v1599_v8 = vld [vmem:[%s11186_s5 + $0xc8] sm:$0xff] }
 0x156   : > { %v9788_v47 = vpack.c.bf16 %v1260_v4, %v1259_v28  ;;  %2158 = vmatpush1.bf16.msra.mxu0 %v7766_v0  ;;  %v7759_v11 = vcombine.high %v1599_v8, %v1603_v49  ;;  %v7758_v13 = vcombine.low %v1599_v8, %v1603_v49  ;;  %v996_v4 = vadd.f32 %v964_v31, %v800_v56 }
 0x157   : > { %v880_v27 = vpop.permute.xlu1 %879 }
 0x158   : > { %11242 = vst [vmem:[#allocation18_spill] sm:$0xff] %v9788_v47  ;;  %8369 = vmatmul.mubr.msk.bf16.gmra.mxu0 %vm1332_vm0, %v9788_v47  ;;  %2159 = vmatprep.subr.bf16.mxu0 %v7759_v11  ;;  %v962_v40 = vmul.f32 %v9529_v50, %v880_v27  ;;  %v8644_v47 = vld [vmem:[#allocation2 + $0x4e4] ss:$16 sps:$4 sm:$0xff]  }
 0x159   : > { %8541 = vset.pattern.permute.xlu1 %v9211_v5  ;;  %v1595_v5 = vld [vmem:[%s11186_s5 + $0xa8] sm:$0xff] }
 0x15a   : > { %1127 = vperm.xlu1 %8541, %v9510_v44   ;;  %2160 = vmatpush1.bf16.msra.mxu0 %v7758_v13  ;;  %v7751_v14 = vcombine.high %v1591_v43, %v1595_v5  ;;  %v7750_v15 = vcombine.low %v1591_v43, %v1595_v5  ;;  %v1104_v5 = vpop.permute.xlu0 %1103 }
 0x15b   : > { %v884_v12 = vpop.permute.xlu1 %883 }
 0x15c   : > { %2161 = vmatprep.subr.bf16.mxu0 %v7751_v14  ;;  %v963_v44 = vmul.f32 %v9529_v50, %v884_v12 }
 0x15e   : > { %1131 = vperm.xlu1 %8541, %v9521_v48   ;;  %2162 = vmatpush1.bf16.msra.mxu0 %v7750_v15  ;;  %v799_v48 = vmul.f32 %v9536_v53, %v9588_v60  ;;  %v798_v60 = vmul.f32 %v9536_v53, %v701_v24  ;;  %v1112_v57 = vpop.permute.xlu0 %1111 }
 0x15f   : > { %2163 = vmatprep.subr.bf16.mxu0 %v7743_v17 }
 0x160   : > { %v716_v35 = vpop.permute.xlu1 %715  ;;  %v995_v23 = vadd.f32 %v963_v44, %v799_v48  ;;  %v994_v41 = vadd.f32 %v962_v40, %v798_v60  ;;  %v967_v40 = vmul.f32 %v9529_v50, %v9711_v21  ;;  %v1165_v60 = vmul.f32 %v9533_v52, %v1104_v5 }
 0x161   : > { %v801_v63 = vmul.f32 %v9536_v53, %v716_v35 }
 0x162   : > { %2164 = vmatpush1.bf16.msra.mxu0 %v7742_v45  ;;  %v1191_v42 = vadd.f32 %v1159_v30, %v995_v23  ;;  %v721_v17 = vpop.permute.xlu0 %720 }
 0x163   : > { %2165 = vmatprep.subr.bf16.mxu0 %v7735_v62  ;;  %v802_v45 = vmul.f32 %v9536_v53, %v721_v17 }
 0x164   : > { %v1230_v2 = vadd.f32 %v9557_v9, %v1191_v42 }
 0x165   : > { %v892_v33 = vpop.permute.xlu1 %891 }
 0x166   : > { %2166 = vmatpush1.bf16.msra.mxu0 %v7734_v29  ;;  %v965_v28 = vmul.f32 %v9529_v50, %v892_v33  ;;  %v1262_v59 = vmax.f32 %v1230_v2, 0.0  ;;  %v968_v2 = vmul.f32 %v9529_v50, %v9723_v34 }
 0x168   : > { %v997_v8 = vadd.f32 %v965_v28, %v801_v63 }
 0x16a   : > { %v1076_v51 = vpop.permute.xlu1 %1075 }
 0x16b   : > { %v1158_v61 = vmul.f32 %v9533_v52, %v1076_v51 }
 0x16d   : > { %v1190_v3 = vadd.f32 %v1158_v61, %v994_v41 }
 0x16e   : > { %v1084_v26 = vpop.permute.xlu1 %1083 }
 0x16f   : > { %v1229_v24 = vadd.f32 %v9557_v9, %v1190_v3  ;;  %v1160_v25 = vmul.f32 %v9533_v52, %v1084_v26 }
 0x171   : > { %v1261_v7 = vmax.f32 %v1229_v24, 0.0  ;;  %v1192_v27 = vadd.f32 %v1160_v25, %v996_v4 }
 0x172   : > { %v1088_v0 = vpop.permute.xlu1 %1087 }
 0x173   : > { %v9835_v49 = vpack.c.bf16 %v1262_v59, %v1261_v7  ;;  %v1161_v11 = vmul.f32 %v9533_v52, %v1088_v0  ;;  %v1231_v12 = vadd.f32 %v9557_v9, %v1192_v27 }
 0x175   : > { %11243 = vst [vmem:[#allocation19_spill] sm:$0xff] %v9835_v49  ;;  %v1193_v13 = vadd.f32 %v1161_v11, %v997_v8  ;;  %8372 = vmatprep.mubr.msk.bf16.mxu0 %vm1332_vm0, %v9835_v49  ;;  %v1263_v15 = vmax.f32 %v1231_v12, 0.0 }
 0x177   : > { %v1232_v43 = vadd.f32 %v9557_v9, %v1193_v13  ;;  %v726_v14 = vpop.permute.xlu1 %725  ;;  %v746_v13 = vpop.permute.xlu0 %745 }
 0x178   : > { %v803_v62 = vmul.f32 %v9536_v53, %v726_v14 }
 0x179   : > { %v1264_v35 = vmax.f32 %v1232_v43, 0.0 }
 0x17a   : > { %v999_v31 = vadd.f32 %v967_v40, %v803_v62 }
 0x17b   : > { %v9842_v44 = vpack.c.bf16 %v1264_v35, %v1263_v15  ;;  %v751_v5 = vpop.permute.xlu0 %750 }
 0x17c   : > { %v896_v16 = vpop.permute.xlu1 %895 }
 0x17d   : > { %11244 = vst [vmem:[#allocation20_spill] sm:$0xff] %v9842_v44  ;;  %8373 = vmatmul.mubr.msk.bf16.gmra.mxu0 %vm1332_vm0, %v9842_v44  ;;  %v966_v22 = vmul.f32 %v9529_v50, %v896_v16  ;;  %v807_v16 = vmul.f32 %v9536_v53, %v746_v13 }
 0x17f   : > { %v998_v23 = vadd.f32 %v966_v22, %v802_v45  ;;  %v9872_v35 = vpop.permute.xlu0 %760  ;;  %v1167_v22 = vmul.f32 %v9533_v52, %v1112_v57 }
 0x181   : > { %v731_v37 = vpop.permute.xlu1 %730  ;;  %v1194_v42 = vadd.f32 %v1162_v20, %v998_v23 }
 0x182   : > { %v804_v41 = vmul.f32 %v9536_v53, %v731_v37 }
 0x183   : > { %v1233_v3 = vadd.f32 %v9557_v9, %v1194_v42  ;;  %v920_v45 = vpop.permute.xlu0 %919 }
 0x184   : > { %v1000_v24 = vadd.f32 %v968_v2, %v804_v41  ;;  %v972_v62 = vmul.f32 %v9529_v50, %v920_v45 }
 0x185   : > { %v736_v48 = vpop.permute.xlu1 %735  ;;  %v1265_v59 = vmax.f32 %v1233_v3, 0.0 }
 0x186   : > { %v805_v29 = vmul.f32 %v9536_v53, %v736_v48 }
 0x18a   : > { %v908_v30 = vpop.permute.xlu1 %907 }
 0x18b   : > { %v969_v33 = vmul.f32 %v9529_v50, %v908_v30 }
 0x18d   : > { %v1001_v51 = vadd.f32 %v969_v33, %v805_v29  ;;  %v808_v33 = vmul.f32 %v9536_v53, %v751_v5 }
 0x18f   : > { %v1096_v56 = vpop.permute.xlu1 %1095  ;;  %v1197_v26 = vadd.f32 %v1165_v60, %v1001_v51 }
 0x190   : > { %v1163_v61 = vmul.f32 %v9533_v52, %v1096_v56  ;;  %v1004_v56 = vadd.f32 %v972_v62, %v808_v33 }
 0x191   : > { %v1236_v63 = vadd.f32 %v9557_v9, %v1197_v26 }
 0x192   : > { %v1195_v4 = vadd.f32 %v1163_v61, %v999_v31 }
 0x193   : > { %v1100_v28 = vpop.permute.xlu1 %1099  ;;  %v1268_v8 = vmax.f32 %v1236_v63, 0.0 }
 0x194   : > { %v1234_v21 = vadd.f32 %v9557_v9, %v1195_v4  ;;  %v1164_v25 = vmul.f32 %v9533_v52, %v1100_v28 }
 0x196   : > { %v1266_v7 = vmax.f32 %v1234_v21, 0.0  ;;  %v1196_v27 = vadd.f32 %v1164_v25, %v1000_v24 }
 0x198   : > { %v9863_v10 = vpack.c.bf16 %v1266_v7, %v1265_v59  ;;  %v1235_v0 = vadd.f32 %v9557_v9, %v1196_v27  ;;  %v741_v34 = vpop.permute.xlu1 %740 }
 0x199   : > { %v806_v23 = vmul.f32 %v9536_v53, %v741_v34  ;;  %v9896_v34 = vld [vmem:[%s11185_s4] ss:$0 sm:$0xff] }
 0x19a   : > { %11245 = vst [vmem:[#allocation21_spill] sm:$0xff] %v9863_v10  ;;  %v1267_v11 = vmax.f32 %v1235_v0, 0.0  ;;  %8376 = vmatprep.mubr.msk.bf16.mxu0 %vm1332_vm0, %v9863_v10 }
 0x19c   : > { %v9868_v12 = vpack.c.bf16 %v1268_v8, %v1267_v11 }
 0x19d   : > { %v912_v43 = vpop.permute.xlu1 %911 }
 0x19e   : > { %11246 = vst [vmem:[#allocation22_spill] sm:$0xff] %v9868_v12  ;;  %8377 = vmatmul.mubr.msk.bf16.gmra.mxu0 %vm1332_vm0, %v9868_v12  ;;  %v970_v20 = vmul.f32 %v9529_v50, %v912_v43 }
 0x1a0   : > { %v1002_v40 = vadd.f32 %v970_v20, %v806_v23 }
 0x1a1   : > { %v916_v14 = vpop.permute.xlu1 %915 }
 0x1a2   : > { %v971_v37 = vmul.f32 %v9529_v50, %v916_v14 }
 0x1a4   : > { %v1003_v17 = vadd.f32 %v971_v37, %v807_v16 }
 0x1a6   : > { %v756_v15 = vpop.permute.xlu1 %755  ;;  %v1199_v30 = vadd.f32 %v1167_v22, %v1003_v17  ;;  %v1632_v17 = vld [vmem:[%s11186_s5 + $0x1d0] sm:$0xff]  ;;  %v932_v22 = vpop.permute.xlu0 %931 }
 0x1a7   : > { %v809_v26 = vmul.f32 %v9536_v53, %v756_v15 }
 0x1a8   : > { %v1238_v42 = vadd.f32 %v9557_v9, %v1199_v30 }
 0x1aa   : > { %v1270_v3 = vmax.f32 %v1238_v42, 0.0  ;;  %v936_v42 = vpop.permute.xlu0 %935 }
 0x1ab   : > { %v924_v48 = vpop.permute.xlu1 %923 }
 0x1ac   : > { %v973_v57 = vmul.f32 %v9529_v50, %v924_v48  ;;  %v1636_v48 = vld [vmem:[%s11186_s5 + $0x1f0] sm:$0xff] }
 0x1ad   : > { %v7792_v23 = vcombine.low %v1632_v17, %v1636_v48  ;;  %v7793_v30 = vcombine.high %v1632_v17, %v1636_v48 }
 0x1ae   : > { %v1005_v25 = vadd.f32 %v973_v57, %v809_v26  ;;  %v1624_v57 = vld [vmem:[%s11186_s5 + $0x190] sm:$0xff] }
 0x1af   : > { %2344 = vmatprep.subr.bf16.mxu1 %v7793_v30 }
 0x1b0   : > { %v1108_v29 = vpop.permute.xlu1 %1107 }
 0x1b1   : > { %v1166_v60 = vmul.f32 %v9533_v52, %v1108_v29 }
 0x1b3   : > { %v1198_v51 = vadd.f32 %v1166_v60, %v1002_v40  ;;  %v9921_v40 = vld [vmem:[%s11186_s5 + $0x1d8] sm:$0xff] }
 0x1b4   : > { %v1116_v31 = vpop.permute.xlu1 %1115  ;;  %v9926_v60 = vld [vmem:[%s11186_s5 + $0x1f8] sm:$0xff] }
 0x1b5   : > { %v1237_v41 = vadd.f32 %v9557_v9, %v1198_v51  ;;  %v1168_v61 = vmul.f32 %v9533_v52, %v1116_v31 }
 0x1b6   : > { %v8358_v2 = vpop.f32.mrf.mxu0 }
 0x1b7   : > { %v1269_v4 = vmax.f32 %v1237_v41, 0.0  ;;  %v1200_v28 = vadd.f32 %v1168_v61, %v1004_v56  ;;  %v1424_v62 = vadd.f32 %v8358_v2, %v9896_v34  ;;  %v7795_v56 = vcombine.high %v9921_v40, %v9926_v60  ;;  %v1628_v41 = vld [vmem:[%s11186_s5 + $0x1b0] sm:$0xff] }
 0x1b8   : > { %v1415_v24 = vpop.f32.mrf.mxu0  ;;  %v1120_v21 = vpop.permute.xlu1 %1119  ;;  %v7784_v2 = vcombine.low %v1624_v57, %v1628_v41 }
 0x1b9   : > { %v9887_v59 = vpack.c.bf16 %v1270_v3, %v1269_v4  ;;  %v1169_v63 = vmul.f32 %v9533_v52, %v1120_v21  ;;  %v1239_v27 = vadd.f32 %v9557_v9, %v1200_v28  ;;  %v1416_v11 = vadd.f32 %v9896_v34, %v1415_v24  ;;  %2537 = vmatprep.subr.bf16.mxu0 %v7795_v56  ;;  %v1124_v4 = vpop.permute.xlu0 %1123 }
 0x1ba   : > { %v8359_v7 = vpop.f32.mrf.mxu0  ;;  %v7785_v3 = vcombine.high %v1624_v57, %v1628_v41  ;;  %v810_v28 = vmul.f32 %v9536_v53, %v9872_v35  ;;  %v1170_v21 = vmul.f32 %v9533_v52, %v1124_v4 }
 0x1bb   : > { %11247 = vst [vmem:[#allocation23_spill] sm:$0xff] %v9887_v59  ;;  %v1201_v0 = vadd.f32 %v1169_v63, %v1005_v25  ;;  %8380 = vmatprep.mubr.msk.bf16.mxu0 %vm1332_vm0, %v9887_v59  ;;  %v1271_v14 = vmax.f32 %v1239_v27, 0.0  ;;  %v1427_v37 = vadd.f32 %v8359_v7, %v9896_v34  ;;  %v975_v27 = vmul.f32 %v9529_v50, %v932_v22 }
 0x1bc   : > { %v1418_v8 = vpop.f32.mrf.mxu0 }
 0x1bd   : > { %v1240_v13 = vadd.f32 %v9557_v9, %v1201_v0  ;;  %v1419_v43 = vadd.f32 %v9896_v34, %v1418_v8  ;;  %v766_v5 = vpop.permute.xlu1 %765  ;;  %v1543_v29 = vpack.c.bf16 %v1427_v37, %v1424_v62  ;;  %v1136_v7 = vpop.permute.xlu0 %1135 }
 0x1be   : > { %v811_v0 = vmul.f32 %v9536_v53, %v766_v5 }
 0x1bf   : > { %v1272_v15 = vmax.f32 %v1240_v13, 0.0  ;;  %v1542_v16 = vpack.c.bf16 %v1419_v43, %v1416_v11  ;;  %v9931_v31 = vmax.bf16 %v11198_v1, %v1543_v29  ;;  %v1173_v43 = vmul.f32 %v9533_v52, %v1136_v7 }
 0x1c0   : > { %v1007_v35 = vadd.f32 %v975_v27, %v811_v0 }
 0x1c1   : > { %v9908_v45 = vpack.c.bf16 %v1272_v15, %v1271_v14  ;;  %v9911_v20 = vmax.bf16 %v11198_v1, %v1542_v16  ;;  %v976_v15 = vmul.f32 %v9529_v50, %v936_v42 }
 0x1c2   : > { %v928_v33 = vpop.permute.xlu1 %927 }
 0x1c3   : > { %11248 = vst [vmem:[#allocation24_spill] sm:$0xff] %v9908_v45  ;;  %8381 = vmatmul.mubr.msk.bf16.gmra.mxu0 %vm1332_vm0, %v9908_v45  ;;  %1991 = vmatmul.mubr.bf16.vlgmr.msra.gmra.mxu1 %v9911_v20  ;;  %v974_v26 = vmul.f32 %v9529_v50, %v928_v33 }
 0x1c4   : > { %2000 = vmatprep.mubr.bf16.mxu1 %v11198_v1  ;;  %2345 = vmatpush1.bf16.msra.mxu1 %v7792_v23 }
 0x1c5   : > { %2346 = vmatprep.subr.bf16.mxu1 %v7785_v3  ;;  %v1006_v24 = vadd.f32 %v974_v26, %v810_v28 }
 0x1c7   : > { %v771_v51 = vpop.permute.xlu1 %770  ;;  %v1202_v11 = vadd.f32 %v1170_v21, %v1006_v24  ;;  %v1620_v24 = vld [vmem:[%s11186_s5 + $0x170] sm:$0xff] }
 0x1c8   : > { %2347 = vmatpush1.bf16.msra.mxu1 %v7784_v2  ;;  %v812_v16 = vmul.f32 %v9536_v53, %v771_v51 }
 0x1c9   : > { %v1241_v48 = vadd.f32 %v9557_v9, %v1202_v11  ;;  %v1629_v11 = vld [vmem:[%s11186_s5 + $0x1b8] sm:$0xff] }
 0x1ca   : > { %v1008_v33 = vadd.f32 %v976_v15, %v812_v16  ;;  %v1612_v15 = vld [vmem:[%s11186_s5 + $0x130] sm:$0xff]  ;;  %v1617_v16 = vld [vmem:[%s11186_s5 + $0x158] sm:$0xff] }
 0x1cb   : > { %2001 = vmatmul.mubr.bf16.gmra.mxu1 %v9931_v31  ;;  %v776_v61 = vpop.permute.xlu1 %775  ;;  %v1273_v57 = vmax.f32 %v1241_v48, 0.0 }
 0x1cc   : > { %2010 = vmatprep.mubr.bf16.mxu1 %v11198_v1  ;;  %v813_v8 = vmul.f32 %v9536_v53, %v776_v61 }
 0x1d0   : > { %v940_v25 = vpop.permute.xlu1 %939 }
 0x1d1   : > { %v977_v63 = vmul.f32 %v9529_v50, %v940_v25 }
 0x1d3   : > { %v1009_v13 = vadd.f32 %v977_v63, %v813_v8  ;;  %v1625_v8 = vld [vmem:[%s11186_s5 + $0x198] sm:$0xff] }
 0x1d5   : > { %v1128_v14 = vpop.permute.xlu1 %1127  ;;  %v1205_v22 = vadd.f32 %v1173_v43, %v1009_v13  ;;  %v7794_v43 = vcombine.low %v9921_v40, %v9926_v60  ;;  %v1621_v40 = vld [vmem:[%s11186_s5 + $0x178] sm:$0xff] }
 0x1d6   : > { %v1171_v37 = vmul.f32 %v9533_v52, %v1128_v14  ;;  %v7787_v14 = vcombine.high %v1625_v8, %v1629_v11  ;;  %v7779_v48 = vcombine.high %v1617_v16, %v1621_v40 }
 0x1d7   : > { %v8362_v17 = vpop.f32.mrf.mxu0  ;;  %v1244_v50 = vadd.f32 %v9557_v9, %v1205_v22  ;;  %v1609_v22 = vld [vmem:[%s11186_s5 + $0x118] sm:$0xff] }
 0x1d8   : > { %v1203_v23 = vadd.f32 %v1171_v37, %v1007_v35  ;;  %v1440_v27 = vadd.f32 %v8362_v17, %v9896_v34  ;;  %v1608_v35 = vld [vmem:[%s11186_s5 + $0x110] sm:$0xff]  ;;  %v7786_v17 = vcombine.low %v1625_v8, %v1629_v11 }
 0x1d9   : > { %v1431_v5 = vpop.f32.mrf.mxu0  ;;  %v1132_v30 = vpop.permute.xlu1 %1131  ;;  %v1276_v26 = vmax.f32 %v1244_v50, 0.0  ;;  %v7768_v60 = vcombine.low %v1608_v35, %v1612_v15  ;;  %v7769_v37 = vcombine.high %v1608_v35, %v1612_v15  ;;  %v1605_v50 = vld [vmem:[%s11186_s5 + $0xf8] sm:$0xff]  ;;  %v1596_v8 = vld [vmem:[%s11186_s5 + $0xb0] sm:$0xff] }
 0x1da   : > { %v1242_v62 = vadd.f32 %v9557_v9, %v1203_v23  ;;  %v1172_v29 = vmul.f32 %v9533_v52, %v1132_v30  ;;  %v1432_v61 = vadd.f32 %v9896_v34, %v1431_v5  ;;  %v1616_v52 = vld [vmem:[%s11186_s5 + $0x150] sm:$0xff]  ;;  %v1613_v23 = vld [vmem:[%s11186_s5 + $0x138] sm:$0xff]  ;;  %v7778_v5 = vcombine.low %v1617_v16, %v1621_v40 }
 0x1db   : > { %v8363_v56 = vpop.f32.mrf.mxu0  ;;  %v7777_v63 = vcombine.high %v1616_v52, %v1620_v24  ;;  %v7776_v7 = vcombine.low %v1616_v52, %v1620_v24  ;;  %v7771_v30 = vcombine.high %v1609_v22, %v1613_v23  ;;  %v1597_v35 = vld [vmem:[%s11186_s5 + $0xb8] sm:$0xff] }
 0x1dc   : > { %v1274_v42 = vmax.f32 %v1242_v62, 0.0  ;;  %v1204_v53 = vadd.f32 %v1172_v29, %v1008_v33  ;;  %v1600_v33 = vld [vmem:[%s11186_s5 + $0xd0] sm:$0xff] }
 0x1dd   : > { %v1434_v51 = vpop.f32.mrf.mxu0  ;;  %2348 = vmatprep.subr.bf16.mxu1 %v7777_v63  ;;  %v1604_v62 = vld [vmem:[%s11186_s5 + $0xf0] sm:$0xff] }
 0x1de   : > { %v9957_v41 = vpack.c.bf16 %v1274_v42, %v1273_v57  ;;  %v1243_v2 = vadd.f32 %v9557_v9, %v1204_v53  ;;  %v1435_v3 = vadd.f32 %v9896_v34, %v1434_v51  ;;  %v1443_v9 = vadd.f32 %v8363_v56, %v9896_v34  ;;  %2349 = vmatpush1.bf16.msra.mxu1 %v7776_v7  ;;  %v1601_v57 = vld [vmem:[%s11186_s5 + $0xd8] sm:$0xff] }
 0x1df   : > { %2350 = vmatprep.subr.bf16.mxu1 %v7769_v37  ;;  %v7760_v29 = vcombine.low %v1600_v33, %v1604_v62  ;;  %v7761_v56 = vcombine.high %v1600_v33, %v1604_v62  ;;  %v7770_v42 = vcombine.low %v1609_v22, %v1613_v23  ;;  %v7763_v51 = vcombine.high %v1601_v57, %v1605_v50  ;;  %v1588_v37 = vld [vmem:[%s11186_s5 + $0x70] sm:$0xff]  ;;  %v1589_v23 = vld [vmem:[%s11186_s5 + $0x78] sm:$0xff] }
 0x1e0   : > { %11249 = vst [vmem:[#allocation25_spill] sm:$0xff] %v9957_v41  ;;  %v1275_v4 = vmax.f32 %v1243_v2, 0.0  ;;  %v1544_v28 = vpack.c.bf16 %v1435_v3, %v1432_v61  ;;  %8384 = vmatprep.mubr.msk.bf16.mxu0 %vm1332_vm0, %v9957_v41  ;;  %v1545_v0 = vpack.c.bf16 %v1443_v9, %v1440_v27  ;;  %v7762_v2 = vcombine.low %v1601_v57, %v1605_v50 }
 0x1e2   : > { %v9970_v21 = vpack.c.bf16 %v1276_v26, %v1275_v4  ;;  %v9974_v25 = vmax.bf16 %v11198_v1, %v1544_v28  ;;  %v9989_v13 = vmax.bf16 %v11198_v1, %v1545_v0  ;;  %2351 = vmatpush1.bf16.msra.mxu1 %v7768_v60  ;;  %v1592_v0 = vld [vmem:[%s11186_s5 + $0x90] sm:$0xff] }
 0x1e3   : > { %2352 = vmatprep.subr.bf16.mxu1 %v7761_v56  ;;  %v7752_v11 = vcombine.low %v1592_v0, %v1596_v8  ;;  %v1584_v60 = vld [vmem:[%s11186_s5 + $0x50] sm:$0xff] }
 0x1e4   : > { %11250 = vst [vmem:[#allocation26_spill] sm:$0xff] %v9970_v21  ;;  %8385 = vmatmul.mubr.msk.bf16.gmra.mxu0 %vm1332_vm0, %v9970_v21  ;;  %2011 = vmatmul.mubr.bf16.gmra.mxu1 %v9974_v25  ;;  %v7745_v22 = vcombine.high %v1584_v60, %v1588_v37  ;;  %v8575_v21 = vld [vmem:[#allocation2 + $0x264] ss:$16 sps:$4 sm:$0xff]  }
 0x1e5   : > { %2020 = vmatprep.mubr.bf16.mxu1 %v11198_v1  ;;  %2183 = vmatprep.mubr.bf16.mxu0 %v11198_v1 }
 0x1e6   : > { %2353 = vmatpush1.bf16.msra.mxu1 %v7760_v29 }
 0x1ec   : > { %2021 = vmatmul.mubr.bf16.gmra.mxu1 %v9989_v13  ;;  %2184 = vmatmul.mubr.bf16.vlgmr.msra.gmra.mxu0 %v9911_v20 }
 0x1ed   : > { %2193 = vmatprep.mubr.bf16.mxu0 %v11198_v1  ;;  %2030 = vmatprep.mubr.bf16.mxu1 %v11198_v1 }
 0x1ee   : > { %2538 = vmatpush1.bf16.msra.mxu0 %v7794_v43  ;;  %v7753_v43 = vcombine.high %v1592_v0, %v1596_v8 }
 0x1ef   : > { %2539 = vmatprep.subr.bf16.mxu0 %v7787_v14  ;;  %v1593_v14 = vld [vmem:[%s11186_s5 + $0x98] sm:$0xff] }
 0x1f0   : > { %2354 = vmatprep.subr.bf16.mxu1 %v7753_v43  ;;  %v7754_v15 = vcombine.low %v1593_v14, %v1597_v35  ;;  %v7755_v16 = vcombine.high %v1593_v14, %v1597_v35 }
 0x1f1   : > { %2355 = vmatpush1.bf16.msra.mxu1 %v7752_v11 }
 0x1f2   : > { %2540 = vmatpush1.bf16.msra.mxu0 %v7786_v17  ;;  %v1585_v17 = vld [vmem:[%s11186_s5 + $0x58] sm:$0xff]  ;;  %2356 = vmatprep.subr.bf16.mxu1 %v7745_v22 }
 0x1f3   : > { %2541 = vmatprep.subr.bf16.mxu0 %v7779_v48  ;;  %v7744_v48 = vcombine.low %v1584_v60, %v1588_v37  ;;  %v7747_v33 = vcombine.high %v1585_v17, %v1589_v23 }
 0x1f4   : > { %2194 = vmatmul.mubr.bf16.gmra.mxu0 %v9931_v31 }
 0x1f5   : > { %2203 = vmatprep.mubr.bf16.mxu0 %v11198_v1  ;;  %2357 = vmatpush1.bf16.msra.mxu1 %v7744_v48 }
 0x1f6   : > { %2542 = vmatpush1.bf16.msra.mxu0 %v7778_v5 }
 0x1f7   : > { %v8366_v53 = vpop.f32.mrf.mxu0  ;;  %2543 = vmatprep.subr.bf16.mxu0 %v7771_v30  ;;  %v7746_v30 = vcombine.low %v1585_v17, %v1589_v23 }
 0x1f8   : > { %v1456_v63 = vadd.f32 %v8366_v53, %v9896_v34 }
 0x1f9   : > { %v1447_v61 = vpop.f32.mrf.mxu0 }
 0x1fa   : > { %2544 = vmatpush1.bf16.msra.mxu0 %v7770_v42  ;;  %v1448_v4 = vadd.f32 %v9896_v34, %v1447_v61 }
 0x1fb   : > { %v8367_v3 = vpop.f32.mrf.mxu0  ;;  %2545 = vmatprep.subr.bf16.mxu0 %v7763_v51 }
 0x1fc   : > { %2204 = vmatmul.mubr.bf16.gmra.mxu0 %v9974_v25  ;;  %v1459_v24 = vadd.f32 %v8367_v3, %v9896_v34  ;;  %v1576_v3 = vld [vmem:[%s11186_s5 + $0x10] sm:$0xff] }
 0x1fd   : > { %v1450_v26 = vpop.f32.mrf.mxu0  ;;  %2213 = vmatprep.mubr.bf16.mxu0 %v11198_v1 }
 0x1fe   : > { %v1451_v28 = vadd.f32 %v9896_v34, %v1450_v26  ;;  %2546 = vmatpush1.bf16.msra.mxu0 %v7762_v2  ;;  %v1547_v7 = vpack.c.bf16 %v1459_v24, %v1456_v63  ;;  %v1580_v26 = vld [vmem:[%s11186_s5 + $0x30] sm:$0xff] }
 0x1ff   : > { %2547 = vmatprep.subr.bf16.mxu0 %v7755_v16  ;;  %v7736_v24 = vcombine.low %v1576_v3, %v1580_v26 }
 0x200   : > { %v1546_v52 = vpack.c.bf16 %v1451_v28, %v1448_v4  ;;  %v10043_v27 = vmax.bf16 %v11198_v1, %v1547_v7  ;;  %v1577_v4 = vld [vmem:[%s11186_s5 + $0x18] sm:$0xff]  ;;  %v7737_v28 = vcombine.high %v1576_v3, %v1580_v26 }
 0x202   : > { %v10035_v9 = vmax.bf16 %v11198_v1, %v1546_v52  ;;  %2548 = vmatpush1.bf16.msra.mxu0 %v7754_v15  ;;  %v1581_v52 = vld [vmem:[%s11186_s5 + $0x38] sm:$0xff]  ;;  %2358 = vmatprep.subr.bf16.mxu1 %v7737_v28 }
 0x203   : > { %2549 = vmatprep.subr.bf16.mxu0 %v7747_v33  ;;  %v7738_v63 = vcombine.low %v1577_v4, %v1581_v52  ;;  %v7739_v7 = vcombine.high %v1577_v4, %v1581_v52  ;;  %2359 = vmatpush1.bf16.msra.mxu1 %v7736_v24 }
 0x204   : > { %2031 = vmatmul.mubr.bf16.gmra.mxu1 %v10035_v9  ;;  %2214 = vmatmul.mubr.bf16.gmra.mxu0 %v9989_v13 }
 0x205   : > { %2040 = vmatprep.mubr.bf16.mxu1 %v11198_v1  ;;  %2223 = vmatprep.mubr.bf16.mxu0 %v11198_v1 }
 0x206   : > { %2550 = vmatpush1.bf16.msra.mxu0 %v7746_v30 }
 0x207   : > { %2551 = vmatprep.subr.bf16.mxu0 %v7739_v7 }
 0x20a   : > { %2552 = vmatpush1.bf16.msra.mxu0 %v7738_v63 }
 0x20c   : > { %2041 = vmatmul.mubr.bf16.gmra.mxu1 %v10043_v27  ;;  %2224 = vmatmul.mubr.bf16.gmra.mxu0 %v10035_v9 }
 0x20d   : > { %2233 = vmatprep.mubr.bf16.mxu0 %v11198_v1  ;;  %2050 = vmatprep.mubr.bf16.mxu1 %v11198_v1 }
 0x214   : > { %2234 = vmatmul.mubr.bf16.gmra.mxu0 %v10043_v27 }
 0x215   : > { %2243 = vmatprep.mubr.bf16.mxu0 %v11198_v1 }
 0x218   : > { %v8370_v40 = vpop.f32.mrf.mxu0 }
 0x219   : > { %v1472_v51 = vadd.f32 %v8370_v40, %v9896_v34 }
 0x21a   : > { %v1463_v5 = vpop.f32.mrf.mxu0 }
 0x21b   : > { %v1464_v56 = vadd.f32 %v9896_v34, %v1463_v5 }
 0x21c   : > { %v8371_v62 = vpop.f32.mrf.mxu0 }
 0x21d   : > { %v1475_v42 = vadd.f32 %v8371_v62, %v9896_v34 }
 0x21e   : > { %v1466_v29 = vpop.f32.mrf.mxu0 }
 0x21f   : > { %v1467_v57 = vadd.f32 %v9896_v34, %v1466_v29  ;;  %v1549_v61 = vpack.c.bf16 %v1475_v42, %v1472_v51 }
 0x221   : > { %v1548_v50 = vpack.c.bf16 %v1467_v57, %v1464_v56  ;;  %v10087_v2 = vmax.bf16 %v11198_v1, %v1549_v61 }
 0x223   : > { %v10079_v53 = vmax.bf16 %v11198_v1, %v1548_v50 }
 0x225   : > { %2051 = vmatmul.mubr.bf16.gmra.mxu1 %v10079_v53  ;;  %2244 = vmatmul.mubr.bf16.gmra.mxu0 %v10079_v53 }
 0x226   : > { %2060 = vmatprep.mubr.bf16.mxu1 %v11198_v1  ;;  %2253 = vmatprep.mubr.bf16.mxu0 %v11198_v1 }
 0x22d   : > { %2061 = vmatmul.mubr.bf16.gmra.mxu1 %v10087_v2  ;;  %2254 = vmatmul.mubr.bf16.gmra.mxu0 %v10087_v2 }
 0x22e   : > { %2070 = vmatprep.mubr.bf16.mxu1 %v11198_v1  ;;  %2263 = vmatprep.mubr.bf16.mxu0 %v11198_v1 }
 0x23d   : > { %v8374_v0 = vpop.f32.mrf.mxu0 }
 0x23e   : > { %v1488_v60 = vadd.f32 %v8374_v0, %v9896_v34 }
 0x23f   : > { %v1479_v8 = vpop.f32.mrf.mxu0 }
 0x240   : > { %v1480_v14 = vadd.f32 %v9896_v34, %v1479_v8 }
 0x241   : > { %v8375_v11 = vpop.f32.mrf.mxu0 }
 0x242   : > { %v1491_v16 = vadd.f32 %v8375_v11, %v9896_v34 }
 0x243   : > { %v1482_v43 = vpop.f32.mrf.mxu0 }
 0x244   : > { %v1483_v35 = vadd.f32 %v9896_v34, %v1482_v43  ;;  %v1551_v37 = vpack.c.bf16 %v1491_v16, %v1488_v60 }
 0x246   : > { %v1550_v15 = vpack.c.bf16 %v1483_v35, %v1480_v14  ;;  %v10117_v17 = vmax.bf16 %v11198_v1, %v1551_v37 }
 0x248   : > { %v10109_v40 = vmax.bf16 %v11198_v1, %v1550_v15 }
 0x24a   : > { %2071 = vmatmul.mubr.bf16.gmra.mxu1 %v10109_v40  ;;  %2264 = vmatmul.mubr.bf16.gmra.mxu0 %v10109_v40 }
 0x24b   : > { %2080 = vmatprep.mubr.bf16.mxu1 %v11198_v1  ;;  %2273 = vmatprep.mubr.bf16.mxu0 %v11198_v1 }
 0x252   : > { %2081 = vmatmul.mubr.bf16.gmra.mxu1 %v10117_v17  ;;  %2274 = vmatmul.mubr.bf16.gmra.mxu0 %v10117_v17 }
 0x253   : > { %2090 = vmatprep.mubr.bf16.mxu1 %v11198_v1  ;;  %2283 = vmatprep.mubr.bf16.mxu0 %v11198_v1 }
 0x25e   : > { %v8378_v48 = vpop.f32.mrf.mxu0 }
 0x25f   : > { %v1504_v57 = vadd.f32 %v8378_v48, %v9896_v34 }
 0x260   : > { %v1495_v22 = vpop.f32.mrf.mxu0 }
 0x261   : > { %v1496_v30 = vadd.f32 %v9896_v34, %v1495_v22 }
 0x262   : > { %v8379_v23 = vpop.f32.mrf.mxu0 }
 0x263   : > { %v1507_v29 = vadd.f32 %v8379_v23, %v9896_v34 }
 0x264   : > { %v1498_v5 = vpop.f32.mrf.mxu0 }
 0x265   : > { %v1499_v33 = vadd.f32 %v9896_v34, %v1498_v5  ;;  %v1553_v50 = vpack.c.bf16 %v1507_v29, %v1504_v57 }
 0x267   : > { %v1552_v62 = vpack.c.bf16 %v1499_v33, %v1496_v30  ;;  %v10135_v42 = vmax.bf16 %v11198_v1, %v1553_v50 }
 0x269   : > { %v10127_v56 = vmax.bf16 %v11198_v1, %v1552_v62 }
 0x26b   : > { %2091 = vmatmul.mubr.bf16.gmra.mxu1 %v10127_v56  ;;  %2284 = vmatmul.mubr.bf16.gmra.mxu0 %v10127_v56 }
 0x26c   : > { %2100 = vmatprep.mubr.bf16.mxu1 %v11198_v1  ;;  %2293 = vmatprep.mubr.bf16.mxu0 %v11198_v1 }
 0x273   : > { %2101 = vmatmul.mubr.bf16.gmra.mxu1 %v10135_v42  ;;  %2294 = vmatmul.mubr.bf16.gmra.mxu0 %v10135_v42 }
 0x274   : > { %2110 = vmatprep.mubr.bf16.mxu1 %v11198_v1  ;;  %2303 = vmatprep.mubr.bf16.mxu0 %v11198_v1 }
 0x283   : > { %v8382_v51 = vpop.f32.mrf.mxu0  ;;  %v1992_v61 = vpop.f32.mrf.mxu1 }
 0x284   : > { %v1520_v48 = vadd.f32 %v8382_v51, %v9896_v34 }
 0x285   : > { %v1511_v3 = vpop.f32.mrf.mxu0  ;;  %v1994_v26 = vpop.f32.mrf.mxu1 }
 0x286   : > { %v1512_v7 = vadd.f32 %v9896_v34, %v1511_v3 }
 0x287   : > { %v8383_v4 = vpop.f32.mrf.mxu0  ;;  %v1996_v28 = vpop.f32.mrf.mxu1 }
 0x288   : > { %v2730_v52 = vmax.f32 %v1992_v61, %v1996_v28  ;;  %v1523_v15 = vadd.f32 %v8383_v4, %v9896_v34 }
 0x289   : > { %v1514_v24 = vpop.f32.mrf.mxu0  ;;  %v1998_v63 = vpop.f32.mrf.mxu1 }
 0x28a   : > { %v1515_v0 = vadd.f32 %v9896_v34, %v1514_v24  ;;  %v2743_v43 = vmax.f32 %v1994_v26, %v1998_v63  ;;  %v1555_v23 = vpack.c.bf16 %v1523_v15, %v1520_v48 }
 0x28b   : > { %v2002_v8 = vpop.f32.mrf.mxu1 }
 0x28c   : > { %v1554_v11 = vpack.c.bf16 %v1515_v0, %v1512_v7  ;;  %v2731_v14 = vmax.f32 %v2730_v52, %v2002_v8  ;;  %v10153_v5 = vmax.bf16 %v11198_v1, %v1555_v23 }
 0x28d   : > { %v2004_v35 = vpop.f32.mrf.mxu1 }
 0x28e   : > { %v10145_v16 = vmax.bf16 %v11198_v1, %v1554_v11  ;;  %v2744_v60 = vmax.f32 %v2743_v43, %v2004_v35 }
 0x28f   : > { %v2006_v37 = vpop.f32.mrf.mxu1 }
 0x290   : > { %v2732_v22 = vmax.f32 %v2731_v14, %v2006_v37  ;;  %2111 = vmatmul.mubr.bf16.gmra.mxu1 %v10145_v16  ;;  %2304 = vmatmul.mubr.bf16.gmra.mxu0 %v10145_v16 }
 0x291   : > { %2120 = vmatprep.mubr.bf16.mxu1 %v11198_v1  ;;  %2313 = vmatprep.mubr.bf16.mxu0 %v11198_v1  ;;  %v2008_v30 = vpop.f32.mrf.mxu1 }
 0x292   : > { %v2745_v29 = vmax.f32 %v2744_v60, %v2008_v30 }
 0x298   : > { %2121 = vmatmul.mubr.bf16.gmra.mxu1 %v10153_v5  ;;  %2314 = vmatmul.mubr.bf16.gmra.mxu0 %v10153_v5 }
 0x299   : > { %2130 = vmatprep.mubr.bf16.mxu1 %v11198_v1  ;;  %2323 = vmatprep.mubr.bf16.mxu0 %v11198_v1 }
 0x2a4   : > { %v8386_v33 = vpop.f32.mrf.mxu0  ;;  %v2012_v62 = vpop.f32.mrf.mxu1 }
 0x2a5   : > { %v2733_v57 = vmax.f32 %v2732_v22, %v2012_v62  ;;  %v1536_v23 = vadd.f32 %v8386_v33, %v9896_v34 }
 0x2a6   : > { %v1527_v50 = vpop.f32.mrf.mxu0  ;;  %v2014_v51 = vpop.f32.mrf.mxu1 }
 0x2a7   : > { %v2746_v61 = vmax.f32 %v2745_v29, %v2014_v51  ;;  %v1528_v24 = vadd.f32 %v9896_v34, %v1527_v50 }
 0x2a8   : > { %v8387_v3 = vpop.f32.mrf.mxu0  ;;  %v2016_v26 = vpop.f32.mrf.mxu1 }
 0x2a9   : > { %v2734_v4 = vmax.f32 %v2733_v57, %v2016_v26  ;;  %v1539_v15 = vadd.f32 %v8387_v3, %v9896_v34 }
 0x2aa   : > { %v1530_v28 = vpop.f32.mrf.mxu0  ;;  %v2018_v52 = vpop.f32.mrf.mxu1 }
 0x2ab   : > { %v1531_v63 = vadd.f32 %v9896_v34, %v1530_v28  ;;  %v2747_v11 = vmax.f32 %v2746_v61, %v2018_v52  ;;  %v1557_v57 = vpack.c.bf16 %v1539_v15, %v1536_v23 }
 0x2ac   : > { %v2022_v7 = vpop.f32.mrf.mxu1  ;;  %v2185_v0 = vpop.f32.mrf.mxu0 }
 0x2ad   : > { %v1556_v8 = vpack.c.bf16 %v1531_v63, %v1528_v24  ;;  %v2735_v43 = vmax.f32 %v2734_v4, %v2022_v7  ;;  %v10175_v26 = vmax.bf16 %v11198_v1, %v1557_v57 }
 0x2ae   : > { %v2024_v14 = vpop.f32.mrf.mxu1  ;;  %v2187_v35 = vpop.f32.mrf.mxu0 }
 0x2af   : > { %v10163_v60 = vmax.bf16 %v11198_v1, %v1556_v8  ;;  %v10165_v37 = vmax.f32 %v2747_v11, %v2024_v14 }
 0x2b0   : > { %v2026_v48 = vpop.f32.mrf.mxu1  ;;  %v2189_v22 = vpop.f32.mrf.mxu0 }
 0x2b1   : > { %v10168_v30 = vmax.f32 %v2735_v43, %v2026_v48  ;;  %v2756_v62 = vmax.f32 %v2185_v0, %v2189_v22  ;;  %2131 = vmatmul.mubr.bf16.gmra.mxu1 %v10163_v60  ;;  %2324 = vmatmul.mubr.bf16.gmra.mxu0 %v10163_v60 }
 0x2b2   : > { %v2191_v29 = vpop.f32.mrf.mxu0  ;;  %2140 = vmatprep.mubr.bf16.mxu1 %v11198_v1  ;;  %2333 = vmatprep.mubr.bf16.mxu0 %v11198_v1  ;;  %v10183_v43 = vpop.f32.mrf.mxu1 }
 0x2b3   : > { %v2769_v51 = vmax.f32 %v2187_v35, %v2191_v29 }
 0x2b4   : > { %v2195_v50 = vpop.f32.mrf.mxu0 }
 0x2b5   : > { %v2757_v61 = vmax.f32 %v2756_v62, %v2195_v50 }
 0x2b6   : > { %v2197_v3 = vpop.f32.mrf.mxu0 }
 0x2b7   : > { %v2770_v34 = vmax.f32 %v2769_v51, %v2197_v3 }
 0x2b8   : > { %v2199_v33 = vpop.f32.mrf.mxu0 }
 0x2b9   : > { %v2758_v4 = vmax.f32 %v2757_v61, %v2199_v33  ;;  %2141 = vmatmul.mubr.bf16.gmra.mxu1 %v10175_v26  ;;  %2334 = vmatmul.mubr.bf16.gmra.mxu0 %v10175_v26 }
 0x2ba   : > { %v2201_v28 = vpop.f32.mrf.mxu0  ;;  %2376 = vmatprep.mubr.bf16.mxu1 %v11198_v1  ;;  %2569 = vmatprep.mubr.bf16.mxu0 %v11198_v1 }
 0x2bb   : > { %v2771_v24 = vmax.f32 %v2770_v34, %v2201_v28 }
 0x2bc   : > { %v2205_v52 = vpop.f32.mrf.mxu0 }
 0x2bd   : > { %v2759_v63 = vmax.f32 %v2758_v4, %v2205_v52 }
 0x2be   : > { %v2207_v7 = vpop.f32.mrf.mxu0 }
 0x2bf   : > { %v2772_v0 = vmax.f32 %v2771_v24, %v2207_v7 }
 0x2c0   : > { %v2209_v8 = vpop.f32.mrf.mxu0 }
 0x2c1   : > { %v2760_v11 = vmax.f32 %v2759_v63, %v2209_v8  ;;  %2377 = vmatmul.mubr.bf16.vlgmr.msra.gmra.mxu1 %v9911_v20  ;;  %2570 = vmatmul.mubr.bf16.vlgmr.msra.gmra.mxu0 %v9911_v20 }
 0x2c2   : > { %v2211_v14 = vpop.f32.mrf.mxu0  ;;  %2386 = vmatprep.mubr.bf16.mxu1 %v11198_v1  ;;  %2579 = vmatprep.mubr.bf16.mxu0 %v11198_v1 }
 0x2c3   : > { %v2773_v48 = vmax.f32 %v2772_v0, %v2211_v14 }
 0x2c4   : > { %v2032_v35 = vpop.f32.mrf.mxu1  ;;  %v2215_v15 = vpop.f32.mrf.mxu0 }
 0x2c5   : > { %v2761_v22 = vmax.f32 %v2760_v11, %v2215_v15 }
 0x2c6   : > { %v2034_v23 = vpop.f32.mrf.mxu1  ;;  %v2217_v62 = vpop.f32.mrf.mxu0 }
 0x2c7   : > { %v2774_v29 = vmax.f32 %v2773_v48, %v2217_v62 }
 0x2c8   : > { %v2036_v57 = vpop.f32.mrf.mxu1  ;;  %v2219_v50 = vpop.f32.mrf.mxu0 }
 0x2c9   : > { %v2834_v51 = vmax.f32 %v2032_v35, %v2036_v57  ;;  %v10187_v61 = vmax.f32 %v2761_v22, %v2219_v50  ;;  %2387 = vmatmul.mubr.bf16.gmra.mxu1 %v9931_v31  ;;  %2580 = vmatmul.mubr.bf16.gmra.mxu0 %v9931_v31  ;;  %v8551_v57 = vld [vmem:[#allocation2 + $0x2e4] ss:$16 sps:$4 sm:$0xff]   ;;  %v8546_v50 = vld [vmem:[#allocation2 + $0xe0] ss:$16 sps:$4 sm:$0xff]  }
 0x2ca   : > { %v2038_v20 = vpop.f32.mrf.mxu1  ;;  %v2221_v3 = vpop.f32.mrf.mxu0  ;;  %2396 = vmatprep.mubr.bf16.mxu1 %v11198_v1  ;;  %2589 = vmatprep.mubr.bf16.mxu0 %v11198_v1 }
 0x2cb   : > { %v2847_v4 = vmax.f32 %v2034_v23, %v2038_v20  ;;  %5014 = vmatprep.subr.bf16.mxu0 %v8551_v57  ;;  %v8554_v20 = vld [vmem:[#allocation2 + $0xc4] ss:$16 sps:$4 sm:$0xff]  }
 0x2cc   : > { %v2042_v34 = vpop.f32.mrf.mxu1  ;;  %v2225_v33 = vpop.f32.mrf.mxu0 }
 0x2cd   : > { %v10193_v28 = vmax.f32 %v2834_v51, %v2042_v34  ;;  %v8549_v51 = vld [vmem:[#allocation2 + $0x2e0] ss:$16 sps:$4 sm:$0xff]   ;;  %v8557_v34 = vld [vmem:[#allocation2 + $0x2c4] ss:$16 sps:$4 sm:$0xff]  }
 0x2ce   : > { %v2044_v52 = vpop.f32.mrf.mxu1  ;;  %v2227_v24 = vpop.f32.mrf.mxu0  ;;  %5015 = vmatpush1.bf16.msra.mxu0 %v8549_v51 }
 0x2cf   : > { %v10195_v63 = vmax.f32 %v2847_v4, %v2044_v52  ;;  %v8555_v4 = vld [vmem:[#allocation2 + $0x2c0] ss:$16 sps:$4 sm:$0xff]   ;;  %5016 = vmatprep.subr.bf16.mxu0 %v8557_v34  ;;  %v2749_v52 = vmax.f32 %v10165_v37, %v10183_v43  ;;  %v8566_v37 = vld [vmem:[#allocation2 + $0x84] ss:$16 sps:$4 sm:$0xff]  }
 0x2d0   : > { %v2046_v7 = vpop.f32.mrf.mxu1  ;;  %v2229_v0 = vpop.f32.mrf.mxu0  ;;  %v8569_v43 = vld [vmem:[#allocation2 + $0x284] ss:$16 sps:$4 sm:$0xff]  }
 0x2d1   : > { %v2836_v8 = vmax.f32 %v10193_v28, %v2046_v7  ;;  %v2860_v31 = vmax.f32 %v2225_v33, %v2229_v0  ;;  %2397 = vmatmul.mubr.bf16.gmra.mxu1 %v9974_v25  ;;  %2590 = vmatmul.mubr.bf16.gmra.mxu0 %v9974_v25  ;;  %v8548_v25 = vld [vmem:[#allocation2 + $0xe4] ss:$16 sps:$4 sm:$0xff]   ;;  %v8552_v33 = vld [vmem:[#allocation2 + $0xc0] ss:$16 sps:$4 sm:$0xff]   ;;  %v2737_v7 = vrot.slane %v10168_v30, 4  ;;  %v2763_v0 = vrot.slane %v10187_v61, 4 }
 0x2d2   : > { %v2231_v11 = vpop.f32.mrf.mxu0  ;;  %2406 = vmatprep.mubr.bf16.mxu1 %v11198_v1  ;;  %2599 = vmatprep.mubr.bf16.mxu0 %v11198_v1  ;;  %v8560_v28 = vld [vmem:[#allocation2 + $0xa4] ss:$16 sps:$4 sm:$0xff]  }
 0x2d3   : > { %v2873_v35 = vmax.f32 %v2227_v24, %v2231_v11  ;;  %4973 = vmatprep.subr.bf16.mxu1 %v8548_v25  ;;  %v2775_v24 = vmax.f32 %v2774_v29, %v2221_v3  ;;  %5017 = vmatpush1.bf16.msra.mxu0 %v8555_v4  ;;  %v2750_v29 = vrot.slane %v2749_v52, 4  ;;  %v2764_v51 = vmax.f32 %v10187_v61, %v2763_v0  ;;  %v8567_v4 = vld [vmem:[#allocation2 + $0x280] ss:$16 sps:$4 sm:$0xff]  }
 0x2d4   : > { %v2235_v14 = vpop.f32.mrf.mxu0  ;;  %4974 = vmatpush1.bf16.msra.mxu1 %v8546_v50  ;;  %v2738_v50 = vmax.f32 %v10168_v30, %v2737_v7  ;;  %v11251_v7 = vmov 0  }
 0x2d5   : > { %v2861_v15 = vmax.f32 %v2860_v31, %v2235_v14  ;;  %4975 = vmatprep.subr.bf16.mxu1 %v8554_v20  ;;  %v2048_v31 = vpop.f32.mrf.mxu1  ;;  %v8558_v14 = vld [vmem:[#allocation2 + $0xa0] ss:$16 sps:$4 sm:$0xff]  }
 0x2d6   : > { %v2237_v48 = vpop.f32.mrf.mxu0  ;;  %v2739_v0 = vrot.slane %v2738_v50, 2 }
 0x2d7   : > { %v2874_v22 = vmax.f32 %v2873_v35, %v2237_v48  ;;  %v8561_v35 = vld [vmem:[#allocation2 + $0x2a0] ss:$16 sps:$4 sm:$0xff]   ;;  %v2849_v48 = vmax.f32 %v10195_v63, %v2048_v31  ;;  %v2751_v63 = vmax.f32 %v2749_v52, %v2750_v29  ;;  %v2765_v31 = vrot.slane %v2764_v51, 2 }
 0x2d8   : > { %v2239_v23 = vpop.f32.mrf.mxu0  ;;  %4976 = vmatpush1.bf16.msra.mxu1 %v8552_v33  ;;  %v8564_v33 = vld [vmem:[#allocation2 + $0x80] ss:$16 sps:$4 sm:$0xff]  }
 0x2d9   : > { %v2862_v62 = vmax.f32 %v2861_v15, %v2239_v23  ;;  %2407 = vmatmul.mubr.bf16.gmra.mxu1 %v9989_v13  ;;  %2600 = vmatmul.mubr.bf16.gmra.mxu0 %v9989_v13  ;;  %v8563_v13 = vld [vmem:[#allocation2 + $0x2a4] ss:$16 sps:$4 sm:$0xff]   ;;  %v8570_v52 = vld [vmem:[#allocation2 + $0x60] ss:$16 sps:$4 sm:$0xff]  }
 0x2da   : > { %2416 = vmatprep.mubr.bf16.mxu1 %v11198_v1  ;;  %2609 = vmatprep.mubr.bf16.mxu0 %v11198_v1  ;;  %v2241_v11 = vpop.f32.mrf.mxu0 }
 0x2db   : > { %4977 = vmatprep.subr.bf16.mxu1 %v8560_v28  ;;  %5018 = vmatprep.subr.bf16.mxu0 %v8563_v13  ;;  %v2875_v23 = vmax.f32 %v2874_v22, %v2241_v11 }
 0x2dc   : > { %4978 = vmatpush1.bf16.msra.mxu1 %v8558_v14  ;;  %5019 = vmatpush1.bf16.msra.mxu0 %v8561_v35  ;;  %v8578_v35 = vld [vmem:[#allocation2 + $0x44] ss:$16 sps:$4 sm:$0xff]  }
 0x2dd   : > { %4979 = vmatprep.subr.bf16.mxu1 %v8566_v37  ;;  %5020 = vmatprep.subr.bf16.mxu0 %v8569_v43  ;;  %v8581_v37 = vld [vmem:[#allocation2 + $0x244] ss:$16 sps:$4 sm:$0xff]   ;;  %v2752_v43 = vrot.slane %v2751_v63, 2 }
 0x2e0   : > { %4980 = vmatpush1.bf16.msra.mxu1 %v8564_v33  ;;  %5021 = vmatpush1.bf16.msra.mxu0 %v8567_v4  ;;  %v8576_v33 = vld [vmem:[#allocation2 + $0x40] ss:$16 sps:$4 sm:$0xff]  }
 0x2e1   : > { %2417 = vmatmul.mubr.bf16.gmra.mxu1 %v10035_v9  ;;  %2610 = vmatmul.mubr.bf16.gmra.mxu0 %v10035_v9  ;;  %v2776_v9 = vrot.slane %v2775_v24, 4  ;;  %v8579_v4 = vld [vmem:[#allocation2 + $0x240] ss:$16 sps:$4 sm:$0xff]  }
 0x2e2   : > { %2426 = vmatprep.mubr.bf16.mxu1 %v11198_v1  ;;  %2619 = vmatprep.mubr.bf16.mxu0 %v11198_v1  ;;  %v8572_v1 = vld [vmem:[#allocation2 + $0x64] ss:$16 sps:$4 sm:$0xff]  }
 0x2e3   : > { %v2777_v22 = vmax.f32 %v2775_v24, %v2776_v9  ;;  %v8573_v24 = vld [vmem:[#allocation2 + $0x260] ss:$16 sps:$4 sm:$0xff]   ;;  %4981 = vmatprep.subr.bf16.mxu1 %v8572_v1  ;;  %5022 = vmatprep.subr.bf16.mxu0 %v8575_v21 }
 0x2e4   : > { %4982 = vmatpush1.bf16.msra.mxu1 %v8570_v52  ;;  %5023 = vmatpush1.bf16.msra.mxu0 %v8573_v24  ;;  %v3146_v1 = vld [vmem:[%s11187_s6] sm:$0xff] }
 0x2e5   : > { %v2052_v3 = vpop.f32.mrf.mxu1  ;;  %v2245_v15 = vpop.f32.mrf.mxu0  ;;  %4983 = vmatprep.subr.bf16.mxu1 %v8578_v35  ;;  %5024 = vmatprep.subr.bf16.mxu0 %v8581_v37  ;;  %v8582_v52 = vld [vmem:[#allocation2 + $0x20] ss:$16 sps:$4 sm:$0xff]  }
 0x2e6   : > { %v2837_v25 = vmax.f32 %v2836_v8, %v2052_v3  ;;  %v2863_v57 = vmax.f32 %v2862_v62, %v2245_v15  ;;  %v8585_v24 = vld [vmem:[#allocation2 + $0x220] ss:$16 sps:$4 sm:$0xff]  }
 0x2e7   : > { %v2054_v20 = vpop.f32.mrf.mxu1  ;;  %v2247_v34 = vpop.f32.mrf.mxu0 }
 0x2e8   : > { %v2850_v28 = vmax.f32 %v2849_v48, %v2054_v20  ;;  %v2876_v13 = vmax.f32 %v2875_v23, %v2247_v34  ;;  %4984 = vmatpush1.bf16.msra.mxu1 %v8576_v33  ;;  %5025 = vmatpush1.bf16.msra.mxu0 %v8579_v4  ;;  %v8593_v33 = vld [vmem:[#allocation2 + $0x204] ss:$16 sps:$4 sm:$0xff]  }
 0x2e9   : > { %v2056_v8 = vpop.f32.mrf.mxu1  ;;  %v2249_v62 = vpop.f32.mrf.mxu0  ;;  %2427 = vmatmul.mubr.bf16.gmra.mxu1 %v10043_v27  ;;  %2620 = vmatmul.mubr.bf16.gmra.mxu0 %v10043_v27  ;;  %v2778_v27 = vrot.slane %v2777_v22, 2 }
 0x2ea   : > { %v2838_v30 = vmax.f32 %v2837_v25, %v2056_v8  ;;  %v2864_v61 = vmax.f32 %v2863_v57, %v2249_v62  ;;  %2436 = vmatprep.mubr.bf16.mxu1 %v11251_v7  ;;  %2629 = vmatprep.mubr.bf16.mxu0 %v11251_v7  ;;  %v2740_v25 = vmax.f32 %v2738_v50, %v2739_v0  ;;  %v8587_v0 = vld [vmem:[#allocation2 + $0x224] ss:$16 sps:$4 sm:$0xff]  }
 0x2eb   : > { %v2058_v11 = vpop.f32.mrf.mxu1  ;;  %v2251_v14 = vpop.f32.mrf.mxu0  ;;  %v2766_v57 = vmax.f32 %v2764_v51, %v2765_v31  ;;  %5026 = vmatprep.subr.bf16.mxu0 %v8587_v0 }
 0x2ec   : > { %v2851_v3 = vmax.f32 %v2850_v28, %v2058_v11  ;;  %v2877_v15 = vmax.f32 %v2876_v13, %v2251_v14  ;;  %v2753_v28 = vmax.f32 %v2751_v63, %v2752_v43  ;;  %v2779_v13 = vmax.f32 %v2777_v22, %v2778_v27  ;;  %5027 = vmatpush1.bf16.msra.mxu0 %v8585_v24  ;;  %v8599_v24 = vld [vmem:[#allocation2 + $0x3e4] ss:$16 sps:$4 sm:$0xff]  }
 0x2ed   : > { %v2062_v29 = vpop.f32.mrf.mxu1  ;;  %v2255_v9 = vpop.f32.mrf.mxu0  ;;  %v2741_v31 = vrot.slane %v2740_v25, 1  ;;  %v10229_v11 = vrot.slane %v3146_v1, %v9500_v39  ;;  %v2767_v63 = vrot.slane %v2766_v57, 1  ;;  %5028 = vmatprep.subr.bf16.mxu0 %v8593_v33  ;;  %v8602_v33 = vld [vmem:[#allocation2 + $0x1c4] ss:$16 sps:$4 sm:$0xff]  }
 0x2ee   : > { %v2839_v48 = vmax.f32 %v2838_v30, %v2062_v29  ;;  %v2865_v23 = vmax.f32 %v2864_v61, %v2255_v9  ;;  %v8584_v61 = vld [vmem:[#allocation2 + $0x24] ss:$16 sps:$4 sm:$0xff]   ;;  %v2754_v27 = vrot.slane %v2753_v28, 1  ;;  %v10232_v29 = vrot.slane %v3146_v1, %v9492_v36 }
 0x2ef   : > { %v2064_v20 = vpop.f32.mrf.mxu1  ;;  %v2257_v34 = vpop.f32.mrf.mxu0  ;;  %4985 = vmatprep.subr.bf16.mxu1 %v8584_v61  ;;  %v2780_v9 = vrot.slane %v2779_v13, 1  ;;  %v2742_v4 = vmax.f32 %v2740_v25, %v2741_v31 }
 0x2f0   : > { %v2852_v21 = vmax.f32 %v2851_v3, %v2064_v20  ;;  %v2878_v8 = vmax.f32 %v2877_v15, %v2257_v34  ;;  %v10235_v3 = vsub.s32 3, %v9485_v32  ;;  %v8590_v34 = vld [vmem:[#allocation2 + $0x4] ss:$16 sps:$4 sm:$0xff]   ;;  %4986 = vmatpush1.bf16.msra.mxu1 %v8582_v52 }
 0x2f1   : > { %v2066_v62 = vpop.f32.mrf.mxu1  ;;  %v2259_v30 = vpop.f32.mrf.mxu0  ;;  %2437 = vmatmul.mubr.bf16.gmra.mxu1 %v10079_v53  ;;  %2630 = vmatmul.mubr.bf16.gmra.mxu0 %v10079_v53  ;;  %v8596_v52 = vld [vmem:[#allocation2 + $0x1e4] ss:$16 sps:$4 sm:$0xff]  }
 0x2f2   : > { %v2840_v50 = vmax.f32 %v2839_v48, %v2066_v62  ;;  %v2866_v51 = vmax.f32 %v2865_v23, %v2259_v30  ;;  %2446 = vmatprep.mubr.bf16.mxu1 %v11251_v7  ;;  %2639 = vmatprep.mubr.bf16.mxu0 %v11251_v7  ;;  %11252 = vst [vmem:[#allocation27_spill] sm:$0xff] %v10235_v3  ;;  %v8591_v30 = vld [vmem:[#allocation2 + $0x200] ss:$16 sps:$4 sm:$0xff]  }
 0x2f3   : > { %v2068_v22 = vpop.f32.mrf.mxu1  ;;  %v2261_v14 = vpop.f32.mrf.mxu0  ;;  %v2768_v62 = vmax.f32 %v2766_v57, %v2767_v63  ;;  %4987 = vmatprep.subr.bf16.mxu1 %v8590_v34  ;;  %5029 = vmatpush1.bf16.msra.mxu0 %v8591_v30  ;;  %v8605_v30 = vld [vmem:[#allocation2 + $0x3c4] ss:$16 sps:$4 sm:$0xff]  }
 0x2f4   : > { %v2841_v53 = vrot.slane %v2840_v50, 4  ;;  %v2867_v35 = vrot.slane %v2866_v51, 4  ;;  %v2853_v37 = vmax.f32 %v2852_v21, %v2068_v22  ;;  %v2879_v43 = vmax.f32 %v2878_v8, %v2261_v14  ;;  %v8588_v8 = vld [vmem:[#allocation2] ss:$16 sps:$4 sm:$0xff]   ;;  %5030 = vmatprep.subr.bf16.mxu0 %v8599_v24  ;;  %v8608_v24 = vld [vmem:[#allocation2 + $0x1a4] ss:$16 sps:$4 sm:$0xff]  }
 0x2f5   : > { %v10238_v21 = vrot.slane %v3146_v1, %v9497_v38  ;;  %4988 = vmatpush1.bf16.msra.mxu1 %v8588_v8  ;;  %v8600_v8 = vld [vmem:[#allocation2 + $0x1c0] ss:$16 sps:$4 sm:$0xff]  }
 0x2f6   : > { %v2842_v15 = vmax.f32 %v2840_v50, %v2841_v53  ;;  %v2868_v48 = vmax.f32 %v2866_v51, %v2867_v35  ;;  %v2854_v23 = vrot.slane %v2853_v37, 4  ;;  %v2880_v20 = vrot.slane %v2879_v43, 4  ;;  %v8597_v35 = vld [vmem:[#allocation2 + $0x3e0] ss:$16 sps:$4 sm:$0xff]   ;;  %4989 = vmatprep.subr.bf16.mxu1 %v8596_v52 }
 0x2f7   : > { %v2755_v50 = vmax.f32 %v2753_v28, %v2754_v27  ;;  %v2781_v51 = vmax.f32 %v2779_v13, %v2780_v9  ;;  %v10241_v53 = vrot.slane %v3146_v1, %v10235_v3  ;;  %v3188_v28 = vadd.f32 %v10229_v11, %v2742_v4  ;;  %v8594_v1 = vld [vmem:[#allocation2 + $0x1e0] ss:$16 sps:$4 sm:$0xff]   ;;  %5031 = vmatpush2.bf16.msra.mxu0 %v8597_v35 }
 0x2f8   : > { %v2843_v61 = vrot.slane %v2842_v15, 2  ;;  %v2869_v0 = vrot.slane %v2868_v48, 2  ;;  %v2855_v22 = vmax.f32 %v2853_v37, %v2854_v23  ;;  %v2881_v14 = vmax.f32 %v2879_v43, %v2880_v20  ;;  %5032 = vmatprep.subr.bf16.mxu0 %v8605_v30  ;;  %v8606_v35 = vld [vmem:[#allocation2 + $0x1a0] ss:$16 sps:$4 sm:$0xff]  }
 0x2f9   : > { %2447 = vmatmul.mubr.bf16.gmra.mxu1 %v10087_v2  ;;  %2640 = vmatmul.mubr.bf16.gmra.mxu0 %v10087_v2  ;;  %v3190_v13 = vadd.f32 %v10238_v21, %v2768_v62  ;;  %v3189_v9 = vadd.f32 %v10232_v29, %v2755_v50  ;;  %v3220_v4 = vmax.f32 %v3188_v28, 0.0  ;;  %v8603_v50 = vld [vmem:[#allocation2 + $0x3c0] ss:$16 sps:$4 sm:$0xff]   ;;  %v8611_v28 = vld [vmem:[#allocation2 + $0x3a4] ss:$16 sps:$4 sm:$0xff]  }
 0x2fa   : > { %v2844_v25 = vmax.f32 %v2842_v15, %v2843_v61  ;;  %v2870_v57 = vmax.f32 %v2868_v48, %v2869_v0  ;;  %v2856_v31 = vrot.slane %v2855_v22, 2  ;;  %v2882_v63 = vrot.slane %v2881_v14, 2  ;;  %2456 = vmatprep.mubr.bf16.mxu1 %v11251_v7  ;;  %2649 = vmatprep.mubr.bf16.mxu0 %v11251_v7 }
 0x2fb   : > { %v3191_v15 = vadd.f32 %v10241_v53, %v2781_v51  ;;  %v3222_v62 = vmax.f32 %v3190_v13, 0.0  ;;  %4990 = vmatpush2.bf16.msra.mxu1 %v8594_v1  ;;  %v3221_v51 = vmax.f32 %v3189_v9, 0.0  ;;  %v3252_v13 = vpack.c.bf16 %v3220_v4, %v3220_v4  ;;  %5033 = vmatpush2.bf16.msra.mxu0 %v8603_v50  ;;  %v8615_v50 = vld [vmem:[#allocation2 + $0x380] ss:$16 sps:$4 sm:$0xff]  }
 0x2fc   : > { %v2845_v37 = vrot.slane %v2844_v25, 1  ;;  %v2871_v2 = vrot.slane %v2870_v57, 1  ;;  %v2857_v43 = vmax.f32 %v2855_v22, %v2856_v31  ;;  %v2883_v27 = vmax.f32 %v2881_v14, %v2882_v63  ;;  %4991 = vmatprep.subr.bf16.mxu1 %v8602_v33  ;;  %5034 = vmatprep.subr.bf16.mxu0 %v8611_v28  ;;  %v8623_v28 = vld [vmem:[#allocation2 + $0x364] ss:$16 sps:$4 sm:$0xff]  }
 0x2fd   : > { %v3254_v1 = vpack.c.bf16 %v3222_v62, %v3222_v62  ;;  %v3253_v9 = vpack.c.bf16 %v3221_v51, %v3221_v51  ;;  %v3594_v33 = vunpack.c.l.b16 %v3252_v13  ;;  %v8614_v62 = vld [vmem:[#allocation2 + $0x184] ss:$16 sps:$4 sm:$0xff]   ;;  %v8618_v13 = vld [vmem:[#allocation2 + $0x160] ss:$16 sps:$4 sm:$0xff]  }
 0x2fe   : > { %v2846_v48 = vmax.f32 %v2844_v25, %v2845_v37  ;;  %v2872_v23 = vmax.f32 %v2870_v57, %v2871_v2  ;;  %v2858_v20 = vrot.slane %v2857_v43, 1  ;;  %v2884_v34 = vrot.slane %v2883_v27, 1 }
 0x2ff   : > { %v3223_v25 = vmax.f32 %v3191_v15, 0.0  ;;  %4992 = vmatpush2.bf16.msra.mxu1 %v8600_v8  ;;  %v3596_v4 = vunpack.c.l.b16 %v3254_v1  ;;  %v8617_v8 = vld [vmem:[#allocation2 + $0x384] ss:$16 sps:$4 sm:$0xff]   ;;  %v3595_v51 = vunpack.c.l.b16 %v3253_v9 }
 0x300   : > { %v3196_v61 = vadd.f32 %v10229_v11, %v2846_v48  ;;  %v3198_v0 = vadd.f32 %v10238_v21, %v2872_v23  ;;  %v2859_v22 = vmax.f32 %v2857_v43, %v2858_v20  ;;  %v2885_v14 = vmax.f32 %v2883_v27, %v2884_v34  ;;  %4993 = vmatprep.subr.bf16.mxu1 %v8608_v24  ;;  %v8609_v27 = vld [vmem:[#allocation2 + $0x3a0] ss:$16 sps:$4 sm:$0xff]   ;;  %v8620_v24 = vld [vmem:[#allocation2 + $0x164] ss:$16 sps:$4 sm:$0xff]  }
 0x301   : > { %2457 = vmatmul.mubr.bf16.gmra.mxu1 %v10109_v40  ;;  %2650 = vmatmul.mubr.bf16.gmra.mxu0 %v10109_v40  ;;  %v3255_v15 = vpack.c.bf16 %v3223_v25, %v3223_v25  ;;  %v8635_v9 = vld [vmem:[#allocation2 + $0x324] ss:$16 sps:$4 sm:$0xff]  }
 0x302   : > { %v3228_v57 = vmax.f32 %v3196_v61, 0.0  ;;  %v3230_v31 = vmax.f32 %v3198_v0, 0.0  ;;  %v3197_v63 = vadd.f32 %v10232_v29, %v2859_v22  ;;  %v3199_v52 = vadd.f32 %v10241_v53, %v2885_v14  ;;  %2466 = vmatprep.mubr.bf16.mxu1 %v11251_v7  ;;  %2659 = vmatprep.mubr.bf16.mxu0 %v11251_v7  ;;  %v8612_v14 = vld [vmem:[#allocation2 + $0x180] ss:$16 sps:$4 sm:$0xff]  }
 0x303   : > { %4994 = vmatpush2.bf16.msra.mxu1 %v8606_v35  ;;  %5035 = vmatpush2.bf16.msra.mxu0 %v8609_v27  ;;  %v3597_v25 = vunpack.c.l.b16 %v3255_v15  ;;  %v8632_v27 = vld [vmem:[#allocation2 + $0x124] ss:$16 sps:$4 sm:$0xff]   ;;  %v8630_v15 = vld [vmem:[#allocation2 + $0x120] ss:$16 sps:$4 sm:$0xff]  }
 0x304   : > { %v3260_v37 = vpack.c.bf16 %v3228_v57, %v3228_v57  ;;  %v3262_v2 = vpack.c.bf16 %v3230_v31, %v3230_v31  ;;  %v3229_v40 = vmax.f32 %v3197_v63, 0.0  ;;  %v3231_v43 = vmax.f32 %v3199_v52, 0.0  ;;  %4995 = vmatprep.subr.bf16.mxu1 %v8614_v62  ;;  %5036 = vmatprep.subr.bf16.mxu0 %v8617_v8 }
 0x306   : > { %v3602_v48 = vunpack.c.l.b16 %v3260_v37  ;;  %v3604_v23 = vunpack.c.l.b16 %v3262_v2  ;;  %v3261_v20 = vpack.c.bf16 %v3229_v40, %v3229_v40  ;;  %v3263_v34 = vpack.c.bf16 %v3231_v43, %v3231_v43  ;;  %v8626_v37 = vld [vmem:[#allocation2 + $0x144] ss:$16 sps:$4 sm:$0xff]   ;;  %v8624_v40 = vld [vmem:[#allocation2 + $0x140] ss:$16 sps:$4 sm:$0xff]  }
 0x307   : > { %4996 = vmatpush2.bf16.msra.mxu1 %v8612_v14  ;;  %5037 = vmatpush2.bf16.msra.mxu0 %v8615_v50  ;;  %v8629_v2 = vld [vmem:[#allocation2 + $0x344] ss:$16 sps:$4 sm:$0xff]   ;;  %v8627_v43 = vld [vmem:[#allocation2 + $0x340] ss:$16 sps:$4 sm:$0xff]  }
 0x308   : > { %v3626_v30 = vrot.slane %v3602_v48, 7  ;;  %v3641_v61 = vrot.slane %v3604_v23, 7  ;;  %v3603_v0 = vunpack.c.l.b16 %v3261_v20  ;;  %v3605_v22 = vunpack.c.l.b16 %v3263_v34  ;;  %4997 = vmatprep.subr.bf16.mxu1 %v8620_v24  ;;  %5038 = vmatprep.subr.bf16.mxu0 %v8623_v28  ;;  %v8633_v48 = vld [vmem:[#allocation2 + $0x320] ss:$16 sps:$4 sm:$0xff]   ;;  %v8638_v34 = vld [vmem:[#allocation2 + $0x104] ss:$16 sps:$4 sm:$0xff]  }
 0x309   : > { %2467 = vmatmul.mubr.bf16.gmra.mxu1 %v10117_v17  ;;  %2660 = vmatmul.mubr.bf16.gmra.mxu0 %v10117_v17  ;;  %v8621_v17 = vld [vmem:[#allocation2 + $0x360] ss:$16 sps:$4 sm:$0xff]  }
 0x30a   : > { %v10262_v57 = vsel %vm3627_vm1, %v3626_v30, %v3594_v33  ;;  %v10265_v31 = vsel %vm3627_vm1, %v3641_v61, %v3596_v4  ;;  %v3635_v63 = vrot.slane %v3603_v0, 7  ;;  %v3647_v52 = vrot.slane %v3605_v22, 7  ;;  %2476 = vmatprep.mubr.bf16.mxu1 %v11251_v7  ;;  %2669 = vmatprep.mubr.bf16.mxu0 %v11251_v7  ;;  %v10279_v23 = vpop.f32.mrf.mxu1  ;;  %v10281_v20 = vpop.f32.mrf.mxu0  ;;  %v8636_v33 = vld [vmem:[#allocation2 + $0x100] ss:$16 sps:$4 sm:$0xff]  }
 0x30b   : > { %4998 = vmatpush2.bf16.msra.mxu1 %v8618_v13  ;;  %5039 = vmatpush2.bf16.msra.mxu0 %v8621_v17  ;;  %v8639_v4 = vld [vmem:[#allocation2 + $0x300] ss:$16 sps:$4 sm:$0xff]  }
 0x30c   : > { %v10270_v1 = vsel %vm3627_vm1, %v3635_v63, %v3595_v51  ;;  %v10273_v35 = vsel %vm3627_vm1, %v3647_v52, %v3597_v25  ;;  %4999 = vmatprep.subr.bf16.mxu1 %v8626_v37  ;;  %5040 = vmatprep.subr.bf16.mxu0 %v8629_v2  ;;  %v10287_v62 = vpop.f32.mrf.mxu1  ;;  %v10289_v8 = vpop.f32.mrf.mxu0 }
 0x30e   : > { %v2076_v30 = vpop.f32.mrf.mxu1  ;;  %v2269_v61 = vpop.f32.mrf.mxu0 }
 0x30f   : > { %5000 = vmatpush2.bf16.msra.mxu1 %v8624_v40  ;;  %5041 = vmatpush2.bf16.msra.mxu0 %v8627_v43  ;;  %v2938_v41 = vmax.f32 %v10279_v23, %v2076_v30 }
 0x310   : > { %5001 = vmatprep.subr.bf16.mxu1 %v8632_v27  ;;  %5042 = vmatprep.subr.bf16.mxu0 %v8635_v9  ;;  %v2271_v0 = vpop.f32.mrf.mxu0 }
 0x311   : > { %2477 = vmatmul.mubr.bf16.gmra.mxu1 %v10127_v56  ;;  %2670 = vmatmul.mubr.bf16.gmra.mxu0 %v10127_v56  ;;  %v8641_v56 = vld [vmem:[#allocation2 + $0x304] ss:$16 sps:$4 sm:$0xff]   ;;  %v2977_v10 = vmax.f32 %v10289_v8, %v2271_v0 }
 0x312   : > { %2486 = vmatprep.mubr.bf16.mxu1 %v11251_v7  ;;  %2679 = vmatprep.mubr.bf16.mxu0 %v11251_v7  ;;  %v2275_v14 = vpop.f32.mrf.mxu0 }
 0x313   : > { %5002 = vmatpush2.bf16.msra.mxu1 %v8630_v15  ;;  %5043 = vmatpush2.bf16.msra.mxu0 %v8633_v48 }
 0x314   : > { %5003 = vmatprep.subr.bf16.mxu1 %v8638_v34  ;;  %5044 = vmatprep.subr.bf16.mxu0 %v8641_v56  ;;  %v2277_v51 = vpop.f32.mrf.mxu0 }
 0x315   : > { %v2978_v6 = vmax.f32 %v2977_v10, %v2277_v51 }
 0x317   : > { %5004 = vmatpush2.bf16.msra.mxu1 %v8636_v33  ;;  %5045 = vmatpush2.bf16.msra.mxu0 %v8639_v4 }
 0x318   : > { %5055 = vmatprep.subr.bf16.mxu1 %v8644_v47  ;;  %5096 = vmatprep.subr.bf16.mxu0 %v8647_v58 }
 0x319   : > { %2487 = vmatmul.mubr.bf16.gmra.mxu1 %v10135_v42  ;;  %2680 = vmatmul.mubr.bf16.gmra.mxu0 %v10135_v42  ;;  %v2078_v42 = vpop.f32.mrf.mxu1 }
 0x31a   : > { %2496 = vmatprep.mubr.bf16.mxu1 %v11251_v7  ;;  %2689 = vmatprep.mubr.bf16.mxu0 %v11251_v7  ;;  %v2951_v12 = vmax.f32 %v10287_v62, %v2078_v42 }
 0x31b   : > { %v2082_v22 = vpop.f32.mrf.mxu1 }
 0x31c   : > { %v2939_v3 = vmax.f32 %v2938_v41, %v2082_v22 }
 0x31d   : > { %v2084_v50 = vpop.f32.mrf.mxu1 }
 0x31e   : > { %v2952_v18 = vmax.f32 %v2951_v12, %v2084_v50 }
 0x31f   : > { %v2086_v25 = vpop.f32.mrf.mxu1 }
 0x320   : > { %v2940_v44 = vmax.f32 %v2939_v3, %v2086_v25 }
 0x321   : > { %2497 = vmatmul.mubr.bf16.gmra.mxu1 %v10145_v16  ;;  %2690 = vmatmul.mubr.bf16.gmra.mxu0 %v10145_v16  ;;  %v2279_v16 = vpop.f32.mrf.mxu0  ;;  %v2088_v63 = vpop.f32.mrf.mxu1 }
 0x322   : > { %2506 = vmatprep.mubr.bf16.mxu1 %v11251_v7  ;;  %2699 = vmatprep.mubr.bf16.mxu0 %v11251_v7  ;;  %v2953_v41 = vmax.f32 %v2952_v18, %v2088_v63 }
 0x323   : > { %v2281_v52 = vpop.f32.mrf.mxu0 }
 0x329   : > { %2507 = vmatmul.mubr.bf16.gmra.mxu1 %v10153_v5  ;;  %2700 = vmatmul.mubr.bf16.gmra.mxu0 %v10153_v5 }
 0x32a   : > { %2516 = vmatprep.mubr.bf16.mxu1 %v11251_v7  ;;  %2709 = vmatprep.mubr.bf16.mxu0 %v11251_v7 }
 0x32b   : > { %v2092_v24 = vpop.f32.mrf.mxu1  ;;  %v2285_v5 = vpop.f32.mrf.mxu0 }
 0x32c   : > { %v2941_v19 = vmax.f32 %v2940_v44, %v2092_v24 }
 0x32d   : > { %v2094_v28 = vpop.f32.mrf.mxu1  ;;  %v2287_v13 = vpop.f32.mrf.mxu0 }
 0x32f   : > { %v2096_v17 = vpop.f32.mrf.mxu1  ;;  %v2289_v37 = vpop.f32.mrf.mxu0 }
 0x330   : > { %v2942_v22 = vmax.f32 %v2941_v19, %v2096_v17 }
 0x331   : > { %2517 = vmatmul.mubr.bf16.gmra.mxu1 %v10163_v60  ;;  %2710 = vmatmul.mubr.bf16.gmra.mxu0 %v10163_v60  ;;  %v2098_v2 = vpop.f32.mrf.mxu1  ;;  %v2291_v40 = vpop.f32.mrf.mxu0 }
 0x332   : > { %2526 = vmatprep.mubr.bf16.mxu1 %v11251_v7  ;;  %2719 = vmatprep.mubr.bf16.mxu0 %v11251_v7 }
 0x333   : > { %v2102_v43 = vpop.f32.mrf.mxu1  ;;  %v2295_v60 = vpop.f32.mrf.mxu0 }
 0x334   : > { %v2943_v42 = vmax.f32 %v2942_v22, %v2102_v43 }
 0x335   : > { %v2104_v27 = vpop.f32.mrf.mxu1  ;;  %v2297_v9 = vpop.f32.mrf.mxu0 }
 0x337   : > { %v2106_v15 = vpop.f32.mrf.mxu1  ;;  %v2299_v48 = vpop.f32.mrf.mxu0 }
 0x338   : > { %v2944_v12 = vmax.f32 %v2943_v42, %v2106_v15 }
 0x339   : > { %2527 = vmatmul.mubr.bf16.gmra.mxu1 %v10175_v26  ;;  %2720 = vmatmul.mubr.bf16.gmra.mxu0 %v10175_v26  ;;  %v2108_v34 = vpop.f32.mrf.mxu1  ;;  %v2301_v56 = vpop.f32.mrf.mxu0  ;;  %v2964_v26 = vmax.f32 %v10281_v20, %v2269_v61  ;;  %v2979_v61 = vmax.f32 %v2978_v6, %v2281_v52 }
 0x33a   : > { %v2945_v47 = vrot.slane %v2944_v12, 4 }
 0x33b   : > { %v2965_v38 = vmax.f32 %v2964_v26, %v2275_v14  ;;  %v2954_v26 = vmax.f32 %v2953_v41, %v2094_v28  ;;  %v2980_v62 = vmax.f32 %v2979_v61, %v2287_v13 }
 0x33c   : > { %v2946_v63 = vmax.f32 %v2944_v12, %v2945_v47 }
 0x33d   : > { %v2966_v49 = vmax.f32 %v2965_v38, %v2279_v16  ;;  %v2955_v0 = vmax.f32 %v2954_v26, %v2098_v2  ;;  %v2981_v25 = vmax.f32 %v2980_v62, %v2291_v40 }
 0x33e   : > { %v2947_v17 = vrot.slane %v2946_v63, 2 }
 0x33f   : > { %v2967_v23 = vmax.f32 %v2966_v49, %v2285_v5  ;;  %v2956_v44 = vmax.f32 %v2955_v0, %v2104_v27  ;;  %v2982_v49 = vmax.f32 %v2981_v25, %v2297_v9 }
 0x340   : > { %v2948_v27 = vmax.f32 %v2946_v63, %v2947_v17 }
 0x341   : > { %v2968_v14 = vmax.f32 %v2967_v23, %v2289_v37  ;;  %v2957_v18 = vmax.f32 %v2956_v44, %v2108_v34  ;;  %v2983_v6 = vmax.f32 %v2982_v49, %v2301_v56 }
 0x343   : > { %v2969_v8 = vmax.f32 %v2968_v14, %v2295_v60  ;;  %v2958_v24 = vrot.slane %v2957_v18, 4  ;;  %v2984_v5 = vrot.slane %v2983_v6, 4 }
 0x345   : > { %v2970_v10 = vmax.f32 %v2969_v8, %v2299_v48  ;;  %v2959_v2 = vmax.f32 %v2957_v18, %v2958_v24  ;;  %v2985_v40 = vmax.f32 %v2983_v6, %v2984_v5  ;;  %v2949_v8 = vrot.slane %v2948_v27, 1 }
 0x347   : > { %v2971_v58 = vrot.slane %v2970_v10, 4  ;;  %v2960_v15 = vrot.slane %v2959_v2, 2  ;;  %v2986_v48 = vrot.slane %v2985_v40, 2 }
 0x349   : > { %v2972_v52 = vmax.f32 %v2970_v10, %v2971_v58  ;;  %v2961_v25 = vmax.f32 %v2959_v2, %v2960_v15  ;;  %v2987_v12 = vmax.f32 %v2985_v40, %v2986_v48 }
 0x34b   : > { %v2973_v37 = vrot.slane %v2972_v52, 2 }
 0x34d   : > { %v2974_v9 = vmax.f32 %v2972_v52, %v2973_v37 }
 0x34f   : > { %v2975_v0 = vrot.slane %v2974_v9, 1 }
 0x350   : > { %v10305_v33 = vpop.f32.mrf.mxu1  ;;  %v10307_v4 = vpop.f32.mrf.mxu0 }
 0x352   : > { %v10311_v45 = vpop.f32.mrf.mxu1  ;;  %v10313_v59 = vpop.f32.mrf.mxu0 }
 0x354   : > { %v2116_v30 = vpop.f32.mrf.mxu1  ;;  %v2309_v20 = vpop.f32.mrf.mxu0 }
 0x355   : > { %v3042_v23 = vmax.f32 %v10305_v33, %v2116_v30  ;;  %v3068_v41 = vmax.f32 %v10307_v4, %v2309_v20 }
 0x356   : > { %v2118_v3 = vpop.f32.mrf.mxu1  ;;  %v2311_v38 = vpop.f32.mrf.mxu0 }
 0x357   : > { %v3055_v14 = vmax.f32 %v10311_v45, %v2118_v3  ;;  %v3081_v26 = vmax.f32 %v10313_v59, %v2311_v38  ;;  %v2950_v3 = vmax.f32 %v2948_v27, %v2949_v8  ;;  %v2976_v59 = vmax.f32 %v2974_v9, %v2975_v0 }
 0x358   : > { %v2122_v50 = vpop.f32.mrf.mxu1  ;;  %v2315_v51 = vpop.f32.mrf.mxu0  ;;  %v2962_v38 = vrot.slane %v2961_v25, 1 }
 0x359   : > { %v3043_v62 = vmax.f32 %v3042_v23, %v2122_v50  ;;  %v3069_v42 = vmax.f32 %v3068_v41, %v2315_v51  ;;  %v2988_v50 = vrot.slane %v2987_v12, 1  ;;  %v3204_v40 = vadd.f32 %v10229_v11, %v2950_v3 }
 0x35a   : > { %v2124_v19 = vpop.f32.mrf.mxu1  ;;  %v2317_v16 = vpop.f32.mrf.mxu0 }
 0x35b   : > { %v3056_v49 = vmax.f32 %v3055_v14, %v2124_v19  ;;  %v3082_v47 = vmax.f32 %v3081_v26, %v2317_v16  ;;  %v2989_v27 = vmax.f32 %v2987_v12, %v2988_v50 }
 0x35c   : > { %v2126_v28 = vpop.f32.mrf.mxu1  ;;  %v2319_v13 = vpop.f32.mrf.mxu0 }
 0x35d   : > { %v3044_v58 = vmax.f32 %v3043_v62, %v2126_v28  ;;  %v3070_v33 = vmax.f32 %v3069_v42, %v2319_v13  ;;  %v3236_v42 = vmax.f32 %v3204_v40, 0.0 }
 0x35e   : > { %v2128_v43 = vpop.f32.mrf.mxu1  ;;  %v2321_v60 = vpop.f32.mrf.mxu0 }
 0x35f   : > { %v3057_v20 = vmax.f32 %v3056_v49, %v2128_v43  ;;  %v3083_v18 = vmax.f32 %v3082_v47, %v2321_v60  ;;  %v3206_v43 = vadd.f32 %v10238_v21, %v2976_v59  ;;  %v2963_v60 = vmax.f32 %v2961_v25, %v2962_v38 }
 0x361   : > { %v3238_v8 = vmax.f32 %v3206_v43, 0.0  ;;  %v3205_v0 = vadd.f32 %v10232_v29, %v2963_v60 }
 0x363   : > { %v3270_v3 = vpack.c.bf16 %v3238_v8, %v3238_v8  ;;  %v3237_v59 = vmax.f32 %v3205_v0, 0.0 }
 0x365   : > { %v3612_v60 = vunpack.c.l.b16 %v3270_v3 }
 0x371   : > { %v2132_v34 = vpop.f32.mrf.mxu1  ;;  %v2325_v56 = vpop.f32.mrf.mxu0 }
 0x372   : > { %v3045_v6 = vmax.f32 %v3044_v58, %v2132_v34  ;;  %v3071_v45 = vmax.f32 %v3070_v33, %v2325_v56 }
 0x373   : > { %v2134_v61 = vpop.f32.mrf.mxu1  ;;  %v2327_v22 = vpop.f32.mrf.mxu0 }
 0x374   : > { %v3058_v52 = vmax.f32 %v3057_v20, %v2134_v61  ;;  %v3084_v24 = vmax.f32 %v3083_v18, %v2327_v22 }
 0x375   : > { %v2136_v10 = vpop.f32.mrf.mxu1  ;;  %v2329_v44 = vpop.f32.mrf.mxu0 }
 0x376   : > { %v3046_v5 = vmax.f32 %v3045_v6, %v2136_v10  ;;  %v3072_v17 = vmax.f32 %v3071_v45, %v2329_v44  ;;  %v3207_v10 = vadd.f32 %v10241_v53, %v2989_v27  ;;  %v3268_v45 = vpack.c.bf16 %v3236_v42, %v3236_v42 }
 0x377   : > { %v2138_v30 = vpop.f32.mrf.mxu1  ;;  %v2331_v4 = vpop.f32.mrf.mxu0  ;;  %v3269_v27 = vpack.c.bf16 %v3237_v59, %v3237_v59  ;;  %v3643_v59 = vrot.slane %v3612_v60, 6 }
 0x378   : > { %v3059_v28 = vmax.f32 %v3058_v52, %v2138_v30  ;;  %v3085_v13 = vmax.f32 %v3084_v24, %v2331_v4  ;;  %v3239_v38 = vmax.f32 %v3207_v10, 0.0  ;;  %v3610_v43 = vunpack.c.l.b16 %v3268_v45 }
 0x379   : > { %v2142_v51 = vpop.f32.mrf.mxu1  ;;  %v2335_v63 = vpop.f32.mrf.mxu0 }
 0x37a   : > { %v3047_v37 = vmax.f32 %v3046_v5, %v2142_v51  ;;  %v3073_v2 = vmax.f32 %v3072_v17, %v2335_v63 }
 0x37b   : > { %v2144_v19 = vpop.f32.mrf.mxu1  ;;  %v2337_v16 = vpop.f32.mrf.mxu0 }
 0x37c   : > { %v3060_v48 = vmax.f32 %v3059_v28, %v2144_v19  ;;  %v3086_v34 = vmax.f32 %v3085_v13, %v2337_v16 }
 0x37d   : > { %v2146_v9 = vpop.f32.mrf.mxu1  ;;  %v2339_v15 = vpop.f32.mrf.mxu0 }
 0x37e   : > { %v3048_v56 = vmax.f32 %v3047_v37, %v2146_v9  ;;  %v3074_v23 = vmax.f32 %v3073_v2, %v2339_v15  ;;  %v3271_v9 = vpack.c.bf16 %v3239_v38, %v3239_v38 }
 0x37f   : > { %v2148_v41 = vpop.f32.mrf.mxu1  ;;  %v2341_v61 = vpop.f32.mrf.mxu0 }
 0x380   : > { %v3049_v22 = vrot.slane %v3048_v56, 4  ;;  %v3075_v14 = vrot.slane %v3074_v23, 4  ;;  %v3061_v26 = vmax.f32 %v3060_v48, %v2148_v41  ;;  %v3087_v62 = vmax.f32 %v3086_v34, %v2341_v61 }
 0x381   : > { %v2378_v25 = vpop.f32.mrf.mxu1  ;;  %v2571_v12 = vpop.f32.mrf.mxu0 }
 0x382   : > { %v3050_v44 = vmax.f32 %v3048_v56, %v3049_v22  ;;  %v3076_v49 = vmax.f32 %v3074_v23, %v3075_v14  ;;  %v3062_v47 = vrot.slane %v3061_v26, 4  ;;  %v3088_v58 = vrot.slane %v3087_v62, 4 }
 0x383   : > { %v2380_v33 = vpop.f32.mrf.mxu1  ;;  %v2573_v30 = vpop.f32.mrf.mxu0 }
 0x384   : > { %v3051_v4 = vrot.slane %v3050_v44, 2  ;;  %v3077_v20 = vrot.slane %v3076_v49, 2  ;;  %v3063_v18 = vmax.f32 %v3061_v26, %v3062_v47  ;;  %v3089_v6 = vmax.f32 %v3087_v62, %v3088_v58 }
 0x385   : > { %v2382_v50 = vpop.f32.mrf.mxu1  ;;  %v2575_v51 = vpop.f32.mrf.mxu0 }
 0x386   : > { %v3052_v63 = vmax.f32 %v3050_v44, %v3051_v4  ;;  %v3078_v52 = vmax.f32 %v3076_v49, %v3077_v20  ;;  %v3064_v24 = vrot.slane %v3063_v18, 2  ;;  %v3090_v5 = vrot.slane %v3089_v6, 2 }
 0x387   : > { %v2782_v17 = vmax.f32 %v2378_v25, %v2382_v50  ;;  %v2808_v19 = vmax.f32 %v2571_v12, %v2575_v51  ;;  %v2384_v16 = vpop.f32.mrf.mxu1  ;;  %v2577_v28 = vpop.f32.mrf.mxu0  ;;  %v3611_v20 = vunpack.c.l.b16 %v3269_v27 }
 0x388   : > { %v3053_v13 = vrot.slane %v3052_v63, 1  ;;  %v3079_v37 = vrot.slane %v3078_v52, 1  ;;  %v3065_v2 = vmax.f32 %v3063_v18, %v3064_v24  ;;  %v3091_v40 = vmax.f32 %v3089_v6, %v3090_v5 }
 0x389   : > { %v2388_v15 = vpop.f32.mrf.mxu1  ;;  %v2581_v48 = vpop.f32.mrf.mxu0  ;;  %v2795_v61 = vmax.f32 %v2380_v33, %v2384_v16  ;;  %v2821_v22 = vmax.f32 %v2573_v30, %v2577_v28  ;;  %v3613_v18 = vunpack.c.l.b16 %v3271_v9 }
 0x38a   : > { %v3054_v34 = vmax.f32 %v3052_v63, %v3053_v13  ;;  %v3080_v56 = vmax.f32 %v3078_v52, %v3079_v37  ;;  %v3066_v23 = vrot.slane %v3065_v2, 1  ;;  %v3092_v41 = vrot.slane %v3091_v40, 1 }
 0x38b   : > { %v2783_v14 = vmax.f32 %v2782_v17, %v2388_v15  ;;  %v2809_v26 = vmax.f32 %v2808_v19, %v2581_v48  ;;  %v2390_v62 = vpop.f32.mrf.mxu1  ;;  %v2583_v42 = vpop.f32.mrf.mxu0  ;;  %v3649_v27 = vrot.slane %v3613_v18, 6  ;;  %v8642_v18 = vld [vmem:[#allocation2 + $0x4e0] ss:$16 sps:$4 sm:$0xff]  }
 0x38c   : > { %v3212_v8 = vadd.f32 %v10229_v11, %v3054_v34  ;;  %v3214_v0 = vadd.f32 %v10238_v21, %v3080_v56  ;;  %v3067_v10 = vmax.f32 %v3065_v2, %v3066_v23  ;;  %v3093_v25 = vmax.f32 %v3091_v40, %v3092_v41 }
 0x38d   : > { %v2796_v12 = vmax.f32 %v2795_v61, %v2390_v62  ;;  %v2822_v44 = vmax.f32 %v2821_v22, %v2583_v42  ;;  %v2392_v49 = vpop.f32.mrf.mxu1  ;;  %v2585_v47 = vpop.f32.mrf.mxu0  ;;  %v3629_v21 = vrot.slane %v3610_v43, 6  ;;  %v3637_v2 = vrot.slane %v3611_v20, 6 }
 0x38e   : > { %v3244_v58 = vmax.f32 %v3212_v8, 0.0  ;;  %v3246_v4 = vmax.f32 %v3214_v0, 0.0  ;;  %v3213_v33 = vadd.f32 %v10232_v29, %v3067_v10  ;;  %v3215_v30 = vadd.f32 %v10241_v53, %v3093_v25 }
 0x38f   : > { %v2784_v6 = vmax.f32 %v2783_v14, %v2392_v49  ;;  %v2810_v45 = vmax.f32 %v2809_v26, %v2585_v47  ;;  %v2394_v11 = vpop.f32.mrf.mxu1  ;;  %v2587_v3 = vpop.f32.mrf.mxu0  ;;  %v3631_v22 = vsel %vm3630_vm2, %v3629_v21, %v10262_v57  ;;  %v3644_v14 = vsel %vm3630_vm2, %v3643_v59, %v10265_v31  ;;  %v8653_v21 = vld [vmem:[#allocation2 + $0x6c4] ss:$16 sps:$4 sm:$0xff]  }
 0x390   : > { %v3276_v38 = vpack.c.bf16 %v3244_v58, %v3244_v58  ;;  %v3278_v50 = vpack.c.bf16 %v3246_v4, %v3246_v4  ;;  %v2797_v51 = vmax.f32 %v2796_v12, %v2394_v11  ;;  %v2823_v63 = vmax.f32 %v2822_v44, %v2587_v3  ;;  %v8650_v3 = vld [vmem:[#allocation2 + $0x4c4] ss:$16 sps:$4 sm:$0xff]  }
 0x391   : > { %v2398_v52 = vpop.f32.mrf.mxu1  ;;  %v2591_v24 = vpop.f32.mrf.mxu0  ;;  %v3245_v5 = vmax.f32 %v3213_v33, 0.0  ;;  %v3247_v17 = vmax.f32 %v3215_v30, 0.0  ;;  %v3638_v25 = vsel %vm3630_vm2, %v3637_v2, %v10270_v1  ;;  %v3650_v12 = vsel %vm3630_vm2, %v3649_v27, %v10273_v35  ;;  %v8662_v27 = vld [vmem:[#allocation2 + $0x484] ss:$16 sps:$4 sm:$0xff]  }
 0x392   : > { %v3618_v19 = vunpack.c.l.b16 %v3276_v38  ;;  %v3620_v29 = vunpack.c.l.b16 %v3278_v50  ;;  %v2785_v16 = vmax.f32 %v2784_v6, %v2398_v52  ;;  %v2811_v53 = vmax.f32 %v2810_v45, %v2591_v24  ;;  %v8645_v6 = vld [vmem:[#allocation2 + $0x6e0] ss:$16 sps:$4 sm:$0xff]  }
 0x393   : > { %v2400_v28 = vpop.f32.mrf.mxu1  ;;  %v2593_v13 = vpop.f32.mrf.mxu0  ;;  %v3277_v37 = vpack.c.bf16 %v3245_v5, %v3245_v5  ;;  %v3279_v40 = vpack.c.bf16 %v3247_v17, %v3247_v17  ;;  %v8648_v24 = vld [vmem:[#allocation2 + $0x4c0] ss:$16 sps:$4 sm:$0xff]  }
 0x394   : > { %v3632_v43 = vrot.slane %v3618_v19, 5  ;;  %v3645_v60 = vrot.slane %v3620_v29, 5  ;;  %v2798_v9 = vmax.f32 %v2797_v51, %v2400_v28  ;;  %v2824_v15 = vmax.f32 %v2823_v63, %v2593_v13  ;;  %v8651_v5 = vld [vmem:[#allocation2 + $0x6c0] ss:$16 sps:$4 sm:$0xff]   ;;  %v8656_v29 = vld [vmem:[#allocation2 + $0x4a4] ss:$16 sps:$4 sm:$0xff]  }
 0x395   : > { %v2402_v48 = vpop.f32.mrf.mxu1  ;;  %v2595_v34 = vpop.f32.mrf.mxu0  ;;  %v3619_v56 = vunpack.c.l.b16 %v3277_v37  ;;  %v3621_v23 = vunpack.c.l.b16 %v3279_v40  ;;  %v8654_v13 = vld [vmem:[#allocation2 + $0x4a0] ss:$16 sps:$4 sm:$0xff]  }
 0x396   : > { %v2786_v41 = vmax.f32 %v2785_v16, %v2402_v48  ;;  %v2812_v61 = vmax.f32 %v2811_v53, %v2595_v34  ;;  %v3634_v0 = vsel %vm3633_vm3, %v3632_v43, %v3631_v22  ;;  %v3646_v10 = vsel %vm3633_vm3, %v3645_v60, %v3644_v14  ;;  %v8659_v16 = vld [vmem:[#allocation2 + $0x6a4] ss:$16 sps:$4 sm:$0xff]   ;;  %v8657_v37 = vld [vmem:[#allocation2 + $0x6a0] ss:$16 sps:$4 sm:$0xff]  }
 0x397   : > { %v2404_v26 = vpop.f32.mrf.mxu1  ;;  %v2597_v62 = vpop.f32.mrf.mxu0  ;;  %v3639_v42 = vrot.slane %v3619_v56, 5  ;;  %v3651_v8 = vrot.slane %v3621_v23, 5  ;;  %v10345_v1 = vpack.c.b16 %v3634_v0, %v3634_v0  ;;  %v10347_v45 = vpack.c.b16 %v3646_v10, %v3646_v10  ;;  %v8665_v43 = vld [vmem:[#allocation2 + $0x684] ss:$16 sps:$4 sm:$0xff]   ;;  %v8663_v48 = vld [vmem:[#allocation2 + $0x680] ss:$16 sps:$4 sm:$0xff]  }
 0x398   : > { %v2799_v44 = vmax.f32 %v2798_v9, %v2404_v26  ;;  %v2825_v49 = vmax.f32 %v2824_v15, %v2597_v62  ;;  %v8660_v15 = vld [vmem:[#allocation2 + $0x480] ss:$16 sps:$4 sm:$0xff]   ;;  %v8671_v22 = vld [vmem:[#allocation2 + $0x664] ss:$16 sps:$4 sm:$0xff]  }
 0x399   : > { %v2408_v57 = vpop.f32.mrf.mxu1  ;;  %v2601_v47 = vpop.f32.mrf.mxu0  ;;  %v3640_v31 = vsel %vm3633_vm3, %v3639_v42, %v3638_v25  ;;  %v3652_v58 = vsel %vm3633_vm3, %v3651_v8, %v3650_v12  ;;  %v8666_v42 = vld [vmem:[#allocation2 + $0x460] ss:$16 sps:$4 sm:$0xff]  }
 0x39a   : > { %v2787_v4 = vmax.f32 %v2786_v41, %v2408_v57  ;;  %v2813_v33 = vmax.f32 %v2812_v61, %v2601_v47  ;;  %v10341_v30 = vpack.c.b16 %v3640_v31, %v3640_v31  ;;  %v10343_v20 = vpack.c.b16 %v3652_v58, %v3652_v58  ;;  %v8668_v61 = vld [vmem:[#allocation2 + $0x464] ss:$16 sps:$4 sm:$0xff]   ;;  %v8669_v8 = vld [vmem:[#allocation2 + $0x660] ss:$16 sps:$4 sm:$0xff]  }
 0x39b   : > { %v2410_v35 = vpop.f32.mrf.mxu1  ;;  %v2603_v11 = vpop.f32.mrf.mxu0  ;;  %v8677_v57 = vld [vmem:[#allocation2 + $0x644] ss:$16 sps:$4 sm:$0xff]  }
 0x39c   : > { %v2800_v59 = vmax.f32 %v2799_v44, %v2410_v35  ;;  %v2826_v38 = vmax.f32 %v2825_v49, %v2603_v11  ;;  %5005 = vmatprep.mubr.bf16.mxu1 %v10341_v30  ;;  %5046 = vmatprep.mubr.bf16.mxu0 %v10343_v20  ;;  %v8674_v49 = vld [vmem:[#allocation2 + $0x444] ss:$16 sps:$4 sm:$0xff]   ;;  %v8672_v35 = vld [vmem:[#allocation2 + $0x440] ss:$16 sps:$4 sm:$0xff]  }
 0x39d   : > { %5006 = vmatmul.mubr.bf16.vlgmr.msra.gmra.mxu1 %v10345_v1  ;;  %5047 = vmatmul.mubr.bf16.vlgmr.msra.gmra.mxu0 %v10347_v45  ;;  %v2412_v50 = vpop.f32.mrf.mxu1  ;;  %v2605_v51 = vpop.f32.mrf.mxu0  ;;  %v8675_v11 = vld [vmem:[#allocation2 + $0x640] ss:$16 sps:$4 sm:$0xff]  }
 0x39e   : > { %v10353_v63 = vmax.f32 %v2787_v4, %v2412_v50  ;;  %v10355_v52 = vmax.f32 %v2813_v33, %v2605_v51  ;;  %5056 = vmatpush1.bf16.msra.mxu1 %v8642_v18  ;;  %5097 = vmatpush1.bf16.msra.mxu0 %v8645_v6 }
 0x39f   : > { %v2414_v17 = vpop.f32.mrf.mxu1  ;;  %v2607_v19 = vpop.f32.mrf.mxu0  ;;  %5057 = vmatprep.subr.bf16.mxu1 %v8650_v3  ;;  %5098 = vmatprep.subr.bf16.mxu0 %v8653_v21 }
 0x3a0   : > { %v2801_v47 = vmax.f32 %v2800_v59, %v2414_v17  ;;  %v2827_v31 = vmax.f32 %v2826_v38, %v2607_v19  ;;  %v2789_v6 = vrot.slane %v10353_v63, 4  ;;  %v2815_v3 = vrot.slane %v10355_v52, 4  ;;  %v8680_v59 = vld [vmem:[#allocation2 + $0x424] ss:$16 sps:$4 sm:$0xff]  }
 0x3a1   : > { %v2418_v53 = vpop.f32.mrf.mxu1  ;;  %v2611_v28 = vpop.f32.mrf.mxu0  ;;  %v8683_v38 = vld [vmem:[#allocation2 + $0x624] ss:$16 sps:$4 sm:$0xff]  }
 0x3a2   : > { %5058 = vmatpush1.bf16.msra.mxu1 %v8648_v24  ;;  %5099 = vmatpush1.bf16.msra.mxu0 %v8651_v5  ;;  %v2802_v5 = vrot.slane %v2801_v47, 4  ;;  %v2828_v17 = vrot.slane %v2827_v31, 4 }
 0x3a3   : > { %v2420_v2 = vpop.f32.mrf.mxu1  ;;  %v2613_v40 = vpop.f32.mrf.mxu0  ;;  %5059 = vmatprep.subr.bf16.mxu1 %v8656_v29  ;;  %5100 = vmatprep.subr.bf16.mxu0 %v8659_v16  ;;  %v2790_v16 = vmax.f32 %v10353_v63, %v2789_v6  ;;  %v3166_v6 = vsub.s32 4, %v9485_v32 }
 0x3a4   : > { %v2829_v63 = vmax.f32 %v2827_v31, %v2828_v17 }
 0x3a5   : > { %v2422_v60 = vpop.f32.mrf.mxu1  ;;  %v2615_v9 = vpop.f32.mrf.mxu0 }
 0x3a6   : > { %5060 = vmatpush1.bf16.msra.mxu1 %v8654_v13  ;;  %5101 = vmatpush1.bf16.msra.mxu0 %v8657_v37  ;;  %v2886_v34 = vmax.f32 %v2418_v53, %v2422_v60  ;;  %v2912_v56 = vmax.f32 %v2611_v28, %v2615_v9  ;;  %v8678_v13 = vld [vmem:[#allocation2 + $0x420] ss:$16 sps:$4 sm:$0xff]   ;;  %v8686_v9 = vld [vmem:[#allocation2 + $0x404] ss:$16 sps:$4 sm:$0xff]  }
 0x3a7   : > { %v2424_v23 = vpop.f32.mrf.mxu1  ;;  %v2617_v41 = vpop.f32.mrf.mxu0  ;;  %5061 = vmatprep.subr.bf16.mxu1 %v8662_v27  ;;  %5102 = vmatprep.subr.bf16.mxu0 %v8665_v43  ;;  %v8681_v37 = vld [vmem:[#allocation2 + $0x620] ss:$16 sps:$4 sm:$0xff]  }
 0x3a8   : > { %v2899_v62 = vmax.f32 %v2420_v2, %v2424_v23  ;;  %v2925_v0 = vmax.f32 %v2613_v40, %v2617_v41  ;;  %v2816_v2 = vmax.f32 %v10355_v52, %v2815_v3  ;;  %v8687_v52 = vld [vmem:[#allocation2 + $0x600] ss:$16 sps:$4 sm:$0xff]  }
 0x3a9   : > { %v2428_v14 = vpop.f32.mrf.mxu1  ;;  %v2621_v26 = vpop.f32.mrf.mxu0 }
 0x3aa   : > { %5062 = vmatpush1.bf16.msra.mxu1 %v8660_v15  ;;  %5103 = vmatpush1.bf16.msra.mxu0 %v8663_v48  ;;  %v2887_v10 = vmax.f32 %v2886_v34, %v2428_v14  ;;  %v2913_v25 = vmax.f32 %v2912_v56, %v2621_v26  ;;  %v8689_v15 = vld [vmem:[#allocation2 + $0x604] ss:$16 sps:$4 sm:$0xff]   ;;  %v2803_v56 = vmax.f32 %v2801_v47, %v2802_v5  ;;  %v8684_v14 = vld [vmem:[#allocation2 + $0x400] ss:$16 sps:$4 sm:$0xff]   ;;  %v2791_v26 = vrot.slane %v2790_v16, 2 }
 0x3ab   : > { %v2430_v12 = vpop.f32.mrf.mxu1  ;;  %v2623_v44 = vpop.f32.mrf.mxu0  ;;  %5063 = vmatprep.subr.bf16.mxu1 %v8668_v61  ;;  %5104 = vmatprep.subr.bf16.mxu0 %v8671_v22 }
 0x3ac   : > { %v2900_v58 = vmax.f32 %v2899_v62, %v2430_v12  ;;  %v2926_v4 = vmax.f32 %v2925_v0, %v2623_v44  ;;  %v2817_v62 = vrot.slane %v2816_v2, 2  ;;  %v8692_v0 = vld [vmem:[#allocation2 + $0x5e4] ss:$16 sps:$4 sm:$0xff]   ;;  %v2830_v12 = vrot.slane %v2829_v63, 2 }
 0x3ad   : > { %v2432_v33 = vpop.f32.mrf.mxu1  ;;  %v2625_v18 = vpop.f32.mrf.mxu0 }
 0x3ae   : > { %5064 = vmatpush1.bf16.msra.mxu1 %v8666_v42  ;;  %5105 = vmatpush1.bf16.msra.mxu0 %v8669_v8  ;;  %v2888_v21 = vmax.f32 %v2887_v10, %v2432_v33  ;;  %v2914_v50 = vmax.f32 %v2913_v25, %v2625_v18  ;;  %v8695_v10 = vld [vmem:[#allocation2 + $0x7e4] ss:$16 sps:$4 sm:$0xff]   ;;  %v2804_v25 = vrot.slane %v2803_v56, 2  ;;  %v8693_v33 = vld [vmem:[#allocation2 + $0x7e0] ss:$16 sps:$4 sm:$0xff]   ;;  %v2792_v18 = vmax.f32 %v2790_v16, %v2791_v26 }
 0x3af   : > { %v2434_v51 = vpop.f32.mrf.mxu1  ;;  %v2627_v24 = vpop.f32.mrf.mxu0  ;;  %5065 = vmatprep.subr.bf16.mxu1 %v8674_v49  ;;  %5106 = vmatprep.subr.bf16.mxu0 %v8677_v57  ;;  %v8696_v16 = vld [vmem:[#allocation2 + $0x5c0] ss:$16 sps:$4 sm:$0xff]  }
 0x3b0   : > { %v2901_v53 = vmax.f32 %v2900_v58, %v2434_v51  ;;  %v2927_v28 = vmax.f32 %v2926_v4, %v2627_v24  ;;  %v8690_v4 = vld [vmem:[#allocation2 + $0x5e0] ss:$16 sps:$4 sm:$0xff]  }
 0x3b1   : > { %v2438_v19 = vpop.f32.mrf.mxu1  ;;  %v2631_v29 = vpop.f32.mrf.mxu0 }
 0x3b2   : > { %5066 = vmatpush1.bf16.msra.mxu1 %v8672_v35  ;;  %5107 = vmatpush1.bf16.msra.mxu0 %v8675_v11  ;;  %v2889_v40 = vmax.f32 %v2888_v21, %v2438_v19  ;;  %v2915_v27 = vmax.f32 %v2914_v50, %v2631_v29  ;;  %v2818_v35 = vmax.f32 %v2816_v2, %v2817_v62  ;;  %v8698_v21 = vld [vmem:[#allocation2 + $0x5c4] ss:$16 sps:$4 sm:$0xff]   ;;  %v3174_v19 = vsub.s32 6, %v9485_v32 }
 0x3b3   : > { %v2440_v43 = vpop.f32.mrf.mxu1  ;;  %v2633_v60 = vpop.f32.mrf.mxu0  ;;  %5067 = vmatprep.subr.bf16.mxu1 %v8680_v59  ;;  %5108 = vmatprep.subr.bf16.mxu0 %v8683_v38  ;;  %v8701_v50 = vld [vmem:[#allocation2 + $0x7c4] ss:$16 sps:$4 sm:$0xff]   ;;  %v2805_v59 = vmax.f32 %v2803_v56, %v2804_v25  ;;  %v2831_v38 = vmax.f32 %v2829_v63, %v2830_v12 }
 0x3b4   : > { %v2902_v48 = vmax.f32 %v2901_v53, %v2440_v43  ;;  %v2928_v34 = vmax.f32 %v2927_v28, %v2633_v60  ;;  %v8699_v28 = vld [vmem:[#allocation2 + $0x7c0] ss:$16 sps:$4 sm:$0xff]   ;;  %v8704_v60 = vld [vmem:[#allocation2 + $0x5a4] ss:$16 sps:$4 sm:$0xff]  }
 0x3b5   : > { %v2442_v23 = vpop.f32.mrf.mxu1  ;;  %v2635_v41 = vpop.f32.mrf.mxu0  ;;  %v2806_v63 = vrot.slane %v2805_v59, 1 }
 0x3b6   : > { %v2890_v61 = vmax.f32 %v2889_v40, %v2442_v23  ;;  %v2916_v22 = vmax.f32 %v2915_v27, %v2635_v41  ;;  %5068 = vmatpush1.bf16.msra.mxu1 %v8678_v13  ;;  %5109 = vmatpush1.bf16.msra.mxu0 %v8681_v37  ;;  %v2793_v13 = vrot.slane %v2792_v18, 1  ;;  %v9074_v37 = vld [vmem:[%s11187_s6] sm:$0xff]  ;;  %v2819_v40 = vrot.slane %v2818_v35, 1 }
 0x3b7   : > { %v2444_v42 = vpop.f32.mrf.mxu1  ;;  %v2637_v8 = vpop.f32.mrf.mxu0  ;;  %5069 = vmatprep.subr.bf16.mxu1 %v8686_v9  ;;  %5110 = vmatprep.subr.bf16.mxu0 %v8689_v15  ;;  %v10366_v2 = vrot.slane %v9074_v37, %v3166_v6  ;;  %v8707_v9 = vld [vmem:[#allocation2 + $0x7a4] ss:$16 sps:$4 sm:$0xff]   ;;  %v3170_v23 = vsub.s32 5, %v9485_v32  ;;  %v2832_v41 = vrot.slane %v2831_v38, 1  ;;  %v10374_v12 = vrot.slane %v9074_v37, %v3174_v19  ;;  %v8711_v19 = vld [vmem:[#allocation2 + $0x780] ss:$16 sps:$4 sm:$0xff]  }
 0x3b8   : > { %v2903_v44 = vmax.f32 %v2902_v48, %v2444_v42  ;;  %v2929_v47 = vmax.f32 %v2928_v34, %v2637_v8  ;;  %v8702_v8 = vld [vmem:[#allocation2 + $0x5a0] ss:$16 sps:$4 sm:$0xff]   ;;  %v2820_v25 = vmax.f32 %v2818_v35, %v2819_v40  ;;  %v2807_v6 = vmax.f32 %v2805_v59, %v2806_v63 }
 0x3b9   : > { %v2448_v49 = vpop.f32.mrf.mxu1  ;;  %v2641_v57 = vpop.f32.mrf.mxu0 }
 0x3ba   : > { %v2891_v31 = vmax.f32 %v2890_v61, %v2448_v49  ;;  %v2917_v58 = vmax.f32 %v2916_v22, %v2641_v57  ;;  %5070 = vmatpush1.bf16.msra.mxu1 %v8684_v14  ;;  %5111 = vmatpush1.bf16.msra.mxu0 %v8687_v52  ;;  %v3178_v61 = vsub.s32 7, %v9485_v32  ;;  %v8710_v57 = vld [vmem:[#allocation2 + $0x584] ss:$16 sps:$4 sm:$0xff]   ;;  %v3194_v59 = vadd.f32 %v10374_v12, %v2820_v25 }
 0x3bb   : > { %v2450_v11 = vpop.f32.mrf.mxu1  ;;  %v2643_v3 = vpop.f32.mrf.mxu0  ;;  %5071 = vmatprep.subr.bf16.mxu1 %v8692_v0  ;;  %5112 = vmatprep.subr.bf16.mxu0 %v8695_v10  ;;  %v8705_v0 = vld [vmem:[#allocation2 + $0x7a0] ss:$16 sps:$4 sm:$0xff]   ;;  %v2794_v10 = vmax.f32 %v2792_v18, %v2793_v13 }
 0x3bc   : > { %v2904_v51 = vmax.f32 %v2903_v44, %v2450_v11  ;;  %v2930_v24 = vmax.f32 %v2929_v47, %v2643_v3  ;;  %v8713_v47 = vld [vmem:[#allocation2 + $0x784] ss:$16 sps:$4 sm:$0xff]   ;;  %v10380_v11 = vrot.slane %v9074_v37, %v3170_v23  ;;  %v2833_v3 = vmax.f32 %v2831_v38, %v2832_v41  ;;  %v8714_v23 = vld [vmem:[#allocation2 + $0x560] ss:$16 sps:$4 sm:$0xff]  }
 0x3bd   : > { %v2452_v5 = vpop.f32.mrf.mxu1  ;;  %v2645_v17 = vpop.f32.mrf.mxu0  ;;  %v10382_v18 = vrot.slane %v9074_v37, %v3178_v61  ;;  %v8717_v41 = vld [vmem:[#allocation2 + $0x760] ss:$16 sps:$4 sm:$0xff]  }
 0x3be   : > { %v2892_v29 = vmax.f32 %v2891_v31, %v2452_v5  ;;  %v2918_v53 = vmax.f32 %v2917_v58, %v2645_v17  ;;  %5072 = vmatpush2.bf16.msra.mxu1 %v8690_v4  ;;  %5113 = vmatpush2.bf16.msra.mxu0 %v8693_v33  ;;  %v8708_v17 = vld [vmem:[#allocation2 + $0x580] ss:$16 sps:$4 sm:$0xff]  }
 0x3bf   : > { %v2454_v27 = vpop.f32.mrf.mxu1  ;;  %v2647_v43 = vpop.f32.mrf.mxu0  ;;  %5073 = vmatprep.subr.bf16.mxu1 %v8698_v21  ;;  %5114 = vmatprep.subr.bf16.mxu0 %v8701_v50 }
 0x3c0   : > { %v2893_v15 = vrot.slane %v2892_v29, 4  ;;  %v2919_v48 = vrot.slane %v2918_v53, 4  ;;  %v2905_v34 = vmax.f32 %v2904_v51, %v2454_v27  ;;  %v2931_v56 = vmax.f32 %v2930_v24, %v2647_v43 }
 0x3c1   : > { %v10370_v22 = vpop.f32.mrf.mxu1  ;;  %v10372_v14 = vpop.f32.mrf.mxu0  ;;  %v3193_v43 = vadd.f32 %v10380_v11, %v2807_v6 }
 0x3c2   : > { %v2894_v52 = vmax.f32 %v2892_v29, %v2893_v15  ;;  %v2920_v26 = vmax.f32 %v2918_v53, %v2919_v48  ;;  %v2906_v62 = vrot.slane %v2905_v34, 4  ;;  %v2932_v42 = vrot.slane %v2931_v56, 4  ;;  %5074 = vmatpush2.bf16.msra.mxu1 %v8696_v16  ;;  %5115 = vmatpush2.bf16.msra.mxu0 %v8699_v28  ;;  %v8716_v16 = vld [vmem:[#allocation2 + $0x564] ss:$16 sps:$4 sm:$0xff]  }
 0x3c3   : > { %v10376_v44 = vpop.f32.mrf.mxu1  ;;  %v10378_v49 = vpop.f32.mrf.mxu0  ;;  %5075 = vmatprep.subr.bf16.mxu1 %v8704_v60  ;;  %5116 = vmatprep.subr.bf16.mxu0 %v8707_v9  ;;  %v3192_v29 = vadd.f32 %v10366_v2, %v2794_v10  ;;  %v8719_v28 = vld [vmem:[#allocation2 + $0x764] ss:$16 sps:$4 sm:$0xff]   ;;  %v3195_v60 = vadd.f32 %v10382_v18, %v2833_v3 }
 0x3c4   : > { %v2895_v31 = vrot.slane %v2894_v52, 2  ;;  %v2921_v58 = vrot.slane %v2920_v26, 2  ;;  %v2907_v4 = vmax.f32 %v2905_v34, %v2906_v62  ;;  %v2933_v33 = vmax.f32 %v2931_v56, %v2932_v42  ;;  %v8722_v42 = vld [vmem:[#allocation2 + $0x544] ss:$16 sps:$4 sm:$0xff]  }
 0x3c5   : > { %v10384_v35 = vpop.f32.mrf.mxu1  ;;  %v10386_v21 = vpop.f32.mrf.mxu0  ;;  %v3224_v61 = vmax.f32 %v3192_v29, 0.0 }
 0x3c6   : > { %v2896_v50 = vmax.f32 %v2894_v52, %v2895_v31  ;;  %v2922_v51 = vmax.f32 %v2920_v26, %v2921_v58  ;;  %v2908_v24 = vrot.slane %v2907_v4, 2  ;;  %v2934_v5 = vrot.slane %v2933_v33, 2  ;;  %5076 = vmatpush2.bf16.msra.mxu1 %v8702_v8  ;;  %5117 = vmatpush2.bf16.msra.mxu0 %v8705_v0  ;;  %v8725_v8 = vld [vmem:[#allocation2 + $0x744] ss:$16 sps:$4 sm:$0xff]  }
 0x3c7   : > { %v10390_v53 = vpop.f32.mrf.mxu1  ;;  %v10392_v38 = vpop.f32.mrf.mxu0  ;;  %5077 = vmatprep.subr.bf16.mxu1 %v8710_v57  ;;  %5118 = vmatprep.subr.bf16.mxu0 %v8713_v47  ;;  %v3226_v52 = vmax.f32 %v3194_v59, 0.0  ;;  %v3225_v47 = vmax.f32 %v3193_v43, 0.0  ;;  %v3227_v31 = vmax.f32 %v3195_v60, 0.0  ;;  %v8728_v59 = vld [vmem:[#allocation2 + $0x524] ss:$16 sps:$4 sm:$0xff]  }
 0x3c8   : > { %v2897_v13 = vrot.slane %v2896_v50, 1  ;;  %v2923_v37 = vrot.slane %v2922_v51, 1  ;;  %v2909_v40 = vmax.f32 %v2907_v4, %v2908_v24  ;;  %v2935_v27 = vmax.f32 %v2933_v33, %v2934_v5  ;;  %v8723_v24 = vld [vmem:[#allocation2 + $0x740] ss:$16 sps:$4 sm:$0xff]  }
 0x3c9   : > { %v10396_v9 = vpop.f32.mrf.mxu1  ;;  %v10398_v15 = vpop.f32.mrf.mxu0  ;;  %v3256_v5 = vpack.c.bf16 %v3224_v61, %v3224_v61  ;;  %v3259_v43 = vpack.c.bf16 %v3227_v31, %v3227_v31  ;;  %v8729_v61 = vld [vmem:[#allocation2 + $0x720] ss:$16 sps:$4 sm:$0xff]  }
 0x3ca   : > { %v2898_v48 = vmax.f32 %v2896_v50, %v2897_v13  ;;  %v2924_v34 = vmax.f32 %v2922_v51, %v2923_v37  ;;  %v2910_v56 = vrot.slane %v2909_v40, 1  ;;  %v2936_v63 = vrot.slane %v2935_v27, 1  ;;  %5078 = vmatpush2.bf16.msra.mxu1 %v8708_v17  ;;  %5119 = vmatpush2.bf16.msra.mxu0 %v8711_v19  ;;  %v8720_v51 = vld [vmem:[#allocation2 + $0x540] ss:$16 sps:$4 sm:$0xff]  }
 0x3cb   : > { %v10400_v26 = vpop.f32.mrf.mxu1  ;;  %v10402_v62 = vpop.f32.mrf.mxu0  ;;  %5079 = vmatprep.subr.bf16.mxu1 %v8716_v16  ;;  %5120 = vmatprep.subr.bf16.mxu0 %v8719_v28  ;;  %v3258_v17 = vpack.c.bf16 %v3226_v52, %v3226_v52  ;;  %v8731_v16 = vld [vmem:[#allocation2 + $0x724] ss:$16 sps:$4 sm:$0xff]   ;;  %v3598_v52 = vunpack.c.l.b16 %v3256_v5 }
 0x3cc   : > { %v3200_v0 = vadd.f32 %v10366_v2, %v2898_v48  ;;  %v3202_v10 = vadd.f32 %v10374_v12, %v2924_v34  ;;  %v2911_v25 = vmax.f32 %v2909_v40, %v2910_v56  ;;  %v2937_v57 = vmax.f32 %v2935_v27, %v2936_v63 }
 0x3cd   : > { %v10406_v58 = vpop.f32.mrf.mxu1  ;;  %v10408_v4 = vpop.f32.mrf.mxu0  ;;  %v3257_v27 = vpack.c.bf16 %v3225_v47, %v3225_v47 }
 0x3ce   : > { %v3232_v33 = vmax.f32 %v3200_v0, 0.0  ;;  %v3234_v6 = vmax.f32 %v3202_v10, 0.0  ;;  %v3201_v3 = vadd.f32 %v10380_v11, %v2911_v25  ;;  %v3203_v50 = vadd.f32 %v10382_v18, %v2937_v57  ;;  %5080 = vmatpush2.bf16.msra.mxu1 %v8714_v23  ;;  %5121 = vmatpush2.bf16.msra.mxu0 %v8717_v41  ;;  %v8726_v41 = vld [vmem:[#allocation2 + $0x520] ss:$16 sps:$4 sm:$0xff]   ;;  %v8734_v10 = vld [vmem:[#allocation2 + $0x504] ss:$16 sps:$4 sm:$0xff]  }
 0x3cf   : > { %v10412_v19 = vpop.f32.mrf.mxu1  ;;  %v10414_v29 = vpop.f32.mrf.mxu0  ;;  %5081 = vmatprep.subr.bf16.mxu1 %v8722_v42  ;;  %5122 = vmatprep.subr.bf16.mxu0 %v8725_v8  ;;  %v3600_v42 = vunpack.c.l.b16 %v3258_v17  ;;  %v8737_v25 = vld [vmem:[#allocation2 + $0x704] ss:$16 sps:$4 sm:$0xff]  }
 0x3d0   : > { %v3264_v28 = vpack.c.bf16 %v3232_v33, %v3232_v33  ;;  %v3266_v13 = vpack.c.bf16 %v3234_v6, %v3234_v6  ;;  %v3233_v37 = vmax.f32 %v3201_v3, 0.0  ;;  %v3235_v40 = vmax.f32 %v3203_v50, 0.0 }
 0x3d1   : > { %v10416_v60 = vpop.f32.mrf.mxu1  ;;  %v10418_v48 = vpop.f32.mrf.mxu0  ;;  %v3599_v6 = vunpack.c.l.b16 %v3257_v27  ;;  %v3601_v3 = vunpack.c.l.b16 %v3259_v43  ;;  %v8743_v27 = vld [vmem:[#allocation2 + $0x2ec] ss:$16 sps:$4 sm:$0xff]  }
 0x3d2   : > { %v3606_v34 = vunpack.c.l.b16 %v3264_v28  ;;  %v3608_v56 = vunpack.c.l.b16 %v3266_v13  ;;  %v3265_v63 = vpack.c.bf16 %v3233_v37, %v3233_v37  ;;  %v3267_v23 = vpack.c.bf16 %v3235_v40, %v3235_v40  ;;  %5082 = vmatpush2.bf16.msra.mxu1 %v8720_v51  ;;  %5123 = vmatpush2.bf16.msra.mxu0 %v8723_v24  ;;  %v8740_v40 = vld [vmem:[#allocation2 + $0xec] ss:$16 sps:$4 sm:$0xff]  }
 0x3d3   : > { %v2480_v8 = vpop.f32.mrf.mxu1  ;;  %v2673_v0 = vpop.f32.mrf.mxu0  ;;  %5083 = vmatprep.subr.bf16.mxu1 %v8728_v59  ;;  %5124 = vmatprep.subr.bf16.mxu0 %v8731_v16  ;;  %v8732_v59 = vld [vmem:[#allocation2 + $0x500] ss:$16 sps:$4 sm:$0xff]  }
 0x3d4   : > { %v3653_v57 = vrot.slane %v3606_v34, 7  ;;  %v3665_v47 = vrot.slane %v3608_v56, 7  ;;  %v3607_v31 = vunpack.c.l.b16 %v3265_v63  ;;  %v3609_v33 = vunpack.c.l.b16 %v3267_v23  ;;  %v8735_v16 = vld [vmem:[#allocation2 + $0x700] ss:$16 sps:$4 sm:$0xff]  }
 0x3d5   : > { %v2482_v50 = vpop.f32.mrf.mxu1  ;;  %v2675_v28 = vpop.f32.mrf.mxu0  ;;  %v2990_v56 = vmax.f32 %v10370_v22, %v10384_v35  ;;  %v3016_v63 = vmax.f32 %v10372_v14, %v10386_v21 }
 0x3d6   : > { %v10421_v51 = vsel %vm3627_vm1, %v3653_v57, %v3598_v52  ;;  %v10424_v24 = vsel %vm3627_vm1, %v3665_v47, %v3600_v42  ;;  %v3659_v5 = vrot.slane %v3607_v31, 7  ;;  %v3671_v17 = vrot.slane %v3609_v33, 7  ;;  %5084 = vmatpush2.bf16.msra.mxu1 %v8726_v41  ;;  %5125 = vmatpush2.bf16.msra.mxu0 %v8729_v61 }
 0x3d7   : > { %v2484_v13 = vpop.f32.mrf.mxu1  ;;  %v2677_v37 = vpop.f32.mrf.mxu0  ;;  %5085 = vmatprep.subr.bf16.mxu1 %v8734_v10  ;;  %5126 = vmatprep.subr.bf16.mxu0 %v8737_v25  ;;  %v3003_v61 = vmax.f32 %v10376_v44, %v10390_v53  ;;  %v3029_v52 = vmax.f32 %v10378_v49, %v10392_v38  ;;  %v2991_v42 = vmax.f32 %v2990_v56, %v10396_v9 }
 0x3d8   : > { %v10427_v43 = vsel %vm3627_vm1, %v3659_v5, %v3599_v6  ;;  %v10430_v34 = vsel %vm3627_vm1, %v3671_v17, %v3601_v3  ;;  %v3017_v10 = vmax.f32 %v3016_v63, %v10398_v15 }
 0x3d9   : > { %v2488_v23 = vpop.f32.mrf.mxu1  ;;  %v2681_v41 = vpop.f32.mrf.mxu0  ;;  %v3004_v22 = vmax.f32 %v3003_v61, %v10400_v26  ;;  %v3030_v14 = vmax.f32 %v3029_v52, %v10402_v62  ;;  %v2992_v35 = vmax.f32 %v2991_v42, %v10406_v58 }
 0x3da   : > { %5086 = vmatpush2.bf16.msra.mxu1 %v8732_v59  ;;  %5127 = vmatpush2.bf16.msra.mxu0 %v8735_v16  ;;  %v3018_v44 = vmax.f32 %v3017_v10, %v10408_v4 }
 0x3db   : > { %v2490_v25 = vpop.f32.mrf.mxu1  ;;  %v2683_v57 = vpop.f32.mrf.mxu0  ;;  %5137 = vmatprep.subr.bf16.mxu1 %v8740_v40  ;;  %5178 = vmatprep.subr.bf16.mxu0 %v8743_v27  ;;  %v3005_v49 = vmax.f32 %v3004_v22, %v10412_v19  ;;  %v3031_v38 = vmax.f32 %v3030_v14, %v10414_v29  ;;  %v2993_v9 = vmax.f32 %v2992_v35, %v10416_v60 }
 0x3dc   : > { %v3019_v15 = vmax.f32 %v3018_v44, %v10418_v48 }
 0x3dd   : > { %v2492_v21 = vpop.f32.mrf.mxu1  ;;  %v2685_v53 = vpop.f32.mrf.mxu0  ;;  %v3006_v33 = vmax.f32 %v3005_v49, %v2480_v8  ;;  %v3032_v26 = vmax.f32 %v3031_v38, %v2673_v0  ;;  %v2994_v6 = vmax.f32 %v2993_v9, %v2482_v50 }
 0x3de   : > { %v3020_v62 = vmax.f32 %v3019_v15, %v2675_v28 }
 0x3df   : > { %v2494_v47 = vpop.f32.mrf.mxu1  ;;  %v2687_v31 = vpop.f32.mrf.mxu0  ;;  %v3007_v5 = vmax.f32 %v3006_v33, %v2484_v13  ;;  %v3033_v4 = vmax.f32 %v3032_v26, %v2677_v37  ;;  %v2995_v17 = vmax.f32 %v2994_v6, %v2488_v23 }
 0x3e0   : > { %v3021_v59 = vmax.f32 %v3020_v62, %v2681_v41 }
 0x3e1   : > { %v2498_v3 = vpop.f32.mrf.mxu1  ;;  %v2691_v58 = vpop.f32.mrf.mxu0  ;;  %v3008_v40 = vmax.f32 %v3007_v5, %v2490_v25  ;;  %v3034_v29 = vmax.f32 %v3033_v4, %v2683_v57  ;;  %v2996_v27 = vmax.f32 %v2995_v17, %v2492_v21 }
 0x3e2   : > { %v3022_v60 = vmax.f32 %v3021_v59, %v2685_v53 }
 0x3e3   : > { %v2500_v16 = vpop.f32.mrf.mxu1  ;;  %v2693_v19 = vpop.f32.mrf.mxu0  ;;  %v3009_v63 = vmax.f32 %v3008_v40, %v2494_v47  ;;  %v3035_v61 = vmax.f32 %v3034_v29, %v2687_v31  ;;  %v2997_v50 = vrot.slane %v2996_v27, 4 }
 0x3e4   : > { %v3023_v28 = vrot.slane %v3022_v60, 4 }
 0x3e5   : > { %v2502_v56 = vpop.f32.mrf.mxu1  ;;  %v2695_v48 = vpop.f32.mrf.mxu0  ;;  %v3010_v13 = vrot.slane %v3009_v63, 4  ;;  %v3036_v37 = vrot.slane %v3035_v61, 4  ;;  %v2998_v10 = vmax.f32 %v2996_v27, %v2997_v50 }
 0x3e6   : > { %v3024_v22 = vmax.f32 %v3022_v60, %v3023_v28  ;;  %v3094_v15 = vmax.f32 %v2498_v3, %v2502_v56  ;;  %v3120_v47 = vmax.f32 %v2691_v58, %v2695_v48 }
 0x3e7   : > { %v2504_v8 = vpop.f32.mrf.mxu1  ;;  %v2697_v0 = vpop.f32.mrf.mxu0  ;;  %v3011_v14 = vmax.f32 %v3009_v63, %v3010_v13  ;;  %v3037_v35 = vmax.f32 %v3035_v61, %v3036_v37  ;;  %v2999_v53 = vrot.slane %v2998_v10, 2 }
 0x3e8   : > { %v3025_v49 = vrot.slane %v3024_v22, 2  ;;  %v3107_v62 = vmax.f32 %v2500_v16, %v2504_v8  ;;  %v3133_v5 = vmax.f32 %v2693_v19, %v2697_v0 }
 0x3e9   : > { %v2508_v52 = vpop.f32.mrf.mxu1  ;;  %v2701_v42 = vpop.f32.mrf.mxu0  ;;  %v3012_v31 = vrot.slane %v3011_v14, 2  ;;  %v3038_v33 = vrot.slane %v3037_v35, 2  ;;  %v3000_v59 = vmax.f32 %v2998_v10, %v2999_v53 }
 0x3ea   : > { %v3095_v4 = vmax.f32 %v3094_v15, %v2508_v52  ;;  %v3121_v17 = vmax.f32 %v3120_v47, %v2701_v42  ;;  %v3026_v40 = vmax.f32 %v3024_v22, %v3025_v49 }
 0x3eb   : > { %v2510_v23 = vpop.f32.mrf.mxu1  ;;  %v2703_v41 = vpop.f32.mrf.mxu0  ;;  %v3013_v28 = vmax.f32 %v3011_v14, %v3012_v31  ;;  %v3039_v13 = vmax.f32 %v3037_v35, %v3038_v33  ;;  %v3001_v16 = vrot.slane %v3000_v59, 1 }
 0x3ec   : > { %v3108_v60 = vmax.f32 %v3107_v62, %v2510_v23  ;;  %v3134_v63 = vmax.f32 %v3133_v5, %v2703_v41  ;;  %v3027_v19 = vrot.slane %v3026_v40, 1 }
 0x3ed   : > { %v2512_v25 = vpop.f32.mrf.mxu1  ;;  %v2705_v57 = vpop.f32.mrf.mxu0  ;;  %v3014_v23 = vrot.slane %v3013_v28, 1  ;;  %v3040_v41 = vrot.slane %v3039_v13, 1 }
 0x3ee   : > { %v3096_v61 = vmax.f32 %v3095_v4, %v2512_v25  ;;  %v3122_v50 = vmax.f32 %v3121_v17, %v2705_v57 }
 0x3ef   : > { %v2514_v44 = vpop.f32.mrf.mxu1  ;;  %v2707_v21 = vpop.f32.mrf.mxu0 }
 0x3f0   : > { %v3109_v56 = vmax.f32 %v3108_v60, %v2514_v44  ;;  %v3135_v48 = vmax.f32 %v3134_v63, %v2707_v21  ;;  %v3002_v44 = vmax.f32 %v3000_v59, %v3001_v16  ;;  %v3028_v21 = vmax.f32 %v3026_v40, %v3027_v19 }
 0x3f1   : > { %v2518_v38 = vpop.f32.mrf.mxu1  ;;  %v2711_v9 = vpop.f32.mrf.mxu0 }
 0x3f2   : > { %v3097_v37 = vmax.f32 %v3096_v61, %v2518_v38  ;;  %v3123_v32 = vmax.f32 %v3122_v50, %v2711_v9  ;;  %v3210_v60 = vadd.f32 %v10374_v12, %v3028_v21 }
 0x3f3   : > { %v2520_v26 = vpop.f32.mrf.mxu1  ;;  %v2713_v6 = vpop.f32.mrf.mxu0 }
 0x3f4   : > { %v3110_v52 = vmax.f32 %v3109_v56, %v2520_v26  ;;  %v3136_v42 = vmax.f32 %v3135_v48, %v2713_v6  ;;  %v3015_v26 = vmax.f32 %v3013_v28, %v3014_v23  ;;  %v3041_v6 = vmax.f32 %v3039_v13, %v3040_v41 }
 0x3f5   : > { %v2522_v29 = vpop.f32.mrf.mxu1  ;;  %v2715_v27 = vpop.f32.mrf.mxu0 }
 0x3f6   : > { %v3098_v10 = vmax.f32 %v3097_v37, %v2522_v29  ;;  %v3124_v22 = vmax.f32 %v3123_v32, %v2715_v27  ;;  %v3208_v27 = vadd.f32 %v10366_v2, %v3002_v44  ;;  %v3209_v50 = vadd.f32 %v10380_v11, %v3015_v26 }
 0x3f7   : > { %v2524_v3 = vpop.f32.mrf.mxu1  ;;  %v2717_v58 = vpop.f32.mrf.mxu0  ;;  %v3242_v37 = vmax.f32 %v3210_v60, 0.0 }
 0x3f8   : > { %v3111_v14 = vmax.f32 %v3110_v52, %v2524_v3  ;;  %v3137_v35 = vmax.f32 %v3136_v42, %v2717_v58  ;;  %v3211_v3 = vadd.f32 %v10382_v18, %v3041_v6  ;;  %v3240_v48 = vmax.f32 %v3208_v27, 0.0 }
 0x3f9   : > { %v2528_v8 = vpop.f32.mrf.mxu1  ;;  %v2721_v0 = vpop.f32.mrf.mxu0  ;;  %v3241_v52 = vmax.f32 %v3209_v50, 0.0 }
 0x3fa   : > { %v3099_v53 = vmax.f32 %v3098_v10, %v2528_v8  ;;  %v3125_v49 = vmax.f32 %v3124_v22, %v2721_v0  ;;  %v3243_v42 = vmax.f32 %v3211_v3, 0.0 }
 0x3fb   : > { %v2530_v25 = vpop.f32.mrf.mxu1  ;;  %v2723_v57 = vpop.f32.mrf.mxu0  ;;  %v3273_v44 = vpack.c.bf16 %v3241_v52, %v3241_v52 }
 0x3fc   : > { %v3112_v15 = vmax.f32 %v3111_v14, %v2530_v25  ;;  %v3138_v47 = vmax.f32 %v3137_v35, %v2723_v57  ;;  %v3272_v25 = vpack.c.bf16 %v3240_v48, %v3240_v48  ;;  %v3274_v57 = vpack.c.bf16 %v3242_v37, %v3242_v37 }
 0x3fd   : > { %v2532_v38 = vpop.f32.mrf.mxu1  ;;  %v2725_v9 = vpop.f32.mrf.mxu0  ;;  %v3275_v21 = vpack.c.bf16 %v3243_v42, %v3243_v42 }
 0x3fe   : > { %v3100_v31 = vmax.f32 %v3099_v53, %v2532_v38  ;;  %v3126_v33 = vmax.f32 %v3125_v49, %v2725_v9 }
 0x3ff   : > { %v2534_v62 = vpop.f32.mrf.mxu1  ;;  %v2727_v32 = vpop.f32.mrf.mxu0 }
 0x400   : > { %v3101_v5 = vrot.slane %v3100_v31, 4  ;;  %v3127_v4 = vrot.slane %v3126_v33, 4  ;;  %v3113_v17 = vmax.f32 %v3112_v15, %v2534_v62  ;;  %v3139_v29 = vmax.f32 %v3138_v47, %v2727_v32 }
 0x402   : > { %v3102_v59 = vmax.f32 %v3100_v31, %v3101_v5  ;;  %v3128_v40 = vmax.f32 %v3126_v33, %v3127_v4  ;;  %v3114_v63 = vrot.slane %v3113_v17, 4  ;;  %v3140_v61 = vrot.slane %v3139_v29, 4 }
 0x403   : > { %v3614_v31 = vunpack.c.l.b16 %v3272_v25  ;;  %v3616_v33 = vunpack.c.l.b16 %v3274_v57  ;;  %v3615_v5 = vunpack.c.l.b16 %v3273_v44  ;;  %v3617_v4 = vunpack.c.l.b16 %v3275_v21  ;;  %v8744_v25 = vld [vmem:[#allocation2 + $0xc8] ss:$16 sps:$4 sm:$0xff]   ;;  %v8758_v44 = vld [vmem:[#allocation2 + $0x8c] ss:$16 sps:$4 sm:$0xff]  }
 0x404   : > { %v3103_v28 = vrot.slane %v3102_v59, 2  ;;  %v3129_v13 = vrot.slane %v3128_v40, 2  ;;  %v3115_v58 = vmax.f32 %v3113_v17, %v3114_v63  ;;  %v3141_v56 = vmax.f32 %v3139_v29, %v3140_v61  ;;  %v8747_v57 = vld [vmem:[#allocation2 + $0x2c8] ss:$16 sps:$4 sm:$0xff]   ;;  %v8761_v21 = vld [vmem:[#allocation2 + $0x28c] ss:$16 sps:$4 sm:$0xff]  }
 0x405   : > { %v3661_v50 = vrot.slane %v3615_v5, 6  ;;  %v3673_v3 = vrot.slane %v3617_v4, 6  ;;  %v8774_v5 = vld [vmem:[#allocation2 + $0x28] ss:$16 sps:$4 sm:$0xff]  }
 0x406   : > { %v3104_v16 = vmax.f32 %v3102_v59, %v3103_v28  ;;  %v3130_v19 = vmax.f32 %v3128_v40, %v3129_v13  ;;  %v3116_v8 = vrot.slane %v3115_v58, 2  ;;  %v3142_v0 = vrot.slane %v3141_v56, 2  ;;  %v8777_v4 = vld [vmem:[#allocation2 + $0x228] ss:$16 sps:$4 sm:$0xff]  }
 0x407   : > { %v3655_v59 = vrot.slane %v3614_v31, 6  ;;  %v8770_v31 = vld [vmem:[#allocation2 + $0x4c] ss:$16 sps:$4 sm:$0xff]  }
 0x408   : > { %v3105_v10 = vrot.slane %v3104_v16, 1  ;;  %v3131_v22 = vrot.slane %v3130_v19, 1  ;;  %v3117_v23 = vmax.f32 %v3115_v58, %v3116_v8  ;;  %v3143_v41 = vmax.f32 %v3141_v56, %v3142_v0 }
 0x409   : > { %v3656_v48 = vsel %vm3630_vm2, %v3655_v59, %v10421_v51  ;;  %v8788_v59 = vld [vmem:[#allocation2 + $0x1ec] ss:$16 sps:$4 sm:$0xff]  }
 0x40a   : > { %v3106_v14 = vmax.f32 %v3104_v16, %v3105_v10  ;;  %v3132_v35 = vmax.f32 %v3130_v19, %v3131_v22  ;;  %v3118_v53 = vrot.slane %v3117_v23, 1  ;;  %v3144_v49 = vrot.slane %v3143_v41, 1  ;;  %v8738_v22 = vld [vmem:[#allocation2 + $0xe8] ss:$16 sps:$4 sm:$0xff]  }
 0x40b   : > { %v3662_v16 = vsel %vm3630_vm2, %v3661_v50, %v10427_v43  ;;  %v3674_v19 = vsel %vm3630_vm2, %v3673_v3, %v10430_v34  ;;  %v8746_v34 = vld [vmem:[#allocation2 + $0xcc] ss:$16 sps:$4 sm:$0xff]   ;;  %v8792_v50 = vld [vmem:[#allocation2 + $0x1c8] ss:$16 sps:$4 sm:$0xff]  }
 0x40c   : > { %v3216_v38 = vadd.f32 %v10366_v2, %v3106_v14  ;;  %v3218_v9 = vadd.f32 %v10374_v12, %v3132_v35  ;;  %v3119_v15 = vmax.f32 %v3117_v23, %v3118_v53  ;;  %v3145_v47 = vmax.f32 %v3143_v41, %v3144_v49  ;;  %v8749_v41 = vld [vmem:[#allocation2 + $0x2cc] ss:$16 sps:$4 sm:$0xff]   ;;  %v8750_v53 = vld [vmem:[#allocation2 + $0xa8] ss:$16 sps:$4 sm:$0xff]  }
 0x40d   : > { %v3667_v2 = vrot.slane %v3616_v33, 6  ;;  %v8752_v14 = vld [vmem:[#allocation2 + $0xac] ss:$16 sps:$4 sm:$0xff]   ;;  %v8753_v49 = vld [vmem:[#allocation2 + $0x2a8] ss:$16 sps:$4 sm:$0xff]  }
 0x40e   : > { %v3248_v26 = vmax.f32 %v3216_v38, 0.0  ;;  %v3250_v6 = vmax.f32 %v3218_v9, 0.0  ;;  %v3217_v62 = vadd.f32 %v10380_v11, %v3119_v15  ;;  %v3219_v32 = vadd.f32 %v10382_v18, %v3145_v47  ;;  %v8755_v35 = vld [vmem:[#allocation2 + $0x2ac] ss:$16 sps:$4 sm:$0xff]   ;;  %v8756_v38 = vld [vmem:[#allocation2 + $0x88] ss:$16 sps:$4 sm:$0xff]  }
 0x40f   : > { %v3668_v37 = vsel %vm3630_vm2, %v3667_v2, %v10424_v24  ;;  %v8741_v24 = vld [vmem:[#allocation2 + $0x2e8] ss:$16 sps:$4 sm:$0xff]   ;;  %v8773_v33 = vld [vmem:[#allocation2 + $0x24c] ss:$16 sps:$4 sm:$0xff]  }
 0x410   : > { %v3280_v17 = vpack.c.bf16 %v3248_v26, %v3248_v26  ;;  %v3282_v29 = vpack.c.bf16 %v3250_v6, %v3250_v6  ;;  %v3249_v27 = vmax.f32 %v3217_v62, 0.0  ;;  %v3251_v60 = vmax.f32 %v3219_v32, 0.0  ;;  %v8759_v9 = vld [vmem:[#allocation2 + $0x288] ss:$16 sps:$4 sm:$0xff]   ;;  %v8776_v62 = vld [vmem:[#allocation2 + $0x2c] ss:$16 sps:$4 sm:$0xff]  }
 0x411   : > { %v8762_v15 = vld [vmem:[#allocation2 + $0x68] ss:$16 sps:$4 sm:$0xff]   ;;  %v8779_v32 = vld [vmem:[#allocation2 + $0x22c] ss:$16 sps:$4 sm:$0xff]  }
 0x412   : > { %v3622_v40 = vunpack.c.l.b16 %v3280_v17  ;;  %v3624_v12 = vunpack.c.l.b16 %v3282_v29  ;;  %v3281_v63 = vpack.c.bf16 %v3249_v27, %v3249_v27  ;;  %v3283_v61 = vpack.c.bf16 %v3251_v60, %v3251_v60  ;;  %v8765_v47 = vld [vmem:[#allocation2 + $0x268] ss:$16 sps:$4 sm:$0xff]   ;;  %v8782_v17 = vld [vmem:[#allocation2 + $0xc] ss:$16 sps:$4 sm:$0xff]  }
 0x413   : > { %v8768_v26 = vld [vmem:[#allocation2 + $0x48] ss:$16 sps:$4 sm:$0xff]   ;;  %v8785_v29 = vld [vmem:[#allocation2 + $0x20c] ss:$16 sps:$4 sm:$0xff]  }
 0x414   : > { %v3657_v28 = vrot.slane %v3622_v40, 5  ;;  %v3669_v13 = vrot.slane %v3624_v12, 5  ;;  %v3623_v58 = vunpack.c.l.b16 %v3281_v63  ;;  %v3625_v11 = vunpack.c.l.b16 %v3283_v61  ;;  %v8771_v6 = vld [vmem:[#allocation2 + $0x248] ss:$16 sps:$4 sm:$0xff]   ;;  %v8791_v2 = vld [vmem:[#allocation2 + $0x3ec] ss:$16 sps:$4 sm:$0xff]  }
 0x415   : > { %v8780_v27 = vld [vmem:[#allocation2 + $0x8] ss:$16 sps:$4 sm:$0xff]   ;;  %v8794_v63 = vld [vmem:[#allocation2 + $0x1cc] ss:$16 sps:$4 sm:$0xff]  }
 0x416   : > { %v3663_v56 = vrot.slane %v3623_v58, 5  ;;  %v3675_v18 = vrot.slane %v3625_v11, 5  ;;  %v3658_v8 = vsel %vm3633_vm3, %v3657_v28, %v3656_v48  ;;  %v3670_v0 = vsel %vm3633_vm3, %v3669_v13, %v3668_v37  ;;  %v8783_v60 = vld [vmem:[#allocation2 + $0x208] ss:$16 sps:$4 sm:$0xff]   ;;  %v8797_v61 = vld [vmem:[#allocation2 + $0x3cc] ss:$16 sps:$4 sm:$0xff]  }
 0x417   : > { %v10474_v23 = vpack.c.b16 %v3658_v8, %v3658_v8  ;;  %v10476_v43 = vpack.c.b16 %v3670_v0, %v3670_v0  ;;  %v8786_v40 = vld [vmem:[#allocation2 + $0x1e8] ss:$16 sps:$4 sm:$0xff]   ;;  %v8800_v28 = vld [vmem:[#allocation2 + $0x1ac] ss:$16 sps:$4 sm:$0xff]  }
 0x418   : > { %v3664_v52 = vsel %vm3633_vm3, %v3663_v56, %v3662_v16  ;;  %v3676_v42 = vsel %vm3633_vm3, %v3675_v18, %v3674_v19  ;;  %v8789_v12 = vld [vmem:[#allocation2 + $0x3e8] ss:$16 sps:$4 sm:$0xff]   ;;  %v8803_v13 = vld [vmem:[#allocation2 + $0x3ac] ss:$16 sps:$4 sm:$0xff]  }
 0x419   : > { %v10470_v10 = vpack.c.b16 %v3664_v52, %v3664_v52  ;;  %v10472_v51 = vpack.c.b16 %v3676_v42, %v3676_v42  ;;  %v8795_v3 = vld [vmem:[#allocation2 + $0x3c8] ss:$16 sps:$4 sm:$0xff]   ;;  %v8806_v56 = vld [vmem:[#allocation2 + $0x18c] ss:$16 sps:$4 sm:$0xff]  }
 0x41a   : > { %v8798_v58 = vld [vmem:[#allocation2 + $0x1a8] ss:$16 sps:$4 sm:$0xff]   ;;  %v8809_v18 = vld [vmem:[#allocation2 + $0x38c] ss:$16 sps:$4 sm:$0xff]  }
 0x41b   : > { %5087 = vmatprep.mubr.bf16.mxu1 %v10470_v10  ;;  %5128 = vmatprep.mubr.bf16.mxu0 %v10472_v51  ;;  %v8801_v11 = vld [vmem:[#allocation2 + $0x3a8] ss:$16 sps:$4 sm:$0xff]   ;;  %v8812_v16 = vld [vmem:[#allocation2 + $0x16c] ss:$16 sps:$4 sm:$0xff]  }
 0x41c   : > { %5088 = vmatmul.mubr.bf16.vlgmr.msra.gmra.mxu1 %v10474_v23  ;;  %5129 = vmatmul.mubr.bf16.vlgmr.msra.gmra.mxu0 %v10476_v43  ;;  %v8804_v48 = vld [vmem:[#allocation2 + $0x188] ss:$16 sps:$4 sm:$0xff]   ;;  %v8815_v19 = vld [vmem:[#allocation2 + $0x36c] ss:$16 sps:$4 sm:$0xff]  }
 0x41d   : > { %5138 = vmatpush1.bf16.msra.mxu1 %v8738_v22  ;;  %5179 = vmatpush1.bf16.msra.mxu0 %v8741_v24  ;;  %v8807_v37 = vld [vmem:[#allocation2 + $0x388] ss:$16 sps:$4 sm:$0xff]   ;;  %v8818_v52 = vld [vmem:[#allocation2 + $0x14c] ss:$16 sps:$4 sm:$0xff]  }
 0x41e   : > { %5169 = vmatprep.mubr.bf16.mxu1 %v10341_v30  ;;  %5210 = vmatprep.mubr.bf16.mxu0 %v10343_v20  ;;  %v8764_v30 = vld [vmem:[#allocation2 + $0x6c] ss:$16 sps:$4 sm:$0xff]   ;;  %v8810_v8 = vld [vmem:[#allocation2 + $0x168] ss:$16 sps:$4 sm:$0xff]  }
 0x41f   : > { %5139 = vmatprep.subr.bf16.mxu1 %v8746_v34  ;;  %5180 = vmatprep.subr.bf16.mxu0 %v8749_v41  ;;  %v8767_v20 = vld [vmem:[#allocation2 + $0x26c] ss:$16 sps:$4 sm:$0xff]   ;;  %v8813_v0 = vld [vmem:[#allocation2 + $0x368] ss:$16 sps:$4 sm:$0xff]  }
 0x420   : > { %v8821_v42 = vld [vmem:[#allocation2 + $0x34c] ss:$16 sps:$4 sm:$0xff]   ;;  %v8816_v22 = vld [vmem:[#allocation2 + $0x148] ss:$16 sps:$4 sm:$0xff]  }
 0x421   : > { %5140 = vmatpush1.bf16.msra.mxu1 %v8744_v25  ;;  %5181 = vmatpush1.bf16.msra.mxu0 %v8747_v57  ;;  %v8819_v24 = vld [vmem:[#allocation2 + $0x348] ss:$16 sps:$4 sm:$0xff]   ;;  %v8824_v34 = vld [vmem:[#allocation2 + $0x12c] ss:$16 sps:$4 sm:$0xff]  }
 0x422   : > { %5141 = vmatprep.subr.bf16.mxu1 %v8752_v14  ;;  %5182 = vmatprep.subr.bf16.mxu0 %v8755_v35  ;;  %v8827_v41 = vld [vmem:[#allocation2 + $0x32c] ss:$16 sps:$4 sm:$0xff]   ;;  %v8822_v25 = vld [vmem:[#allocation2 + $0x128] ss:$16 sps:$4 sm:$0xff]  }
 0x423   : > { %v8825_v57 = vld [vmem:[#allocation2 + $0x328] ss:$16 sps:$4 sm:$0xff]   ;;  %v8830_v14 = vld [vmem:[#allocation2 + $0x10c] ss:$16 sps:$4 sm:$0xff]  }
 0x424   : > { %v8833_v35 = vld [vmem:[#allocation2 + $0x30c] ss:$16 sps:$4 sm:$0xff]  }
 0x425   : > { %5142 = vmatpush1.bf16.msra.mxu1 %v8750_v53  ;;  %5183 = vmatpush1.bf16.msra.mxu0 %v8753_v49  ;;  %v8828_v53 = vld [vmem:[#allocation2 + $0x108] ss:$16 sps:$4 sm:$0xff]  }
 0x426   : > { %5143 = vmatprep.subr.bf16.mxu1 %v8758_v44  ;;  %5184 = vmatprep.subr.bf16.mxu0 %v8761_v21  ;;  %v8831_v49 = vld [vmem:[#allocation2 + $0x308] ss:$16 sps:$4 sm:$0xff]   ;;  %v8836_v44 = vld [vmem:[#allocation2 + $0x4ec] ss:$16 sps:$4 sm:$0xff]  }
 0x427   : > { %v8839_v21 = vld [vmem:[#allocation2 + $0x6ec] ss:$16 sps:$4 sm:$0xff]  }
 0x429   : > { %5144 = vmatpush1.bf16.msra.mxu1 %v8756_v38  ;;  %5185 = vmatpush1.bf16.msra.mxu0 %v8759_v9  ;;  %v10487_v38 = vld [vmem:[%s11190_s9] sm:$0xf]  ;;  %v8834_v9 = vld [vmem:[#allocation2 + $0x4e8] ss:$16 sps:$4 sm:$0xff]  }
 0x42a   : > { %5145 = vmatprep.subr.bf16.mxu1 %v8764_v30  ;;  %5186 = vmatprep.subr.bf16.mxu0 %v8767_v20  ;;  %v8837_v30 = vld [vmem:[#allocation2 + $0x6e8] ss:$16 sps:$4 sm:$0xff]   ;;  %v3545_v20 = vrot.slane %v10487_v38, %v9500_v39 }
 0x42d   : > { %5146 = vmatpush1.bf16.msra.mxu1 %v8762_v15  ;;  %5187 = vmatpush1.bf16.msra.mxu0 %v8765_v47  ;;  %v8842_v15 = vld [vmem:[#allocation2 + $0x4cc] ss:$16 sps:$4 sm:$0xff]  }
 0x42e   : > { %5147 = vmatprep.subr.bf16.mxu1 %v8770_v31  ;;  %5188 = vmatprep.subr.bf16.mxu0 %v8773_v33  ;;  %v8845_v47 = vld [vmem:[#allocation2 + $0x6cc] ss:$16 sps:$4 sm:$0xff]   ;;  %v3549_v31 = vrot.slane %v10487_v38, %v9492_v36 }
 0x431   : > { %5148 = vmatpush1.bf16.msra.mxu1 %v8768_v26  ;;  %5189 = vmatpush1.bf16.msra.mxu0 %v8771_v6  ;;  %v8840_v6 = vld [vmem:[#allocation2 + $0x4c8] ss:$16 sps:$4 sm:$0xff]  }
 0x432   : > { %5149 = vmatprep.subr.bf16.mxu1 %v8776_v62  ;;  %5190 = vmatprep.subr.bf16.mxu0 %v8779_v32  ;;  %v8843_v32 = vld [vmem:[#allocation2 + $0x6c8] ss:$16 sps:$4 sm:$0xff]  }
 0x435   : > { %5150 = vmatpush1.bf16.msra.mxu1 %v8774_v5  ;;  %5191 = vmatpush1.bf16.msra.mxu0 %v8777_v4  ;;  %v8848_v5 = vld [vmem:[#allocation2 + $0x4ac] ss:$16 sps:$4 sm:$0xff]  }
 0x436   : > { %5151 = vmatprep.subr.bf16.mxu1 %v8782_v17  ;;  %5192 = vmatprep.subr.bf16.mxu0 %v8785_v29 }
 0x439   : > { %5152 = vmatpush1.bf16.msra.mxu1 %v8780_v27  ;;  %5193 = vmatpush1.bf16.msra.mxu0 %v8783_v60 }
 0x43a   : > { %5153 = vmatprep.subr.bf16.mxu1 %v8788_v59  ;;  %5194 = vmatprep.subr.bf16.mxu0 %v8791_v2  ;;  %v8846_v59 = vld [vmem:[#allocation2 + $0x4a8] ss:$16 sps:$4 sm:$0xff]  }
 0x43b   : > { %v8849_v2 = vld [vmem:[#allocation2 + $0x6a8] ss:$16 sps:$4 sm:$0xff]  }
 0x43d   : > { %5154 = vmatpush2.bf16.msra.mxu1 %v8786_v40  ;;  %5195 = vmatpush2.bf16.msra.mxu0 %v8789_v12 }
 0x43e   : > { %5155 = vmatprep.subr.bf16.mxu1 %v8794_v63  ;;  %5196 = vmatprep.subr.bf16.mxu0 %v8797_v61  ;;  %v8857_v63 = vld [vmem:[#allocation2 + $0x68c] ss:$16 sps:$4 sm:$0xff]   ;;  %v8852_v61 = vld [vmem:[#allocation2 + $0x488] ss:$16 sps:$4 sm:$0xff]  }
 0x441   : > { %5156 = vmatpush2.bf16.msra.mxu1 %v8792_v50  ;;  %5197 = vmatpush2.bf16.msra.mxu0 %v8795_v3  ;;  %v8855_v50 = vld [vmem:[#allocation2 + $0x688] ss:$16 sps:$4 sm:$0xff]   ;;  %v8860_v3 = vld [vmem:[#allocation2 + $0x46c] ss:$16 sps:$4 sm:$0xff]  }
 0x442   : > { %5157 = vmatprep.subr.bf16.mxu1 %v8800_v28  ;;  %5198 = vmatprep.subr.bf16.mxu0 %v8803_v13  ;;  %v8863_v28 = vld [vmem:[#allocation2 + $0x66c] ss:$16 sps:$4 sm:$0xff]   ;;  %v8858_v13 = vld [vmem:[#allocation2 + $0x468] ss:$16 sps:$4 sm:$0xff]  }
 0x445   : > { %5158 = vmatpush2.bf16.msra.mxu1 %v8798_v58  ;;  %5199 = vmatpush2.bf16.msra.mxu0 %v8801_v11  ;;  %v8861_v58 = vld [vmem:[#allocation2 + $0x668] ss:$16 sps:$4 sm:$0xff]   ;;  %v8866_v11 = vld [vmem:[#allocation2 + $0x44c] ss:$16 sps:$4 sm:$0xff]  }
 0x446   : > { %5159 = vmatprep.subr.bf16.mxu1 %v8806_v56  ;;  %5200 = vmatprep.subr.bf16.mxu0 %v8809_v18  ;;  %v8869_v56 = vld [vmem:[#allocation2 + $0x64c] ss:$16 sps:$4 sm:$0xff]   ;;  %v8864_v18 = vld [vmem:[#allocation2 + $0x448] ss:$16 sps:$4 sm:$0xff]  }
 0x449   : > { %5160 = vmatpush2.bf16.msra.mxu1 %v8804_v48  ;;  %5201 = vmatpush2.bf16.msra.mxu0 %v8807_v37  ;;  %v8867_v48 = vld [vmem:[#allocation2 + $0x648] ss:$16 sps:$4 sm:$0xff]   ;;  %v8872_v37 = vld [vmem:[#allocation2 + $0x42c] ss:$16 sps:$4 sm:$0xff]  }
 0x44a   : > { %5161 = vmatprep.subr.bf16.mxu1 %v8812_v16  ;;  %5202 = vmatprep.subr.bf16.mxu0 %v8815_v19  ;;  %v8875_v16 = vld [vmem:[#allocation2 + $0x62c] ss:$16 sps:$4 sm:$0xff]   ;;  %v8870_v19 = vld [vmem:[#allocation2 + $0x428] ss:$16 sps:$4 sm:$0xff]  }
 0x44d   : > { %5162 = vmatpush2.bf16.msra.mxu1 %v8810_v8  ;;  %5203 = vmatpush2.bf16.msra.mxu0 %v8813_v0  ;;  %v8873_v8 = vld [vmem:[#allocation2 + $0x628] ss:$16 sps:$4 sm:$0xff]   ;;  %v8878_v0 = vld [vmem:[#allocation2 + $0x40c] ss:$16 sps:$4 sm:$0xff]  }
 0x44e   : > { %5163 = vmatprep.subr.bf16.mxu1 %v8818_v52  ;;  %5204 = vmatprep.subr.bf16.mxu0 %v8821_v42  ;;  %v8881_v52 = vld [vmem:[#allocation2 + $0x60c] ss:$16 sps:$4 sm:$0xff]   ;;  %v8876_v42 = vld [vmem:[#allocation2 + $0x408] ss:$16 sps:$4 sm:$0xff]  }
 0x451   : > { %5164 = vmatpush2.bf16.msra.mxu1 %v8816_v22  ;;  %5205 = vmatpush2.bf16.msra.mxu0 %v8819_v24  ;;  %v8879_v22 = vld [vmem:[#allocation2 + $0x608] ss:$16 sps:$4 sm:$0xff]   ;;  %v8884_v24 = vld [vmem:[#allocation2 + $0x5ec] ss:$16 sps:$4 sm:$0xff]  }
 0x452   : > { %5165 = vmatprep.subr.bf16.mxu1 %v8824_v34  ;;  %5206 = vmatprep.subr.bf16.mxu0 %v8827_v41  ;;  %v8887_v34 = vld [vmem:[#allocation2 + $0x7ec] ss:$16 sps:$4 sm:$0xff]   ;;  %v8882_v41 = vld [vmem:[#allocation2 + $0x5e8] ss:$16 sps:$4 sm:$0xff]  }
 0x455   : > { %5166 = vmatpush2.bf16.msra.mxu1 %v8822_v25  ;;  %5207 = vmatpush2.bf16.msra.mxu0 %v8825_v57  ;;  %v8885_v25 = vld [vmem:[#allocation2 + $0x7e8] ss:$16 sps:$4 sm:$0xff]   ;;  %v8890_v57 = vld [vmem:[#allocation2 + $0x5cc] ss:$16 sps:$4 sm:$0xff]  }
 0x456   : > { %5167 = vmatprep.subr.bf16.mxu1 %v8830_v14  ;;  %5208 = vmatprep.subr.bf16.mxu0 %v8833_v35  ;;  %v8893_v14 = vld [vmem:[#allocation2 + $0x7cc] ss:$16 sps:$4 sm:$0xff]   ;;  %v8888_v35 = vld [vmem:[#allocation2 + $0x5c8] ss:$16 sps:$4 sm:$0xff]  }
 0x459   : > { %5168 = vmatpush2.bf16.msra.mxu1 %v8828_v53  ;;  %5209 = vmatpush2.bf16.msra.mxu0 %v8831_v49  ;;  %v8891_v53 = vld [vmem:[#allocation2 + $0x7c8] ss:$16 sps:$4 sm:$0xff]   ;;  %v8896_v49 = vld [vmem:[#allocation2 + $0x5ac] ss:$16 sps:$4 sm:$0xff]  }
 0x45a   : > { %5219 = vmatprep.subr.bf16.mxu1 %v8836_v44  ;;  %5260 = vmatprep.subr.bf16.mxu0 %v8839_v21  ;;  %v8899_v44 = vld [vmem:[#allocation2 + $0x7ac] ss:$16 sps:$4 sm:$0xff]   ;;  %v8894_v21 = vld [vmem:[#allocation2 + $0x5a8] ss:$16 sps:$4 sm:$0xff]  }
 0x45c   : > { %5170 = vmatmul.mubr.bf16.vlgmr.msra.gmra.mxu1 %v10345_v1  ;;  %5211 = vmatmul.mubr.bf16.vlgmr.msra.gmra.mxu0 %v10347_v45  ;;  %v8851_v1 = vld [vmem:[#allocation2 + $0x6ac] ss:$16 sps:$4 sm:$0xff]  }
 0x45d   : > { %v5007_v33 = vpop.f32.mrf.mxu1  ;;  %v5048_v26 = vpop.f32.mrf.mxu0  ;;  %5220 = vmatpush1.bf16.msra.mxu1 %v8834_v9  ;;  %5251 = vmatprep.mubr.bf16.mxu1 %v10470_v10  ;;  %v8897_v9 = vld [vmem:[#allocation2 + $0x7a8] ss:$16 sps:$4 sm:$0xff]  }
 0x45e   : > { %v5008_v62 = vadd.f32 %v5007_v33, %v3545_v20  ;;  %5261 = vmatpush1.bf16.msra.mxu0 %v8837_v30  ;;  %5292 = vmatprep.mubr.bf16.mxu0 %v10472_v51  ;;  %v8854_v51 = vld [vmem:[#allocation2 + $0x48c] ss:$16 sps:$4 sm:$0xff]  }
 0x45f   : > { %v5009_v4 = vpop.f32.mrf.mxu1  ;;  %v5050_v17 = vpop.f32.mrf.mxu0  ;;  %5221 = vmatprep.subr.bf16.mxu1 %v8842_v15  ;;  %5262 = vmatprep.subr.bf16.mxu0 %v8845_v47  ;;  %v8902_v30 = vld [vmem:[#allocation2 + $0x58c] ss:$16 sps:$4 sm:$0xff]   ;;  %v8900_v15 = vld [vmem:[#allocation2 + $0x588] ss:$16 sps:$4 sm:$0xff]  }
 0x460   : > { %v10497_v45 = vadd.f32 %v5048_v26, %v5008_v62  ;;  %v5010_v29 = vadd.f32 %v5009_v4, %v3549_v31  ;;  %v8905_v20 = vld [vmem:[#allocation2 + $0x78c] ss:$16 sps:$4 sm:$0xff]   ;;  %v8903_v47 = vld [vmem:[#allocation2 + $0x788] ss:$16 sps:$4 sm:$0xff]  }
 0x461   : > { %v5011_v27 = vpop.f32.mrf.mxu1  ;;  %v5052_v60 = vpop.f32.mrf.mxu0  ;;  %5222 = vmatpush1.bf16.msra.mxu1 %v8840_v6  ;;  %v8908_v31 = vld [vmem:[#allocation2 + $0x56c] ss:$16 sps:$4 sm:$0xff]   ;;  %v8906_v26 = vld [vmem:[#allocation2 + $0x568] ss:$16 sps:$4 sm:$0xff]  }
 0x462   : > { %v10499_v10 = vadd.f32 %v5050_v17, %v5010_v29  ;;  %5263 = vmatpush1.bf16.msra.mxu0 %v8843_v32  ;;  %5223 = vmatprep.subr.bf16.mxu1 %v8848_v5  ;;  %v8911_v33 = vld [vmem:[#allocation2 + $0x76c] ss:$16 sps:$4 sm:$0xff]   ;;  %v8909_v6 = vld [vmem:[#allocation2 + $0x768] ss:$16 sps:$4 sm:$0xff]  }
 0x463   : > { %v5012_v40 = vpop.f32.mrf.mxu1  ;;  %v5053_v12 = vpop.f32.mrf.mxu0  ;;  %5264 = vmatprep.subr.bf16.mxu0 %v8851_v1  ;;  %v8914_v62 = vld [vmem:[#allocation2 + $0x54c] ss:$16 sps:$4 sm:$0xff]   ;;  %v8912_v5 = vld [vmem:[#allocation2 + $0x548] ss:$16 sps:$4 sm:$0xff]  }
 0x464   : > { %v8917_v32 = vld [vmem:[#allocation2 + $0x74c] ss:$16 sps:$4 sm:$0xff]   ;;  %v8915_v4 = vld [vmem:[#allocation2 + $0x748] ss:$16 sps:$4 sm:$0xff]   ;;  %v8932_v40 = vld [vmem:[#allocation4 + $0x64] ss:$16 sps:$4 sm:$0xff]  }
 0x465   : > { %5224 = vmatpush1.bf16.msra.mxu1 %v8846_v59  ;;  %v8920_v17 = vld [vmem:[#allocation2 + $0x52c] ss:$16 sps:$4 sm:$0xff]   ;;  %v8918_v29 = vld [vmem:[#allocation2 + $0x528] ss:$16 sps:$4 sm:$0xff]  }
 0x466   : > { %5265 = vmatpush1.bf16.msra.mxu0 %v8849_v2  ;;  %5225 = vmatprep.subr.bf16.mxu1 %v8854_v51  ;;  %v8923_v1 = vld [vmem:[#allocation2 + $0x72c] ss:$16 sps:$4 sm:$0xff]   ;;  %v8921_v27 = vld [vmem:[#allocation2 + $0x728] ss:$16 sps:$4 sm:$0xff]  }
 0x467   : > { %5266 = vmatprep.subr.bf16.mxu0 %v8857_v63  ;;  %v8926_v60 = vld [vmem:[#allocation2 + $0x50c] ss:$16 sps:$4 sm:$0xff]   ;;  %v8924_v2 = vld [vmem:[#allocation2 + $0x508] ss:$16 sps:$4 sm:$0xff]   ;;  %v8930_v63 = vld [vmem:[#allocation4 + $0x60] ss:$16 sps:$4 sm:$0xff]  }
 0x468   : > { %v8929_v59 = vld [vmem:[#allocation2 + $0x70c] ss:$16 sps:$4 sm:$0xff]   ;;  %v8927_v51 = vld [vmem:[#allocation2 + $0x708] ss:$16 sps:$4 sm:$0xff]  }
 0x469   : > { %5226 = vmatpush1.bf16.msra.mxu1 %v8852_v61  ;;  %v8935_v12 = vld [vmem:[#allocation4 + $0x6c] ss:$16 sps:$4 sm:$0xff]   ;;  %v8933_v61 = vld [vmem:[#allocation4 + $0x68] ss:$16 sps:$4 sm:$0xff]  }
 0x46a   : > { %5267 = vmatpush1.bf16.msra.mxu0 %v8855_v50  ;;  %5227 = vmatprep.subr.bf16.mxu1 %v8860_v3  ;;  %v8938_v50 = vld [vmem:[#allocation4 + $0x44] ss:$16 sps:$4 sm:$0xff]   ;;  %v8941_v3 = vld [vmem:[#allocation4 + $0x4c] ss:$16 sps:$4 sm:$0xff]  }
 0x46b   : > { %5268 = vmatprep.subr.bf16.mxu0 %v8863_v28  ;;  %v8936_v28 = vld [vmem:[#allocation4 + $0x40] ss:$16 sps:$4 sm:$0xff]  }
 0x46d   : > { %5228 = vmatpush1.bf16.msra.mxu1 %v8858_v13  ;;  %v8939_v13 = vld [vmem:[#allocation4 + $0x48] ss:$16 sps:$4 sm:$0xff]  }
 0x46e   : > { %5269 = vmatpush1.bf16.msra.mxu0 %v8861_v58  ;;  %5229 = vmatprep.subr.bf16.mxu1 %v8866_v11  ;;  %v8944_v58 = vld [vmem:[#allocation4 + $0x24] ss:$16 sps:$4 sm:$0xff]   ;;  %v8947_v11 = vld [vmem:[#allocation4 + $0x2c] ss:$16 sps:$4 sm:$0xff]  }
 0x46f   : > { %5270 = vmatprep.subr.bf16.mxu0 %v8869_v56  ;;  %v8942_v56 = vld [vmem:[#allocation4 + $0x20] ss:$16 sps:$4 sm:$0xff]  }
 0x471   : > { %5230 = vmatpush1.bf16.msra.mxu1 %v8864_v18  ;;  %v8945_v18 = vld [vmem:[#allocation4 + $0x28] ss:$16 sps:$4 sm:$0xff]  }
 0x472   : > { %5271 = vmatpush1.bf16.msra.mxu0 %v8867_v48  ;;  %5231 = vmatprep.subr.bf16.mxu1 %v8872_v37  ;;  %v8948_v48 = vld [vmem:[#allocation4] ss:$16 sps:$4 sm:$0xff]   ;;  %v8951_v37 = vld [vmem:[#allocation4 + $0x8] ss:$16 sps:$4 sm:$0xff]  }
 0x473   : > { %5272 = vmatprep.subr.bf16.mxu0 %v8875_v16  ;;  %v8956_v16 = vld [vmem:[#allocation6 + $0x74] ss:$8 sps:$4 sm:$0xff]  }
 0x475   : > { %5232 = vmatpush1.bf16.msra.mxu1 %v8870_v19  ;;  %v8959_v19 = vld [vmem:[#allocation6 + $0x174] ss:$8 sps:$4 sm:$0xff]  }
 0x476   : > { %5273 = vmatpush1.bf16.msra.mxu0 %v8873_v8  ;;  %5233 = vmatprep.subr.bf16.mxu1 %v8878_v0  ;;  %v8954_v8 = vld [vmem:[#allocation6 + $0x70] ss:$8 sps:$4 sm:$0xff]  }
 0x477   : > { %5274 = vmatprep.subr.bf16.mxu0 %v8881_v52  ;;  %v8957_v0 = vld [vmem:[#allocation6 + $0x170] ss:$8 sps:$4 sm:$0xff]   ;;  %v8962_v52 = vld [vmem:[#allocation6 + $0x64] ss:$8 sps:$4 sm:$0xff]  }
 0x479   : > { %5234 = vmatpush1.bf16.msra.mxu1 %v8876_v42  ;;  %v8965_v42 = vld [vmem:[#allocation6 + $0x164] ss:$8 sps:$4 sm:$0xff]  }
 0x47a   : > { %5275 = vmatpush1.bf16.msra.mxu0 %v8879_v22  ;;  %5235 = vmatprep.subr.bf16.mxu1 %v8884_v24  ;;  %v8960_v22 = vld [vmem:[#allocation6 + $0x60] ss:$8 sps:$4 sm:$0xff]  }
 0x47b   : > { %5276 = vmatprep.subr.bf16.mxu0 %v8887_v34  ;;  %v8963_v24 = vld [vmem:[#allocation6 + $0x160] ss:$8 sps:$4 sm:$0xff]   ;;  %v8968_v34 = vld [vmem:[#allocation6 + $0x54] ss:$8 sps:$4 sm:$0xff]  }
 0x47d   : > { %5236 = vmatpush2.bf16.msra.mxu1 %v8882_v41  ;;  %v8971_v41 = vld [vmem:[#allocation6 + $0x154] ss:$8 sps:$4 sm:$0xff]  }
 0x47e   : > { %5277 = vmatpush2.bf16.msra.mxu0 %v8885_v25  ;;  %5237 = vmatprep.subr.bf16.mxu1 %v8890_v57  ;;  %v8966_v25 = vld [vmem:[#allocation6 + $0x50] ss:$8 sps:$4 sm:$0xff]  }
 0x47f   : > { %5278 = vmatprep.subr.bf16.mxu0 %v8893_v14  ;;  %v8969_v57 = vld [vmem:[#allocation6 + $0x150] ss:$8 sps:$4 sm:$0xff]   ;;  %v8974_v14 = vld [vmem:[#allocation6 + $0x44] ss:$8 sps:$4 sm:$0xff]  }
 0x481   : > { %5238 = vmatpush2.bf16.msra.mxu1 %v8888_v35  ;;  %v8972_v35 = vld [vmem:[#allocation6 + $0x40] ss:$8 sps:$4 sm:$0xff]  }
 0x482   : > { %5279 = vmatpush2.bf16.msra.mxu0 %v8891_v53  ;;  %5239 = vmatprep.subr.bf16.mxu1 %v8896_v49  ;;  %v8975_v53 = vld [vmem:[#allocation6 + $0x140] ss:$8 sps:$4 sm:$0xff]   ;;  %v8980_v49 = vld [vmem:[#allocation6 + $0x34] ss:$8 sps:$4 sm:$0xff]  }
 0x483   : > { %5280 = vmatprep.subr.bf16.mxu0 %v8899_v44  ;;  %v8983_v44 = vld [vmem:[#allocation6 + $0x134] ss:$8 sps:$4 sm:$0xff]  }
 0x485   : > { %5240 = vmatpush2.bf16.msra.mxu1 %v8894_v21  ;;  %v8978_v21 = vld [vmem:[#allocation6 + $0x30] ss:$8 sps:$4 sm:$0xff]  }
 0x486   : > { %5281 = vmatpush2.bf16.msra.mxu0 %v8897_v9  ;;  %5241 = vmatprep.subr.bf16.mxu1 %v8902_v30  ;;  %v8981_v9 = vld [vmem:[#allocation6 + $0x130] ss:$8 sps:$4 sm:$0xff]   ;;  %v8986_v30 = vld [vmem:[#allocation6 + $0x24] ss:$8 sps:$4 sm:$0xff]  }
 0x487   : > { %5282 = vmatprep.subr.bf16.mxu0 %v8905_v20  ;;  %v8984_v20 = vld [vmem:[#allocation6 + $0x20] ss:$8 sps:$4 sm:$0xff]  }
 0x489   : > { %5242 = vmatpush2.bf16.msra.mxu1 %v8900_v15  ;;  %v8987_v15 = vld [vmem:[#allocation6 + $0x120] ss:$8 sps:$4 sm:$0xff]  }
 0x48a   : > { %5283 = vmatpush2.bf16.msra.mxu0 %v8903_v47  ;;  %5243 = vmatprep.subr.bf16.mxu1 %v8908_v31  ;;  %v8992_v47 = vld [vmem:[#allocation6 + $0x14] ss:$8 sps:$4 sm:$0xff]  }
 0x48b   : > { %5284 = vmatprep.subr.bf16.mxu0 %v8911_v33  ;;  %v8995_v31 = vld [vmem:[#allocation6 + $0x114] ss:$8 sps:$4 sm:$0xff]   ;;  %v8990_v33 = vld [vmem:[#allocation6 + $0x10] ss:$8 sps:$4 sm:$0xff]  }
 0x48d   : > { %5244 = vmatpush2.bf16.msra.mxu1 %v8906_v26  ;;  %v8993_v26 = vld [vmem:[#allocation6 + $0x110] ss:$8 sps:$4 sm:$0xff]  }
 0x48e   : > { %5285 = vmatpush2.bf16.msra.mxu0 %v8909_v6  ;;  %5245 = vmatprep.subr.bf16.mxu1 %v8914_v62  ;;  %v8998_v6 = vld [vmem:[#allocation6 + $0x4] ss:$8 sps:$4 sm:$0xff]   ;;  %v11253_v62 = vld [vmem:[#allocation14_spill] sm:$0xff] }
 0x48f   : > { %5286 = vmatprep.subr.bf16.mxu0 %v8917_v32  ;;  %v8996_v32 = vld [vmem:[#allocation6] ss:$8 sps:$4 sm:$0xff]  }
 0x491   : > { %5246 = vmatpush2.bf16.msra.mxu1 %v8912_v5  ;;  %v8999_v5 = vld [vmem:[#allocation6 + $0x100] ss:$8 sps:$4 sm:$0xff]  }
 0x492   : > { %5287 = vmatpush2.bf16.msra.mxu0 %v8915_v4  ;;  %5247 = vmatprep.subr.bf16.mxu1 %v8920_v17  ;;  %v9004_v4 = vld [vmem:[#allocation6 + $0xf4] ss:$8 sps:$4 sm:$0xff]  }
 0x493   : > { %5288 = vmatprep.subr.bf16.mxu0 %v8923_v1  ;;  %v9007_v17 = vld [vmem:[#allocation6 + $0x1f4] ss:$8 sps:$4 sm:$0xff]   ;;  %v9002_v1 = vld [vmem:[#allocation6 + $0xf0] ss:$8 sps:$4 sm:$0xff]  }
 0x495   : > { %5248 = vmatpush2.bf16.msra.mxu1 %v8918_v29  ;;  %v9005_v29 = vld [vmem:[#allocation6 + $0x1f0] ss:$8 sps:$4 sm:$0xff]  }
 0x496   : > { %5289 = vmatpush2.bf16.msra.mxu0 %v8921_v27  ;;  %5249 = vmatprep.subr.bf16.mxu1 %v8926_v60  ;;  %v9010_v27 = vld [vmem:[#allocation6 + $0xe4] ss:$8 sps:$4 sm:$0xff]   ;;  %v11254_v60 = vld [vmem:[#allocation15_spill] sm:$0xff] }
 0x497   : > { %5290 = vmatprep.subr.bf16.mxu0 %v8929_v59  ;;  %v9013_v59 = vld [vmem:[#allocation6 + $0x1e4] ss:$8 sps:$4 sm:$0xff]  }
 0x499   : > { %5250 = vmatpush2.bf16.msra.mxu1 %v8924_v2  ;;  %v9008_v2 = vld [vmem:[#allocation6 + $0xe0] ss:$8 sps:$4 sm:$0xff]  }
 0x49a   : > { %5291 = vmatpush2.bf16.msra.mxu0 %v8927_v51  ;;  %5405 = vmatprep.subr.bf16.mxu1 %v8932_v40  ;;  %v9011_v51 = vld [vmem:[#allocation6 + $0x1e0] ss:$8 sps:$4 sm:$0xff]   ;;  %v9016_v40 = vld [vmem:[#allocation6 + $0xd4] ss:$8 sps:$4 sm:$0xff]  }
 0x49b   : > { %5598 = vmatprep.subr.bf16.mxu0 %v8935_v12  ;;  %v9019_v12 = vld [vmem:[#allocation6 + $0x1d4] ss:$8 sps:$4 sm:$0xff]  }
 0x49c   : > { %5252 = vmatmul.mubr.bf16.vlgmr.msra.gmra.mxu1 %v10474_v23  ;;  %v8950_v23 = vld [vmem:[#allocation4 + $0x4] ss:$16 sps:$4 sm:$0xff]  }
 0x49d   : > { %5293 = vmatmul.mubr.bf16.vlgmr.msra.gmra.mxu0 %v10476_v43  ;;  %5406 = vmatpush1.bf16.msra.mxu1 %v8930_v63  ;;  %v8953_v43 = vld [vmem:[#allocation4 + $0xc] ss:$16 sps:$4 sm:$0xff]   ;;  %v9014_v63 = vld [vmem:[#allocation6 + $0xd0] ss:$8 sps:$4 sm:$0xff]  }
 0x49e   : > { %5599 = vmatpush1.bf16.msra.mxu0 %v8933_v61  ;;  %5407 = vmatprep.subr.bf16.mxu1 %v8938_v50  ;;  %v9017_v61 = vld [vmem:[#allocation6 + $0x1d0] ss:$8 sps:$4 sm:$0xff]   ;;  %v9022_v50 = vld [vmem:[#allocation6 + $0xc4] ss:$8 sps:$4 sm:$0xff]  }
 0x49f   : > { %5600 = vmatprep.subr.bf16.mxu0 %v8941_v3  ;;  %5429 = vmatprep.mubr.bf16.mxu1 %v11251_v7  ;;  %v11255_v3 = vld [vmem:[#allocation16_spill] sm:$0xff] }
 0x4a0   : > { %5622 = vmatprep.mubr.bf16.mxu0 %v11251_v7 }
 0x4a1   : > { %5408 = vmatpush1.bf16.msra.mxu1 %v8936_v28  ;;  %v9025_v28 = vld [vmem:[#allocation6 + $0x1c4] ss:$8 sps:$4 sm:$0xff]  }
 0x4a2   : > { %5601 = vmatpush1.bf16.msra.mxu0 %v8939_v13  ;;  %5409 = vmatprep.subr.bf16.mxu1 %v8944_v58  ;;  %v9020_v13 = vld [vmem:[#allocation6 + $0xc0] ss:$8 sps:$4 sm:$0xff]  }
 0x4a3   : > { %5602 = vmatprep.subr.bf16.mxu0 %v8947_v11  ;;  %v9023_v58 = vld [vmem:[#allocation6 + $0x1c0] ss:$8 sps:$4 sm:$0xff]   ;;  %v9028_v11 = vld [vmem:[#allocation6 + $0xb4] ss:$8 sps:$4 sm:$0xff]  }
 0x4a5   : > { %5410 = vmatpush1.bf16.msra.mxu1 %v8942_v56  ;;  %v9031_v56 = vld [vmem:[#allocation6 + $0x1b4] ss:$8 sps:$4 sm:$0xff]  }
 0x4a6   : > { %5603 = vmatpush1.bf16.msra.mxu0 %v8945_v18  ;;  %5411 = vmatprep.subr.bf16.mxu1 %v8950_v23  ;;  %v9026_v18 = vld [vmem:[#allocation6 + $0xb0] ss:$8 sps:$4 sm:$0xff]  }
 0x4a7   : > { %5604 = vmatprep.subr.bf16.mxu0 %v8953_v43  ;;  %v9029_v23 = vld [vmem:[#allocation6 + $0x1b0] ss:$8 sps:$4 sm:$0xff]   ;;  %v11256_v43 = vld [vmem:[#allocation17_spill] sm:$0xff] }
 0x4a9   : > { %5412 = vmatpush1.bf16.msra.mxu1 %v8948_v48 }
 0x4aa   : > { %5605 = vmatpush1.bf16.msra.mxu0 %v8951_v37  ;;  %6553 = vmatprep.subr.bf16.mxu1 %v8956_v16 }
 0x4ab   : > { %6746 = vmatprep.subr.bf16.mxu0 %v8959_v19 }
 0x4ac   : > { %8068 = vmatmul.mubr.msk.bf16.vlgmr.msra.gmra.mxu1 %vm1332_vm0, %v9571_v46 }
 0x4ad   : > { %8084 = vmatmul.mubr.msk.bf16.vlgmr.msra.gmra.mxu0 %vm1332_vm0, %v9571_v46  ;;  %5439 = vmatprep.mubr.bf16.mxu1 %v11251_v7  ;;  %v8977_v46 = vld [vmem:[#allocation6 + $0x144] ss:$8 sps:$4 sm:$0xff]  }
 0x4ae   : > { %5632 = vmatprep.mubr.bf16.mxu0 %v11251_v7  ;;  %6554 = vmatpush1.bf16.msra.mxu1 %v8954_v8 }
 0x4af   : > { %6747 = vmatpush1.bf16.msra.mxu0 %v8957_v0  ;;  %6555 = vmatprep.subr.bf16.mxu1 %v8962_v52 }
 0x4b0   : > { %6748 = vmatprep.subr.bf16.mxu0 %v8965_v42 }
 0x4b2   : > { %6556 = vmatpush1.bf16.msra.mxu1 %v8960_v22 }
 0x4b3   : > { %6749 = vmatpush1.bf16.msra.mxu0 %v8963_v24  ;;  %6557 = vmatprep.subr.bf16.mxu1 %v8968_v34 }
 0x4b4   : > { %8069 = vmatmul.mubr.msk.bf16.gmra.mxu1 %vm1332_vm0, %v9578_v55  ;;  %6750 = vmatprep.subr.bf16.mxu0 %v8971_v41 }
 0x4b5   : > { %8085 = vmatmul.mubr.msk.bf16.gmra.mxu0 %vm1332_vm0, %v9578_v55  ;;  %5449 = vmatprep.mubr.bf16.mxu1 %v11251_v7  ;;  %v8989_v55 = vld [vmem:[#allocation6 + $0x124] ss:$8 sps:$4 sm:$0xff]  }
 0x4b6   : > { %5642 = vmatprep.mubr.bf16.mxu0 %v11251_v7  ;;  %6558 = vmatpush1.bf16.msra.mxu1 %v8966_v25  ;;  %v11257_v25 = vld [vmem:[#allocation18_spill] sm:$0xff] }
 0x4b7   : > { %6751 = vmatpush1.bf16.msra.mxu0 %v8969_v57  ;;  %6559 = vmatprep.subr.bf16.mxu1 %v8974_v14  ;;  %v9034_v57 = vld [vmem:[#allocation6 + $0xa4] ss:$8 sps:$4 sm:$0xff]  }
 0x4b8   : > { %6752 = vmatprep.subr.bf16.mxu0 %v8977_v46  ;;  %v9037_v14 = vld [vmem:[#allocation6 + $0x1a4] ss:$8 sps:$4 sm:$0xff]   ;;  %v9032_v46 = vld [vmem:[#allocation6 + $0xa0] ss:$8 sps:$4 sm:$0xff]  }
 0x4ba   : > { %6560 = vmatpush1.bf16.msra.mxu1 %v8972_v35  ;;  %v9035_v35 = vld [vmem:[#allocation6 + $0x1a0] ss:$8 sps:$4 sm:$0xff]  }
 0x4bb   : > { %6753 = vmatpush1.bf16.msra.mxu0 %v8975_v53  ;;  %6561 = vmatprep.subr.bf16.mxu1 %v8980_v49  ;;  %v9040_v53 = vld [vmem:[#allocation6 + $0x94] ss:$8 sps:$4 sm:$0xff]  }
 0x4bc   : > { %8070 = vmatmul.mubr.msk.bf16.gmra.mxu1 %vm1332_vm0, %v9617_v54  ;;  %6754 = vmatprep.subr.bf16.mxu0 %v8983_v44  ;;  %v9043_v49 = vld [vmem:[#allocation6 + $0x194] ss:$8 sps:$4 sm:$0xff]   ;;  %v9038_v44 = vld [vmem:[#allocation6 + $0x90] ss:$8 sps:$4 sm:$0xff]  }
 0x4bd   : > { %8086 = vmatmul.mubr.msk.bf16.gmra.mxu0 %vm1332_vm0, %v9617_v54  ;;  %5459 = vmatprep.mubr.bf16.mxu1 %v11251_v7  ;;  %v9001_v54 = vld [vmem:[#allocation6 + $0x104] ss:$8 sps:$4 sm:$0xff]  }
 0x4be   : > { %5652 = vmatprep.mubr.bf16.mxu0 %v11251_v7  ;;  %6562 = vmatpush1.bf16.msra.mxu1 %v8978_v21  ;;  %v9041_v21 = vld [vmem:[#allocation6 + $0x190] ss:$8 sps:$4 sm:$0xff]  }
 0x4bf   : > { %6755 = vmatpush1.bf16.msra.mxu0 %v8981_v9  ;;  %6563 = vmatprep.subr.bf16.mxu1 %v8986_v30  ;;  %v11259_v9 = vld [vmem:[#allocation20_spill] sm:$0xff] }
 0x4c0   : > { %6756 = vmatprep.subr.bf16.mxu0 %v8989_v55  ;;  %v9044_v30 = vld [vmem:[#allocation6 + $0x80] ss:$8 sps:$4 sm:$0xff]   ;;  %v9046_v55 = vld [vmem:[#allocation6 + $0x84] ss:$8 sps:$4 sm:$0xff]  }
 0x4c2   : > { %6564 = vmatpush1.bf16.msra.mxu1 %v8984_v20  ;;  %v9047_v20 = vld [vmem:[#allocation6 + $0x180] ss:$8 sps:$4 sm:$0xff]  }
 0x4c3   : > { %6757 = vmatpush1.bf16.msra.mxu0 %v8987_v15  ;;  %6565 = vmatprep.subr.bf16.mxu1 %v8992_v47  ;;  %v9049_v15 = vld [vmem:[#allocation6 + $0x184] ss:$8 sps:$4 sm:$0xff]  }
 0x4c4   : > { %8071 = vmatmul.mubr.msk.bf16.gmra.mxu1 %vm1332_vm0, %v11253_v62  ;;  %6758 = vmatprep.subr.bf16.mxu0 %v8995_v31  ;;  %v11260_v47 = vld [vmem:[#allocation21_spill] sm:$0xff]  ;;  %v11261_v31 = vld [vmem:[#allocation22_spill] sm:$0xff] }
 0x4c5   : > { %8087 = vmatmul.mubr.msk.bf16.gmra.mxu0 %vm1332_vm0, %v11253_v62  ;;  %5469 = vmatprep.mubr.bf16.mxu1 %v11251_v7 }
 0x4c6   : > { %5662 = vmatprep.mubr.bf16.mxu0 %v11251_v7  ;;  %6566 = vmatpush1.bf16.msra.mxu1 %v8990_v33  ;;  %v11262_v33 = vld [vmem:[#allocation23_spill] sm:$0xff] }
 0x4c7   : > { %6759 = vmatpush1.bf16.msra.mxu0 %v8993_v26  ;;  %6567 = vmatprep.subr.bf16.mxu1 %v8998_v6  ;;  %v11263_v26 = vld [vmem:[#allocation24_spill] sm:$0xff]  ;;  %v11264_v6 = vld [vmem:[#allocation13_spill] sm:$0xff] }
 0x4c8   : > { %6760 = vmatprep.subr.bf16.mxu0 %v9001_v54  ;;  %v3553_v62 = vrot.slane %v10487_v38, %v11264_v6  ;;  %v11265_v54 = vld [vmem:[#allocation27_spill] sm:$0xff] }
 0x4ca   : > { %6568 = vmatpush1.bf16.msra.mxu1 %v8996_v32  ;;  %v3557_v32 = vrot.slane %v10487_v38, %v11265_v54 }
 0x4cb   : > { %6761 = vmatpush1.bf16.msra.mxu0 %v8999_v5  ;;  %6569 = vmatprep.subr.bf16.mxu1 %v9004_v4 }
 0x4cc   : > { %8072 = vmatmul.mubr.msk.bf16.gmra.mxu1 %vm1332_vm0, %v11254_v60  ;;  %6762 = vmatprep.subr.bf16.mxu0 %v9007_v17  ;;  %v11266_v17 = vld [vmem:[#allocation25_spill] sm:$0xff] }
 0x4cd   : > { %8088 = vmatmul.mubr.msk.bf16.gmra.mxu0 %vm1332_vm0, %v11254_v60  ;;  %5479 = vmatprep.mubr.bf16.mxu1 %v11251_v7 }
 0x4ce   : > { %5672 = vmatprep.mubr.bf16.mxu0 %v11251_v7  ;;  %6570 = vmatpush2.bf16.msra.mxu1 %v9002_v1 }
 0x4cf   : > { %6763 = vmatpush2.bf16.msra.mxu0 %v9005_v29  ;;  %6571 = vmatprep.subr.bf16.mxu1 %v9010_v27 }
 0x4d0   : > { %6764 = vmatprep.subr.bf16.mxu0 %v9013_v59 }
 0x4d2   : > { %6572 = vmatpush2.bf16.msra.mxu1 %v9008_v2 }
 0x4d3   : > { %6765 = vmatpush2.bf16.msra.mxu0 %v9011_v51  ;;  %6573 = vmatprep.subr.bf16.mxu1 %v9016_v40 }
 0x4d4   : > { %8073 = vmatmul.mubr.msk.bf16.gmra.mxu1 %vm1332_vm0, %v11255_v3  ;;  %6766 = vmatprep.subr.bf16.mxu0 %v9019_v12 }
 0x4d5   : > { %8089 = vmatmul.mubr.msk.bf16.gmra.mxu0 %vm1332_vm0, %v11255_v3  ;;  %5489 = vmatprep.mubr.bf16.mxu1 %v11251_v7 }
 0x4d6   : > { %5682 = vmatprep.mubr.bf16.mxu0 %v11251_v7  ;;  %6574 = vmatpush2.bf16.msra.mxu1 %v9014_v63  ;;  %v11267_v63 = vld [vmem:[#allocation26_spill] sm:$0xff] }
 0x4d7   : > { %6767 = vmatpush2.bf16.msra.mxu0 %v9017_v61  ;;  %6575 = vmatprep.subr.bf16.mxu1 %v9022_v50  ;;  %v9050_v61 = vld [vmem:[#allocation7 + $0x78] sm:$0xff]   ;;  %v9212_v50 = vmov 1966171168  }
 0x4d8   : > { %6768 = vmatprep.subr.bf16.mxu0 %v9025_v28  ;;  %v5790_v3 = vunpack.c.l.s4 %v9212_v50 }
 0x4da   : > { %6576 = vmatpush2.bf16.msra.mxu1 %v9020_v13  ;;  %v5791_v13 = vunpack.c.0.s8 %v5790_v3 }
 0x4db   : > { %6769 = vmatpush2.bf16.msra.mxu0 %v9023_v58  ;;  %6577 = vmatprep.subr.bf16.mxu1 %v9028_v11 }
 0x4dc   : > { %8074 = vmatmul.mubr.msk.bf16.gmra.mxu1 %vm1332_vm0, %v11256_v43  ;;  %v5089_v48 = vpop.f32.mrf.mxu1  ;;  %v5130_v37 = vpop.f32.mrf.mxu0  ;;  %6770 = vmatprep.subr.bf16.mxu0 %v9031_v56 }
 0x4dd   : > { %8090 = vmatmul.mubr.msk.bf16.gmra.mxu0 %vm1332_vm0, %v11256_v43  ;;  %v5090_v16 = vadd.f32 %v5089_v48, %v10497_v45  ;;  %5499 = vmatprep.mubr.bf16.mxu1 %v11251_v7  ;;  %v11268_v48 = vld [vmem:[#allocation12_spill] sm:$0xff] }
 0x4de   : > { %v5091_v19 = vpop.f32.mrf.mxu1  ;;  %v5132_v8 = vpop.f32.mrf.mxu0  ;;  %5692 = vmatprep.mubr.bf16.mxu0 %v11251_v7  ;;  %6578 = vmatpush2.bf16.msra.mxu1 %v9026_v18 }
 0x4df   : > { %v10548_v0 = vadd.f32 %v5130_v37, %v5090_v16  ;;  %v5092_v52 = vadd.f32 %v5091_v19, %v10499_v10  ;;  %6771 = vmatpush2.bf16.msra.mxu0 %v9029_v23  ;;  %v11258_v10 = vld [vmem:[#allocation19_spill] sm:$0xff]  ;;  %6579 = vmatprep.subr.bf16.mxu1 %v9034_v57  ;;  %v10612_v37 = vsub.s32 %v5791_v13, %v11268_v48 }
 0x4e0   : > { %v5093_v42 = vpop.f32.mrf.mxu1  ;;  %v5134_v22 = vpop.f32.mrf.mxu0  ;;  %6772 = vmatprep.subr.bf16.mxu0 %v9037_v14 }
 0x4e1   : > { %v10551_v24 = vadd.f32 %v5132_v8, %v5092_v52 }
 0x4e2   : > { %v5094_v34 = vpop.f32.mrf.mxu1  ;;  %v5135_v41 = vpop.f32.mrf.mxu0  ;;  %6580 = vmatpush2.bf16.msra.mxu1 %v9032_v46 }
 0x4e3   : > { %v5787_v45 = vcombine.low %v10548_v0, %v10551_v24  ;;  %6773 = vmatpush2.bf16.msra.mxu0 %v9035_v35  ;;  %6581 = vmatprep.subr.bf16.mxu1 %v9040_v53 }
 0x4e4   : > { %8075 = vmatmul.mubr.msk.bf16.gmra.mxu1 %vm1332_vm0, %v11257_v25  ;;  %6774 = vmatprep.subr.bf16.mxu0 %v9043_v49 }
 0x4e5   : > { %8091 = vmatmul.mubr.msk.bf16.gmra.mxu0 %vm1332_vm0, %v11257_v25  ;;  %5509 = vmatprep.mubr.bf16.mxu1 %v11251_v7  ;;  %v10618_v34 = vrot.slane %v5787_v45, %v10612_v37 }
 0x4e6   : > { %5702 = vmatprep.mubr.bf16.mxu0 %v11251_v7  ;;  %6582 = vmatpush2.bf16.msra.mxu1 %v9038_v44 }
 0x4e7   : > { %6775 = vmatpush2.bf16.msra.mxu0 %v9041_v21  ;;  %6583 = vmatprep.subr.bf16.mxu1 %v9046_v55 }
 0x4e8   : > { %6776 = vmatprep.subr.bf16.mxu0 %v9049_v15 }
 0x4ea   : > { %6584 = vmatpush2.bf16.msra.mxu1 %v9044_v30 }
 0x4eb   : > { %6777 = vmatpush2.bf16.msra.mxu0 %v9047_v20  ;;  %8212 = vmatprep.subr.bf16.mxu1 %v9050_v61 }
 0x4ec   : > { %8076 = vmatmul.mubr.msk.bf16.gmra.mxu1 %vm1332_vm0, %v11258_v10 }
 0x4ed   : > { %8092 = vmatmul.mubr.msk.bf16.gmra.mxu0 %vm1332_vm0, %v11258_v10  ;;  %5519 = vmatprep.mubr.bf16.mxu1 %v11251_v7 }
 0x4ee   : > { %5712 = vmatprep.mubr.bf16.mxu0 %v11251_v7 }
 0x4f4   : > { %8077 = vmatmul.mubr.msk.bf16.gmra.mxu1 %vm1332_vm0, %v11259_v9 }
 0x4f5   : > { %8093 = vmatmul.mubr.msk.bf16.gmra.mxu0 %vm1332_vm0, %v11259_v9  ;;  %5529 = vmatprep.mubr.bf16.mxu1 %v11251_v7 }
 0x4f6   : > { %5722 = vmatprep.mubr.bf16.mxu0 %v11251_v7 }
 0x4fc   : > { %8078 = vmatmul.mubr.msk.bf16.gmra.mxu1 %vm1332_vm0, %v11260_v47 }
 0x4fd   : > { %8094 = vmatmul.mubr.msk.bf16.gmra.mxu0 %vm1332_vm0, %v11260_v47  ;;  %5539 = vmatprep.mubr.bf16.mxu1 %v11251_v7 }
 0x4fe   : > { %5732 = vmatprep.mubr.bf16.mxu0 %v11251_v7 }
 0x504   : > { %8079 = vmatmul.mubr.msk.bf16.gmra.mxu1 %vm1332_vm0, %v11261_v31 }
 0x505   : > { %8095 = vmatmul.mubr.msk.bf16.gmra.mxu0 %vm1332_vm0, %v11261_v31  ;;  %5549 = vmatprep.mubr.bf16.mxu1 %v11251_v7 }
 0x506   : > { %5742 = vmatprep.mubr.bf16.mxu0 %v11251_v7 }
 0x50c   : > { %8080 = vmatmul.mubr.msk.bf16.gmra.mxu1 %vm1332_vm0, %v11262_v33 }
 0x50d   : > { %8096 = vmatmul.mubr.msk.bf16.gmra.mxu0 %vm1332_vm0, %v11262_v33  ;;  %5559 = vmatprep.mubr.bf16.mxu1 %v11251_v7 }
 0x50e   : > { %5752 = vmatprep.mubr.bf16.mxu0 %v11251_v7 }
 0x514   : > { %8081 = vmatmul.mubr.msk.bf16.gmra.mxu1 %vm1332_vm0, %v11263_v26 }
 0x515   : > { %8097 = vmatmul.mubr.msk.bf16.gmra.mxu0 %vm1332_vm0, %v11263_v26  ;;  %5569 = vmatprep.mubr.bf16.mxu1 %v11251_v7 }
 0x516   : > { %5762 = vmatprep.mubr.bf16.mxu0 %v11251_v7 }
 0x51c   : > { %v5171_v5 = vpop.f32.mrf.mxu1  ;;  %v5212_v4 = vpop.f32.mrf.mxu0  ;;  %8082 = vmatmul.mubr.msk.bf16.gmra.mxu1 %vm1332_vm0, %v11266_v17 }
 0x51d   : > { %v5172_v1 = vadd.f32 %v5171_v5, %v3553_v62  ;;  %8098 = vmatmul.mubr.msk.bf16.gmra.mxu0 %vm1332_vm0, %v11266_v17  ;;  %5579 = vmatprep.mubr.bf16.mxu1 %v11251_v7 }
 0x51e   : > { %v5173_v29 = vpop.f32.mrf.mxu1  ;;  %v5214_v27 = vpop.f32.mrf.mxu0  ;;  %5772 = vmatprep.mubr.bf16.mxu0 %v11251_v7 }
 0x51f   : > { %v5213_v60 = vadd.f32 %v5212_v4, %v5172_v1  ;;  %v5174_v59 = vadd.f32 %v5173_v29, %v3557_v32 }
 0x520   : > { %v5175_v2 = vpop.f32.mrf.mxu1  ;;  %v5216_v51 = vpop.f32.mrf.mxu0 }
 0x521   : > { %v5215_v38 = vadd.f32 %v5214_v27, %v5174_v59  ;;  %v9051_v2 = vld [vmem:[#allocation7 + $0x38] sm:$0xff]  }
 0x522   : > { %v5176_v40 = vpop.f32.mrf.mxu1  ;;  %v5217_v12 = vpop.f32.mrf.mxu0 }
 0x523   : > { %v9052_v12 = vld [vmem:[#allocation7 + $0x70] sm:$0xff]  }
 0x524   : > { %8083 = vmatmul.mubr.msk.bf16.gmra.mxu1 %vm1332_vm0, %v11267_v63 }
 0x525   : > { %8099 = vmatmul.mubr.msk.bf16.gmra.mxu0 %vm1332_vm0, %v11267_v63 }
 0x55c   : > { %v5253_v28 = vpop.f32.mrf.mxu1 }
 0x55d   : > { %v5254_v58 = vadd.f32 %v5253_v28, %v5213_v60  ;;  %v5294_v11 = vpop.f32.mrf.mxu0 }
 0x55e   : > { %v5255_v56 = vpop.f32.mrf.mxu1 }
 0x55f   : > { %v5256_v18 = vadd.f32 %v5255_v56, %v5215_v38  ;;  %v5296_v23 = vpop.f32.mrf.mxu0  ;;  %v5295_v16 = vadd.f32 %v5294_v11, %v5254_v58 }
 0x560   : > { %v5257_v43 = vpop.f32.mrf.mxu1 }
 0x561   : > { %v5297_v19 = vadd.f32 %v5296_v23, %v5256_v18  ;;  %v5298_v8 = vpop.f32.mrf.mxu0  ;;  %v9053_v23 = vld [vmem:[#allocation7 + $0x30] sm:$0xff]  }
 0x562   : > { %v5258_v52 = vpop.f32.mrf.mxu1  ;;  %v9054_v8 = vld [vmem:[#allocation7 + $0x68] sm:$0xff]  }
 0x563   : > { %v5788_v42 = vcombine.low %v5295_v16, %v5297_v19  ;;  %v5299_v22 = vpop.f32.mrf.mxu0 }
 0x565   : > { %v10621_v41 = vrot.slane %v5788_v42, %v10612_v37 }
 0x567   : > { %v5803_v25 = vcombine.low %v10618_v34, %v10621_v41  ;;  %v5804_v10 = vcombine.high %v10618_v34, %v10621_v41 }
 0x569   : > { %v10628_v57 = vrot.slane %v5803_v25, %v10612_v37 }
 0x56b   : > { %v10632_v35 = vrot.slane %v10628_v57, %v9500_v39  ;;  %v10636_v24 = vrot.slane %v10628_v57, %v11264_v6  ;;  %v10640_v49 = vrot.slane %v10628_v57, %v9492_v36  ;;  %v10645_v9 = vrot.slane %v10628_v57, %v11265_v54 }
 0x56c   : > { %v5431_v14 = vpop.f32.mrf.mxu1 }
 0x56d   : > { %v5624_v46 = vpop.f32.mrf.mxu0  ;;  %v5901_v30 = vadd.f32 %v10632_v35, %v5431_v14 }
 0x56e   : > { %v5433_v0 = vpop.f32.mrf.mxu1  ;;  %v5903_v15 = vadd.f32 %v10636_v24, %v5624_v46 }
 0x56f   : > { %v5626_v45 = vpop.f32.mrf.mxu0  ;;  %v5902_v47 = vadd.f32 %v10640_v49, %v5433_v0 }
 0x570   : > { %v5435_v53 = vpop.f32.mrf.mxu1  ;;  %v5904_v26 = vadd.f32 %v10645_v9, %v5626_v45  ;;  %v9055_v45 = vld [vmem:[#allocation7 + $0x28] sm:$0xff]  }
 0x571   : > { %v5905_v44 = vadd.f32 %v10632_v35, %v5435_v53  ;;  %v5628_v21 = vpop.f32.mrf.mxu0 }
 0x572   : > { %v5907_v55 = vadd.f32 %v10636_v24, %v5628_v21  ;;  %v5437_v20 = vpop.f32.mrf.mxu1 }
 0x573   : > { %v5906_v31 = vadd.f32 %v10640_v49, %v5437_v20  ;;  %v5630_v33 = vpop.f32.mrf.mxu0  ;;  %v6029_v62 = vpack.c.bf16 %v5905_v44, %v5901_v30  ;;  %v9056_v30 = vld [vmem:[#allocation7 + $0x60] sm:$0xff]  }
 0x574   : > { %v5908_v32 = vadd.f32 %v10645_v9, %v5630_v33  ;;  %v5441_v5 = vpop.f32.mrf.mxu1  ;;  %v6031_v4 = vpack.c.bf16 %v5907_v55, %v5903_v15 }
 0x575   : > { %v6030_v17 = vpack.c.bf16 %v5906_v31, %v5902_v47  ;;  %v5634_v1 = vpop.f32.mrf.mxu0  ;;  %v6093_v51 = vmax.bf16 %v11251_v7, %v6029_v62  ;;  %v5909_v3 = vadd.f32 %v10632_v35, %v5441_v5 }
 0x576   : > { %v6032_v29 = vpack.c.bf16 %v5908_v32, %v5904_v26  ;;  %v5443_v27 = vpop.f32.mrf.mxu1  ;;  %v6095_v63 = vmax.bf16 %v11251_v7, %v6031_v4  ;;  %v5911_v58 = vadd.f32 %v10636_v24, %v5634_v1  ;;  %v9057_v4 = vld [vmem:[#allocation7 + $0x20] sm:$0xff]  }
 0x577   : > { %v5636_v60 = vpop.f32.mrf.mxu0  ;;  %v6094_v59 = vmax.bf16 %v11251_v7, %v6030_v17  ;;  %v5910_v11 = vadd.f32 %v10640_v49, %v5443_v27 }
 0x578   : > { %v5445_v38 = vpop.f32.mrf.mxu1  ;;  %v6096_v40 = vmax.bf16 %v11251_v7, %v6032_v29  ;;  %v5912_v43 = vadd.f32 %v10645_v9, %v5636_v60  ;;  %v9058_v60 = vld [vmem:[#allocation7 + $0x58] sm:$0xff]  }
 0x579   : > { %v5913_v61 = vadd.f32 %v10632_v35, %v5445_v38  ;;  %v5638_v50 = vpop.f32.mrf.mxu0  ;;  %6585 = vmatprep.mubr.bf16.mxu1 %v6094_v59 }
 0x57a   : > { %v5915_v28 = vadd.f32 %v10636_v24, %v5638_v50  ;;  %6778 = vmatprep.mubr.bf16.mxu0 %v6096_v40  ;;  %v5447_v13 = vpop.f32.mrf.mxu1  ;;  %6586 = vmatmul.mubr.bf16.vlgmr.msra.gmra.mxu1 %v6093_v51 }
 0x57b   : > { %v5914_v56 = vadd.f32 %v10640_v49, %v5447_v13  ;;  %v5640_v18 = vpop.f32.mrf.mxu0  ;;  %6779 = vmatmul.mubr.bf16.vlgmr.msra.gmra.mxu0 %v6095_v63  ;;  %8213 = vmatpush3.bf16.msra.mxu1 %v9051_v2  ;;  %v6033_v48 = vpack.c.bf16 %v5913_v61, %v5909_v3  ;;  %v9059_v61 = vld [vmem:[#allocation7 + $0x18] sm:$0xff]   ;;  %v9060_v13 = vld [vmem:[#allocation7 + $0x50] sm:$0xff]  }
 0x57c   : > { %v5916_v16 = vadd.f32 %v10645_v9, %v5640_v18  ;;  %v5451_v19 = vpop.f32.mrf.mxu1  ;;  %8214 = vmatprep.subr.bf16.mxu1 %v9052_v12  ;;  %v6035_v52 = vpack.c.bf16 %v5915_v28, %v5911_v58  ;;  %v10687_v18 = vrot.slane %v5804_v10, %v10612_v37 }
 0x57d   : > { %v6034_v42 = vpack.c.bf16 %v5914_v56, %v5910_v11  ;;  %v5644_v22 = vpop.f32.mrf.mxu0  ;;  %v6097_v53 = vmax.bf16 %v11251_v7, %v6033_v48  ;;  %v5917_v47 = vadd.f32 %v10632_v35, %v5451_v19 }
 0x57e   : > { %v6036_v25 = vpack.c.bf16 %v5916_v16, %v5912_v43  ;;  %v5453_v14 = vpop.f32.mrf.mxu1  ;;  %v6099_v55 = vmax.bf16 %v11251_v7, %v6035_v52  ;;  %v5919_v26 = vadd.f32 %v10636_v24, %v5644_v22 }
 0x57f   : > { %v5646_v46 = vpop.f32.mrf.mxu0  ;;  %v6098_v0 = vmax.bf16 %v11251_v7, %v6034_v42  ;;  %8215 = vmatpush3.bf16.msra.mxu1 %v9053_v23  ;;  %v5918_v62 = vadd.f32 %v10640_v49, %v5453_v14  ;;  %v9061_v42 = vld [vmem:[#allocation7 + $0x10] sm:$0xff]  }
 0x580   : > { %v5455_v44 = vpop.f32.mrf.mxu1  ;;  %v6100_v21 = vmax.bf16 %v11251_v7, %v6036_v25  ;;  %8216 = vmatprep.subr.bf16.mxu1 %v9054_v8  ;;  %v5920_v17 = vadd.f32 %v10645_v9, %v5646_v46 }
 0x581   : > { %v5921_v20 = vadd.f32 %v10632_v35, %v5455_v44  ;;  %v5648_v15 = vpop.f32.mrf.mxu0  ;;  %6595 = vmatprep.mubr.bf16.mxu1 %v6098_v0 }
 0x582   : > { %v5923_v31 = vadd.f32 %v10636_v24, %v5648_v15  ;;  %6788 = vmatprep.mubr.bf16.mxu0 %v6100_v21  ;;  %v5457_v33 = vpop.f32.mrf.mxu1  ;;  %6596 = vmatmul.mubr.bf16.gmra.mxu1 %v6097_v53  ;;  %v9063_v53 = vld [vmem:[#allocation7 + $0x8] sm:$0xff]  }
 0x583   : > { %v5922_v32 = vadd.f32 %v10640_v49, %v5457_v33  ;;  %v5650_v5 = vpop.f32.mrf.mxu0  ;;  %6789 = vmatmul.mubr.bf16.gmra.mxu0 %v6099_v55  ;;  %8217 = vmatpush3.bf16.msra.mxu1 %v9055_v45  ;;  %v6037_v1 = vpack.c.bf16 %v5921_v20, %v5917_v47  ;;  %v9064_v55 = vld [vmem:[#allocation7 + $0x40] sm:$0xff]   ;;  %v10709_v20 = vrot.slane %v10687_v18, %v9492_v36 }
 0x584   : > { %v5924_v29 = vadd.f32 %v10645_v9, %v5650_v5  ;;  %v5461_v27 = vpop.f32.mrf.mxu1  ;;  %8218 = vmatprep.subr.bf16.mxu1 %v9056_v30  ;;  %v6039_v59 = vpack.c.bf16 %v5923_v31, %v5919_v26  ;;  %v10715_v33 = vrot.slane %v10687_v18, %v11265_v54 }
 0x585   : > { %v6038_v2 = vpack.c.bf16 %v5922_v32, %v5918_v62  ;;  %v5654_v51 = vpop.f32.mrf.mxu0  ;;  %v6101_v50 = vmax.bf16 %v11251_v7, %v6037_v1  ;;  %v5925_v23 = vadd.f32 %v10632_v35, %v5461_v27 }
 0x586   : > { %v6040_v38 = vpack.c.bf16 %v5924_v29, %v5920_v17  ;;  %v5463_v40 = vpop.f32.mrf.mxu1  ;;  %v6103_v58 = vmax.bf16 %v11251_v7, %v6039_v59  ;;  %v5927_v16 = vadd.f32 %v10636_v24, %v5654_v51 }
 0x587   : > { %v5656_v12 = vpop.f32.mrf.mxu0  ;;  %v6102_v63 = vmax.bf16 %v11251_v7, %v6038_v2  ;;  %8219 = vmatpush3.bf16.msra.mxu1 %v9057_v4  ;;  %v5926_v19 = vadd.f32 %v10640_v49, %v5463_v40 }
 0x588   : > { %v5465_v3 = vpop.f32.mrf.mxu1  ;;  %v6104_v28 = vmax.bf16 %v11251_v7, %v6040_v38  ;;  %8220 = vmatprep.subr.bf16.mxu1 %v9058_v60  ;;  %v5928_v37 = vadd.f32 %v10645_v9, %v5656_v12 }
 0x589   : > { %v5929_v11 = vadd.f32 %v10632_v35, %v5465_v3  ;;  %v5658_v56 = vpop.f32.mrf.mxu0  ;;  %6605 = vmatprep.mubr.bf16.mxu1 %v6102_v63  ;;  %v9062_v35 = vld [vmem:[#allocation7 + $0x48] sm:$0xff]  }
 0x58a   : > { %v5931_v43 = vadd.f32 %v10636_v24, %v5658_v56  ;;  %6798 = vmatprep.mubr.bf16.mxu0 %v6104_v28  ;;  %v5467_v48 = vpop.f32.mrf.mxu1  ;;  %6606 = vmatmul.mubr.bf16.gmra.mxu1 %v6101_v50 }
 0x58b   : > { %v5930_v8 = vadd.f32 %v10640_v49, %v5467_v48  ;;  %v5660_v52 = vpop.f32.mrf.mxu0  ;;  %6799 = vmatmul.mubr.bf16.gmra.mxu0 %v6103_v58  ;;  %8221 = vmatpush3.bf16.msra.mxu1 %v9059_v61  ;;  %v6041_v34 = vpack.c.bf16 %v5929_v11, %v5925_v23  ;;  %v10698_v49 = vrot.slane %v10687_v18, %v9500_v39 }
 0x58c   : > { %v5932_v41 = vadd.f32 %v10645_v9, %v5660_v52  ;;  %v5471_v10 = vpop.f32.mrf.mxu1  ;;  %8222 = vmatprep.subr.bf16.mxu1 %v9060_v13  ;;  %v6043_v22 = vpack.c.bf16 %v5931_v43, %v5927_v16  ;;  %v10703_v9 = vrot.slane %v10687_v18, %v11264_v6 }
 0x58d   : > { %v6042_v25 = vpack.c.bf16 %v5930_v8, %v5926_v19  ;;  %v5664_v14 = vpop.f32.mrf.mxu0  ;;  %v6105_v44 = vmax.bf16 %v11251_v7, %v6041_v34  ;;  %v5933_v26 = vadd.f32 %v10698_v49, %v5471_v10 }
 0x58e   : > { %v6044_v24 = vpack.c.bf16 %v5932_v41, %v5928_v37  ;;  %v5473_v46 = vpop.f32.mrf.mxu1  ;;  %v6107_v15 = vmax.bf16 %v11251_v7, %v6043_v22  ;;  %v5935_v5 = vadd.f32 %v10703_v9, %v5664_v14 }
 0x58f   : > { %v5666_v0 = vpop.f32.mrf.mxu0  ;;  %v6106_v45 = vmax.bf16 %v11251_v7, %v6042_v25  ;;  %8223 = vmatpush3.bf16.msra.mxu1 %v9061_v42  ;;  %v5934_v4 = vadd.f32 %v10709_v20, %v5473_v46 }
 0x590   : > { %v5475_v21 = vpop.f32.mrf.mxu1  ;;  %v6108_v30 = vmax.bf16 %v11251_v7, %v6044_v24  ;;  %8224 = vmatprep.subr.bf16.mxu1 %v9062_v35  ;;  %v5936_v29 = vadd.f32 %v10715_v33, %v5666_v0 }
 0x591   : > { %v5937_v47 = vadd.f32 %v10698_v49, %v5475_v21  ;;  %v5668_v31 = vpop.f32.mrf.mxu0  ;;  %6615 = vmatprep.mubr.bf16.mxu1 %v6106_v45 }
 0x592   : > { %v5939_v62 = vadd.f32 %v10703_v9, %v5668_v31  ;;  %6808 = vmatprep.mubr.bf16.mxu0 %v6108_v30  ;;  %v5477_v32 = vpop.f32.mrf.mxu1  ;;  %6616 = vmatmul.mubr.bf16.gmra.mxu1 %v6105_v44 }
 0x593   : > { %v5938_v17 = vadd.f32 %v10709_v20, %v5477_v32  ;;  %v5670_v1 = vpop.f32.mrf.mxu0  ;;  %6809 = vmatmul.mubr.bf16.gmra.mxu0 %v6107_v15  ;;  %8225 = vmatpush3.bf16.msra.mxu1 %v9063_v53  ;;  %v6045_v27 = vpack.c.bf16 %v5937_v47, %v5933_v26 }
 0x594   : > { %v5940_v60 = vadd.f32 %v10715_v33, %v5670_v1  ;;  %v5481_v59 = vpop.f32.mrf.mxu1  ;;  %8226 = vmatprep.subr.bf16.mxu1 %v9064_v55  ;;  %v6047_v2 = vpack.c.bf16 %v5939_v62, %v5935_v5 }
 0x595   : > { %v6046_v51 = vpack.c.bf16 %v5938_v17, %v5934_v4  ;;  %v5674_v38 = vpop.f32.mrf.mxu0  ;;  %v6109_v50 = vmax.bf16 %v11251_v7, %v6045_v27  ;;  %v5941_v56 = vadd.f32 %v10698_v49, %v5481_v59 }
 0x596   : > { %v6048_v40 = vpack.c.bf16 %v5940_v60, %v5936_v29  ;;  %v5483_v12 = vpop.f32.mrf.mxu1  ;;  %v6111_v13 = vmax.bf16 %v11251_v7, %v6047_v2  ;;  %v5943_v48 = vadd.f32 %v10703_v9, %v5674_v38 }
 0x597   : > { %v5676_v63 = vpop.f32.mrf.mxu0  ;;  %v6110_v61 = vmax.bf16 %v11251_v7, %v6046_v51  ;;  %v5942_v16 = vadd.f32 %v10709_v20, %v5483_v12 }
 0x598   : > { %v5485_v3 = vpop.f32.mrf.mxu1  ;;  %v6112_v28 = vmax.bf16 %v11251_v7, %v6048_v40  ;;  %v5944_v52 = vadd.f32 %v10715_v33, %v5676_v63 }
 0x599   : > { %v5945_v58 = vadd.f32 %v10698_v49, %v5485_v3  ;;  %v5678_v11 = vpop.f32.mrf.mxu0  ;;  %6625 = vmatprep.mubr.bf16.mxu1 %v6110_v61 }
 0x59a   : > { %v5947_v23 = vadd.f32 %v10703_v9, %v5678_v11  ;;  %6818 = vmatprep.mubr.bf16.mxu0 %v6112_v28  ;;  %v5487_v43 = vpop.f32.mrf.mxu1  ;;  %6626 = vmatmul.mubr.bf16.gmra.mxu1 %v6109_v50 }
 0x59b   : > { %v5946_v19 = vadd.f32 %v10709_v20, %v5487_v43  ;;  %v5680_v8 = vpop.f32.mrf.mxu0  ;;  %6819 = vmatmul.mubr.bf16.gmra.mxu0 %v6111_v13  ;;  %v6049_v42 = vpack.c.bf16 %v5945_v58, %v5941_v56  ;;  %v5819_v58 = vcombine.high %v10628_v57, %v10628_v57 }
 0x59c   : > { %v5948_v37 = vadd.f32 %v10715_v33, %v5680_v8  ;;  %v5491_v34 = vpop.f32.mrf.mxu1  ;;  %v6051_v41 = vpack.c.bf16 %v5947_v23, %v5943_v48 }
 0x59d   : > { %v6050_v10 = vpack.c.bf16 %v5946_v19, %v5942_v16  ;;  %v5684_v35 = vpop.f32.mrf.mxu0  ;;  %v6113_v46 = vmax.bf16 %v11251_v7, %v6049_v42  ;;  %v5949_v30 = vadd.f32 %v10698_v49, %v5491_v34  ;;  %v10763_v57 = vrot.slane %v5819_v58, %v9500_v39 }
 0x59e   : > { %v6052_v22 = vpack.c.bf16 %v5948_v37, %v5944_v52  ;;  %v5493_v25 = vpop.f32.mrf.mxu1  ;;  %v6115_v53 = vmax.bf16 %v11251_v7, %v6051_v41  ;;  %v5951_v47 = vadd.f32 %v10703_v9, %v5684_v35 }
 0x59f   : > { %v5686_v14 = vpop.f32.mrf.mxu0  ;;  %v6114_v24 = vmax.bf16 %v11251_v7, %v6050_v10  ;;  %v5950_v31 = vadd.f32 %v10709_v20, %v5493_v25 }
 0x5a0   : > { %v5495_v0 = vpop.f32.mrf.mxu1  ;;  %v6116_v45 = vmax.bf16 %v11251_v7, %v6052_v22  ;;  %v5952_v32 = vadd.f32 %v10715_v33, %v5686_v14  ;;  %v10772_v22 = vrot.slane %v5819_v58, %v9492_v36 }
 0x5a1   : > { %v5953_v44 = vadd.f32 %v10698_v49, %v5495_v0  ;;  %v5688_v21 = vpop.f32.mrf.mxu0  ;;  %6635 = vmatprep.mubr.bf16.mxu1 %v6114_v24 }
 0x5a2   : > { %v5955_v55 = vadd.f32 %v10703_v9, %v5688_v21  ;;  %6828 = vmatprep.mubr.bf16.mxu0 %v6116_v45  ;;  %v5497_v15 = vpop.f32.mrf.mxu1  ;;  %6636 = vmatmul.mubr.bf16.gmra.mxu1 %v6113_v46  ;;  %v10777_v46 = vrot.slane %v5819_v58, %v11265_v54 }
 0x5a3   : > { %v5954_v26 = vadd.f32 %v10709_v20, %v5497_v15  ;;  %v5690_v62 = vpop.f32.mrf.mxu0  ;;  %6829 = vmatmul.mubr.bf16.gmra.mxu0 %v6115_v53  ;;  %v6053_v5 = vpack.c.bf16 %v5953_v44, %v5949_v30 }
 0x5a4   : > { %v5956_v4 = vadd.f32 %v10715_v33, %v5690_v62  ;;  %v5501_v17 = vpop.f32.mrf.mxu1  ;;  %v6055_v1 = vpack.c.bf16 %v5955_v55, %v5951_v47 }
 0x5a5   : > { %v6054_v29 = vpack.c.bf16 %v5954_v26, %v5950_v31  ;;  %v5694_v27 = vpop.f32.mrf.mxu0  ;;  %v6117_v38 = vmax.bf16 %v11251_v7, %v6053_v5  ;;  %v5957_v3 = vadd.f32 %v10698_v49, %v5501_v17 }
 0x5a6   : > { %v6056_v60 = vpack.c.bf16 %v5956_v4, %v5952_v32  ;;  %v5503_v59 = vpop.f32.mrf.mxu1  ;;  %v6119_v63 = vmax.bf16 %v11251_v7, %v6055_v1  ;;  %v5959_v11 = vadd.f32 %v10703_v9, %v5694_v27 }
 0x5a7   : > { %v5696_v2 = vpop.f32.mrf.mxu0  ;;  %v6118_v51 = vmax.bf16 %v11251_v7, %v6054_v29  ;;  %v5958_v56 = vadd.f32 %v10709_v20, %v5503_v59 }
 0x5a8   : > { %v5505_v40 = vpop.f32.mrf.mxu1  ;;  %v6120_v12 = vmax.bf16 %v11251_v7, %v6056_v60  ;;  %v5960_v48 = vadd.f32 %v10715_v33, %v5696_v2 }
 0x5a9   : > { %v5961_v61 = vadd.f32 %v10698_v49, %v5505_v40  ;;  %v5698_v50 = vpop.f32.mrf.mxu0  ;;  %6645 = vmatprep.mubr.bf16.mxu1 %v6118_v51 }
 0x5aa   : > { %v5963_v28 = vadd.f32 %v10703_v9, %v5698_v50  ;;  %6838 = vmatprep.mubr.bf16.mxu0 %v6120_v12  ;;  %v5507_v13 = vpop.f32.mrf.mxu1  ;;  %6646 = vmatmul.mubr.bf16.gmra.mxu1 %v6117_v38 }
 0x5ab   : > { %v5962_v23 = vadd.f32 %v10709_v20, %v5507_v13  ;;  %v5700_v43 = vpop.f32.mrf.mxu0  ;;  %6839 = vmatmul.mubr.bf16.gmra.mxu0 %v6119_v63  ;;  %v6057_v16 = vpack.c.bf16 %v5961_v61, %v5957_v3  ;;  %v10767_v20 = vrot.slane %v5819_v58, %v11264_v6 }
 0x5ac   : > { %v5964_v49 = vadd.f32 %v10715_v33, %v5700_v43  ;;  %v5511_v19 = vpop.f32.mrf.mxu1  ;;  %v6059_v8 = vpack.c.bf16 %v5963_v28, %v5959_v11 }
 0x5ad   : > { %v6058_v52 = vpack.c.bf16 %v5962_v23, %v5958_v56  ;;  %v5704_v42 = vpop.f32.mrf.mxu0  ;;  %v6121_v10 = vmax.bf16 %v11251_v7, %v6057_v16  ;;  %v5965_v0 = vadd.f32 %v10763_v57, %v5511_v19  ;;  %v9065_v16 = vld [vmem:[#allocation7] sm:$0xff]  }
 0x5ae   : > { %v6060_v37 = vpack.c.bf16 %v5964_v49, %v5960_v48  ;;  %v5513_v34 = vpop.f32.mrf.mxu1  ;;  %v6123_v25 = vmax.bf16 %v11251_v7, %v6059_v8  ;;  %v5967_v44 = vadd.f32 %v10767_v20, %v5704_v42  ;;  %8227 = vmatpush3.bf16.msra.mxu1 %v9065_v16 }
 0x5af   : > { %v5706_v9 = vpop.f32.mrf.mxu0  ;;  %v6122_v41 = vmax.bf16 %v11251_v7, %v6058_v52  ;;  %v5966_v21 = vadd.f32 %v10772_v22, %v5513_v34 }
 0x5b0   : > { %v5515_v35 = vpop.f32.mrf.mxu1  ;;  %v6124_v33 = vmax.bf16 %v11251_v7, %v6060_v37  ;;  %v5968_v15 = vadd.f32 %v10777_v46, %v5706_v9 }
 0x5b1   : > { %v5969_v14 = vadd.f32 %v10763_v57, %v5515_v35  ;;  %v5708_v24 = vpop.f32.mrf.mxu0  ;;  %6655 = vmatprep.mubr.bf16.mxu1 %v6122_v41 }
 0x5b2   : > { %v5971_v45 = vadd.f32 %v10767_v20, %v5708_v24  ;;  %6848 = vmatprep.mubr.bf16.mxu0 %v6124_v33  ;;  %v5517_v53 = vpop.f32.mrf.mxu1  ;;  %6656 = vmatmul.mubr.bf16.gmra.mxu1 %v6121_v10 }
 0x5b3   : > { %v5970_v30 = vadd.f32 %v10772_v22, %v5517_v53  ;;  %v5710_v55 = vpop.f32.mrf.mxu0  ;;  %6849 = vmatmul.mubr.bf16.gmra.mxu0 %v6123_v25  ;;  %v6061_v47 = vpack.c.bf16 %v5969_v14, %v5965_v0 }
 0x5b4   : > { %v5972_v31 = vadd.f32 %v10777_v46, %v5710_v55  ;;  %v5521_v26 = vpop.f32.mrf.mxu1  ;;  %v6063_v62 = vpack.c.bf16 %v5971_v45, %v5967_v44 }
 0x5b5   : > { %v6062_v32 = vpack.c.bf16 %v5970_v30, %v5966_v21  ;;  %v5714_v5 = vpop.f32.mrf.mxu0  ;;  %v6125_v27 = vmax.bf16 %v11251_v7, %v6061_v47  ;;  %v5973_v40 = vadd.f32 %v10763_v57, %v5521_v26 }
 0x5b6   : > { %v6064_v4 = vpack.c.bf16 %v5972_v31, %v5968_v15  ;;  %v5523_v17 = vpop.f32.mrf.mxu1  ;;  %v6127_v2 = vmax.bf16 %v11251_v7, %v6063_v62  ;;  %v5975_v61 = vadd.f32 %v10767_v20, %v5714_v5 }
 0x5b7   : > { %v5716_v1 = vpop.f32.mrf.mxu0  ;;  %v6126_v29 = vmax.bf16 %v11251_v7, %v6062_v32  ;;  %v5974_v50 = vadd.f32 %v10772_v22, %v5523_v17 }
 0x5b8   : > { %v5525_v60 = vpop.f32.mrf.mxu1  ;;  %v6128_v59 = vmax.bf16 %v11251_v7, %v6064_v4  ;;  %v5976_v13 = vadd.f32 %v10777_v46, %v5716_v1 }
 0x5b9   : > { %v5977_v51 = vadd.f32 %v10763_v57, %v5525_v60  ;;  %v5718_v38 = vpop.f32.mrf.mxu0  ;;  %6665 = vmatprep.mubr.bf16.mxu1 %v6126_v29 }
 0x5ba   : > { %v5979_v12 = vadd.f32 %v10767_v20, %v5718_v38  ;;  %6858 = vmatprep.mubr.bf16.mxu0 %v6128_v59  ;;  %v5527_v63 = vpop.f32.mrf.mxu1  ;;  %6666 = vmatmul.mubr.bf16.gmra.mxu1 %v6125_v27 }
 0x5bb   : > { %v5978_v3 = vadd.f32 %v10772_v22, %v5527_v63  ;;  %v5720_v28 = vpop.f32.mrf.mxu0  ;;  %6859 = vmatmul.mubr.bf16.gmra.mxu0 %v6127_v2  ;;  %v6065_v58 = vpack.c.bf16 %v5977_v51, %v5973_v40  ;;  %v5820_v51 = vcombine.high %v10687_v18, %v10687_v18 }
 0x5bc   : > { %v5980_v11 = vadd.f32 %v10777_v46, %v5720_v28  ;;  %v5531_v56 = vpop.f32.mrf.mxu1  ;;  %v6067_v23 = vpack.c.bf16 %v5979_v12, %v5975_v61 }
 0x5bd   : > { %v6066_v43 = vpack.c.bf16 %v5978_v3, %v5974_v50  ;;  %v5724_v48 = vpop.f32.mrf.mxu0  ;;  %v6129_v42 = vmax.bf16 %v11251_v7, %v6065_v58  ;;  %v5981_v35 = vadd.f32 %v10763_v57, %v5531_v56  ;;  %v10825_v18 = vrot.slane %v5820_v51, %v9500_v39 }
 0x5be   : > { %v6068_v49 = vpack.c.bf16 %v5980_v11, %v5976_v13  ;;  %v5533_v19 = vpop.f32.mrf.mxu1  ;;  %v6131_v9 = vmax.bf16 %v11251_v7, %v6067_v23  ;;  %v5983_v14 = vadd.f32 %v10767_v20, %v5724_v48  ;;  %v10834_v16 = vrot.slane %v5820_v51, %v9492_v36 }
 0x5bf   : > { %v5726_v8 = vpop.f32.mrf.mxu0  ;;  %v6130_v52 = vmax.bf16 %v11251_v7, %v6066_v43  ;;  %v5982_v24 = vadd.f32 %v10772_v22, %v5533_v19 }
 0x5c0   : > { %v5535_v37 = vpop.f32.mrf.mxu1  ;;  %v6132_v34 = vmax.bf16 %v11251_v7, %v6068_v49  ;;  %v5984_v53 = vadd.f32 %v10777_v46, %v5726_v8 }
 0x5c1   : > { %v5985_v41 = vadd.f32 %v10763_v57, %v5535_v37  ;;  %v5728_v10 = vpop.f32.mrf.mxu0  ;;  %6675 = vmatprep.mubr.bf16.mxu1 %v6130_v52  ;;  %v10839_v52 = vrot.slane %v5820_v51, %v11265_v54 }
 0x5c2   : > { %v5987_v33 = vadd.f32 %v10767_v20, %v5728_v10  ;;  %6868 = vmatprep.mubr.bf16.mxu0 %v6132_v34  ;;  %v5537_v25 = vpop.f32.mrf.mxu1  ;;  %6676 = vmatmul.mubr.bf16.gmra.mxu1 %v6129_v42 }
 0x5c3   : > { %v5986_v0 = vadd.f32 %v10772_v22, %v5537_v25  ;;  %v5730_v45 = vpop.f32.mrf.mxu0  ;;  %6869 = vmatmul.mubr.bf16.gmra.mxu0 %v6131_v9  ;;  %v6069_v44 = vpack.c.bf16 %v5985_v41, %v5981_v35 }
 0x5c4   : > { %v5988_v21 = vadd.f32 %v10777_v46, %v5730_v45  ;;  %v5541_v30 = vpop.f32.mrf.mxu1  ;;  %v6071_v55 = vpack.c.bf16 %v5987_v33, %v5983_v14 }
 0x5c5   : > { %v6070_v15 = vpack.c.bf16 %v5986_v0, %v5982_v24  ;;  %v5734_v47 = vpop.f32.mrf.mxu0  ;;  %v6133_v5 = vmax.bf16 %v11251_v7, %v6069_v44  ;;  %v5989_v60 = vadd.f32 %v10763_v57, %v5541_v30 }
 0x5c6   : > { %v6072_v31 = vpack.c.bf16 %v5988_v21, %v5984_v53  ;;  %v5543_v26 = vpop.f32.mrf.mxu1  ;;  %v6135_v1 = vmax.bf16 %v11251_v7, %v6071_v55  ;;  %v5991_v38 = vadd.f32 %v10767_v20, %v5734_v47 }
 0x5c7   : > { %v5736_v62 = vpop.f32.mrf.mxu0  ;;  %v6134_v32 = vmax.bf16 %v11251_v7, %v6070_v15  ;;  %v5990_v40 = vadd.f32 %v10772_v22, %v5543_v26 }
 0x5c8   : > { %v5545_v4 = vpop.f32.mrf.mxu1  ;;  %v6136_v17 = vmax.bf16 %v11251_v7, %v6072_v31  ;;  %v5992_v61 = vadd.f32 %v10777_v46, %v5736_v62 }
 0x5c9   : > { %v5993_v29 = vadd.f32 %v10763_v57, %v5545_v4  ;;  %v5738_v27 = vpop.f32.mrf.mxu0  ;;  %6685 = vmatprep.mubr.bf16.mxu1 %v6134_v32 }
 0x5ca   : > { %v5995_v59 = vadd.f32 %v10767_v20, %v5738_v27  ;;  %6878 = vmatprep.mubr.bf16.mxu0 %v6136_v17  ;;  %v5547_v2 = vpop.f32.mrf.mxu1  ;;  %6686 = vmatmul.mubr.bf16.gmra.mxu1 %v6133_v5 }
 0x5cb   : > { %v5994_v12 = vadd.f32 %v10772_v22, %v5547_v2  ;;  %v5740_v63 = vpop.f32.mrf.mxu0  ;;  %6879 = vmatmul.mubr.bf16.gmra.mxu0 %v6135_v1  ;;  %v6073_v50 = vpack.c.bf16 %v5993_v29, %v5989_v60  ;;  %v10829_v22 = vrot.slane %v5820_v51, %v11264_v6 }
 0x5cc   : > { %v5996_v57 = vadd.f32 %v10777_v46, %v5740_v63  ;;  %v5551_v3 = vpop.f32.mrf.mxu1  ;;  %v6075_v28 = vpack.c.bf16 %v5995_v59, %v5991_v38 }
 0x5cd   : > { %v6074_v13 = vpack.c.bf16 %v5994_v12, %v5990_v40  ;;  %v5744_v58 = vpop.f32.mrf.mxu0  ;;  %v6137_v43 = vmax.bf16 %v11251_v7, %v6073_v50  ;;  %v5997_v6 = vadd.f32 %v10825_v18, %v5551_v3 }
 0x5ce   : > { %v6076_v11 = vpack.c.bf16 %v5996_v57, %v5992_v61  ;;  %v5553_v56 = vpop.f32.mrf.mxu1  ;;  %v6139_v49 = vmax.bf16 %v11251_v7, %v6075_v28  ;;  %v5999_v34 = vadd.f32 %v10829_v22, %v5744_v58 }
 0x5cf   : > { %v5746_v20 = vpop.f32.mrf.mxu0  ;;  %v6138_v23 = vmax.bf16 %v11251_v7, %v6074_v13  ;;  %v5998_v9 = vadd.f32 %v10834_v16, %v5553_v56 }
 0x5d0   : > { %v5555_v48 = vpop.f32.mrf.mxu1  ;;  %v6140_v46 = vmax.bf16 %v11251_v7, %v6076_v11  ;;  %v6000_v35 = vadd.f32 %v10839_v52, %v5746_v20 }
 0x5d1   : > { %v6001_v19 = vadd.f32 %v10825_v18, %v5555_v48  ;;  %v5748_v8 = vpop.f32.mrf.mxu0  ;;  %6695 = vmatprep.mubr.bf16.mxu1 %v6138_v23 }
 0x5d2   : > { %v6003_v42 = vadd.f32 %v10829_v22, %v5748_v8  ;;  %6888 = vmatprep.mubr.bf16.mxu0 %v6140_v46  ;;  %v5557_v37 = vpop.f32.mrf.mxu1  ;;  %6696 = vmatmul.mubr.bf16.gmra.mxu1 %v6137_v43 }
 0x5d3   : > { %v6002_v41 = vadd.f32 %v10834_v16, %v5557_v37  ;;  %v5750_v10 = vpop.f32.mrf.mxu0  ;;  %6889 = vmatmul.mubr.bf16.gmra.mxu0 %v6139_v49  ;;  %v6077_v33 = vpack.c.bf16 %v6001_v19, %v5997_v6 }
 0x5d4   : > { %v6004_v54 = vadd.f32 %v10839_v52, %v5750_v10  ;;  %v5561_v25 = vpop.f32.mrf.mxu1  ;;  %v6079_v14 = vpack.c.bf16 %v6003_v42, %v5999_v34 }
 0x5d5   : > { %v6078_v24 = vpack.c.bf16 %v6002_v41, %v5998_v9  ;;  %v5754_v0 = vpop.f32.mrf.mxu0  ;;  %v6141_v30 = vmax.bf16 %v11251_v7, %v6077_v33  ;;  %v6005_v62 = vadd.f32 %v10825_v18, %v5561_v25 }
 0x5d6   : > { %v6080_v45 = vpack.c.bf16 %v6004_v54, %v6000_v35  ;;  %v5563_v53 = vpop.f32.mrf.mxu1  ;;  %v6143_v47 = vmax.bf16 %v11251_v7, %v6079_v14  ;;  %v6007_v4 = vadd.f32 %v10829_v22, %v5754_v0 }
 0x5d7   : > { %v5756_v44 = vpop.f32.mrf.mxu0  ;;  %v6142_v21 = vmax.bf16 %v11251_v7, %v6078_v24  ;;  %v6006_v17 = vadd.f32 %v10834_v16, %v5563_v53 }
 0x5d8   : > { %v5565_v55 = vpop.f32.mrf.mxu1  ;;  %v6144_v15 = vmax.bf16 %v11251_v7, %v6080_v45  ;;  %v6008_v27 = vadd.f32 %v10839_v52, %v5756_v44 }
 0x5d9   : > { %v6009_v31 = vadd.f32 %v10825_v18, %v5565_v55  ;;  %v5758_v26 = vpop.f32.mrf.mxu0  ;;  %6705 = vmatprep.mubr.bf16.mxu1 %v6142_v21 }
 0x5da   : > { %v6011_v32 = vadd.f32 %v10829_v22, %v5758_v26  ;;  %6898 = vmatprep.mubr.bf16.mxu0 %v6144_v15  ;;  %v5567_v5 = vpop.f32.mrf.mxu1  ;;  %6706 = vmatmul.mubr.bf16.gmra.mxu1 %v6141_v30 }
 0x5db   : > { %v6010_v1 = vadd.f32 %v10834_v16, %v5567_v5  ;;  %v5760_v29 = vpop.f32.mrf.mxu0  ;;  %6899 = vmatmul.mubr.bf16.gmra.mxu0 %v6143_v47  ;;  %v6081_v60 = vpack.c.bf16 %v6009_v31, %v6005_v62 }
 0x5dc   : > { %v6012_v59 = vadd.f32 %v10839_v52, %v5760_v29  ;;  %v5571_v2 = vpop.f32.mrf.mxu1  ;;  %v6083_v51 = vpack.c.bf16 %v6011_v32, %v6007_v4 }
 0x5dd   : > { %v6082_v38 = vpack.c.bf16 %v6010_v1, %v6006_v17  ;;  %v5764_v40 = vpop.f32.mrf.mxu0  ;;  %v6145_v57 = vmax.bf16 %v11251_v7, %v6081_v60  ;;  %v6013_v56 = vadd.f32 %v10825_v18, %v5571_v2 }
 0x5de   : > { %v6084_v12 = vpack.c.bf16 %v6012_v59, %v6008_v27  ;;  %v5573_v63 = vpop.f32.mrf.mxu1  ;;  %v6147_v13 = vmax.bf16 %v11251_v7, %v6083_v51  ;;  %v6015_v43 = vadd.f32 %v10829_v22, %v5764_v40 }
 0x5df   : > { %v5766_v61 = vpop.f32.mrf.mxu0  ;;  %v6146_v50 = vmax.bf16 %v11251_v7, %v6082_v38  ;;  %v6014_v48 = vadd.f32 %v10834_v16, %v5573_v63 }
 0x5e0   : > { %v5575_v3 = vpop.f32.mrf.mxu1  ;;  %v6148_v28 = vmax.bf16 %v11251_v7, %v6084_v12  ;;  %v6016_v19 = vadd.f32 %v10839_v52, %v5766_v61 }
 0x5e1   : > { %v6017_v58 = vadd.f32 %v10825_v18, %v5575_v3  ;;  %v5768_v11 = vpop.f32.mrf.mxu0  ;;  %6715 = vmatprep.mubr.bf16.mxu1 %v6146_v50 }
 0x5e2   : > { %v6019_v20 = vadd.f32 %v10829_v22, %v5768_v11  ;;  %6908 = vmatprep.mubr.bf16.mxu0 %v6148_v28  ;;  %v5577_v23 = vpop.f32.mrf.mxu1  ;;  %6716 = vmatmul.mubr.bf16.gmra.mxu1 %v6145_v57 }
 0x5e3   : > { %v6018_v46 = vadd.f32 %v10834_v16, %v5577_v23  ;;  %v5770_v49 = vpop.f32.mrf.mxu0  ;;  %6909 = vmatmul.mubr.bf16.gmra.mxu0 %v6147_v13  ;;  %v6085_v8 = vpack.c.bf16 %v6017_v58, %v6013_v56  ;;  %v9067_v13 = vld [vmem:[%s11195_s14 + $0x30] sm:$0xff]  }
 0x5e4   : > { %v6020_v6 = vadd.f32 %v10839_v52, %v5770_v49  ;;  %v5581_v42 = vpop.f32.mrf.mxu1  ;;  %v6087_v37 = vpack.c.bf16 %v6019_v20, %v6015_v43 }
 0x5e5   : > { %v6086_v34 = vpack.c.bf16 %v6018_v46, %v6014_v48  ;;  %v5774_v9 = vpop.f32.mrf.mxu0  ;;  %v6149_v54 = vmax.bf16 %v11251_v7, %v6085_v8  ;;  %v6021_v53 = vadd.f32 %v10825_v18, %v5581_v42 }
 0x5e6   : > { %v6088_v41 = vpack.c.bf16 %v6020_v6, %v6016_v19  ;;  %v5583_v10 = vpop.f32.mrf.mxu1  ;;  %v6151_v24 = vmax.bf16 %v11251_v7, %v6087_v37  ;;  %v6023_v30 = vadd.f32 %v10829_v22, %v5774_v9  ;;  %v9068_v19 = vld [vmem:[%s11195_s14 + $0x28] sm:$0xff]  }
 0x5e7   : > { %v5776_v35 = vpop.f32.mrf.mxu0  ;;  %v6150_v33 = vmax.bf16 %v11251_v7, %v6086_v34  ;;  %v6022_v55 = vadd.f32 %v10834_v16, %v5583_v10 }
 0x5e8   : > { %v5585_v25 = vpop.f32.mrf.mxu1  ;;  %v6152_v14 = vmax.bf16 %v11251_v7, %v6088_v41  ;;  %v6024_v31 = vadd.f32 %v10839_v52, %v5776_v35 }
 0x5e9   : > { %v6025_v0 = vadd.f32 %v10825_v18, %v5585_v25  ;;  %v5778_v45 = vpop.f32.mrf.mxu0  ;;  %6725 = vmatprep.mubr.bf16.mxu1 %v6150_v33  ;;  %v9069_v25 = vld [vmem:[%s11195_s14 + $0x20] sm:$0xff]  }
 0x5ea   : > { %v6027_v44 = vadd.f32 %v10829_v22, %v5778_v45  ;;  %6918 = vmatprep.mubr.bf16.mxu0 %v6152_v14  ;;  %v5587_v21 = vpop.f32.mrf.mxu1  ;;  %6726 = vmatmul.mubr.bf16.gmra.mxu1 %v6149_v54 }
 0x5eb   : > { %v6026_v15 = vadd.f32 %v10834_v16, %v5587_v21  ;;  %v5780_v47 = vpop.f32.mrf.mxu0  ;;  %6919 = vmatmul.mubr.bf16.gmra.mxu0 %v6151_v24  ;;  %v6089_v26 = vpack.c.bf16 %v6025_v0, %v6021_v53  ;;  %v6221_v16 = vld [vmem:[%s11192_s11] sm:$0x3] }
 0x5ec   : > { %v6028_v62 = vadd.f32 %v10839_v52, %v5780_v47  ;;  %v6091_v32 = vpack.c.bf16 %v6027_v44, %v6023_v30  ;;  %v10892_v52 = vrot.slane %v6221_v16, %v9500_v39  ;;  %v10895_v60 = vrot.slane %v6221_v16, %v9492_v36  ;;  %v9066_v36 = vld [vmem:[%s11195_s14 + $0x38] sm:$0xff]  }
 0x5ed   : > { %v6090_v18 = vpack.c.bf16 %v6026_v15, %v6022_v55  ;;  %v6153_v17 = vmax.bf16 %v11251_v7, %v6089_v26  ;;  %8388 = vmatprep.subr.bf16.mxu0 %v9066_v36 }
 0x5ee   : > { %v6092_v5 = vpack.c.bf16 %v6028_v62, %v6024_v31  ;;  %v6155_v1 = vmax.bf16 %v11251_v7, %v6091_v32  ;;  %8389 = vmatpush3.bf16.msra.mxu0 %v9066_v36 }
 0x5ef   : > { %v6154_v4 = vmax.bf16 %v11251_v7, %v6090_v18  ;;  %8390 = vmatprep.subr.bf16.mxu0 %v9067_v13 }
 0x5f0   : > { %v6156_v22 = vmax.bf16 %v11251_v7, %v6092_v5 }
 0x5f1   : > { %6735 = vmatprep.mubr.bf16.mxu1 %v6154_v4 }
 0x5f2   : > { %6928 = vmatprep.mubr.bf16.mxu0 %v6156_v22  ;;  %6736 = vmatmul.mubr.bf16.gmra.mxu1 %v6153_v17 }
 0x5f3   : > { %6929 = vmatmul.mubr.bf16.gmra.mxu0 %v6155_v1 }
 0x5f4   : > { %8391 = vmatpush3.bf16.msra.mxu0 %v9067_v13 }
 0x5f5   : > { %8392 = vmatprep.subr.bf16.mxu0 %v9068_v19 }
 0x5f8   : > { %8393 = vmatpush3.bf16.msra.mxu0 %v9068_v19 }
 0x5f9   : > { %8394 = vmatprep.subr.bf16.mxu0 %v9069_v25 }
 0x5fc   : > { %8395 = vmatpush3.bf16.msra.mxu0 %v9069_v25 }
 0x63a   : > { %v6587_v29 = vpop.f32.mrf.mxu1 }
 0x63b   : > { %v6780_v27 = vpop.f32.mrf.mxu0  ;;  %v6588_v51 = vadd.f32 %v6587_v29, %v10892_v52 }
 0x63c   : > { %v6589_v59 = vpop.f32.mrf.mxu1 }
 0x63d   : > { %v6782_v2 = vpop.f32.mrf.mxu0  ;;  %v6590_v40 = vadd.f32 %v6589_v59, %v10895_v60  ;;  %v6781_v3 = vadd.f32 %v6780_v27, %v6588_v51 }
 0x63e   : > { %v6591_v38 = vpop.f32.mrf.mxu1 }
 0x63f   : > { %v6592_v12 = vadd.f32 %v6591_v38, %v10892_v52  ;;  %v6784_v63 = vpop.f32.mrf.mxu0  ;;  %v6783_v58 = vadd.f32 %v6782_v2, %v6590_v40 }
 0x640   : > { %v6593_v61 = vpop.f32.mrf.mxu1 }
 0x641   : > { %v6785_v50 = vadd.f32 %v6784_v63, %v6592_v12  ;;  %v6594_v39 = vadd.f32 %v6593_v61, %v10895_v60  ;;  %v6786_v57 = vpop.f32.mrf.mxu0 }
 0x642   : > { %v6597_v28 = vpop.f32.mrf.mxu1 }
 0x643   : > { %v6787_v11 = vadd.f32 %v6786_v57, %v6594_v39  ;;  %v6790_v56 = vpop.f32.mrf.mxu0  ;;  %v6939_v20 = vpack.c.bf16 %v6785_v50, %v6781_v3  ;;  %v6598_v46 = vadd.f32 %v6597_v28, %v10892_v52 }
 0x644   : > { %v6599_v23 = vpop.f32.mrf.mxu1 }
 0x645   : > { %v6940_v43 = vpack.c.bf16 %v6787_v11, %v6783_v58  ;;  %v6792_v48 = vpop.f32.mrf.mxu0  ;;  %v6600_v8 = vadd.f32 %v6599_v23, %v10895_v60  ;;  %v6971_v34 = vmax.bf16 %v11251_v7, %v6939_v20  ;;  %v6791_v33 = vadd.f32 %v6790_v56, %v6598_v46 }
 0x646   : > { %v6601_v49 = vpop.f32.mrf.mxu1 }
 0x647   : > { %v6602_v6 = vadd.f32 %v6601_v49, %v10892_v52  ;;  %v6794_v42 = vpop.f32.mrf.mxu0  ;;  %v6972_v37 = vmax.bf16 %v11251_v7, %v6940_v43  ;;  %v6793_v14 = vadd.f32 %v6792_v48, %v6600_v8 }
 0x648   : > { %v6603_v9 = vpop.f32.mrf.mxu1 }
 0x649   : > { %v6795_v41 = vadd.f32 %v6794_v42, %v6602_v6  ;;  %v6604_v10 = vadd.f32 %v6603_v9, %v10895_v60  ;;  %v6796_v35 = vpop.f32.mrf.mxu0  ;;  %7170 = vmatprep.mubr.bf16.mxu1 %v6972_v37 }
 0x64a   : > { %v6607_v54 = vpop.f32.mrf.mxu1  ;;  %7171 = vmatmul.mubr.bf16.vlgmr.msra.gmra.mxu1 %v6971_v34 }
 0x64b   : > { %v6797_v24 = vadd.f32 %v6796_v35, %v6604_v10  ;;  %v6800_v0 = vpop.f32.mrf.mxu0  ;;  %v6941_v45 = vpack.c.bf16 %v6795_v41, %v6791_v33  ;;  %v6608_v30 = vadd.f32 %v6607_v54, %v10892_v52 }
 0x64c   : > { %v6609_v53 = vpop.f32.mrf.mxu1 }
 0x64d   : > { %v6942_v44 = vpack.c.bf16 %v6797_v24, %v6793_v14  ;;  %v6802_v21 = vpop.f32.mrf.mxu0  ;;  %v6610_v15 = vadd.f32 %v6609_v53, %v10895_v60  ;;  %v6973_v62 = vmax.bf16 %v11251_v7, %v6941_v45  ;;  %v6801_v17 = vadd.f32 %v6800_v0, %v6608_v30 }
 0x64e   : > { %v6611_v55 = vpop.f32.mrf.mxu1 }
 0x64f   : > { %v6612_v47 = vadd.f32 %v6611_v55, %v10892_v52  ;;  %v6804_v31 = vpop.f32.mrf.mxu0  ;;  %v6974_v26 = vmax.bf16 %v11251_v7, %v6942_v44  ;;  %v6803_v1 = vadd.f32 %v6802_v21, %v6610_v15 }
 0x650   : > { %v6613_v32 = vpop.f32.mrf.mxu1 }
 0x651   : > { %v6805_v18 = vadd.f32 %v6804_v31, %v6612_v47  ;;  %v6614_v5 = vadd.f32 %v6613_v32, %v10895_v60  ;;  %v6806_v4 = vpop.f32.mrf.mxu0  ;;  %7178 = vmatprep.mubr.bf16.mxu1 %v6974_v26 }
 0x652   : > { %v6617_v22 = vpop.f32.mrf.mxu1  ;;  %7179 = vmatmul.mubr.bf16.gmra.mxu1 %v6973_v62 }
 0x653   : > { %v6807_v16 = vadd.f32 %v6806_v4, %v6614_v5  ;;  %v6810_v29 = vpop.f32.mrf.mxu0  ;;  %v6943_v27 = vpack.c.bf16 %v6805_v18, %v6801_v17  ;;  %v6618_v38 = vadd.f32 %v6617_v22, %v10892_v52 }
 0x654   : > { %v6619_v59 = vpop.f32.mrf.mxu1 }
 0x655   : > { %v6944_v2 = vpack.c.bf16 %v6807_v16, %v6803_v1  ;;  %v6812_v51 = vpop.f32.mrf.mxu0  ;;  %v6620_v12 = vadd.f32 %v6619_v59, %v10895_v60  ;;  %v6975_v39 = vmax.bf16 %v11251_v7, %v6943_v27  ;;  %v6811_v13 = vadd.f32 %v6810_v29, %v6618_v38 }
 0x656   : > { %v6621_v40 = vpop.f32.mrf.mxu1 }
 0x657   : > { %v6622_v63 = vadd.f32 %v6621_v40, %v10892_v52  ;;  %v6814_v61 = vpop.f32.mrf.mxu0  ;;  %v6976_v50 = vmax.bf16 %v11251_v7, %v6944_v2  ;;  %v6813_v11 = vadd.f32 %v6812_v51, %v6620_v12 }
 0x658   : > { %v6623_v57 = vpop.f32.mrf.mxu1 }
 0x659   : > { %v6815_v3 = vadd.f32 %v6814_v61, %v6622_v63  ;;  %v6624_v28 = vadd.f32 %v6623_v57, %v10895_v60  ;;  %v6816_v36 = vpop.f32.mrf.mxu0  ;;  %7186 = vmatprep.mubr.bf16.mxu1 %v6976_v50 }
 0x65a   : > { %v6627_v58 = vpop.f32.mrf.mxu1  ;;  %7187 = vmatmul.mubr.bf16.gmra.mxu1 %v6975_v39 }
 0x65b   : > { %v6817_v56 = vadd.f32 %v6816_v36, %v6624_v28  ;;  %v6820_v20 = vpop.f32.mrf.mxu0  ;;  %v6945_v23 = vpack.c.bf16 %v6815_v3, %v6811_v13  ;;  %v6628_v49 = vadd.f32 %v6627_v58, %v10892_v52 }
 0x65c   : > { %v6629_v43 = vpop.f32.mrf.mxu1 }
 0x65d   : > { %v6946_v48 = vpack.c.bf16 %v6817_v56, %v6813_v11  ;;  %v6822_v46 = vpop.f32.mrf.mxu0  ;;  %v6630_v8 = vadd.f32 %v6629_v43, %v10895_v60  ;;  %v6977_v34 = vmax.bf16 %v11251_v7, %v6945_v23  ;;  %v6821_v33 = vadd.f32 %v6820_v20, %v6628_v49 }
 0x65e   : > { %v6631_v19 = vpop.f32.mrf.mxu1 }
 0x65f   : > { %v6632_v6 = vadd.f32 %v6631_v19, %v10892_v52  ;;  %v6824_v42 = vpop.f32.mrf.mxu0  ;;  %v6978_v37 = vmax.bf16 %v11251_v7, %v6946_v48  ;;  %v6823_v25 = vadd.f32 %v6822_v46, %v6630_v8 }
 0x660   : > { %v6633_v9 = vpop.f32.mrf.mxu1 }
 0x661   : > { %v6825_v41 = vadd.f32 %v6824_v42, %v6632_v6  ;;  %v6634_v10 = vadd.f32 %v6633_v9, %v10895_v60  ;;  %v6826_v35 = vpop.f32.mrf.mxu0  ;;  %7194 = vmatprep.mubr.bf16.mxu1 %v6978_v37 }
 0x662   : > { %v6637_v54 = vpop.f32.mrf.mxu1  ;;  %7195 = vmatmul.mubr.bf16.gmra.mxu1 %v6977_v34 }
 0x663   : > { %v6827_v14 = vadd.f32 %v6826_v35, %v6634_v10  ;;  %v6830_v24 = vpop.f32.mrf.mxu0  ;;  %v6947_v0 = vpack.c.bf16 %v6825_v41, %v6821_v33  ;;  %v6638_v21 = vadd.f32 %v6637_v54, %v10892_v52 }
 0x664   : > { %v6639_v45 = vpop.f32.mrf.mxu1 }
 0x665   : > { %v6948_v53 = vpack.c.bf16 %v6827_v14, %v6823_v25  ;;  %v6832_v44 = vpop.f32.mrf.mxu0  ;;  %v6640_v55 = vadd.f32 %v6639_v45, %v10895_v60  ;;  %v6979_v26 = vmax.bf16 %v11251_v7, %v6947_v0  ;;  %v6831_v4 = vadd.f32 %v6830_v24, %v6638_v21 }
 0x666   : > { %v6641_v30 = vpop.f32.mrf.mxu1 }
 0x667   : > { %v6642_v15 = vadd.f32 %v6641_v30, %v10892_v52  ;;  %v6834_v47 = vpop.f32.mrf.mxu0  ;;  %v6980_v31 = vmax.bf16 %v11251_v7, %v6948_v53  ;;  %v6833_v22 = vadd.f32 %v6832_v44, %v6640_v55 }
 0x668   : > { %v6643_v62 = vpop.f32.mrf.mxu1 }
 0x669   : > { %v6835_v32 = vadd.f32 %v6834_v47, %v6642_v15  ;;  %v6644_v18 = vadd.f32 %v6643_v62, %v10895_v60  ;;  %v6836_v5 = vpop.f32.mrf.mxu0  ;;  %7202 = vmatprep.mubr.bf16.mxu1 %v6980_v31 }
 0x66a   : > { %v6647_v17 = vpop.f32.mrf.mxu1  ;;  %7203 = vmatmul.mubr.bf16.gmra.mxu1 %v6979_v26 }
 0x66b   : > { %v6837_v1 = vadd.f32 %v6836_v5, %v6644_v18  ;;  %v6840_v16 = vpop.f32.mrf.mxu0  ;;  %v6949_v29 = vpack.c.bf16 %v6835_v32, %v6831_v4  ;;  %v6648_v51 = vadd.f32 %v6647_v17, %v10892_v52 }
 0x66c   : > { %v6649_v27 = vpop.f32.mrf.mxu1 }
 0x66d   : > { %v6950_v59 = vpack.c.bf16 %v6837_v1, %v6833_v22  ;;  %v6842_v2 = vpop.f32.mrf.mxu0  ;;  %v6650_v40 = vadd.f32 %v6649_v27, %v10895_v60  ;;  %v6981_v50 = vmax.bf16 %v11251_v7, %v6949_v29  ;;  %v6841_v36 = vadd.f32 %v6840_v16, %v6648_v51 }
 0x66e   : > { %v6651_v38 = vpop.f32.mrf.mxu1 }
 0x66f   : > { %v6652_v12 = vadd.f32 %v6651_v38, %v10892_v52  ;;  %v6844_v63 = vpop.f32.mrf.mxu0  ;;  %v6982_v61 = vmax.bf16 %v11251_v7, %v6950_v59  ;;  %v6843_v58 = vadd.f32 %v6842_v2, %v6650_v40 }
 0x670   : > { %v6653_v39 = vpop.f32.mrf.mxu1 }
 0x671   : > { %v6845_v57 = vadd.f32 %v6844_v63, %v6652_v12  ;;  %v6654_v3 = vadd.f32 %v6653_v39, %v10895_v60  ;;  %v6846_v28 = vpop.f32.mrf.mxu0  ;;  %7210 = vmatprep.mubr.bf16.mxu1 %v6982_v61 }
 0x672   : > { %v6657_v13 = vpop.f32.mrf.mxu1  ;;  %7211 = vmatmul.mubr.bf16.gmra.mxu1 %v6981_v50 }
 0x673   : > { %v6847_v11 = vadd.f32 %v6846_v28, %v6654_v3  ;;  %v6850_v56 = vpop.f32.mrf.mxu0  ;;  %v6951_v20 = vpack.c.bf16 %v6845_v57, %v6841_v36  ;;  %v6658_v46 = vadd.f32 %v6657_v13, %v10892_v52 }
 0x674   : > { %v6659_v23 = vpop.f32.mrf.mxu1 }
 0x675   : > { %v6952_v43 = vpack.c.bf16 %v6847_v11, %v6843_v58  ;;  %v6852_v48 = vpop.f32.mrf.mxu0  ;;  %v6660_v19 = vadd.f32 %v6659_v23, %v10895_v60  ;;  %v6983_v37 = vmax.bf16 %v11251_v7, %v6951_v20  ;;  %v6851_v35 = vadd.f32 %v6850_v56, %v6658_v46 }
 0x676   : > { %v6661_v49 = vpop.f32.mrf.mxu1 }
 0x677   : > { %v6662_v8 = vadd.f32 %v6661_v49, %v10892_v52  ;;  %v6854_v6 = vpop.f32.mrf.mxu0  ;;  %v6984_v42 = vmax.bf16 %v11251_v7, %v6952_v43  ;;  %v6853_v54 = vadd.f32 %v6852_v48, %v6660_v19 }
 0x678   : > { %v6663_v34 = vpop.f32.mrf.mxu1 }
 0x679   : > { %v6855_v9 = vadd.f32 %v6854_v6, %v6662_v8  ;;  %v6664_v41 = vadd.f32 %v6663_v34, %v10895_v60  ;;  %v6856_v10 = vpop.f32.mrf.mxu0  ;;  %7218 = vmatprep.mubr.bf16.mxu1 %v6984_v42 }
 0x67a   : > { %v6667_v33 = vpop.f32.mrf.mxu1  ;;  %7219 = vmatmul.mubr.bf16.gmra.mxu1 %v6983_v37 }
 0x67b   : > { %v6857_v25 = vadd.f32 %v6856_v10, %v6664_v41  ;;  %v6860_v14 = vpop.f32.mrf.mxu0  ;;  %v6953_v24 = vpack.c.bf16 %v6855_v9, %v6851_v35  ;;  %v6668_v44 = vadd.f32 %v6667_v33, %v10892_v52  ;;  %v9070_v10 = vld [vmem:[%s11195_s14 + $0x18] sm:$0xff]  }
 0x67c   : > { %v6669_v0 = vpop.f32.mrf.mxu1  ;;  %8396 = vmatprep.subr.bf16.mxu0 %v9070_v10 }
 0x67d   : > { %v6954_v45 = vpack.c.bf16 %v6857_v25, %v6853_v54  ;;  %v6862_v53 = vpop.f32.mrf.mxu0  ;;  %v6670_v30 = vadd.f32 %v6669_v0, %v10895_v60  ;;  %v6985_v31 = vmax.bf16 %v11251_v7, %v6953_v24  ;;  %v6861_v5 = vadd.f32 %v6860_v14, %v6668_v44  ;;  %8397 = vmatpush3.bf16.msra.mxu0 %v9070_v10  ;;  %v9071_v44 = vld [vmem:[%s11195_s14 + $0x10] sm:$0xff]  }
 0x67e   : > { %v6671_v21 = vpop.f32.mrf.mxu1  ;;  %8398 = vmatprep.subr.bf16.mxu0 %v9071_v44 }
 0x67f   : > { %v6672_v55 = vadd.f32 %v6671_v21, %v10892_v52  ;;  %v6864_v15 = vpop.f32.mrf.mxu0  ;;  %v6986_v47 = vmax.bf16 %v11251_v7, %v6954_v45  ;;  %v6863_v17 = vadd.f32 %v6862_v53, %v6670_v30 }
 0x680   : > { %v6673_v26 = vpop.f32.mrf.mxu1 }
 0x681   : > { %v6865_v62 = vadd.f32 %v6864_v15, %v6672_v55  ;;  %v6674_v32 = vadd.f32 %v6673_v26, %v10895_v60  ;;  %v6866_v18 = vpop.f32.mrf.mxu0  ;;  %7226 = vmatprep.mubr.bf16.mxu1 %v6986_v47  ;;  %8399 = vmatpush3.bf16.msra.mxu0 %v9071_v44 }
 0x682   : > { %v6677_v4 = vpop.f32.mrf.mxu1  ;;  %7227 = vmatmul.mubr.bf16.gmra.mxu1 %v6985_v31 }
 0x683   : > { %v6867_v22 = vadd.f32 %v6866_v18, %v6674_v32  ;;  %v6870_v1 = vpop.f32.mrf.mxu0  ;;  %v6955_v16 = vpack.c.bf16 %v6865_v62, %v6861_v5  ;;  %v6678_v2 = vadd.f32 %v6677_v4, %v10892_v52  ;;  %v9072_v4 = vld [vmem:[%s11195_s14 + $0x8] sm:$0xff]  }
 0x684   : > { %v6679_v29 = vpop.f32.mrf.mxu1  ;;  %8400 = vmatprep.subr.bf16.mxu0 %v9072_v4 }
 0x685   : > { %v6956_v27 = vpack.c.bf16 %v6867_v22, %v6863_v17  ;;  %v6872_v59 = vpop.f32.mrf.mxu0  ;;  %v6680_v38 = vadd.f32 %v6679_v29, %v10895_v60  ;;  %v6987_v61 = vmax.bf16 %v11251_v7, %v6955_v16  ;;  %v6871_v28 = vadd.f32 %v6870_v1, %v6678_v2  ;;  %8401 = vmatpush3.bf16.msra.mxu0 %v9072_v4 }
 0x686   : > { %v6681_v51 = vpop.f32.mrf.mxu1 }
 0x687   : > { %v6682_v40 = vadd.f32 %v6681_v51, %v10892_v52  ;;  %v6874_v12 = vpop.f32.mrf.mxu0  ;;  %v6988_v63 = vmax.bf16 %v11251_v7, %v6956_v27  ;;  %v6873_v13 = vadd.f32 %v6872_v59, %v6680_v38  ;;  %v9073_v38 = vld [vmem:[%s11195_s14] sm:$0xff]  }
 0x688   : > { %v6683_v50 = vpop.f32.mrf.mxu1  ;;  %8402 = vmatprep.subr.bf16.mxu0 %v9073_v38 }
 0x689   : > { %v6875_v39 = vadd.f32 %v6874_v12, %v6682_v40  ;;  %v6684_v57 = vadd.f32 %v6683_v50, %v10895_v60  ;;  %v6876_v3 = vpop.f32.mrf.mxu0  ;;  %7234 = vmatprep.mubr.bf16.mxu1 %v6988_v63  ;;  %8403 = vmatpush3.bf16.msra.mxu0 %v9073_v38 }
 0x68a   : > { %v6687_v36 = vpop.f32.mrf.mxu1  ;;  %7235 = vmatmul.mubr.bf16.gmra.mxu1 %v6987_v61 }
 0x68b   : > { %v6877_v58 = vadd.f32 %v6876_v3, %v6684_v57  ;;  %v6880_v11 = vpop.f32.mrf.mxu0  ;;  %v6957_v56 = vpack.c.bf16 %v6875_v39, %v6871_v28  ;;  %v6688_v48 = vadd.f32 %v6687_v36, %v10892_v52 }
 0x68c   : > { %v6689_v20 = vpop.f32.mrf.mxu1 }
 0x68d   : > { %v6958_v23 = vpack.c.bf16 %v6877_v58, %v6873_v13  ;;  %v6882_v43 = vpop.f32.mrf.mxu0  ;;  %v6690_v49 = vadd.f32 %v6689_v20, %v10895_v60  ;;  %v6989_v42 = vmax.bf16 %v11251_v7, %v6957_v56  ;;  %v6881_v35 = vadd.f32 %v6880_v11, %v6688_v48 }
 0x68e   : > { %v6691_v46 = vpop.f32.mrf.mxu1 }
 0x68f   : > { %v6692_v19 = vadd.f32 %v6691_v46, %v10892_v52  ;;  %v6884_v8 = vpop.f32.mrf.mxu0  ;;  %v6990_v6 = vmax.bf16 %v11251_v7, %v6958_v23  ;;  %v6883_v54 = vadd.f32 %v6882_v43, %v6690_v49 }
 0x690   : > { %v6693_v37 = vpop.f32.mrf.mxu1 }
 0x691   : > { %v6885_v34 = vadd.f32 %v6884_v8, %v6692_v19  ;;  %v6694_v9 = vadd.f32 %v6693_v37, %v10895_v60  ;;  %v6886_v41 = vpop.f32.mrf.mxu0  ;;  %7242 = vmatprep.mubr.bf16.mxu1 %v6990_v6 }
 0x692   : > { %v6697_v33 = vpop.f32.mrf.mxu1  ;;  %7243 = vmatmul.mubr.bf16.gmra.mxu1 %v6989_v42 }
 0x693   : > { %v6887_v25 = vadd.f32 %v6886_v41, %v6694_v9  ;;  %v6890_v14 = vpop.f32.mrf.mxu0  ;;  %v6959_v24 = vpack.c.bf16 %v6885_v34, %v6881_v35  ;;  %v6698_v21 = vadd.f32 %v6697_v33, %v10892_v52 }
 0x694   : > { %v6699_v0 = vpop.f32.mrf.mxu1 }
 0x695   : > { %v6960_v45 = vpack.c.bf16 %v6887_v25, %v6883_v54  ;;  %v6892_v53 = vpop.f32.mrf.mxu0  ;;  %v6700_v55 = vadd.f32 %v6699_v0, %v10895_v60  ;;  %v6991_v26 = vmax.bf16 %v11251_v7, %v6959_v24  ;;  %v6891_v17 = vadd.f32 %v6890_v14, %v6698_v21 }
 0x696   : > { %v6701_v30 = vpop.f32.mrf.mxu1 }
 0x697   : > { %v6702_v15 = vadd.f32 %v6701_v30, %v10892_v52  ;;  %v6894_v47 = vpop.f32.mrf.mxu0  ;;  %v6992_v31 = vmax.bf16 %v11251_v7, %v6960_v45  ;;  %v6893_v1 = vadd.f32 %v6892_v53, %v6700_v55 }
 0x698   : > { %v6703_v62 = vpop.f32.mrf.mxu1 }
 0x699   : > { %v6895_v32 = vadd.f32 %v6894_v47, %v6702_v15  ;;  %v6704_v18 = vadd.f32 %v6703_v62, %v10895_v60  ;;  %v6896_v5 = vpop.f32.mrf.mxu0  ;;  %7250 = vmatprep.mubr.bf16.mxu1 %v6992_v31 }
 0x69a   : > { %v6707_v22 = vpop.f32.mrf.mxu1  ;;  %7251 = vmatmul.mubr.bf16.gmra.mxu1 %v6991_v26 }
 0x69b   : > { %v6897_v16 = vadd.f32 %v6896_v5, %v6704_v18  ;;  %v6900_v29 = vpop.f32.mrf.mxu0  ;;  %v6961_v27 = vpack.c.bf16 %v6895_v32, %v6891_v17  ;;  %v6708_v40 = vadd.f32 %v6707_v22, %v10892_v52 }
 0x69c   : > { %v6709_v59 = vpop.f32.mrf.mxu1 }
 0x69d   : > { %v6962_v2 = vpack.c.bf16 %v6897_v16, %v6893_v1  ;;  %v6902_v51 = vpop.f32.mrf.mxu0  ;;  %v6710_v63 = vadd.f32 %v6709_v59, %v10895_v60  ;;  %v6993_v57 = vmax.bf16 %v11251_v7, %v6961_v27  ;;  %v6901_v58 = vadd.f32 %v6900_v29, %v6708_v40 }
 0x69e   : > { %v6711_v12 = vpop.f32.mrf.mxu1 }
 0x69f   : > { %v6712_v61 = vadd.f32 %v6711_v12, %v10892_v52  ;;  %v6904_v50 = vpop.f32.mrf.mxu0  ;;  %v6994_v39 = vmax.bf16 %v11251_v7, %v6962_v2  ;;  %v6903_v56 = vadd.f32 %v6902_v51, %v6710_v63 }
 0x6a0   : > { %v6713_v3 = vpop.f32.mrf.mxu1 }
 0x6a1   : > { %v6905_v28 = vadd.f32 %v6904_v50, %v6712_v61  ;;  %v6714_v36 = vadd.f32 %v6713_v3, %v10895_v60  ;;  %v6906_v13 = vpop.f32.mrf.mxu0  ;;  %7258 = vmatprep.mubr.bf16.mxu1 %v6994_v39 }
 0x6a2   : > { %v6717_v11 = vpop.f32.mrf.mxu1  ;;  %7259 = vmatmul.mubr.bf16.gmra.mxu1 %v6993_v57 }
 0x6a3   : > { %v6907_v20 = vadd.f32 %v6906_v13, %v6714_v36  ;;  %v6910_v23 = vpop.f32.mrf.mxu0  ;;  %v6963_v43 = vpack.c.bf16 %v6905_v28, %v6901_v58  ;;  %v6718_v19 = vadd.f32 %v6717_v11, %v10892_v52 }
 0x6a4   : > { %v6719_v48 = vpop.f32.mrf.mxu1 }
 0x6a5   : > { %v6964_v46 = vpack.c.bf16 %v6907_v20, %v6903_v56  ;;  %v6912_v49 = vpop.f32.mrf.mxu0  ;;  %v6720_v6 = vadd.f32 %v6719_v48, %v10895_v60  ;;  %v6995_v9 = vmax.bf16 %v11251_v7, %v6963_v43  ;;  %v6911_v54 = vadd.f32 %v6910_v23, %v6718_v19 }
 0x6a6   : > { %v6721_v8 = vpop.f32.mrf.mxu1 }
 0x6a7   : > { %v6722_v42 = vadd.f32 %v6721_v8, %v10892_v52  ;;  %v6914_v37 = vpop.f32.mrf.mxu0  ;;  %v6996_v34 = vmax.bf16 %v11251_v7, %v6964_v46  ;;  %v6913_v14 = vadd.f32 %v6912_v49, %v6720_v6 }
 0x6a8   : > { %v6723_v41 = vpop.f32.mrf.mxu1 }
 0x6a9   : > { %v6915_v10 = vadd.f32 %v6914_v37, %v6722_v42  ;;  %v6724_v35 = vadd.f32 %v6723_v41, %v10895_v60  ;;  %v6916_v33 = vpop.f32.mrf.mxu0  ;;  %7266 = vmatprep.mubr.bf16.mxu1 %v6996_v34 }
 0x6aa   : > { %v6727_v25 = vpop.f32.mrf.mxu1  ;;  %7267 = vmatmul.mubr.bf16.gmra.mxu1 %v6995_v9 }
 0x6ab   : > { %v6917_v24 = vadd.f32 %v6916_v33, %v6724_v35  ;;  %v6920_v0 = vpop.f32.mrf.mxu0  ;;  %v6965_v45 = vpack.c.bf16 %v6915_v10, %v6911_v54  ;;  %v6728_v30 = vadd.f32 %v6727_v25, %v10892_v52 }
 0x6ac   : > { %v6729_v53 = vpop.f32.mrf.mxu1 }
 0x6ad   : > { %v6966_v44 = vpack.c.bf16 %v6917_v24, %v6913_v14  ;;  %v6922_v21 = vpop.f32.mrf.mxu0  ;;  %v6730_v15 = vadd.f32 %v6729_v53, %v10895_v60  ;;  %v6997_v62 = vmax.bf16 %v11251_v7, %v6965_v45  ;;  %v6921_v17 = vadd.f32 %v6920_v0, %v6728_v30 }
 0x6ae   : > { %v6731_v55 = vpop.f32.mrf.mxu1 }
 0x6af   : > { %v6732_v47 = vadd.f32 %v6731_v55, %v10892_v52  ;;  %v6924_v31 = vpop.f32.mrf.mxu0  ;;  %v6998_v26 = vmax.bf16 %v11251_v7, %v6966_v44  ;;  %v6923_v1 = vadd.f32 %v6922_v21, %v6730_v15 }
 0x6b0   : > { %v6733_v32 = vpop.f32.mrf.mxu1 }
 0x6b1   : > { %v6925_v18 = vadd.f32 %v6924_v31, %v6732_v47  ;;  %v6734_v5 = vadd.f32 %v6733_v32, %v10895_v60  ;;  %v6926_v4 = vpop.f32.mrf.mxu0  ;;  %7274 = vmatprep.mubr.bf16.mxu1 %v6998_v26 }
 0x6b2   : > { %v6737_v22 = vpop.f32.mrf.mxu1  ;;  %7275 = vmatmul.mubr.bf16.gmra.mxu1 %v6997_v62 }
 0x6b3   : > { %v6927_v16 = vadd.f32 %v6926_v4, %v6734_v5  ;;  %v6930_v29 = vpop.f32.mrf.mxu0  ;;  %v6967_v27 = vpack.c.bf16 %v6925_v18, %v6921_v17  ;;  %v6738_v38 = vadd.f32 %v6737_v22, %v10892_v52 }
 0x6b4   : > { %v6739_v59 = vpop.f32.mrf.mxu1 }
 0x6b5   : > { %v6968_v2 = vpack.c.bf16 %v6927_v16, %v6923_v1  ;;  %v6932_v51 = vpop.f32.mrf.mxu0  ;;  %v6740_v12 = vadd.f32 %v6739_v59, %v10895_v60  ;;  %v6999_v39 = vmax.bf16 %v11251_v7, %v6967_v27  ;;  %v6931_v36 = vadd.f32 %v6930_v29, %v6738_v38 }
 0x6b6   : > { %v6741_v40 = vpop.f32.mrf.mxu1 }
 0x6b7   : > { %v6742_v63 = vadd.f32 %v6741_v40, %v10892_v52  ;;  %v6934_v61 = vpop.f32.mrf.mxu0  ;;  %v7000_v50 = vmax.bf16 %v11251_v7, %v6968_v2  ;;  %v6933_v58 = vadd.f32 %v6932_v51, %v6740_v12 }
 0x6b8   : > { %v6743_v57 = vpop.f32.mrf.mxu1 }
 0x6b9   : > { %v6935_v3 = vadd.f32 %v6934_v61, %v6742_v63  ;;  %v6744_v28 = vadd.f32 %v6743_v57, %v10895_v60  ;;  %7282 = vmatprep.mubr.bf16.mxu1 %v7000_v50  ;;  %v6936_v13 = vpop.f32.mrf.mxu0  ;;  %v11020_v60 = vld [vmem:[%s11194_s13] ss:$0 sm:$0xff] }
 0x6ba   : > { %7283 = vmatmul.mubr.bf16.gmra.mxu1 %v6999_v39 }
 0x6bb   : > { %v6937_v11 = vadd.f32 %v6936_v13, %v6744_v28  ;;  %v6969_v56 = vpack.c.bf16 %v6935_v3, %v6931_v36 }
 0x6bd   : > { %v6970_v20 = vpack.c.bf16 %v6937_v11, %v6933_v58  ;;  %v7001_v52 = vmax.bf16 %v11251_v7, %v6969_v56 }
 0x6bf   : > { %v7002_v23 = vmax.bf16 %v11251_v7, %v6970_v20 }
 0x6c1   : > { %7290 = vmatprep.mubr.bf16.mxu1 %v7002_v23 }
 0x6c2   : > { %7291 = vmatmul.mubr.bf16.gmra.mxu1 %v7001_v52 }
 0x70a   : > { %v8228_v43 = vpop.f32.mrf.mxu1 }
 0x70c   : > { %v8229_v48 = vpop.f32.mrf.mxu1 }
 0x70d   : > { %v8230_v49 = vadd.f32 %v8229_v48, %v8228_v43 }
 0x70e   : > { %v8231_v46 = vpop.f32.mrf.mxu1 }
 0x70f   : > { %v7173_v42 = vadd.f32 %v8230_v49, %v11020_v60 }
 0x710   : > { %v8232_v19 = vpop.f32.mrf.mxu1 }
 0x711   : > { %v8233_v8 = vadd.f32 %v8232_v19, %v8231_v46 }
 0x712   : > { %v8234_v6 = vpop.f32.mrf.mxu1 }
 0x713   : > { %v7176_v37 = vadd.f32 %v8233_v8, %v11020_v60 }
 0x714   : > { %v8235_v34 = vpop.f32.mrf.mxu1 }
 0x715   : > { %v7299_v9 = vpack.c.bf16 %v7176_v37, %v7173_v42  ;;  %v8236_v10 = vadd.f32 %v8235_v34, %v8234_v6 }
 0x716   : > { %v8237_v41 = vpop.f32.mrf.mxu1 }
 0x717   : > { %v7315_v35 = vmax.bf16 %v11251_v7, %v7299_v9  ;;  %v7181_v14 = vadd.f32 %v8236_v10, %v11020_v60 }
 0x718   : > { %v8238_v33 = vpop.f32.mrf.mxu1 }
 0x719   : > { %v8239_v54 = vadd.f32 %v8238_v33, %v8237_v41  ;;  %8404 = vmatprep.mubr.bf16.mxu0 %v7315_v35 }
 0x71a   : > { %v8240_v25 = vpop.f32.mrf.mxu1 }
 0x71b   : > { %v7184_v24 = vadd.f32 %v8239_v54, %v11020_v60 }
 0x71c   : > { %v8241_v0 = vpop.f32.mrf.mxu1 }
 0x71d   : > { %v7300_v45 = vpack.c.bf16 %v7184_v24, %v7181_v14  ;;  %v8242_v21 = vadd.f32 %v8241_v0, %v8240_v25 }
 0x71e   : > { %v8243_v53 = vpop.f32.mrf.mxu1 }
 0x71f   : > { %v7316_v44 = vmax.bf16 %v11251_v7, %v7300_v45  ;;  %v7189_v47 = vadd.f32 %v8242_v21, %v11020_v60 }
 0x720   : > { %v8244_v30 = vpop.f32.mrf.mxu1 }
 0x721   : > { %v8245_v55 = vadd.f32 %v8244_v30, %v8243_v53  ;;  %8405 = vmatmul.mubr.bf16.vlgmr.msra.gmra.mxu0 %v7316_v44 }
 0x722   : > { %v8246_v15 = vpop.f32.mrf.mxu1 }
 0x723   : > { %v7192_v31 = vadd.f32 %v8245_v55, %v11020_v60 }
 0x724   : > { %v8247_v26 = vpop.f32.mrf.mxu1 }
 0x725   : > { %v7301_v62 = vpack.c.bf16 %v7192_v31, %v7189_v47  ;;  %v8248_v18 = vadd.f32 %v8247_v26, %v8246_v15 }
 0x726   : > { %v8249_v32 = vpop.f32.mrf.mxu1 }
 0x727   : > { %v7317_v5 = vmax.bf16 %v11251_v7, %v7301_v62  ;;  %v7197_v1 = vadd.f32 %v8248_v18, %v11020_v60 }
 0x728   : > { %v8250_v4 = vpop.f32.mrf.mxu1 }
 0x729   : > { %v8251_v17 = vadd.f32 %v8250_v4, %v8249_v32  ;;  %8408 = vmatprep.mubr.bf16.mxu0 %v7317_v5 }
 0x72a   : > { %v8252_v22 = vpop.f32.mrf.mxu1 }
 0x72b   : > { %v7200_v16 = vadd.f32 %v8251_v17, %v11020_v60 }
 0x72c   : > { %v8253_v29 = vpop.f32.mrf.mxu1 }
 0x72d   : > { %v7302_v27 = vpack.c.bf16 %v7200_v16, %v7197_v1  ;;  %v8254_v51 = vadd.f32 %v8253_v29, %v8252_v22 }
 0x72e   : > { %v8255_v59 = vpop.f32.mrf.mxu1 }
 0x72f   : > { %v7318_v2 = vmax.bf16 %v11251_v7, %v7302_v27  ;;  %v7205_v63 = vadd.f32 %v8254_v51, %v11020_v60 }
 0x730   : > { %v8256_v38 = vpop.f32.mrf.mxu1 }
 0x731   : > { %v8257_v40 = vadd.f32 %v8256_v38, %v8255_v59  ;;  %8409 = vmatmul.mubr.bf16.gmra.mxu0 %v7318_v2 }
 0x732   : > { %v8258_v12 = vpop.f32.mrf.mxu1 }
 0x733   : > { %v7208_v61 = vadd.f32 %v8257_v40, %v11020_v60 }
 0x734   : > { %v8259_v50 = vpop.f32.mrf.mxu1 }
 0x735   : > { %v7303_v39 = vpack.c.bf16 %v7208_v61, %v7205_v63  ;;  %v8260_v3 = vadd.f32 %v8259_v50, %v8258_v12 }
 0x736   : > { %v8261_v57 = vpop.f32.mrf.mxu1 }
 0x737   : > { %v7319_v28 = vmax.bf16 %v11251_v7, %v7303_v39  ;;  %v7213_v11 = vadd.f32 %v8260_v3, %v11020_v60 }
 0x738   : > { %v8262_v36 = vpop.f32.mrf.mxu1 }
 0x739   : > { %v8263_v13 = vadd.f32 %v8262_v36, %v8261_v57  ;;  %8412 = vmatprep.mubr.bf16.mxu0 %v7319_v28 }
 0x73a   : > { %v8264_v58 = vpop.f32.mrf.mxu1 }
 0x73b   : > { %v7216_v56 = vadd.f32 %v8263_v13, %v11020_v60 }
 0x73c   : > { %v8265_v20 = vpop.f32.mrf.mxu1 }
 0x73d   : > { %v7304_v23 = vpack.c.bf16 %v7216_v56, %v7213_v11  ;;  %v8266_v48 = vadd.f32 %v8265_v20, %v8264_v58 }
 0x73e   : > { %v8267_v52 = vpop.f32.mrf.mxu1 }
 0x73f   : > { %v7320_v43 = vmax.bf16 %v11251_v7, %v7304_v23  ;;  %v7221_v8 = vadd.f32 %v8266_v48, %v11020_v60 }
 0x740   : > { %v8268_v46 = vpop.f32.mrf.mxu1 }
 0x741   : > { %v8269_v49 = vadd.f32 %v8268_v46, %v8267_v52  ;;  %8413 = vmatmul.mubr.bf16.gmra.mxu0 %v7320_v43 }
 0x742   : > { %v8270_v19 = vpop.f32.mrf.mxu1 }
 0x743   : > { %v7224_v6 = vadd.f32 %v8269_v49, %v11020_v60 }
 0x744   : > { %v8271_v42 = vpop.f32.mrf.mxu1 }
 0x745   : > { %v7305_v37 = vpack.c.bf16 %v7224_v6, %v7221_v8  ;;  %v8272_v9 = vadd.f32 %v8271_v42, %v8270_v19 }
 0x746   : > { %v8273_v34 = vpop.f32.mrf.mxu1 }
 0x747   : > { %v7321_v41 = vmax.bf16 %v11251_v7, %v7305_v37  ;;  %v7229_v54 = vadd.f32 %v8272_v9, %v11020_v60 }
 0x748   : > { %v8274_v10 = vpop.f32.mrf.mxu1 }
 0x749   : > { %v8275_v35 = vadd.f32 %v8274_v10, %v8273_v34  ;;  %8416 = vmatprep.mubr.bf16.mxu0 %v7321_v41 }
 0x74a   : > { %v8276_v33 = vpop.f32.mrf.mxu1 }
 0x74b   : > { %v7232_v25 = vadd.f32 %v8275_v35, %v11020_v60 }
 0x74c   : > { %v8277_v14 = vpop.f32.mrf.mxu1 }
 0x74d   : > { %v7306_v24 = vpack.c.bf16 %v7232_v25, %v7229_v54  ;;  %v8278_v53 = vadd.f32 %v8277_v14, %v8276_v33 }
 0x74e   : > { %v8279_v0 = vpop.f32.mrf.mxu1 }
 0x74f   : > { %v7322_v45 = vmax.bf16 %v11251_v7, %v7306_v24  ;;  %v7237_v55 = vadd.f32 %v8278_v53, %v11020_v60 }
 0x750   : > { %v8280_v44 = vpop.f32.mrf.mxu1 }
 0x751   : > { %v8281_v21 = vadd.f32 %v8280_v44, %v8279_v0  ;;  %8417 = vmatmul.mubr.bf16.gmra.mxu0 %v7322_v45 }
 0x752   : > { %v8282_v30 = vpop.f32.mrf.mxu1 }
 0x753   : > { %v7240_v15 = vadd.f32 %v8281_v21, %v11020_v60 }
 0x754   : > { %v8283_v47 = vpop.f32.mrf.mxu1 }
 0x755   : > { %v7307_v31 = vpack.c.bf16 %v7240_v15, %v7237_v55  ;;  %v8284_v62 = vadd.f32 %v8283_v47, %v8282_v30 }
 0x756   : > { %v8285_v26 = vpop.f32.mrf.mxu1 }
 0x757   : > { %v7323_v32 = vmax.bf16 %v11251_v7, %v7307_v31  ;;  %v7245_v17 = vadd.f32 %v8284_v62, %v11020_v60 }
 0x758   : > { %v8286_v18 = vpop.f32.mrf.mxu1 }
 0x759   : > { %v8287_v5 = vadd.f32 %v8286_v18, %v8285_v26  ;;  %8420 = vmatprep.mubr.bf16.mxu0 %v7323_v32 }
 0x75a   : > { %v8288_v4 = vpop.f32.mrf.mxu1 }
 0x75b   : > { %v7248_v22 = vadd.f32 %v8287_v5, %v11020_v60 }
 0x75c   : > { %v8289_v1 = vpop.f32.mrf.mxu1 }
 0x75d   : > { %v7308_v16 = vpack.c.bf16 %v7248_v22, %v7245_v17  ;;  %v8290_v59 = vadd.f32 %v8289_v1, %v8288_v4  ;;  %v11073_v22 = vld [vmem:[%s11196_s15] ss:$0 sm:$0xff] }
 0x75e   : > { %v8291_v29 = vpop.f32.mrf.mxu1 }
 0x75f   : > { %v7324_v27 = vmax.bf16 %v11251_v7, %v7308_v16  ;;  %v7253_v40 = vadd.f32 %v8290_v59, %v11020_v60 }
 0x760   : > { %v8292_v2 = vpop.f32.mrf.mxu1 }
 0x761   : > { %v8293_v51 = vadd.f32 %v8292_v2, %v8291_v29  ;;  %8421 = vmatmul.mubr.bf16.gmra.mxu0 %v7324_v27 }
 0x762   : > { %v8294_v38 = vpop.f32.mrf.mxu1 }
 0x763   : > { %v7256_v12 = vadd.f32 %v8293_v51, %v11020_v60 }
 0x764   : > { %v8295_v63 = vpop.f32.mrf.mxu1 }
 0x765   : > { %v7309_v61 = vpack.c.bf16 %v7256_v12, %v7253_v40  ;;  %v8296_v39 = vadd.f32 %v8295_v63, %v8294_v38 }
 0x766   : > { %v8297_v50 = vpop.f32.mrf.mxu1 }
 0x767   : > { %v7325_v57 = vmax.bf16 %v11251_v7, %v7309_v61  ;;  %v7261_v13 = vadd.f32 %v8296_v39, %v11020_v60 }
 0x768   : > { %v8298_v3 = vpop.f32.mrf.mxu1 }
 0x769   : > { %v8299_v28 = vadd.f32 %v8298_v3, %v8297_v50  ;;  %8424 = vmatprep.mubr.bf16.mxu0 %v7325_v57 }
 0x76a   : > { %v8300_v36 = vpop.f32.mrf.mxu1 }
 0x76b   : > { %v7264_v58 = vadd.f32 %v8299_v28, %v11020_v60 }
 0x76c   : > { %v8301_v11 = vpop.f32.mrf.mxu1 }
 0x76d   : > { %v7310_v56 = vpack.c.bf16 %v7264_v58, %v7261_v13  ;;  %v8302_v52 = vadd.f32 %v8301_v11, %v8300_v36 }
 0x76e   : > { %v8303_v20 = vpop.f32.mrf.mxu1 }
 0x76f   : > { %v7326_v23 = vmax.bf16 %v11251_v7, %v7310_v56  ;;  %v7269_v49 = vadd.f32 %v8302_v52, %v11020_v60 }
 0x770   : > { %v8304_v43 = vpop.f32.mrf.mxu1 }
 0x771   : > { %v8305_v48 = vadd.f32 %v8304_v43, %v8303_v20  ;;  %8425 = vmatmul.mubr.bf16.gmra.mxu0 %v7326_v23 }
 0x772   : > { %v8306_v46 = vpop.f32.mrf.mxu1 }
 0x773   : > { %v7272_v19 = vadd.f32 %v8305_v48, %v11020_v60 }
 0x774   : > { %v8307_v8 = vpop.f32.mrf.mxu1 }
 0x775   : > { %v7311_v6 = vpack.c.bf16 %v7272_v19, %v7269_v49  ;;  %v8308_v37 = vadd.f32 %v8307_v8, %v8306_v46 }
 0x776   : > { %v8309_v42 = vpop.f32.mrf.mxu1 }
 0x777   : > { %v7327_v34 = vmax.bf16 %v11251_v7, %v7311_v6  ;;  %v7277_v35 = vadd.f32 %v8308_v37, %v11020_v60 }
 0x778   : > { %v8310_v9 = vpop.f32.mrf.mxu1 }
 0x779   : > { %v8311_v41 = vadd.f32 %v8310_v9, %v8309_v42  ;;  %8428 = vmatprep.mubr.bf16.mxu0 %v7327_v34 }
 0x77a   : > { %v8312_v10 = vpop.f32.mrf.mxu1 }
 0x77b   : > { %v7280_v33 = vadd.f32 %v8311_v41, %v11020_v60 }
 0x77c   : > { %v8313_v54 = vpop.f32.mrf.mxu1 }
 0x77d   : > { %v7312_v25 = vpack.c.bf16 %v7280_v33, %v7277_v35  ;;  %v8314_v0 = vadd.f32 %v8313_v54, %v8312_v10 }
 0x77e   : > { %v8315_v14 = vpop.f32.mrf.mxu1 }
 0x77f   : > { %v7328_v24 = vmax.bf16 %v11251_v7, %v7312_v25  ;;  %v7285_v21 = vadd.f32 %v8314_v0, %v11020_v60 }
 0x780   : > { %v8316_v45 = vpop.f32.mrf.mxu1 }
 0x781   : > { %v8317_v53 = vadd.f32 %v8316_v45, %v8315_v14  ;;  %8429 = vmatmul.mubr.bf16.gmra.mxu0 %v7328_v24 }
 0x782   : > { %v8318_v44 = vpop.f32.mrf.mxu1 }
 0x783   : > { %v7288_v30 = vadd.f32 %v8317_v53, %v11020_v60 }
 0x784   : > { %v8319_v55 = vpop.f32.mrf.mxu1 }
 0x785   : > { %v7313_v15 = vpack.c.bf16 %v7288_v30, %v7285_v21  ;;  %v8320_v31 = vadd.f32 %v8319_v55, %v8318_v44 }
 0x786   : > { %v8321_v47 = vpop.f32.mrf.mxu1 }
 0x787   : > { %v7329_v26 = vmax.bf16 %v11251_v7, %v7313_v15  ;;  %v7293_v18 = vadd.f32 %v8320_v31, %v11020_v60 }
 0x788   : > { %v8322_v62 = vpop.f32.mrf.mxu1 }
 0x789   : > { %v8323_v32 = vadd.f32 %v8322_v62, %v8321_v47  ;;  %8432 = vmatprep.mubr.bf16.mxu0 %v7329_v26 }
 0x78b   : > { %v7296_v5 = vadd.f32 %v8323_v32, %v11020_v60 }
 0x78d   : > { %v7314_v4 = vpack.c.bf16 %v7296_v5, %v7293_v18 }
 0x78f   : > { %v7330_v17 = vmax.bf16 %v11251_v7, %v7314_v4 }
 0x791   : > { %8433 = vmatmul.mubr.bf16.gmra.mxu0 %v7330_v17 }
 0x7e1   : > { %v8406_v60 = vpop.f32.mrf.mxu0 }
 0x7e2   : > { %v7445_v7 = vadd.f32 %v8406_v60, %v11073_v22 }
 0x7e3   : > { %v7436_v1 = vpop.f32.mrf.mxu0 }
 0x7e4   : > { %7566 = vst.msk [vmem:[%s11080_s26 + $0x10] sm:$0xff] %vm7563_vm4, %v7445_v7  ;;  %v7437_v16 = vadd.f32 %v11073_v22, %v7436_v1 }
 0x7e5   : > { %v8407_v29 = vpop.f32.mrf.mxu0 }
 0x7e6   : > { %7564 = vst.msk [vmem:[%s11080_s26] sm:$0xff] %vm7563_vm4, %v7437_v16  ;;  %v7448_v27 = vadd.f32 %v8407_v29, %v11073_v22 }
 0x7e7   : > { %v7439_v59 = vpop.f32.mrf.mxu0 }
 0x7e8   : > { %7567 = vst.msk [vmem:[%s11080_s26 + $0x18] sm:$0xff] %vm7563_vm4, %v7448_v27  ;;  %v7440_v2 = vadd.f32 %v11073_v22, %v7439_v59 }
 0x7ea   : > { %7565 = vst.msk [vmem:[%s11080_s26 + $0x8] sm:$0xff] %vm7563_vm4, %v7440_v2 }
 0x7f1   : > { %v8410_v51 = vpop.f32.mrf.mxu0 }
 0x7f2   : > { %v7461_v38 = vadd.f32 %v8410_v51, %v11073_v22 }
 0x7f3   : > { %v7452_v40 = vpop.f32.mrf.mxu0 }
 0x7f4   : > { %7570 = vst.msk [vmem:[%s11080_s26 + $0x30] sm:$0xff] %vm7563_vm4, %v7461_v38  ;;  %v7453_v12 = vadd.f32 %v11073_v22, %v7452_v40 }
 0x7f5   : > { %v8411_v63 = vpop.f32.mrf.mxu0 }
 0x7f6   : > { %7568 = vst.msk [vmem:[%s11080_s26 + $0x20] sm:$0xff] %vm7563_vm4, %v7453_v12  ;;  %v7464_v61 = vadd.f32 %v8411_v63, %v11073_v22 }
 0x7f7   : > { %v7455_v50 = vpop.f32.mrf.mxu0 }
 0x7f8   : > { %7571 = vst.msk [vmem:[%s11080_s26 + $0x38] sm:$0xff] %vm7563_vm4, %v7464_v61  ;;  %v7456_v39 = vadd.f32 %v11073_v22, %v7455_v50 }
 0x7fa   : > { %7569 = vst.msk [vmem:[%s11080_s26 + $0x28] sm:$0xff] %vm7563_vm4, %v7456_v39 }
 0x801   : > { %v8414_v57 = vpop.f32.mrf.mxu0 }
 0x802   : > { %v7477_v3 = vadd.f32 %v8414_v57, %v11073_v22 }
 0x803   : > { %v7468_v28 = vpop.f32.mrf.mxu0 }
 0x804   : > { %7574 = vst.msk [vmem:[%s11080_s26 + $0x50] sm:$0xff] %vm7563_vm4, %v7477_v3  ;;  %v7469_v36 = vadd.f32 %v11073_v22, %v7468_v28 }
 0x805   : > { %v8415_v13 = vpop.f32.mrf.mxu0 }
 0x806   : > { %7572 = vst.msk [vmem:[%s11080_s26 + $0x40] sm:$0xff] %vm7563_vm4, %v7469_v36  ;;  %v7480_v58 = vadd.f32 %v8415_v13, %v11073_v22 }
 0x807   : > { %v7471_v11 = vpop.f32.mrf.mxu0 }
 0x808   : > { %7575 = vst.msk [vmem:[%s11080_s26 + $0x58] sm:$0xff] %vm7563_vm4, %v7480_v58  ;;  %v7472_v56 = vadd.f32 %v11073_v22, %v7471_v11 }
 0x80a   : > { %7573 = vst.msk [vmem:[%s11080_s26 + $0x48] sm:$0xff] %vm7563_vm4, %v7472_v56 }
 0x811   : > { %v8418_v20 = vpop.f32.mrf.mxu0 }
 0x812   : > { %v7493_v23 = vadd.f32 %v8418_v20, %v11073_v22 }
 0x813   : > { %v7484_v52 = vpop.f32.mrf.mxu0 }
 0x814   : > { %7578 = vst.msk [vmem:[%s11080_s26 + $0x70] sm:$0xff] %vm7563_vm4, %v7493_v23  ;;  %v7485_v43 = vadd.f32 %v11073_v22, %v7484_v52 }
 0x815   : > { %v8419_v48 = vpop.f32.mrf.mxu0 }
 0x816   : > { %7576 = vst.msk [vmem:[%s11080_s26 + $0x60] sm:$0xff] %vm7563_vm4, %v7485_v43  ;;  %v7496_v46 = vadd.f32 %v8419_v48, %v11073_v22 }
 0x817   : > { %v7487_v49 = vpop.f32.mrf.mxu0 }
 0x818   : > { %7579 = vst.msk [vmem:[%s11080_s26 + $0x78] sm:$0xff] %vm7563_vm4, %v7496_v46  ;;  %v7488_v19 = vadd.f32 %v11073_v22, %v7487_v49 }
 0x81a   : > { %7577 = vst.msk [vmem:[%s11080_s26 + $0x68] sm:$0xff] %vm7563_vm4, %v7488_v19 }
 0x821   : > { %v8422_v8 = vpop.f32.mrf.mxu0 }
 0x822   : > { %v7509_v6 = vadd.f32 %v8422_v8, %v11073_v22 }
 0x823   : > { %v7500_v42 = vpop.f32.mrf.mxu0 }
 0x824   : > { %7582 = vst.msk [vmem:[%s11080_s26 + $0x90] sm:$0xff] %vm7563_vm4, %v7509_v6  ;;  %v7501_v37 = vadd.f32 %v11073_v22, %v7500_v42 }
 0x825   : > { %v8423_v34 = vpop.f32.mrf.mxu0 }
 0x826   : > { %7580 = vst.msk [vmem:[%s11080_s26 + $0x80] sm:$0xff] %vm7563_vm4, %v7501_v37  ;;  %v7512_v9 = vadd.f32 %v8423_v34, %v11073_v22 }
 0x827   : > { %v7503_v41 = vpop.f32.mrf.mxu0 }
 0x828   : > { %7583 = vst.msk [vmem:[%s11080_s26 + $0x98] sm:$0xff] %vm7563_vm4, %v7512_v9  ;;  %v7504_v10 = vadd.f32 %v11073_v22, %v7503_v41 }
 0x82a   : > { %7581 = vst.msk [vmem:[%s11080_s26 + $0x88] sm:$0xff] %vm7563_vm4, %v7504_v10 }
 0x831   : > { %v8426_v35 = vpop.f32.mrf.mxu0 }
 0x832   : > { %v7525_v33 = vadd.f32 %v8426_v35, %v11073_v22 }
 0x833   : > { %v7516_v54 = vpop.f32.mrf.mxu0 }
 0x834   : > { %7586 = vst.msk [vmem:[%s11080_s26 + $0xb0] sm:$0xff] %vm7563_vm4, %v7525_v33  ;;  %v7517_v25 = vadd.f32 %v11073_v22, %v7516_v54 }
 0x835   : > { %v8427_v14 = vpop.f32.mrf.mxu0 }
 0x836   : > { %7584 = vst.msk [vmem:[%s11080_s26 + $0xa0] sm:$0xff] %vm7563_vm4, %v7517_v25  ;;  %v7528_v24 = vadd.f32 %v8427_v14, %v11073_v22 }
 0x837   : > { %v7519_v0 = vpop.f32.mrf.mxu0 }
 0x838   : > { %7587 = vst.msk [vmem:[%s11080_s26 + $0xb8] sm:$0xff] %vm7563_vm4, %v7528_v24  ;;  %v7520_v45 = vadd.f32 %v11073_v22, %v7519_v0 }
 0x83a   : > { %7585 = vst.msk [vmem:[%s11080_s26 + $0xa8] sm:$0xff] %vm7563_vm4, %v7520_v45 }
 0x841   : > { %v8430_v53 = vpop.f32.mrf.mxu0 }
 0x842   : > { %v7541_v44 = vadd.f32 %v8430_v53, %v11073_v22 }
 0x843   : > { %v7532_v21 = vpop.f32.mrf.mxu0 }
 0x844   : > { %7590 = vst.msk [vmem:[%s11080_s26 + $0xd0] sm:$0xff] %vm7563_vm4, %v7541_v44  ;;  %v7533_v30 = vadd.f32 %v11073_v22, %v7532_v21 }
 0x845   : > { %v8431_v55 = vpop.f32.mrf.mxu0 }
 0x846   : > { %7588 = vst.msk [vmem:[%s11080_s26 + $0xc0] sm:$0xff] %vm7563_vm4, %v7533_v30  ;;  %v7544_v15 = vadd.f32 %v8431_v55, %v11073_v22 }
 0x847   : > { %v7535_v47 = vpop.f32.mrf.mxu0 }
 0x848   : > { %7591 = vst.msk [vmem:[%s11080_s26 + $0xd8] sm:$0xff] %vm7563_vm4, %v7544_v15  ;;  %v7536_v31 = vadd.f32 %v11073_v22, %v7535_v47 }
 0x84a   : > { %7589 = vst.msk [vmem:[%s11080_s26 + $0xc8] sm:$0xff] %vm7563_vm4, %v7536_v31 }
 0x851   : > { %v8434_v26 = vpop.f32.mrf.mxu0 }
 0x852   : > { %v7557_v62 = vadd.f32 %v8434_v26, %v11073_v22 }
 0x853   : > { %v7548_v32 = vpop.f32.mrf.mxu0 }
 0x854   : > { %7594 = vst.msk [vmem:[%s11080_s26 + $0xf0] sm:$0xff] %vm7563_vm4, %v7557_v62  ;;  %v7549_v18 = vadd.f32 %v11073_v22, %v7548_v32 }
 0x855   : > { %v8435_v5 = vpop.f32.mrf.mxu0 }
 0x856   : > { %7592 = vst.msk [vmem:[%s11080_s26 + $0xe0] sm:$0xff] %vm7563_vm4, %v7549_v18  ;;  %v7560_v4 = vadd.f32 %v8435_v5, %v11073_v22 }
 0x857   : > { %v7551_v17 = vpop.f32.mrf.mxu0 }
 0x858   : > { %7595 = vst.msk [vmem:[%s11080_s26 + $0xf8] sm:$0xff] %vm7563_vm4, %v7560_v4  ;;  %v7552_v60 = vadd.f32 %v11073_v22, %v7551_v17 }
 0x85a   : > { %7593 = vst.msk [vmem:[%s11080_s26 + $0xe8] sm:$0xff] %vm7563_vm4, %v7552_v60 }
 0x85b PF: > { %s29_s21 = sadd.s32 1, %s9197_s21  }
 0x85c   : > { %p26_p2 = scmp.ge.s32.totalorder %s29_s21, 4  }
 0x85e   :  { %28 = sbr.rel (!%p26_p2) target bundleno = 5 (0x5), region = 131 }
 0x863   :  { %7618 = vsyncpa [#allocation3], 1 }
 0x864   :  { %7620 = vsyncpa [#allocation3 + $0x1], 1 }
 0x865   :  { %7621 = vsyncpa [#allocation5], 1 }
 0x866   :  { %7622 = vsyncpa [#allocation8], 1 }

</bundles_post_ra>
